<compile_context>
chip_gen: v6e
topology: v6e:2x2x1
jax: 0.10.0
libtpu: 0.0.40
codegen_flags: <defaults>
</compile_context>

<pallas_src>
import functools

import jax
import jax.numpy as jnp
from jax.experimental import pallas as pl
from jax.experimental.pallas import tpu as pltpu


# ---------------------------------------------------------------------------
# Pallas kernels
# ---------------------------------------------------------------------------
def _conv_pool_kernel(x_ref, w_ref, b_ref, o_ref, *, cb):
    """Fused conv (as matmul over 6x6/stride-2 patches) + 2x2 max pool.

    x_ref: (Mo, K)      im2col of 6x6 stride-2 patches, Mo = B*Ho*Wo
    w_ref: (K, 4*cb)    bf16; column block p=2i+j holds the 5x5 taps for pool
                        window pixel (i, j), zero elsewhere
    b_ref: (1, cb)      f32 bias (added after the max; identical across the 4
                        window pixels, so max(conv+b) == max(conv)+b)
    o_ref: (Mo, cb)     pooled output, rows ordered (b, ho, wo), lanes = chans
    """
    x = x_ref[...].astype(w_ref.dtype)
    y = jnp.dot(x, w_ref[...], preferred_element_type=jnp.float32)   # (Mo, 4cb)
    pooled = jnp.maximum(jnp.maximum(y[:, 0 * cb:1 * cb], y[:, 1 * cb:2 * cb]),
                         jnp.maximum(y[:, 2 * cb:3 * cb], y[:, 3 * cb:4 * cb]))
    o_ref[...] = (pooled + b_ref[...]).astype(o_ref.dtype)


def _head_kernel(x_ref, w1_ref, s1_ref, b1_ref, w2_ref, b2_ref, o_ref,
                 acc_ref, *, n_valid):
    """Fused fc1(+scale dequant, bias, ReLU) -> fc2 -> bias -> log-softmax.

    Grid streams fc1 weight column blocks; fc2 is folded into a running
    (M, 128) f32 accumulator so no (M, 1024) intermediate touches HBM.
    """
    j = pl.program_id(0)

    @pl.when(j == 0)
    def _():
        acc_ref[...] = jnp.zeros_like(acc_ref)

    x = x_ref[...].astype(jnp.bfloat16)                 # (M, 3136), resident
    w1 = w1_ref[...].astype(jnp.bfloat16)               # int8 -> bf16 dequant
    h = jnp.dot(x, w1, preferred_element_type=jnp.float32)     # (M, tn)
    h = h * s1_ref[...] + b1_ref[...]                   # per-column int8 scale
    h = jnp.maximum(h, 0.0)                             # ReLU
    # TODO(synk): Dropout(0.5) treated as identity (eval mode); training-mode
    # RNG masking not implemented.
    acc_ref[...] += jnp.dot(h.astype(jnp.bfloat16), w2_ref[...],
                            preferred_element_type=jnp.float32)   # (M, 128)

    @pl.when(j == pl.num_programs(0) - 1)
    def _():
        logits = acc_ref[...] + b2_ref[...]
        col = jax.lax.broadcasted_iota(jnp.int32, logits.shape, 1)
        masked = jnp.where(col < n_valid, logits, -1e30)
        m = jnp.max(masked, axis=-1, keepdims=True)
        s = masked - m
        lse = jnp.log(jnp.sum(jnp.exp(s), axis=-1, keepdims=True))
        o_ref[...] = (s - lse).astype(o_ref.dtype)


# ---------------------------------------------------------------------------
# Pallas wrappers
# ---------------------------------------------------------------------------
def conv_pool(cols, w, b, *, cb):
    """One fused conv+pool layer as a single full-block matmul kernel."""
    M, K = cols.shape
    Kw, N4 = w.shape
    assert K == Kw and N4 == 4 * cb, (cols.shape, w.shape, cb)
    return pl.pallas_call(
        functools.partial(_conv_pool_kernel, cb=cb),
        out_shape=jax.ShapeDtypeStruct((M, cb), jnp.float32),
        grid=(1,),
        in_specs=[
            pl.BlockSpec((M, K), lambda i: (0, 0)),
            pl.BlockSpec((K, N4), lambda i: (0, 0)),
            pl.BlockSpec((1, cb), lambda i: (0, 0)),
        ],
        out_specs=pl.BlockSpec((M, cb), lambda i: (0, 0)),
    )(cols, w, b)


def head_fc(x, w1q, s1, b1, w2, b2, *, n_valid=10, tn=512):
    """Fused fc1(int8)+ReLU+fc2+log-softmax.  Streams fc1 weight in tn-wide
    column blocks on an 'arbitrary' grid axis (fc2 folded per step)."""
    M, K = x.shape
    Kw, N1 = w1q.shape
    assert K == Kw and N1 % tn == 0
    assert w2.shape == (N1, 128)
    steps = N1 // tn
    out = pl.pallas_call(
        functools.partial(_head_kernel, n_valid=n_valid),
        out_shape=jax.ShapeDtypeStruct((M, 128), jnp.float32),
        grid=(steps,),
        in_specs=[
            pl.BlockSpec((M, K), lambda j: (0, 0)),      # x (resident)
            pl.BlockSpec((K, tn), lambda j: (0, j)),     # fc1 weight (int8)
            pl.BlockSpec((1, tn), lambda j: (0, j)),     # fc1 dequant scale
            pl.BlockSpec((1, tn), lambda j: (0, j)),     # fc1 bias
            pl.BlockSpec((tn, 128), lambda j: (j, 0)),   # fc2 weight (bf16)
            pl.BlockSpec((1, 128), lambda j: (0, 0)),    # fc2 bias
        ],
        out_specs=pl.BlockSpec((M, 128), lambda j: (0, 0)),
        scratch_shapes=[pltpu.VMEM((M, 128), jnp.float32)],
        compiler_params=pltpu.CompilerParams(
            dimension_semantics=("arbitrary",)),
    )(x, w1q, s1, b1, w2, b2)
    return out[:, :n_valid]


# ---------------------------------------------------------------------------
# im2col glue for the fused conv+pool layout (stays in XLA at these sizes).
# ---------------------------------------------------------------------------
def _im2col_pool(x_nhwc, pad):
    """6x6 patches at stride 2 from the zero-padded input (covers the whole
    2x2 pool window of 5x5 'same' conv taps).  Rows ordered (b, ho, wo),
    columns ordered ((u*6+v)*C + c)."""
    B, H, W, C = x_nhwc.shape
    Ho, Wo = H // 2, W // 2
    xp = jnp.pad(x_nhwc, ((0, 0), (pad, pad), (pad, pad), (0, 0)))
    patches = []
    for u in range(6):
        for v in range(6):
            patches.append(xp[:, u:u + 2 * Ho:2, v:v + 2 * Wo:2, :])
    p = jnp.stack(patches, axis=3)                  # (B, Ho, Wo, 36, C)
    return p.reshape(B * Ho * Wo, 36 * C)


# ---------------------------------------------------------------------------
# Parameters
# ---------------------------------------------------------------------------
def init_params(key):
    """PyTorch-shaped parameters (Conv2d OIHW, Linear (out, in))."""
    ks = jax.random.split(key, 8)
    s = 0.05
    return {
        "conv1_w": s * jax.random.normal(ks[0], (32, 1, 5, 5), jnp.float32),
        "conv1_b": s * jax.random.normal(ks[1], (32,), jnp.float32),
        "conv2_w": s * jax.random.normal(ks[2], (64, 32, 5, 5), jnp.float32),
        "conv2_b": s * jax.random.normal(ks[3], (64,), jnp.float32),
        "fc1_w": s * jax.random.normal(ks[4], (1024, 3136), jnp.float32),
        "fc1_b": s * jax.random.normal(ks[5], (1024,), jnp.float32),
        "fc2_w": s * jax.random.normal(ks[6], (10, 1024), jnp.float32),
        "fc2_b": s * jax.random.normal(ks[7], (10,), jnp.float32),
    }


def _pad_cols(a, n):
    return jnp.zeros((a.shape[0], n), a.dtype).at[:, :a.shape[1]].set(a)


def _prep_conv_pool_weight(w_oihw, cb):
    """(Cout,Cin,5,5) -> (36*Cin, 4*cb) bf16 for the fused conv+pool matmul.
    Column block p=2i+j holds the 5x5 taps of pool-window pixel (i,j) embedded
    in the shared 6x6 patch; unused taps / padded channels are zero."""
    Cout, Cin, kh, kw = w_oihw.shape
    assert (kh, kw) == (5, 5) and Cout <= cb
    w = jnp.transpose(w_oihw, (2, 3, 1, 0))          # (5, 5, Cin, Cout)
    blocks = []
    for i in range(2):
        for j in range(2):
            wij = jnp.zeros((6, 6, Cin, cb), w.dtype)
            wij = wij.at[i:i + 5, j:j + 5, :, :Cout].set(w)
            blocks.append(wij.reshape(36 * Cin, cb))
    return jnp.concatenate(blocks, axis=1).astype(jnp.bfloat16)


def prepare_params(p):
    """One-time weight layout / dtype prep (kept OUT of the forward hot path):
      conv: OIHW -> fused conv+pool matmul layout, bf16.
      fc1:  rows permuted to NHWC (h,w,c) flatten order, int8-quantized per
            output column with an f32 scale row.
      fc2:  (out,in) -> (in, 128-padded out), bf16.
    """
    # conv1 / conv2 fused conv+pool weights.
    c1w = _prep_conv_pool_weight(p["conv1_w"], cb=32)     # (36,   128) bf16
    c2w = _prep_conv_pool_weight(p["conv2_w"], cb=64)     # (1152, 256) bf16

    # fc1: permute rows so it consumes the (h, w, c) flatten order produced by
    # the conv2+pool kernel (PyTorch uses the NCHW (c, h, w) order).
    w1 = p["fc1_w"].reshape(1024, 64, 7, 7)               # (n, c, h, w)
    w1 = jnp.transpose(w1, (2, 3, 1, 0)).reshape(3136, 1024)   # rows (h,w,c)
    absmax = jnp.max(jnp.abs(w1), axis=0, keepdims=True)       # (1, 1024)
    s1 = jnp.maximum(absmax, 1e-12) / 127.0
    w1_q = jnp.clip(jnp.round(w1 / s1), -127, 127).astype(jnp.int8)

    # fc2: (10, 1024) -> (1024, 128) bf16, output lanes padded to 128.
    w2 = _pad_cols(jnp.transpose(p["fc2_w"]), 128).astype(jnp.bfloat16)

    return {
        "conv1_w": c1w,
        "conv1_b": p["conv1_b"][None, :],                 # (1, 32) f32
        "conv2_w": c2w,
        "conv2_b": p["conv2_b"][None, :],                 # (1, 64) f32
        "fc1_w_q": w1_q,                                  # (3136, 1024) int8
        "fc1_scale": s1.astype(jnp.float32),              # (1, 1024) f32
        "fc1_b": p["fc1_b"][None, :],                     # (1, 1024) f32
        "fc2_w": w2,                                      # (1024, 128) bf16
        "fc2_b": _pad_cols(p["fc2_b"][None, :], 128),     # (1, 128) f32
    }


# ---------------------------------------------------------------------------
# net3 forward
# ---------------------------------------------------------------------------
def net3_forward(prep, x_nchw):
    B = x_nchw.shape[0]
    x = jnp.transpose(x_nchw, (0, 2, 3, 1))                       # (B,28,28,1)

    # conv1 (5x5, pad 2) + maxpool 2x2, fused: (B*14*14, 32)
    cols1 = _im2col_pool(x, pad=2)                                # (B*196, 36)
    x = conv_pool(cols1, prep["conv1_w"], prep["conv1_b"], cb=32)
    x = x.reshape(B, 14, 14, 32)

    # conv2 (5x5, pad 2) + maxpool 2x2, fused: (B*7*7, 64)
    cols2 = _im2col_pool(x, pad=2)                                # (B*49, 1152)
    x = conv_pool(cols2, prep["conv2_w"], prep["conv2_b"], cb=64)

    # Flatten is free: rows already (b, ho, wo), lanes = channels; fc1 weight
    # rows were permuted in prepare_params to match this (h, w, c) order.
    x = x.reshape(B, 7 * 7 * 64)                                  # (B, 3136)

    # fc1(int8) + ReLU + (dropout=identity) + fc2 + bias + log-softmax, fused.
    return head_fc(x, prep["fc1_w_q"], prep["fc1_scale"], prep["fc1_b"],
                   prep["fc2_w"], prep["fc2_b"], n_valid=10)


if __name__ == "__main__":
    key = jax.random.PRNGKey(0)
    pkey, xkey = jax.random.split(key)
    params = init_params(pkey)
    prep = prepare_params(params)     # one-time layout / dtype / quant prep
    # Input spatial size fixed to 28x28 by fc1 (3136 = 64*7*7); batch = 2.
    x = jax.random.normal(xkey, (2, 1, 28, 28), jnp.float32)

    fwd = jax.jit(net3_forward)
    out = jax.block_until_ready(fwd(prep, x))

    assert out.shape == (2, 10), out.shape
    assert bool(jnp.all(jnp.isfinite(out)))
    # log-softmax rows must exponentiate-and-sum to 1.
    assert bool(jnp.allclose(jnp.sum(jnp.exp(out), axis=-1), 1.0, atol=1e-3))
    print("KERNEL_OK")
</pallas_src>

<mosaic_0001>
module attributes {stable_mosaic.version = 11 : i64} {
  func.func @_conv_pool_kernel(%arg0: i32, %arg1: memref<392x36xf32, #tpu.memory_space<vmem>>, %arg2: memref<36x128xbf16, #tpu.memory_space<vmem>>, %arg3: memref<1x32xf32, #tpu.memory_space<vmem>>, %arg4: memref<392x32xf32, #tpu.memory_space<vmem>>) attributes {dimension_semantics = [#tpu.dimension_semantics<arbitrary>], iteration_bounds = array<i64: 1>, scalar_prefetch = 0 : i64, scratch_operands = 0 : i64, tpu.core_type = #tpu.core_type<tc>, window_params = [{pipeline_mode = #tpu.pipeline_mode<synchronous>, transform_indices = @transform_0, window_bounds = array<i64: 392, 36>}, {pipeline_mode = #tpu.pipeline_mode<synchronous>, transform_indices = @transform_1, window_bounds = array<i64: 36, 128>}, {pipeline_mode = #tpu.pipeline_mode<synchronous>, transform_indices = @transform_2, window_bounds = array<i64: 1, 32>}, {pipeline_mode = #tpu.pipeline_mode<synchronous>, transform_indices = @transform_3, window_bounds = array<i64: 392, 32>}]} {
    %c0 = arith.constant 0 : index
    %c0_0 = arith.constant 0 : index
    %0 = vector.load %arg1[%c0, %c0_0] : memref<392x36xf32, #tpu.memory_space<vmem>>, vector<392x36xf32>
    %1 = arith.truncf %0 : vector<392x36xf32> to vector<392x36xbf16>
    %c0_1 = arith.constant 0 : index
    %c0_2 = arith.constant 0 : index
    %2 = vector.load %arg2[%c0_1, %c0_2] : memref<36x128xbf16, #tpu.memory_space<vmem>>, vector<36x128xbf16>
    %cst = arith.constant dense<0.000000e+00> : vector<392x128xf32>
    %3 = tpu.matmul %1, %2, %cst {dimension_numbers = #tpu.dot_dimension_numbers<[1], [0], [0], [1], [0, 0, 1, 1], [], []>} : vector<392x36xbf16>, vector<36x128xbf16>, vector<392x128xf32> -> vector<392x128xf32>
    %4 = vector.extract_strided_slice %3 {offsets = [0, 0], sizes = [392, 32], strides = [1, 1]} : vector<392x128xf32> to vector<392x32xf32>
    %5 = vector.extract_strided_slice %3 {offsets = [0, 32], sizes = [392, 32], strides = [1, 1]} : vector<392x128xf32> to vector<392x32xf32>
    %6 = arith.maximumf %4, %5 : vector<392x32xf32>
    %7 = vector.extract_strided_slice %3 {offsets = [0, 64], sizes = [392, 32], strides = [1, 1]} : vector<392x128xf32> to vector<392x32xf32>
    %8 = vector.extract_strided_slice %3 {offsets = [0, 96], sizes = [392, 32], strides = [1, 1]} : vector<392x128xf32> to vector<392x32xf32>
    %9 = arith.maximumf %7, %8 : vector<392x32xf32>
    %10 = arith.maximumf %6, %9 : vector<392x32xf32>
    %c0_3 = arith.constant 0 : index
    %c0_4 = arith.constant 0 : index
    %11 = vector.load %arg3[%c0_3, %c0_4] : memref<1x32xf32, #tpu.memory_space<vmem>>, vector<1x32xf32>
    %12 = vector.broadcast %11 : vector<1x32xf32> to vector<392x32xf32>
    %13 = arith.addf %10, %12 : vector<392x32xf32>
    %c0_5 = arith.constant 0 : index
    %c0_6 = arith.constant 0 : index
    %14 = vector.load %arg4[%c0_5, %c0_6] : memref<392x32xf32, #tpu.memory_space<vmem>>, vector<392x32xf32>
    tpu.vector_store %arg4[%c0_5, %c0_6], %13 {strides = array<i32>} : memref<392x32xf32, #tpu.memory_space<vmem>>, vector<392x32xf32>,
    return
  }
  func.func @transform_0(%arg0: i32) -> (i32, i32) {
    %c0_i32 = arith.constant 0 : i32
    %c0_i32_0 = arith.constant 0 : i32
    %c0_i32_1 = arith.constant 0 : i32
    return %c0_i32, %c0_i32_0 : i32, i32
  }
  func.func @transform_1(%arg0: i32) -> (i32, i32) {
    %c0_i32 = arith.constant 0 : i32
    %c0_i32_0 = arith.constant 0 : i32
    %c0_i32_1 = arith.constant 0 : i32
    return %c0_i32, %c0_i32_0 : i32, i32
  }
  func.func @transform_2(%arg0: i32) -> (i32, i32) {
    %c0_i32 = arith.constant 0 : i32
    %c0_i32_0 = arith.constant 0 : i32
    %c0_i32_1 = arith.constant 0 : i32
    return %c0_i32, %c0_i32_0 : i32, i32
  }
  func.func @transform_3(%arg0: i32) -> (i32, i32) {
    %c0_i32 = arith.constant 0 : i32
    %c0_i32_0 = arith.constant 0 : i32
    %c0_i32_1 = arith.constant 0 : i32
    return %c0_i32, %c0_i32_0 : i32, i32
  }
}

module attributes {stable_mosaic.version = 11 : i64} {
  func.func @_conv_pool_kernel(%arg0: i32, %arg1: memref<98x1152xf32, #tpu.memory_space<vmem>>, %arg2: memref<1152x256xbf16, #tpu.memory_space<vmem>>, %arg3: memref<1x64xf32, #tpu.memory_space<vmem>>, %arg4: memref<98x64xf32, #tpu.memory_space<vmem>>) attributes {dimension_semantics = [#tpu.dimension_semantics<arbitrary>], iteration_bounds = array<i64: 1>, scalar_prefetch = 0 : i64, scratch_operands = 0 : i64, tpu.core_type = #tpu.core_type<tc>, window_params = [{pipeline_mode = #tpu.pipeline_mode<synchronous>, transform_indices = @transform_0, window_bounds = array<i64: 98, 1152>}, {pipeline_mode = #tpu.pipeline_mode<synchronous>, transform_indices = @transform_1, window_bounds = array<i64: 1152, 256>}, {pipeline_mode = #tpu.pipeline_mode<synchronous>, transform_indices = @transform_2, window_bounds = array<i64: 1, 64>}, {pipeline_mode = #tpu.pipeline_mode<synchronous>, transform_indices = @transform_3, window_bounds = array<i64: 98, 64>}]} {
    %c0 = arith.constant 0 : index
    %c0_0 = arith.constant 0 : index
    %0 = vector.load %arg1[%c0, %c0_0] : memref<98x1152xf32, #tpu.memory_space<vmem>>, vector<98x1152xf32>
    %1 = arith.truncf %0 : vector<98x1152xf32> to vector<98x1152xbf16>
    %c0_1 = arith.constant 0 : index
    %c0_2 = arith.constant 0 : index
    %2 = vector.load %arg2[%c0_1, %c0_2] : memref<1152x256xbf16, #tpu.memory_space<vmem>>, vector<1152x256xbf16>
    %cst = arith.constant dense<0.000000e+00> : vector<98x256xf32>
    %3 = tpu.matmul %1, %2, %cst {dimension_numbers = #tpu.dot_dimension_numbers<[1], [0], [0], [1], [0, 0, 1, 1], [], []>} : vector<98x1152xbf16>, vector<1152x256xbf16>, vector<98x256xf32> -> vector<98x256xf32>
    %4 = vector.extract_strided_slice %3 {offsets = [0, 0], sizes = [98, 64], strides = [1, 1]} : vector<98x256xf32> to vector<98x64xf32>
    %5 = vector.extract_strided_slice %3 {offsets = [0, 64], sizes = [98, 64], strides = [1, 1]} : vector<98x256xf32> to vector<98x64xf32>
    %6 = arith.maximumf %4, %5 : vector<98x64xf32>
    %7 = vector.extract_strided_slice %3 {offsets = [0, 128], sizes = [98, 64], strides = [1, 1]} : vector<98x256xf32> to vector<98x64xf32>
    %8 = vector.extract_strided_slice %3 {offsets = [0, 192], sizes = [98, 64], strides = [1, 1]} : vector<98x256xf32> to vector<98x64xf32>
    %9 = arith.maximumf %7, %8 : vector<98x64xf32>
    %10 = arith.maximumf %6, %9 : vector<98x64xf32>
    %c0_3 = arith.constant 0 : index
    %c0_4 = arith.constant 0 : index
    %11 = vector.load %arg3[%c0_3, %c0_4] : memref<1x64xf32, #tpu.memory_space<vmem>>, vector<1x64xf32>
    %12 = vector.broadcast %11 : vector<1x64xf32> to vector<98x64xf32>
    %13 = arith.addf %10, %12 : vector<98x64xf32>
    %c0_5 = arith.constant 0 : index
    %c0_6 = arith.constant 0 : index
    %14 = vector.load %arg4[%c0_5, %c0_6] : memref<98x64xf32, #tpu.memory_space<vmem>>, vector<98x64xf32>
    tpu.vector_store %arg4[%c0_5, %c0_6], %13 {strides = array<i32>} : memref<98x64xf32, #tpu.memory_space<vmem>>, vector<98x64xf32>,
    return
  }
  func.func @transform_0(%arg0: i32) -> (i32, i32) {
    %c0_i32 = arith.constant 0 : i32
    %c0_i32_0 = arith.constant 0 : i32
    %c0_i32_1 = arith.constant 0 : i32
    return %c0_i32, %c0_i32_0 : i32, i32
  }
  func.func @transform_1(%arg0: i32) -> (i32, i32) {
    %c0_i32 = arith.constant 0 : i32
    %c0_i32_0 = arith.constant 0 : i32
    %c0_i32_1 = arith.constant 0 : i32
    return %c0_i32, %c0_i32_0 : i32, i32
  }
  func.func @transform_2(%arg0: i32) -> (i32, i32) {
    %c0_i32 = arith.constant 0 : i32
    %c0_i32_0 = arith.constant 0 : i32
    %c0_i32_1 = arith.constant 0 : i32
    return %c0_i32, %c0_i32_0 : i32, i32
  }
  func.func @transform_3(%arg0: i32) -> (i32, i32) {
    %c0_i32 = arith.constant 0 : i32
    %c0_i32_0 = arith.constant 0 : i32
    %c0_i32_1 = arith.constant 0 : i32
    return %c0_i32, %c0_i32_0 : i32, i32
  }
}

module attributes {stable_mosaic.version = 11 : i64} {
  func.func @_head_kernel(%arg0: i32, %arg1: memref<2x3136xf32, #tpu.memory_space<vmem>>, %arg2: memref<3136x512xi8, #tpu.memory_space<vmem>>, %arg3: memref<1x512xf32, #tpu.memory_space<vmem>>, %arg4: memref<1x512xf32, #tpu.memory_space<vmem>>, %arg5: memref<512x128xbf16, #tpu.memory_space<vmem>>, %arg6: memref<1x128xf32, #tpu.memory_space<vmem>>, %arg7: memref<2x128xf32, #tpu.memory_space<vmem>>, %arg8: memref<2x128xf32, #tpu.memory_space<vmem>>) attributes {dimension_semantics = [#tpu.dimension_semantics<arbitrary>], iteration_bounds = array<i64: 2>, scalar_prefetch = 0 : i64, scratch_operands = 1 : i64, tpu.core_type = #tpu.core_type<tc>, window_params = [{pipeline_mode = #tpu.pipeline_mode<synchronous>, transform_indices = @transform_0, window_bounds = array<i64: 2, 3136>}, {transform_indices = @transform_1, window_bounds = array<i64: 3136, 512>}, {transform_indices = @transform_2, window_bounds = array<i64: 1, 512>}, {transform_indices = @transform_3, window_bounds = array<i64: 1, 512>}, {transform_indices = @transform_4, window_bounds = array<i64: 512, 128>}, {pipeline_mode = #tpu.pipeline_mode<synchronous>, transform_indices = @transform_5, window_bounds = array<i64: 1, 128>}, {pipeline_mode = #tpu.pipeline_mode<synchronous>, transform_indices = @transform_6, window_bounds = array<i64: 2, 128>}]} {
    %c0_i32 = arith.constant 0 : i32
    %0 = arith.cmpi eq, %arg0, %c0_i32 : i32
    %1 = arith.extui %0 : i1 to i32
    %c0_i32_0 = arith.constant 0 : i32
    %2 = arith.cmpi ne, %1, %c0_i32_0 : i32
    scf.if %2 {
      %cst_17 = arith.constant 0.000000e+00 : f32
      %25 = vector.broadcast %cst_17 : f32 to vector<2x128xf32>
      %c0_18 = arith.constant 0 : index
      %c0_19 = arith.constant 0 : index
      %26 = vector.load %arg8[%c0_18, %c0_19] : memref<2x128xf32, #tpu.memory_space<vmem>>, vector<2x128xf32>
      tpu.vector_store %arg8[%c0_18, %c0_19], %25 {strides = array<i32>} : memref<2x128xf32, #tpu.memory_space<vmem>>, vector<2x128xf32>,
    } else {
    }
    %c0 = arith.constant 0 : index
    %c0_1 = arith.constant 0 : index
    %3 = vector.load %arg1[%c0, %c0_1] : memref<2x3136xf32, #tpu.memory_space<vmem>>, vector<2x3136xf32>
    %4 = arith.truncf %3 : vector<2x3136xf32> to vector<2x3136xbf16>
    %c0_2 = arith.constant 0 : index
    %c0_3 = arith.constant 0 : index
    %5 = vector.load %arg2[%c0_2, %c0_3] : memref<3136x512xi8, #tpu.memory_space<vmem>>, vector<3136x512xi8>
    %6 = arith.sitofp %5 : vector<3136x512xi8> to vector<3136x512xbf16>
    %cst = arith.constant dense<0.000000e+00> : vector<2x512xf32>
    %7 = tpu.matmul %4, %6, %cst {dimension_numbers = #tpu.dot_dimension_numbers<[1], [0], [0], [1], [0, 0, 1, 1], [], []>} : vector<2x3136xbf16>, vector<3136x512xbf16>, vector<2x512xf32> -> vector<2x512xf32>
    %c0_4 = arith.constant 0 : index
    %c0_5 = arith.constant 0 : index
    %8 = vector.load %arg3[%c0_4, %c0_5] : memref<1x512xf32, #tpu.memory_space<vmem>>, vector<1x512xf32>
    %9 = vector.broadcast %8 : vector<1x512xf32> to vector<2x512xf32>
    %10 = arith.mulf %7, %9 : vector<2x512xf32>
    %c0_6 = arith.constant 0 : index
    %c0_7 = arith.constant 0 : index
    %11 = vector.load %arg4[%c0_6, %c0_7] : memref<1x512xf32, #tpu.memory_space<vmem>>, vector<1x512xf32>
    %12 = vector.broadcast %11 : vector<1x512xf32> to vector<2x512xf32>
    %13 = arith.addf %10, %12 : vector<2x512xf32>
    %cst_8 = arith.constant 0.000000e+00 : f32
    %14 = vector.broadcast %cst_8 : f32 to vector<2x512xf32>
    %15 = arith.maximumf %13, %14 : vector<2x512xf32>
    %c0_9 = arith.constant 0 : index
    %c0_10 = arith.constant 0 : index
    %16 = vector.load %arg8[%c0_9, %c0_10] : memref<2x128xf32, #tpu.memory_space<vmem>>, vector<2x128xf32>
    %17 = arith.truncf %15 : vector<2x512xf32> to vector<2x512xbf16>
    %c0_11 = arith.constant 0 : index
    %c0_12 = arith.constant 0 : index
    %18 = vector.load %arg5[%c0_11, %c0_12] : memref<512x128xbf16, #tpu.memory_space<vmem>>, vector<512x128xbf16>
    %cst_13 = arith.constant dense<0.000000e+00> : vector<2x128xf32>
    %19 = tpu.matmul %17, %18, %cst_13 {dimension_numbers = #tpu.dot_dimension_numbers<[1], [0], [0], [1], [0, 0, 1, 1], [], []>} : vector<2x512xbf16>, vector<512x128xbf16>, vector<2x128xf32> -> vector<2x128xf32>
    %20 = arith.addf %16, %19 : vector<2x128xf32>
    %c0_14 = arith.constant 0 : index
    %c0_15 = arith.constant 0 : index
    %21 = vector.load %arg8[%c0_14, %c0_15] : memref<2x128xf32, #tpu.memory_space<vmem>>, vector<2x128xf32>
    tpu.vector_store %arg8[%c0_14, %c0_15], %20 {strides = array<i32>} : memref<2x128xf32, #tpu.memory_space<vmem>>, vector<2x128xf32>,
    %c1_i32 = arith.constant 1 : i32
    %22 = arith.cmpi eq, %arg0, %c1_i32 : i32
    %23 = arith.extui %22 : i1 to i32
    %c0_i32_16 = arith.constant 0 : i32
    %24 = arith.cmpi ne, %23, %c0_i32_16 : i32
    scf.if %24 {
      %c0_17 = arith.constant 0 : index
      %c0_18 = arith.constant 0 : index
      %25 = vector.load %arg8[%c0_17, %c0_18] : memref<2x128xf32, #tpu.memory_space<vmem>>, vector<2x128xf32>
      %c0_19 = arith.constant 0 : index
      %c0_20 = arith.constant 0 : index
      %26 = vector.load %arg6[%c0_19, %c0_20] : memref<1x128xf32, #tpu.memory_space<vmem>>, vector<1x128xf32>
      %27 = vector.broadcast %26 : vector<1x128xf32> to vector<2x128xf32>
      %28 = arith.addf %25, %27 : vector<2x128xf32>
      %29 = tpu.iota {dimensions = array<i32: 1>} : vector<2x128xi32>
      %c10_i32 = arith.constant 10 : i32
      %30 = vector.broadcast %c10_i32 : i32 to vector<2x128xi32>
      %31 = arith.cmpi slt, %29, %30 : vector<2x128xi32>
      %cst_21 = arith.constant -1.000000e+30 : f32
      %32 = vector.broadcast %cst_21 : f32 to vector<2x128xf32>
      %33 = arith.select %31, %28, %32 : vector<2x128xi1>, vector<2x128xf32>
      %cst_22 = arith.constant dense<0xFF800000> : vector<2xf32>
      %34 = vector.multi_reduction <maximumf>, %33, %cst_22 [1] : vector<2x128xf32> to vector<2xf32>
      %35 = vector.shape_cast %34 : vector<2xf32> to vector<2x1xf32>
      %36 = vector.broadcast %35 : vector<2x1xf32> to vector<2x128xf32>
      %37 = arith.subf %33, %36 : vector<2x128xf32>
      %38 = math.exp %37 : vector<2x128xf32>
      %cst_23 = arith.constant dense<0.000000e+00> : vector<2xf32>
      %39 = vector.multi_reduction <add>, %38, %cst_23 [1] : vector<2x128xf32> to vector<2xf32>
      %40 = vector.shape_cast %39 : vector<2xf32> to vector<2x1xf32>
      %41 = math.log %40 : vector<2x1xf32>
      %42 = vector.broadcast %41 : vector<2x1xf32> to vector<2x128xf32>
      %43 = arith.subf %37, %42 : vector<2x128xf32>
      %c0_24 = arith.constant 0 : index
      %c0_25 = arith.constant 0 : index
      %44 = vector.load %arg7[%c0_24, %c0_25] : memref<2x128xf32, #tpu.memory_space<vmem>>, vector<2x128xf32>
      tpu.vector_store %arg7[%c0_24, %c0_25], %43 {strides = array<i32>} : memref<2x128xf32, #tpu.memory_space<vmem>>, vector<2x128xf32>,
    } else {
    }
    return
  }
  func.func @transform_0(%arg0: i32) -> (i32, i32) {
    %c0_i32 = arith.constant 0 : i32
    %c0_i32_0 = arith.constant 0 : i32
    %c0_i32_1 = arith.constant 0 : i32
    return %c0_i32, %c0_i32_0 : i32, i32
  }
  func.func @transform_1(%arg0: i32) -> (i32, i32) {
    %c0_i32 = arith.constant 0 : i32
    %c0_i32_0 = arith.constant 0 : i32
    return %c0_i32, %arg0 : i32, i32
  }
  func.func @transform_2(%arg0: i32) -> (i32, i32) {
    %c0_i32 = arith.constant 0 : i32
    %c0_i32_0 = arith.constant 0 : i32
    return %c0_i32, %arg0 : i32, i32
  }
  func.func @transform_3(%arg0: i32) -> (i32, i32) {
    %c0_i32 = arith.constant 0 : i32
    %c0_i32_0 = arith.constant 0 : i32
    return %c0_i32, %arg0 : i32, i32
  }
  func.func @transform_4(%arg0: i32) -> (i32, i32) {
    %c0_i32 = arith.constant 0 : i32
    %c0_i32_0 = arith.constant 0 : i32
    return %arg0, %c0_i32 : i32, i32
  }
  func.func @transform_5(%arg0: i32) -> (i32, i32) {
    %c0_i32 = arith.constant 0 : i32
    %c0_i32_0 = arith.constant 0 : i32
    %c0_i32_1 = arith.constant 0 : i32
    return %c0_i32, %c0_i32_0 : i32, i32
  }
  func.func @transform_6(%arg0: i32) -> (i32, i32) {
    %c0_i32 = arith.constant 0 : i32
    %c0_i32_0 = arith.constant 0 : i32
    %c0_i32_1 = arith.constant 0 : i32
    return %c0_i32, %c0_i32_0 : i32, i32
  }
}

</mosaic_0001>

<bundles_post_ra>
// kernel: net3_forward.3
= control target key start
LH: loop header
LB: loop body
LE: loop exit
PB: predicated region body
PF: predicated region fallthrough
CT: control target
= control target key end

     0   :  { %vm185_vm0 = vcmask 1041408   ;;  %v1197_v0 = vmov 0.0   ;;  %vm1198_vm1 = vmmov 0   ;;  %vm109_vm2 = vcmask 293888   ;;  %s1199_s4 = smov 96   ;;  %s2198_s1 = inlined_call_operand.vmem [shape: bf16[36,128], index: 1, kind: input, shape index: {}]   ;;  %s2199_s0 = inlined_call_operand.vmem [shape: f32[392,36], index: 0, kind: input, shape index: {}]   ;;  %s2200_s2 = inlined_call_operand.vmem [shape: f32[1,32], index: 2, kind: input, shape index: {}]   ;;  %s2201_s3 = inlined_call_operand.vmem [shape: f32[392,32], index: 3, kind: output, shape index: {}]  }
   0x1   :  { %1078 = vmatprep.subr.bf16.mxu0 %v1197_v0  ;;  %1184 = vmatprep.subr.bf16.mxu1 %v1197_v0  ;;  %v1194_v1 = vld [vmem:[%s2198_s1 + $0x10] ss:$0 sps:$4 sm:$0x33]   ;;  %v1195_v3 = vld [vmem:[%s2198_s1 + $0x8] sm:$0xff]   ;;  %v1196_v4 = vld [vmem:[%s2198_s1] sm:$0xff]   ;;  %vm967_vm3 = vcmask 261120  }
   0x2   :  { %1084 = vmatprep.mubr.msk.bf16.mxu0 %vm1198_vm1, %v1197_v0  ;;  %1136 = vmatprep.mubr.msk.bf16.mxu1 %vm1198_vm1, %v1197_v0  ;;  %v187_v2 = vsel %vm185_vm0, %v1194_v1, 0  ;;  %v15_v5 = vld [vmem:[%s2199_s0] sm:$0xff]  ;;  %v16_v6 = vld [vmem:[%s2199_s0 + $0x8] sm:$0xff]  ;;  %v41_v7 = vld [vmem:[%s2199_s0 + $0xd0] sm:$0xff] }
   0x3   :  { %1079 = vmatpush3.bf16.msra.mxu0 %v187_v2  ;;  %1187 = vmatpush3.bf16.msra.mxu1 %v187_v2  ;;  %v42_v8 = vld [vmem:[%s2199_s0 + $0xd8] sm:$0xff]  ;;  %v64_v9 = vpack.c.bf16 %v16_v6, %v15_v5  ;;  %v17_v11 = vld [vmem:[%s2199_s0 + $0x10] sm:$0xff]  ;;  %v43_v13 = vld [vmem:[%s2199_s0 + $0xe0] sm:$0xff] }
   0x4   :  { %1080 = vmatprep.subr.bf16.mxu0 %v1197_v0  ;;  %1185 = vmatprep.subr.bf16.mxu1 %v1197_v0  ;;  %v77_v10 = vpack.c.bf16 %v42_v8, %v41_v7  ;;  %v18_v12 = vld [vmem:[%s2199_s0 + $0x18] sm:$0xff]  ;;  %v44_v14 = vld [vmem:[%s2199_s0 + $0xe8] sm:$0xff]  ;;  %v19_v17 = vld [vmem:[%s2199_s0 + $0x20] sm:$0xff] }
   0x5   :  { %v65_v15 = vpack.c.bf16 %v18_v12, %v17_v11  ;;  %v78_v16 = vpack.c.bf16 %v44_v14, %v43_v13  ;;  %v20_v18 = vld [vmem:[%s2199_s0 + $0x28] sm:$0xff]  ;;  %v45_v19 = vld [vmem:[%s2199_s0 + $0xf0] sm:$0xff]  ;;  %v46_v20 = vld [vmem:[%s2199_s0 + $0xf8] sm:$0xff] }
   0x6   :  { %v66_v21 = vpack.c.bf16 %v20_v18, %v19_v17  ;;  %v79_v22 = vpack.c.bf16 %v46_v20, %v45_v19  ;;  %v21_v23 = vld [vmem:[%s2199_s0 + $0x30] sm:$0xff]  ;;  %v22_v24 = vld [vmem:[%s2199_s0 + $0x38] sm:$0xff]  ;;  %v47_v25 = vld [vmem:[%s2199_s0 + $0x100] sm:$0xff] }
   0x7   :  { %1081 = vmatpush3.bf16.msra.mxu0 %v1195_v3  ;;  %1188 = vmatpush3.bf16.msra.mxu1 %v1195_v3  ;;  %v48_v26 = vld [vmem:[%s2199_s0 + $0x108] sm:$0xff]  ;;  %v67_v27 = vpack.c.bf16 %v22_v24, %v21_v23  ;;  %v23_v29 = vld [vmem:[%s2199_s0 + $0x40] sm:$0xff]  ;;  %v49_v31 = vld [vmem:[%s2199_s0 + $0x110] sm:$0xff] }
   0x8   :  { %1082 = vmatprep.subr.bf16.mxu0 %v1197_v0  ;;  %1186 = vmatprep.subr.bf16.mxu1 %v1197_v0  ;;  %v80_v28 = vpack.c.bf16 %v48_v26, %v47_v25  ;;  %v24_v30 = vld [vmem:[%s2199_s0 + $0x48] sm:$0xff]  ;;  %v50_v32 = vld [vmem:[%s2199_s0 + $0x118] sm:$0xff]  ;;  %v25_v35 = vld [vmem:[%s2199_s0 + $0x50] sm:$0xff] }
   0x9   :  { %v68_v33 = vpack.c.bf16 %v24_v30, %v23_v29  ;;  %v81_v34 = vpack.c.bf16 %v50_v32, %v49_v31  ;;  %v26_v36 = vld [vmem:[%s2199_s0 + $0x58] sm:$0xff]  ;;  %v51_v37 = vld [vmem:[%s2199_s0 + $0x120] sm:$0xff]  ;;  %v52_v38 = vld [vmem:[%s2199_s0 + $0x128] sm:$0xff] }
   0xa   :  { %v69_v39 = vpack.c.bf16 %v26_v36, %v25_v35  ;;  %v82_v40 = vpack.c.bf16 %v52_v38, %v51_v37  ;;  %v27_v41 = vld [vmem:[%s2199_s0 + $0x60] sm:$0xff]  ;;  %v28_v42 = vld [vmem:[%s2199_s0 + $0x68] sm:$0xff]  ;;  %v53_v43 = vld [vmem:[%s2199_s0 + $0x130] sm:$0xff] }
   0xb   :  { %1083 = vmatpush3.bf16.msra.mxu0 %v1196_v4  ;;  %1189 = vmatpush3.bf16.msra.mxu1 %v1196_v4  ;;  %v54_v44 = vld [vmem:[%s2199_s0 + $0x138] sm:$0xff]  ;;  %v70_v45 = vpack.c.bf16 %v28_v42, %v27_v41  ;;  %v29_v47 = vld [vmem:[%s2199_s0 + $0x70] sm:$0xff]  ;;  %v55_v49 = vld [vmem:[%s2199_s0 + $0x140] sm:$0xff] }
   0xc   :  { %v83_v46 = vpack.c.bf16 %v54_v44, %v53_v43  ;;  %v30_v48 = vld [vmem:[%s2199_s0 + $0x78] sm:$0xff]  ;;  %v56_v50 = vld [vmem:[%s2199_s0 + $0x148] sm:$0xff]  ;;  %v31_v53 = vld [vmem:[%s2199_s0 + $0x80] sm:$0xff] }
   0xd   :  { %v71_v51 = vpack.c.bf16 %v30_v48, %v29_v47  ;;  %v84_v52 = vpack.c.bf16 %v56_v50, %v55_v49  ;;  %v32_v54 = vld [vmem:[%s2199_s0 + $0x88] sm:$0xff]  ;;  %v57_v55 = vld [vmem:[%s2199_s0 + $0x150] sm:$0xff]  ;;  %v58_v56 = vld [vmem:[%s2199_s0 + $0x158] sm:$0xff] }
   0xe   :  { %1085 = vmatmul.mubr.msk.bf16.vlgmr.msra.gmra.mxu0 %vm109_vm2, %v64_v9  ;;  %1137 = vmatmul.mubr.msk.bf16.vlgmr.msra.gmra.mxu1 %vm109_vm2, %v77_v10  ;;  %v72_v57 = vpack.c.bf16 %v32_v54, %v31_v53  ;;  %v85_v58 = vpack.c.bf16 %v58_v56, %v57_v55  ;;  %v33_v59 = vld [vmem:[%s2199_s0 + $0x90] sm:$0xff]  ;;  %v34_v60 = vld [vmem:[%s2199_s0 + $0x98] sm:$0xff]  ;;  %v59_v61 = vld [vmem:[%s2199_s0 + $0x160] sm:$0xff] }
   0xf   :  { %1088 = vmatprep.mubr.msk.bf16.mxu0 %vm1198_vm1, %v1197_v0  ;;  %1140 = vmatprep.mubr.msk.bf16.mxu1 %vm1198_vm1, %v1197_v0  ;;  %v60_v62 = vld [vmem:[%s2199_s0 + $0x168] sm:$0xff]  ;;  %v73_v63 = vpack.c.bf16 %v34_v60, %v33_v59  ;;  %v35_v2 = vld [vmem:[%s2199_s0 + $0xa0] sm:$0xff]  ;;  %v61_v4 = vld [vmem:[%s2199_s0 + $0x170] sm:$0xff] }
  0x10   :  { %v86_v1 = vpack.c.bf16 %v60_v62, %v59_v61  ;;  %v36_v3 = vld [vmem:[%s2199_s0 + $0xa8] sm:$0xff]  ;;  %v62_v5 = vld [vmem:[%s2199_s0 + $0x178] sm:$0xff]  ;;  %v37_v8 = vld [vmem:[%s2199_s0 + $0xb0] sm:$0xff] }
  0x11   :  { %v74_v6 = vpack.c.bf16 %v36_v3, %v35_v2  ;;  %v87_v7 = vpack.c.bf16 %v62_v5, %v61_v4  ;;  %v38_v9 = vld [vmem:[%s2199_s0 + $0xb8] sm:$0xff]  ;;  %v63_v10 = vld [vmem:[%s2199_s0 + $0x180] sm:$0xff]  ;;  %v40_v14 = vld [vmem:[%s2199_s0 + $0xc8] sm:$0xff] }
  0x12   :  { %v75_v11 = vpack.c.bf16 %v38_v9, %v37_v8  ;;  %v88_v12 = vpack.c.bf16 %v63_v10, %v63_v10  ;;  %v39_v13 = vld [vmem:[%s2199_s0 + $0xc0] sm:$0xff]  ;;  %s1200_s0 = smov 64  }
  0x16   :  { %1089 = vmatmul.mubr.msk.bf16.gmra.mxu0 %vm109_vm2, %v65_v15  ;;  %1141 = vmatmul.mubr.msk.bf16.gmra.mxu1 %vm109_vm2, %v78_v16  ;;  %v76_v15 = vpack.c.bf16 %v40_v14, %v39_v13 }
  0x17   :  { %1092 = vmatprep.mubr.msk.bf16.mxu0 %vm1198_vm1, %v1197_v0  ;;  %1144 = vmatprep.mubr.msk.bf16.mxu1 %vm1198_vm1, %v1197_v0 }
  0x1e   :  { %1093 = vmatmul.mubr.msk.bf16.gmra.mxu0 %vm109_vm2, %v66_v21  ;;  %1145 = vmatmul.mubr.msk.bf16.gmra.mxu1 %vm109_vm2, %v79_v22 }
  0x1f   :  { %1096 = vmatprep.mubr.msk.bf16.mxu0 %vm1198_vm1, %v1197_v0  ;;  %1148 = vmatprep.mubr.msk.bf16.mxu1 %vm1198_vm1, %v1197_v0 }
  0x26   :  { %1097 = vmatmul.mubr.msk.bf16.gmra.mxu0 %vm109_vm2, %v67_v27  ;;  %1149 = vmatmul.mubr.msk.bf16.gmra.mxu1 %vm109_vm2, %v80_v28 }
  0x27   :  { %1100 = vmatprep.mubr.msk.bf16.mxu0 %vm1198_vm1, %v1197_v0  ;;  %1152 = vmatprep.mubr.msk.bf16.mxu1 %vm1198_vm1, %v1197_v0 }
  0x2e   :  { %1101 = vmatmul.mubr.msk.bf16.gmra.mxu0 %vm109_vm2, %v68_v33  ;;  %1153 = vmatmul.mubr.msk.bf16.gmra.mxu1 %vm109_vm2, %v81_v34 }
  0x2f   :  { %1104 = vmatprep.mubr.msk.bf16.mxu0 %vm1198_vm1, %v1197_v0  ;;  %1156 = vmatprep.mubr.msk.bf16.mxu1 %vm1198_vm1, %v1197_v0 }
  0x36   :  { %1105 = vmatmul.mubr.msk.bf16.gmra.mxu0 %vm109_vm2, %v69_v39  ;;  %1157 = vmatmul.mubr.msk.bf16.gmra.mxu1 %vm109_vm2, %v82_v40 }
  0x37   :  { %1108 = vmatprep.mubr.msk.bf16.mxu0 %vm1198_vm1, %v1197_v0  ;;  %1160 = vmatprep.mubr.msk.bf16.mxu1 %vm1198_vm1, %v1197_v0 }
  0x3e   :  { %1109 = vmatmul.mubr.msk.bf16.gmra.mxu0 %vm109_vm2, %v70_v45  ;;  %1161 = vmatmul.mubr.msk.bf16.gmra.mxu1 %vm109_vm2, %v83_v46 }
  0x3f   :  { %1112 = vmatprep.mubr.msk.bf16.mxu0 %vm1198_vm1, %v1197_v0  ;;  %1164 = vmatprep.mubr.msk.bf16.mxu1 %vm1198_vm1, %v1197_v0 }
  0x46   :  { %1113 = vmatmul.mubr.msk.bf16.gmra.mxu0 %vm109_vm2, %v71_v51  ;;  %1165 = vmatmul.mubr.msk.bf16.gmra.mxu1 %vm109_vm2, %v84_v52 }
  0x47   :  { %1116 = vmatprep.mubr.msk.bf16.mxu0 %vm1198_vm1, %v1197_v0  ;;  %1168 = vmatprep.mubr.msk.bf16.mxu1 %vm1198_vm1, %v1197_v0 }
  0x4e   :  { %1117 = vmatmul.mubr.msk.bf16.gmra.mxu0 %vm109_vm2, %v72_v57  ;;  %1169 = vmatmul.mubr.msk.bf16.gmra.mxu1 %vm109_vm2, %v85_v58 }
  0x4f   :  { %1120 = vmatprep.mubr.msk.bf16.mxu0 %vm1198_vm1, %v1197_v0  ;;  %1172 = vmatprep.mubr.msk.bf16.mxu1 %vm1198_vm1, %v1197_v0 }
  0x56   :  { %1121 = vmatmul.mubr.msk.bf16.gmra.mxu0 %vm109_vm2, %v73_v63  ;;  %1173 = vmatmul.mubr.msk.bf16.gmra.mxu1 %vm109_vm2, %v86_v1 }
  0x57   :  { %1124 = vmatprep.mubr.msk.bf16.mxu0 %vm1198_vm1, %v1197_v0  ;;  %1176 = vmatprep.mubr.msk.bf16.mxu1 %vm1198_vm1, %v1197_v0 }
  0x5e   :  { %1125 = vmatmul.mubr.msk.bf16.gmra.mxu0 %vm109_vm2, %v74_v6  ;;  %1177 = vmatmul.mubr.msk.bf16.gmra.mxu1 %vm109_vm2, %v87_v7 }
  0x5f   :  { %1128 = vmatprep.mubr.msk.bf16.mxu0 %vm1198_vm1, %v1197_v0  ;;  %1180 = vmatprep.mubr.msk.bf16.mxu1 %vm1198_vm1, %v1197_v0 }
  0x66   :  { %1129 = vmatmul.mubr.msk.bf16.gmra.mxu0 %vm109_vm2, %v75_v11  ;;  %1181 = vmatmul.mubr.msk.bf16.gmra.mxu1 %vm109_vm2, %v88_v12 }
  0x67   :  { %1132 = vmatprep.mubr.msk.bf16.mxu0 %vm1198_vm1, %v1197_v0 }
  0x6e   :  { %1133 = vmatmul.mubr.msk.bf16.gmra.mxu0 %vm109_vm2, %v76_v15 }
  0xce   :  { %v1458_v16 = vpop.f32.mrf.mxu0  ;;  %v1460_v17 = vpop.f32.mrf.mxu1 }
  0xcf   :  { %470 = vrot.lane.b32.xlu0 %v1458_v16, %s1199_s4 }
  0xd0   :  { %v1086_v0 = vpop.f32.mrf.mxu0  ;;  %v1138_v18 = vpop.f32.mrf.mxu1 }
  0xd2   :  { %v1464_v19 = vpop.f32.mrf.mxu0  ;;  %v1466_v20 = vpop.f32.mrf.mxu1 }
  0xd3   :  { %524 = vrot.lane.b32.xlu1 %v1466_v20, %s1199_s4  ;;  %522 = vrot.lane.b32.xlu0 %v1460_v17, %s1199_s4 }
  0xd4   :  { %v1087_v21 = vpop.f32.mrf.mxu0  ;;  %v1139_v22 = vpop.f32.mrf.mxu1 }
  0xd6   :  { %v1472_v23 = vpop.f32.mrf.mxu0  ;;  %v1474_v24 = vpop.f32.mrf.mxu1 }
  0xd7   :  { %472 = vrot.lane.b32.xlu0 %v1464_v19, %s1199_s4  ;;  %474 = vrot.lane.b32.xlu1 %v1472_v23, %s1199_s4 }
  0xd8   :  { %v1090_v25 = vpop.f32.mrf.mxu0  ;;  %v1142_v26 = vpop.f32.mrf.mxu1 }
  0xda   :  { %v1480_v27 = vpop.f32.mrf.mxu0  ;;  %v1482_v28 = vpop.f32.mrf.mxu1 }
  0xdb   :  { %526 = vrot.lane.b32.xlu0 %v1474_v24, %s1199_s4  ;;  %476 = vrot.lane.b32.xlu1 %v1480_v27, %s1199_s4 }
  0xdc   :  { %v1091_v29 = vpop.f32.mrf.mxu0  ;;  %v1143_v30 = vpop.f32.mrf.mxu1 }
  0xde   :  { %v1488_v31 = vpop.f32.mrf.mxu0  ;;  %v1490_v32 = vpop.f32.mrf.mxu1 }
  0xdf   :  { %528 = vrot.lane.b32.xlu1 %v1482_v28, %s1199_s4  ;;  %478 = vrot.lane.b32.xlu0 %v1488_v31, %s1199_s4 }
  0xe0   :  { %v1094_v33 = vpop.f32.mrf.mxu0  ;;  %v1146_v34 = vpop.f32.mrf.mxu1 }
  0xe2   :  { %v1496_v35 = vpop.f32.mrf.mxu0  ;;  %v1498_v36 = vpop.f32.mrf.mxu1 }
  0xe3   :  { %530 = vrot.lane.b32.xlu0 %v1490_v32, %s1199_s4  ;;  %480 = vrot.lane.b32.xlu1 %v1496_v35, %s1199_s4 }
  0xe4   :  { %v1095_v37 = vpop.f32.mrf.mxu0  ;;  %v1147_v38 = vpop.f32.mrf.mxu1 }
  0xe6   :  { %v1504_v39 = vpop.f32.mrf.mxu0  ;;  %v1506_v40 = vpop.f32.mrf.mxu1 }
  0xe7   :  { %532 = vrot.lane.b32.xlu1 %v1498_v36, %s1199_s4  ;;  %482 = vrot.lane.b32.xlu0 %v1504_v39, %s1199_s4 }
  0xe8   :  { %v1098_v41 = vpop.f32.mrf.mxu0  ;;  %v1150_v42 = vpop.f32.mrf.mxu1 }
  0xea   :  { %v1512_v43 = vpop.f32.mrf.mxu0  ;;  %v1514_v44 = vpop.f32.mrf.mxu1 }
  0xeb   :  { %534 = vrot.lane.b32.xlu0 %v1506_v40, %s1199_s4  ;;  %484 = vrot.lane.b32.xlu1 %v1512_v43, %s1199_s4 }
  0xec   :  { %v1099_v45 = vpop.f32.mrf.mxu0  ;;  %v1151_v46 = vpop.f32.mrf.mxu1 }
  0xee   :  { %v1520_v47 = vpop.f32.mrf.mxu0  ;;  %v1522_v48 = vpop.f32.mrf.mxu1 }
  0xef   :  { %536 = vrot.lane.b32.xlu1 %v1514_v44, %s1199_s4  ;;  %486 = vrot.lane.b32.xlu0 %v1520_v47, %s1199_s4 }
  0xf0   :  { %v1102_v49 = vpop.f32.mrf.mxu0  ;;  %v1154_v50 = vpop.f32.mrf.mxu1 }
  0xf2   :  { %v1528_v51 = vpop.f32.mrf.mxu0  ;;  %v1530_v52 = vpop.f32.mrf.mxu1 }
  0xf3   :  { %538 = vrot.lane.b32.xlu0 %v1522_v48, %s1199_s4  ;;  %488 = vrot.lane.b32.xlu1 %v1528_v51, %s1199_s4 }
  0xf4   :  { %v1103_v53 = vpop.f32.mrf.mxu0  ;;  %v1155_v54 = vpop.f32.mrf.mxu1 }
  0xf6   :  { %v1536_v55 = vpop.f32.mrf.mxu0  ;;  %v1538_v56 = vpop.f32.mrf.mxu1 }
  0xf7   :  { %540 = vrot.lane.b32.xlu1 %v1530_v52, %s1199_s4  ;;  %490 = vrot.lane.b32.xlu0 %v1536_v55, %s1199_s4 }
  0xf8   :  { %v1106_v57 = vpop.f32.mrf.mxu0  ;;  %v1158_v58 = vpop.f32.mrf.mxu1 }
  0xfa   :  { %v1544_v59 = vpop.f32.mrf.mxu0  ;;  %v1546_v60 = vpop.f32.mrf.mxu1 }
  0xfb   :  { %542 = vrot.lane.b32.xlu0 %v1538_v56, %s1199_s4  ;;  %492 = vrot.lane.b32.xlu1 %v1544_v59, %s1199_s4 }
  0xfc   :  { %v1107_v61 = vpop.f32.mrf.mxu0  ;;  %v1159_v62 = vpop.f32.mrf.mxu1 }
  0xfe   :  { %v1552_v63 = vpop.f32.mrf.mxu0  ;;  %v1554_v1 = vpop.f32.mrf.mxu1 }
  0xff   :  { %544 = vrot.lane.b32.xlu1 %v1546_v60, %s1199_s4  ;;  %494 = vrot.lane.b32.xlu0 %v1552_v63, %s1199_s4 }
 0x100   :  { %v1110_v2 = vpop.f32.mrf.mxu0  ;;  %v1162_v3 = vpop.f32.mrf.mxu1 }
 0x102   :  { %v1560_v4 = vpop.f32.mrf.mxu0  ;;  %v1562_v5 = vpop.f32.mrf.mxu1 }
 0x103   :  { %546 = vrot.lane.b32.xlu0 %v1554_v1, %s1199_s4  ;;  %496 = vrot.lane.b32.xlu1 %v1560_v4, %s1199_s4 }
 0x104   :  { %v1111_v6 = vpop.f32.mrf.mxu0  ;;  %v1163_v7 = vpop.f32.mrf.mxu1 }
 0x106   :  { %v1568_v8 = vpop.f32.mrf.mxu0  ;;  %v1570_v9 = vpop.f32.mrf.mxu1 }
 0x107   :  { %548 = vrot.lane.b32.xlu1 %v1562_v5, %s1199_s4  ;;  %498 = vrot.lane.b32.xlu0 %v1568_v8, %s1199_s4 }
 0x108   :  { %v1114_v10 = vpop.f32.mrf.mxu0  ;;  %v1166_v11 = vpop.f32.mrf.mxu1 }
 0x10a   :  { %v1576_v12 = vpop.f32.mrf.mxu0  ;;  %v1578_v13 = vpop.f32.mrf.mxu1 }
 0x10b   :  { %550 = vrot.lane.b32.xlu0 %v1570_v9, %s1199_s4  ;;  %500 = vrot.lane.b32.xlu1 %v1576_v12, %s1199_s4 }
 0x10c   :  { %v1115_v14 = vpop.f32.mrf.mxu0  ;;  %v1167_v15 = vpop.f32.mrf.mxu1 }
 0x10e   :  { %v1584_v0 = vpop.f32.mrf.mxu0  ;;  %v1586_v18 = vpop.f32.mrf.mxu1 }
 0x10f   :  { %552 = vrot.lane.b32.xlu1 %v1578_v13, %s1199_s4  ;;  %502 = vrot.lane.b32.xlu0 %v1584_v0, %s1199_s4 }
 0x110   :  { %v1118_v21 = vpop.f32.mrf.mxu0  ;;  %v1170_v22 = vpop.f32.mrf.mxu1 }
 0x112   :  { %v1592_v25 = vpop.f32.mrf.mxu0  ;;  %v1594_v26 = vpop.f32.mrf.mxu1 }
 0x113   :  { %554 = vrot.lane.b32.xlu0 %v1586_v18, %s1199_s4  ;;  %504 = vrot.lane.b32.xlu1 %v1592_v25, %s1199_s4 }
 0x114   :  { %v1119_v29 = vpop.f32.mrf.mxu0  ;;  %v1171_v30 = vpop.f32.mrf.mxu1 }
 0x116   :  { %v1600_v33 = vpop.f32.mrf.mxu0  ;;  %v1602_v34 = vpop.f32.mrf.mxu1 }
 0x117   :  { %556 = vrot.lane.b32.xlu1 %v1594_v26, %s1199_s4  ;;  %506 = vrot.lane.b32.xlu0 %v1600_v33, %s1199_s4 }
 0x118   :  { %v1122_v37 = vpop.f32.mrf.mxu0  ;;  %v1174_v38 = vpop.f32.mrf.mxu1 }
 0x11a   :  { %v1608_v41 = vpop.f32.mrf.mxu0  ;;  %v1610_v42 = vpop.f32.mrf.mxu1 }
 0x11b   :  { %558 = vrot.lane.b32.xlu0 %v1602_v34, %s1199_s4  ;;  %508 = vrot.lane.b32.xlu1 %v1608_v41, %s1199_s4 }
 0x11c   :  { %v1123_v45 = vpop.f32.mrf.mxu0  ;;  %v1175_v46 = vpop.f32.mrf.mxu1 }
 0x11e   :  { %v1616_v49 = vpop.f32.mrf.mxu0  ;;  %v1618_v50 = vpop.f32.mrf.mxu1 }
 0x11f   :  { %560 = vrot.lane.b32.xlu1 %v1610_v42, %s1199_s4  ;;  %510 = vrot.lane.b32.xlu0 %v1616_v49, %s1199_s4 }
 0x120   :  { %v1126_v53 = vpop.f32.mrf.mxu0  ;;  %v1178_v54 = vpop.f32.mrf.mxu1 }
 0x122   :  { %v1624_v57 = vpop.f32.mrf.mxu0  ;;  %v1626_v58 = vpop.f32.mrf.mxu1 }
 0x123   :  { %562 = vrot.lane.b32.xlu0 %v1618_v50, %s1199_s4  ;;  %512 = vrot.lane.b32.xlu1 %v1624_v57, %s1199_s4 }
 0x124   :  { %v1127_v61 = vpop.f32.mrf.mxu0  ;;  %v1179_v62 = vpop.f32.mrf.mxu1 }
 0x126   :  { %v1632_v2 = vpop.f32.mrf.mxu0  ;;  %v1634_v3 = vpop.f32.mrf.mxu1 }
 0x127   :  { %564 = vrot.lane.b32.xlu1 %v1626_v58, %s1199_s4  ;;  %514 = vrot.lane.b32.xlu0 %v1632_v2, %s1199_s4 }
 0x128   :  { %v1130_v6 = vpop.f32.mrf.mxu0  ;;  %v1182_v7 = vpop.f32.mrf.mxu1 }
 0x12a   :  { %v1640_v10 = vpop.f32.mrf.mxu0  ;;  %v418_v11 = vpop.f32.mrf.mxu1 }
 0x12b   :  { %566 = vrot.lane.b32.xlu0 %v1634_v3, %s1199_s4  ;;  %516 = vrot.lane.b32.xlu1 %v1640_v10, %s1199_s4 }
 0x12c   :  { %v1131_v14 = vpop.f32.mrf.mxu0  ;;  %v1183_v15 = vpop.f32.mrf.mxu1 }
 0x12e   :  { %v1646_v21 = vpop.f32.mrf.mxu0 }
 0x12f   :  { %518 = vrot.lane.b32.xlu0 %v1646_v21, %s1199_s4 }
 0x130   :  { %v1134_v22 = vpop.f32.mrf.mxu0 }
 0x132   :  { %v1650_v29 = vpop.f32.mrf.mxu0 }
 0x133   :  { %520 = vrot.lane.b32.xlu1 %v1650_v29, %s1199_s4 }
 0x134   :  { %v1135_v30 = vpop.f32.mrf.mxu0 }
 0x141   :  { %v471_v37 = vpop.permute.xlu0 %470 }
 0x142   :  { %v1655_v38 = vmax.f32 %v1458_v16, %v471_v37 }
 0x144   :  { %715 = vrot.lane.b32.xlu1 %v1655_v38, %s1200_s0 }
 0x145   :  { %v525_v45 = vpop.permute.xlu1 %524  ;;  %v523_v46 = vpop.permute.xlu0 %522 }
 0x146   :  { %v1660_v53 = vmax.f32 %v1460_v17, %v523_v46  ;;  %v1675_v7 = vmax.f32 %v1466_v20, %v525_v45 }
 0x148   :  { %767 = vrot.lane.b32.xlu1 %v1660_v53, %s1200_s0 }
 0x149   :  { %v473_v54 = vpop.permute.xlu0 %472  ;;  %v475_v61 = vpop.permute.xlu1 %474 }
 0x14a   :  { %v1665_v62 = vmax.f32 %v1464_v19, %v473_v54  ;;  %v1668_v16 = vmax.f32 %v1472_v23, %v475_v61 }
 0x14c   :  { %717 = vrot.lane.b32.xlu0 %v1665_v62, %s1200_s0  ;;  %719 = vrot.lane.b32.xlu1 %v1668_v16, %s1200_s0 }
 0x14d   :  { %v527_v6 = vpop.permute.xlu0 %526  ;;  %v477_v17 = vpop.permute.xlu1 %476 }
 0x14e   :  { %v1678_v11 = vmax.f32 %v1474_v24, %v527_v6  ;;  %v1685_v14 = vmax.f32 %v1480_v27, %v477_v17 }
 0x150   :  { %769 = vrot.lane.b32.xlu0 %v1675_v7, %s1200_s0  ;;  %771 = vrot.lane.b32.xlu1 %v1678_v11, %s1200_s0 }
 0x151   :  { %v529_v19 = vpop.permute.xlu1 %528  ;;  %v479_v23 = vpop.permute.xlu0 %478 }
 0x152   :  { %v1688_v15 = vmax.f32 %v1488_v31, %v479_v23  ;;  %v1695_v22 = vmax.f32 %v1482_v28, %v529_v19 }
 0x154   :  { %721 = vrot.lane.b32.xlu0 %v1685_v14, %s1200_s0  ;;  %723 = vrot.lane.b32.xlu1 %v1688_v15, %s1200_s0 }
 0x155   :  { %v531_v20 = vpop.permute.xlu0 %530  ;;  %v481_v24 = vpop.permute.xlu1 %480 }
 0x156   :  { %v1698_v30 = vmax.f32 %v1490_v32, %v531_v20  ;;  %v1705_v37 = vmax.f32 %v1496_v35, %v481_v24 }
 0x158   :  { %773 = vrot.lane.b32.xlu0 %v1695_v22, %s1200_s0  ;;  %775 = vrot.lane.b32.xlu1 %v1698_v30, %s1200_s0 }
 0x159   :  { %v533_v27 = vpop.permute.xlu1 %532  ;;  %v483_v31 = vpop.permute.xlu0 %482 }
 0x15a   :  { %v1708_v45 = vmax.f32 %v1504_v39, %v483_v31  ;;  %v1715_v46 = vmax.f32 %v1498_v36, %v533_v27 }
 0x15c   :  { %725 = vrot.lane.b32.xlu0 %v1705_v37, %s1200_s0  ;;  %727 = vrot.lane.b32.xlu1 %v1708_v45, %s1200_s0 }
 0x15d   :  { %v535_v28 = vpop.permute.xlu0 %534  ;;  %v485_v32 = vpop.permute.xlu1 %484 }
 0x15e   :  { %v1718_v54 = vmax.f32 %v1506_v40, %v535_v28  ;;  %v1725_v61 = vmax.f32 %v1512_v43, %v485_v32 }
 0x160   :  { %777 = vrot.lane.b32.xlu0 %v1715_v46, %s1200_s0  ;;  %779 = vrot.lane.b32.xlu1 %v1718_v54, %s1200_s0 }
 0x161   :  { %v537_v35 = vpop.permute.xlu1 %536  ;;  %v487_v39 = vpop.permute.xlu0 %486 }
 0x162   :  { %v1728_v6 = vmax.f32 %v1520_v47, %v487_v39  ;;  %v1735_v17 = vmax.f32 %v1514_v44, %v537_v35 }
 0x164   :  { %729 = vrot.lane.b32.xlu0 %v1725_v61, %s1200_s0  ;;  %731 = vrot.lane.b32.xlu1 %v1728_v6, %s1200_s0 }
 0x165   :  { %v539_v36 = vpop.permute.xlu0 %538  ;;  %v489_v40 = vpop.permute.xlu1 %488 }
 0x166   :  { %v1738_v19 = vmax.f32 %v1522_v48, %v539_v36  ;;  %v1745_v23 = vmax.f32 %v1528_v51, %v489_v40 }
 0x168   :  { %781 = vrot.lane.b32.xlu0 %v1735_v17, %s1200_s0  ;;  %783 = vrot.lane.b32.xlu1 %v1738_v19, %s1200_s0 }
 0x169   :  { %v541_v43 = vpop.permute.xlu1 %540  ;;  %v491_v47 = vpop.permute.xlu0 %490 }
 0x16a   :  { %v1748_v20 = vmax.f32 %v1536_v55, %v491_v47  ;;  %v1755_v24 = vmax.f32 %v1530_v52, %v541_v43 }
 0x16c   :  { %733 = vrot.lane.b32.xlu0 %v1745_v23, %s1200_s0  ;;  %735 = vrot.lane.b32.xlu1 %v1748_v20, %s1200_s0 }
 0x16d   :  { %v543_v44 = vpop.permute.xlu0 %542  ;;  %v493_v48 = vpop.permute.xlu1 %492 }
 0x16e   :  { %v1758_v27 = vmax.f32 %v1538_v56, %v543_v44  ;;  %v1765_v31 = vmax.f32 %v1544_v59, %v493_v48 }
 0x170   :  { %785 = vrot.lane.b32.xlu0 %v1755_v24, %s1200_s0  ;;  %787 = vrot.lane.b32.xlu1 %v1758_v27, %s1200_s0 }
 0x171   :  { %v545_v51 = vpop.permute.xlu1 %544  ;;  %v495_v55 = vpop.permute.xlu0 %494 }
 0x172   :  { %v1768_v28 = vmax.f32 %v1552_v63, %v495_v55  ;;  %v1775_v32 = vmax.f32 %v1546_v60, %v545_v51 }
 0x174   :  { %737 = vrot.lane.b32.xlu0 %v1765_v31, %s1200_s0  ;;  %739 = vrot.lane.b32.xlu1 %v1768_v28, %s1200_s0 }
 0x175   :  { %v547_v52 = vpop.permute.xlu0 %546  ;;  %v497_v56 = vpop.permute.xlu1 %496 }
 0x176   :  { %v1778_v35 = vmax.f32 %v1554_v1, %v547_v52  ;;  %v1785_v39 = vmax.f32 %v1560_v4, %v497_v56 }
 0x178   :  { %789 = vrot.lane.b32.xlu0 %v1775_v32, %s1200_s0  ;;  %791 = vrot.lane.b32.xlu1 %v1778_v35, %s1200_s0 }
 0x179   :  { %v549_v59 = vpop.permute.xlu1 %548  ;;  %v499_v63 = vpop.permute.xlu0 %498 }
 0x17a   :  { %v1788_v36 = vmax.f32 %v1568_v8, %v499_v63  ;;  %v1795_v40 = vmax.f32 %v1562_v5, %v549_v59 }
 0x17c   :  { %741 = vrot.lane.b32.xlu0 %v1785_v39, %s1200_s0  ;;  %743 = vrot.lane.b32.xlu1 %v1788_v36, %s1200_s0 }
 0x17d   :  { %v551_v60 = vpop.permute.xlu0 %550  ;;  %v501_v1 = vpop.permute.xlu1 %500 }
 0x17e   :  { %v1798_v43 = vmax.f32 %v1570_v9, %v551_v60  ;;  %v1805_v47 = vmax.f32 %v1576_v12, %v501_v1 }
 0x180   :  { %793 = vrot.lane.b32.xlu0 %v1795_v40, %s1200_s0  ;;  %795 = vrot.lane.b32.xlu1 %v1798_v43, %s1200_s0 }
 0x181   :  { %v553_v4 = vpop.permute.xlu1 %552  ;;  %v503_v8 = vpop.permute.xlu0 %502 }
 0x182   :  { %v1808_v44 = vmax.f32 %v1584_v0, %v503_v8  ;;  %v1815_v48 = vmax.f32 %v1578_v13, %v553_v4 }
 0x184   :  { %745 = vrot.lane.b32.xlu0 %v1805_v47, %s1200_s0  ;;  %747 = vrot.lane.b32.xlu1 %v1808_v44, %s1200_s0 }
 0x185   :  { %v555_v5 = vpop.permute.xlu0 %554  ;;  %v505_v9 = vpop.permute.xlu1 %504 }
 0x186   :  { %v1818_v51 = vmax.f32 %v1586_v18, %v555_v5  ;;  %v1825_v55 = vmax.f32 %v1592_v25, %v505_v9 }
 0x188   :  { %797 = vrot.lane.b32.xlu0 %v1815_v48, %s1200_s0  ;;  %799 = vrot.lane.b32.xlu1 %v1818_v51, %s1200_s0 }
 0x189   :  { %v557_v12 = vpop.permute.xlu1 %556  ;;  %v507_v0 = vpop.permute.xlu0 %506 }
 0x18a   :  { %v1828_v52 = vmax.f32 %v1600_v33, %v507_v0  ;;  %v1835_v56 = vmax.f32 %v1594_v26, %v557_v12 }
 0x18c   :  { %749 = vrot.lane.b32.xlu0 %v1825_v55, %s1200_s0  ;;  %751 = vrot.lane.b32.xlu1 %v1828_v52, %s1200_s0 }
 0x18d   :  { %v559_v13 = vpop.permute.xlu0 %558  ;;  %v509_v18 = vpop.permute.xlu1 %508 }
 0x18e   :  { %v1838_v59 = vmax.f32 %v1602_v34, %v559_v13  ;;  %v1845_v63 = vmax.f32 %v1608_v41, %v509_v18 }
 0x190   :  { %801 = vrot.lane.b32.xlu0 %v1835_v56, %s1200_s0  ;;  %803 = vrot.lane.b32.xlu1 %v1838_v59, %s1200_s0 }
 0x191   :  { %v561_v25 = vpop.permute.xlu1 %560  ;;  %v511_v33 = vpop.permute.xlu0 %510 }
 0x192   :  { %v1848_v60 = vmax.f32 %v1616_v49, %v511_v33  ;;  %v1855_v1 = vmax.f32 %v1610_v42, %v561_v25 }
 0x194   :  { %753 = vrot.lane.b32.xlu0 %v1845_v63, %s1200_s0  ;;  %755 = vrot.lane.b32.xlu1 %v1848_v60, %s1200_s0 }
 0x195   :  { %v563_v26 = vpop.permute.xlu0 %562  ;;  %v513_v34 = vpop.permute.xlu1 %512 }
 0x196   :  { %v1858_v4 = vmax.f32 %v1618_v50, %v563_v26  ;;  %v1865_v8 = vmax.f32 %v1624_v57, %v513_v34 }
 0x198   :  { %805 = vrot.lane.b32.xlu0 %v1855_v1, %s1200_s0  ;;  %807 = vrot.lane.b32.xlu1 %v1858_v4, %s1200_s0 }
 0x199   :  { %v565_v41 = vpop.permute.xlu1 %564  ;;  %v515_v49 = vpop.permute.xlu0 %514 }
 0x19a   :  { %v1868_v5 = vmax.f32 %v1632_v2, %v515_v49 }
 0x19c   :  { %757 = vrot.lane.b32.xlu0 %v1865_v8, %s1200_s0  ;;  %759 = vrot.lane.b32.xlu1 %v1868_v5, %s1200_s0 }
 0x19d   :  { %v567_v42 = vpop.permute.xlu0 %566  ;;  %v517_v50 = vpop.permute.xlu1 %516 }
 0x19e   :  { %v1875_v9 = vmax.f32 %v1640_v10, %v517_v50  ;;  %v1885_v0 = vmax.f32 %v1634_v3, %v567_v42  ;;  %v1895_v10 = vmax.f32 %v1626_v58, %v565_v41  ;;  %v1902_v3 = vld [vmem:[%s2200_s2] ss:$0 sm:$0xff] }
 0x1a0   :  { %761 = vrot.lane.b32.xlu0 %v1875_v9, %s1200_s0 }
 0x1a1   :  { %v519_v12 = vpop.permute.xlu0 %518 }
 0x1a2   :  { %v1880_v57 = vmax.f32 %v1646_v21, %v519_v12 }
 0x1a4   :  { %763 = vrot.lane.b32.xlu1 %v1880_v57, %s1200_s0 }
 0x1a5   :  { %v521_v2 = vpop.permute.xlu1 %520 }
 0x1a6   :  { %v1888_v13 = vmax.f32 %v1650_v29, %v521_v2 }
 0x1a8   :  { %811 = vrot.lane.b32.xlu1 %v1885_v0, %s1200_s0  ;;  %765 = vrot.lane.b32.xlu0 %v1888_v13, %s1200_s0 }
 0x1ac   :  { %809 = vrot.lane.b32.xlu0 %v1895_v10, %s1200_s0 }
 0x1b6   :  { %v716_v21 = vpop.permute.xlu1 %715 }
 0x1b7   :  { %v862_v29 = vmax.f32 %v1655_v38, %v716_v21 }
 0x1b9   :  { %v918_v18 = vadd.f32 %v1902_v3, %v862_v29 }
 0x1ba   :  { %v768_v25 = vpop.permute.xlu1 %767 }
 0x1bb   :  { %968 = vst.msk [vmem:[%s2201_s3] sm:$0xff] %vm967_vm3, %v918_v18  ;;  %v888_v58 = vmax.f32 %v1660_v53, %v768_v25 }
 0x1bd   :  { %v944_v33 = vadd.f32 %v1902_v3, %v888_v58 }
 0x1be   :  { %v718_v26 = vpop.permute.xlu0 %717  ;;  %v720_v34 = vpop.permute.xlu1 %719 }
 0x1bf   :  { %994 = vst.msk [vmem:[%s2201_s3 + $0xd0] sm:$0xff] %vm967_vm3, %v944_v33  ;;  %v863_v38 = vmax.f32 %v1665_v62, %v718_v26  ;;  %v864_v41 = vmax.f32 %v1668_v16, %v720_v34 }
 0x1c1   :  { %v919_v49 = vadd.f32 %v1902_v3, %v863_v38  ;;  %v920_v42 = vadd.f32 %v1902_v3, %v864_v41 }
 0x1c2   :  { %v770_v50 = vpop.permute.xlu0 %769  ;;  %v772_v12 = vpop.permute.xlu1 %771 }
 0x1c3   :  { %969 = vst.msk [vmem:[%s2201_s3 + $0x8] sm:$0xff] %vm967_vm3, %v919_v49  ;;  %970 = vst.msk [vmem:[%s2201_s3 + $0x10] sm:$0xff] %vm967_vm3, %v920_v42  ;;  %v889_v53 = vmax.f32 %v1675_v7, %v770_v50  ;;  %v890_v62 = vmax.f32 %v1678_v11, %v772_v12 }
 0x1c5   :  { %v945_v16 = vadd.f32 %v1902_v3, %v889_v53  ;;  %v946_v2 = vadd.f32 %v1902_v3, %v890_v62 }
 0x1c6   :  { %v722_v21 = vpop.permute.xlu0 %721  ;;  %v724_v29 = vpop.permute.xlu1 %723 }
 0x1c7   :  { %995 = vst.msk [vmem:[%s2201_s3 + $0xd8] sm:$0xff] %vm967_vm3, %v945_v16  ;;  %996 = vst.msk [vmem:[%s2201_s3 + $0xe0] sm:$0xff] %vm967_vm3, %v946_v2  ;;  %v865_v7 = vmax.f32 %v1685_v14, %v722_v21  ;;  %v866_v11 = vmax.f32 %v1688_v15, %v724_v29 }
 0x1c9   :  { %v921_v18 = vadd.f32 %v1902_v3, %v865_v7  ;;  %v922_v25 = vadd.f32 %v1902_v3, %v866_v11 }
 0x1ca   :  { %v774_v58 = vpop.permute.xlu0 %773  ;;  %v776_v33 = vpop.permute.xlu1 %775 }
 0x1cb   :  { %971 = vst.msk [vmem:[%s2201_s3 + $0x18] sm:$0xff] %vm967_vm3, %v921_v18  ;;  %972 = vst.msk [vmem:[%s2201_s3 + $0x20] sm:$0xff] %vm967_vm3, %v922_v25  ;;  %v891_v14 = vmax.f32 %v1695_v22, %v774_v58  ;;  %v892_v15 = vmax.f32 %v1698_v30, %v776_v33 }
 0x1cd   :  { %v947_v26 = vadd.f32 %v1902_v3, %v891_v14  ;;  %v948_v34 = vadd.f32 %v1902_v3, %v892_v15 }
 0x1ce   :  { %v726_v38 = vpop.permute.xlu0 %725  ;;  %v728_v41 = vpop.permute.xlu1 %727 }
 0x1cf   :  { %997 = vst.msk [vmem:[%s2201_s3 + $0xe8] sm:$0xff] %vm967_vm3, %v947_v26  ;;  %998 = vst.msk [vmem:[%s2201_s3 + $0xf0] sm:$0xff] %vm967_vm3, %v948_v34  ;;  %v867_v22 = vmax.f32 %v1705_v37, %v726_v38  ;;  %v868_v30 = vmax.f32 %v1708_v45, %v728_v41 }
 0x1d1   :  { %v923_v49 = vadd.f32 %v1902_v3, %v867_v22  ;;  %v924_v42 = vadd.f32 %v1902_v3, %v868_v30 }
 0x1d2   :  { %v778_v50 = vpop.permute.xlu0 %777  ;;  %v780_v12 = vpop.permute.xlu1 %779 }
 0x1d3   :  { %973 = vst.msk [vmem:[%s2201_s3 + $0x28] sm:$0xff] %vm967_vm3, %v923_v49  ;;  %974 = vst.msk [vmem:[%s2201_s3 + $0x30] sm:$0xff] %vm967_vm3, %v924_v42  ;;  %v893_v37 = vmax.f32 %v1715_v46, %v778_v50  ;;  %v894_v45 = vmax.f32 %v1718_v54, %v780_v12 }
 0x1d5   :  { %v949_v53 = vadd.f32 %v1902_v3, %v893_v37  ;;  %v950_v62 = vadd.f32 %v1902_v3, %v894_v45 }
 0x1d6   :  { %v730_v16 = vpop.permute.xlu0 %729  ;;  %v732_v2 = vpop.permute.xlu1 %731 }
 0x1d7   :  { %999 = vst.msk [vmem:[%s2201_s3 + $0xf8] sm:$0xff] %vm967_vm3, %v949_v53  ;;  %1000 = vst.msk [vmem:[%s2201_s3 + $0x100] sm:$0xff] %vm967_vm3, %v950_v62  ;;  %v869_v46 = vmax.f32 %v1725_v61, %v730_v16  ;;  %v870_v54 = vmax.f32 %v1728_v6, %v732_v2 }
 0x1d9   :  { %v925_v21 = vadd.f32 %v1902_v3, %v869_v46  ;;  %v926_v29 = vadd.f32 %v1902_v3, %v870_v54 }
 0x1da   :  { %v782_v7 = vpop.permute.xlu0 %781  ;;  %v784_v11 = vpop.permute.xlu1 %783 }
 0x1db   :  { %975 = vst.msk [vmem:[%s2201_s3 + $0x38] sm:$0xff] %vm967_vm3, %v925_v21  ;;  %976 = vst.msk [vmem:[%s2201_s3 + $0x40] sm:$0xff] %vm967_vm3, %v926_v29  ;;  %v895_v61 = vmax.f32 %v1735_v17, %v782_v7  ;;  %v896_v6 = vmax.f32 %v1738_v19, %v784_v11 }
 0x1dd   :  { %v951_v18 = vadd.f32 %v1902_v3, %v895_v61  ;;  %v952_v25 = vadd.f32 %v1902_v3, %v896_v6 }
 0x1de   :  { %v734_v58 = vpop.permute.xlu0 %733  ;;  %v736_v33 = vpop.permute.xlu1 %735 }
 0x1df   :  { %1001 = vst.msk [vmem:[%s2201_s3 + $0x108] sm:$0xff] %vm967_vm3, %v951_v18  ;;  %1002 = vst.msk [vmem:[%s2201_s3 + $0x110] sm:$0xff] %vm967_vm3, %v952_v25  ;;  %v871_v17 = vmax.f32 %v1745_v23, %v734_v58  ;;  %v872_v19 = vmax.f32 %v1748_v20, %v736_v33 }
 0x1e1   :  { %v927_v14 = vadd.f32 %v1902_v3, %v871_v17  ;;  %v928_v15 = vadd.f32 %v1902_v3, %v872_v19 }
 0x1e2   :  { %v786_v26 = vpop.permute.xlu0 %785  ;;  %v788_v34 = vpop.permute.xlu1 %787 }
 0x1e3   :  { %977 = vst.msk [vmem:[%s2201_s3 + $0x48] sm:$0xff] %vm967_vm3, %v927_v14  ;;  %978 = vst.msk [vmem:[%s2201_s3 + $0x50] sm:$0xff] %vm967_vm3, %v928_v15  ;;  %v897_v23 = vmax.f32 %v1755_v24, %v786_v26  ;;  %v898_v20 = vmax.f32 %v1758_v27, %v788_v34 }
 0x1e5   :  { %v953_v38 = vadd.f32 %v1902_v3, %v897_v23  ;;  %v954_v41 = vadd.f32 %v1902_v3, %v898_v20 }
 0x1e6   :  { %v738_v22 = vpop.permute.xlu0 %737  ;;  %v740_v30 = vpop.permute.xlu1 %739 }
 0x1e7   :  { %1003 = vst.msk [vmem:[%s2201_s3 + $0x118] sm:$0xff] %vm967_vm3, %v953_v38  ;;  %1004 = vst.msk [vmem:[%s2201_s3 + $0x120] sm:$0xff] %vm967_vm3, %v954_v41  ;;  %v873_v24 = vmax.f32 %v1765_v31, %v738_v22  ;;  %v874_v27 = vmax.f32 %v1768_v28, %v740_v30 }
 0x1e9   :  { %v929_v49 = vadd.f32 %v1902_v3, %v873_v24  ;;  %v930_v42 = vadd.f32 %v1902_v3, %v874_v27 }
 0x1ea   :  { %v790_v50 = vpop.permute.xlu0 %789  ;;  %v792_v12 = vpop.permute.xlu1 %791 }
 0x1eb   :  { %979 = vst.msk [vmem:[%s2201_s3 + $0x58] sm:$0xff] %vm967_vm3, %v929_v49  ;;  %980 = vst.msk [vmem:[%s2201_s3 + $0x60] sm:$0xff] %vm967_vm3, %v930_v42  ;;  %v899_v31 = vmax.f32 %v1775_v32, %v790_v50  ;;  %v900_v28 = vmax.f32 %v1778_v35, %v792_v12 }
 0x1ed   :  { %v955_v37 = vadd.f32 %v1902_v3, %v899_v31  ;;  %v956_v45 = vadd.f32 %v1902_v3, %v900_v28 }
 0x1ee   :  { %v742_v53 = vpop.permute.xlu0 %741  ;;  %v744_v62 = vpop.permute.xlu1 %743 }
 0x1ef   :  { %1005 = vst.msk [vmem:[%s2201_s3 + $0x128] sm:$0xff] %vm967_vm3, %v955_v37  ;;  %1006 = vst.msk [vmem:[%s2201_s3 + $0x130] sm:$0xff] %vm967_vm3, %v956_v45  ;;  %v875_v32 = vmax.f32 %v1785_v39, %v742_v53  ;;  %v876_v35 = vmax.f32 %v1788_v36, %v744_v62 }
 0x1f1   :  { %v931_v16 = vadd.f32 %v1902_v3, %v875_v32  ;;  %v932_v2 = vadd.f32 %v1902_v3, %v876_v35 }
 0x1f2   :  { %v794_v46 = vpop.permute.xlu0 %793  ;;  %v796_v54 = vpop.permute.xlu1 %795 }
 0x1f3   :  { %981 = vst.msk [vmem:[%s2201_s3 + $0x68] sm:$0xff] %vm967_vm3, %v931_v16  ;;  %982 = vst.msk [vmem:[%s2201_s3 + $0x70] sm:$0xff] %vm967_vm3, %v932_v2  ;;  %v901_v39 = vmax.f32 %v1795_v40, %v794_v46  ;;  %v902_v36 = vmax.f32 %v1798_v43, %v796_v54 }
 0x1f5   :  { %v957_v21 = vadd.f32 %v1902_v3, %v901_v39  ;;  %v958_v29 = vadd.f32 %v1902_v3, %v902_v36 }
 0x1f6   :  { %v746_v7 = vpop.permute.xlu0 %745  ;;  %v748_v11 = vpop.permute.xlu1 %747 }
 0x1f7   :  { %1007 = vst.msk [vmem:[%s2201_s3 + $0x138] sm:$0xff] %vm967_vm3, %v957_v21  ;;  %1008 = vst.msk [vmem:[%s2201_s3 + $0x140] sm:$0xff] %vm967_vm3, %v958_v29  ;;  %v877_v40 = vmax.f32 %v1805_v47, %v746_v7  ;;  %v878_v43 = vmax.f32 %v1808_v44, %v748_v11 }
 0x1f9   :  { %v933_v61 = vadd.f32 %v1902_v3, %v877_v40  ;;  %v934_v6 = vadd.f32 %v1902_v3, %v878_v43 }
 0x1fa   :  { %v798_v18 = vpop.permute.xlu0 %797  ;;  %v800_v25 = vpop.permute.xlu1 %799 }
 0x1fb   :  { %983 = vst.msk [vmem:[%s2201_s3 + $0x78] sm:$0xff] %vm967_vm3, %v933_v61  ;;  %984 = vst.msk [vmem:[%s2201_s3 + $0x80] sm:$0xff] %vm967_vm3, %v934_v6  ;;  %v903_v47 = vmax.f32 %v1815_v48, %v798_v18  ;;  %v904_v44 = vmax.f32 %v1818_v51, %v800_v25 }
 0x1fd   :  { %v959_v58 = vadd.f32 %v1902_v3, %v903_v47  ;;  %v960_v33 = vadd.f32 %v1902_v3, %v904_v44 }
 0x1fe   :  { %v750_v17 = vpop.permute.xlu0 %749  ;;  %v752_v19 = vpop.permute.xlu1 %751 }
 0x1ff   :  { %1009 = vst.msk [vmem:[%s2201_s3 + $0x148] sm:$0xff] %vm967_vm3, %v959_v58  ;;  %1010 = vst.msk [vmem:[%s2201_s3 + $0x150] sm:$0xff] %vm967_vm3, %v960_v33  ;;  %v879_v48 = vmax.f32 %v1825_v55, %v750_v17  ;;  %v880_v51 = vmax.f32 %v1828_v52, %v752_v19 }
 0x201   :  { %v935_v14 = vadd.f32 %v1902_v3, %v879_v48  ;;  %v936_v15 = vadd.f32 %v1902_v3, %v880_v51 }
 0x202   :  { %v802_v26 = vpop.permute.xlu0 %801  ;;  %v804_v34 = vpop.permute.xlu1 %803 }
 0x203   :  { %985 = vst.msk [vmem:[%s2201_s3 + $0x88] sm:$0xff] %vm967_vm3, %v935_v14  ;;  %986 = vst.msk [vmem:[%s2201_s3 + $0x90] sm:$0xff] %vm967_vm3, %v936_v15  ;;  %v905_v55 = vmax.f32 %v1835_v56, %v802_v26  ;;  %v906_v52 = vmax.f32 %v1838_v59, %v804_v34 }
 0x205   :  { %v961_v23 = vadd.f32 %v1902_v3, %v905_v55  ;;  %v962_v20 = vadd.f32 %v1902_v3, %v906_v52 }
 0x206   :  { %v754_v38 = vpop.permute.xlu0 %753  ;;  %v756_v41 = vpop.permute.xlu1 %755 }
 0x207   :  { %1011 = vst.msk [vmem:[%s2201_s3 + $0x158] sm:$0xff] %vm967_vm3, %v961_v23  ;;  %1012 = vst.msk [vmem:[%s2201_s3 + $0x160] sm:$0xff] %vm967_vm3, %v962_v20  ;;  %v881_v56 = vmax.f32 %v1845_v63, %v754_v38  ;;  %v882_v59 = vmax.f32 %v1848_v60, %v756_v41 }
 0x209   :  { %v937_v22 = vadd.f32 %v1902_v3, %v881_v56  ;;  %v938_v30 = vadd.f32 %v1902_v3, %v882_v59 }
 0x20a   :  { %v806_v24 = vpop.permute.xlu0 %805  ;;  %v808_v27 = vpop.permute.xlu1 %807 }
 0x20b   :  { %987 = vst.msk [vmem:[%s2201_s3 + $0x98] sm:$0xff] %vm967_vm3, %v937_v22  ;;  %988 = vst.msk [vmem:[%s2201_s3 + $0xa0] sm:$0xff] %vm967_vm3, %v938_v30  ;;  %v907_v63 = vmax.f32 %v1855_v1, %v806_v24  ;;  %v908_v60 = vmax.f32 %v1858_v4, %v808_v27 }
 0x20d   :  { %v963_v49 = vadd.f32 %v1902_v3, %v907_v63  ;;  %v964_v42 = vadd.f32 %v1902_v3, %v908_v60 }
 0x20e   :  { %v758_v50 = vpop.permute.xlu0 %757  ;;  %v760_v12 = vpop.permute.xlu1 %759 }
 0x20f   :  { %1013 = vst.msk [vmem:[%s2201_s3 + $0x168] sm:$0xff] %vm967_vm3, %v963_v49  ;;  %1014 = vst.msk [vmem:[%s2201_s3 + $0x170] sm:$0xff] %vm967_vm3, %v964_v42  ;;  %v883_v1 = vmax.f32 %v1865_v8, %v758_v50  ;;  %v884_v4 = vmax.f32 %v1868_v5, %v760_v12 }
 0x211   :  { %v939_v31 = vadd.f32 %v1902_v3, %v883_v1  ;;  %v940_v28 = vadd.f32 %v1902_v3, %v884_v4 }
 0x212   :  { %v762_v37 = vpop.permute.xlu0 %761 }
 0x213   :  { %989 = vst.msk [vmem:[%s2201_s3 + $0xa8] sm:$0xff] %vm967_vm3, %v939_v31  ;;  %990 = vst.msk [vmem:[%s2201_s3 + $0xb0] sm:$0xff] %vm967_vm3, %v940_v28  ;;  %v885_v45 = vmax.f32 %v1875_v9, %v762_v37 }
 0x215   :  { %v941_v8 = vadd.f32 %v1902_v3, %v885_v45 }
 0x216   :  { %v764_v5 = vpop.permute.xlu1 %763 }
 0x217   :  { %991 = vst.msk [vmem:[%s2201_s3 + $0xb8] sm:$0xff] %vm967_vm3, %v941_v8  ;;  %v886_v53 = vmax.f32 %v1880_v57, %v764_v5 }
 0x219   :  { %v942_v62 = vadd.f32 %v1902_v3, %v886_v53 }
 0x21a   :  { %v766_v32 = vpop.permute.xlu0 %765  ;;  %v812_v35 = vpop.permute.xlu1 %811 }
 0x21b   :  { %992 = vst.msk [vmem:[%s2201_s3 + $0xc0] sm:$0xff] %vm967_vm3, %v942_v62  ;;  %v887_v9 = vmax.f32 %v1888_v13, %v766_v32  ;;  %v910_v16 = vmax.f32 %v1885_v0, %v812_v35 }
 0x21d   :  { %v943_v2 = vadd.f32 %v1902_v3, %v887_v9  ;;  %v966_v46 = vadd.f32 %v1902_v3, %v910_v16 }
 0x21e   :  { %v810_v54 = vpop.permute.xlu0 %809 }
 0x21f   :  { %993 = vst.msk [vmem:[%s2201_s3 + $0xc8] sm:$0xff] %vm967_vm3, %v943_v2  ;;  %1016 = vst.msk [vmem:[%s2201_s3 + $0x180] sm:$0xff] %vm967_vm3, %v966_v46  ;;  %v909_v57 = vmax.f32 %v1895_v10, %v810_v54 }
 0x221   :  { %v965_v13 = vadd.f32 %v1902_v3, %v909_v57 }
 0x223   :  { %1015 = vst.msk [vmem:[%s2201_s3 + $0x178] sm:$0xff] %vm967_vm3, %v965_v13 }

// kernel: net3_forward.4
= control target key start
LH: loop header
LB: loop body
LE: loop exit
PB: predicated region body
PF: predicated region fallthrough
CT: control target
= control target key end

     0   :  { %vm1727_vm0 = vcmask 523264   ;;  %vm1740_vm1 = vcmask 517120   ;;  %s3312_s1 = inlined_call_operand.vmem [shape: bf16[1152,256], index: 1, kind: input, shape index: {}]   ;;  %s3313_s0 = inlined_call_operand.vmem [shape: f32[98,1152], index: 0, kind: input, shape index: {}]   ;;  %s3314_s2 = inlined_call_operand.vmem [shape: f32[1,64], index: 2, kind: input, shape index: {}]   ;;  %s3315_s3 = inlined_call_operand.vmem [shape: f32[98,64], index: 3, kind: output, shape index: {}]  }
   0x1   :  { %v1909_v0 = vld [vmem:[%s3312_s1 + $0x74] ss:$8 sps:$4 sm:$0xff]   ;;  %v1913_v2 = vld [vmem:[%s3312_s1 + $0x70] ss:$8 sps:$4 sm:$0xff]   ;;  %v1915_v4 = vld [vmem:[%s3312_s1 + $0x64] ss:$8 sps:$4 sm:$0xff]  }
   0x2   :  { %v1911_v1 = vld [vmem:[%s3312_s1 + $0x174] ss:$8 sps:$4 sm:$0xff]   ;;  %1059 = vmatprep.subr.bf16.mxu0 %v1909_v0  ;;  %v1914_v3 = vld [vmem:[%s3312_s1 + $0x170] ss:$8 sps:$4 sm:$0xff]   ;;  %v1917_v5 = vld [vmem:[%s3312_s1 + $0x164] ss:$8 sps:$4 sm:$0xff]  }
   0x3   :  { %1160 = vmatprep.subr.bf16.mxu1 %v1911_v1  ;;  %1060 = vmatpush1.bf16.msra.mxu0 %v1913_v2  ;;  %v1919_v6 = vld [vmem:[%s3312_s1 + $0x60] ss:$8 sps:$4 sm:$0xff]   ;;  %v1921_v8 = vld [vmem:[%s3312_s1 + $0x54] ss:$8 sps:$4 sm:$0xff]   ;;  %v1925_v10 = vld [vmem:[%s3312_s1 + $0x50] ss:$8 sps:$4 sm:$0xff]  }
   0x4   :  { %1161 = vmatpush1.bf16.msra.mxu1 %v1914_v3  ;;  %1061 = vmatprep.subr.bf16.mxu0 %v1915_v4  ;;  %v1920_v7 = vld [vmem:[%s3312_s1 + $0x160] ss:$8 sps:$4 sm:$0xff]   ;;  %v1923_v9 = vld [vmem:[%s3312_s1 + $0x154] ss:$8 sps:$4 sm:$0xff]   ;;  %v1926_v11 = vld [vmem:[%s3312_s1 + $0x150] ss:$8 sps:$4 sm:$0xff]  }
   0x5   :  { %1162 = vmatprep.subr.bf16.mxu1 %v1917_v5  ;;  %v1927_v12 = vld [vmem:[%s3312_s1 + $0x44] ss:$8 sps:$4 sm:$0xff]   ;;  %v1931_v14 = vld [vmem:[%s3312_s1 + $0x40] ss:$8 sps:$4 sm:$0xff]   ;;  %v1933_v16 = vld [vmem:[%s3312_s1 + $0x34] ss:$8 sps:$4 sm:$0xff]  }
   0x6   :  { %v1929_v13 = vld [vmem:[%s3312_s1 + $0x144] ss:$8 sps:$4 sm:$0xff]   ;;  %v1932_v15 = vld [vmem:[%s3312_s1 + $0x140] ss:$8 sps:$4 sm:$0xff]   ;;  %v1935_v17 = vld [vmem:[%s3312_s1 + $0x134] ss:$8 sps:$4 sm:$0xff]  }
   0x7   :  { %1062 = vmatpush1.bf16.msra.mxu0 %v1919_v6  ;;  %v1937_v18 = vld [vmem:[%s3312_s1 + $0x30] ss:$8 sps:$4 sm:$0xff]   ;;  %v1939_v20 = vld [vmem:[%s3312_s1 + $0x24] ss:$8 sps:$4 sm:$0xff]   ;;  %v1943_v22 = vld [vmem:[%s3312_s1 + $0x20] ss:$8 sps:$4 sm:$0xff]  }
   0x8   :  { %1163 = vmatpush1.bf16.msra.mxu1 %v1920_v7  ;;  %1063 = vmatprep.subr.bf16.mxu0 %v1921_v8  ;;  %v1938_v19 = vld [vmem:[%s3312_s1 + $0x130] ss:$8 sps:$4 sm:$0xff]   ;;  %v1941_v21 = vld [vmem:[%s3312_s1 + $0x124] ss:$8 sps:$4 sm:$0xff]   ;;  %v1944_v23 = vld [vmem:[%s3312_s1 + $0x120] ss:$8 sps:$4 sm:$0xff]  }
   0x9   :  { %1164 = vmatprep.subr.bf16.mxu1 %v1923_v9  ;;  %v1945_v24 = vld [vmem:[%s3312_s1 + $0x14] ss:$8 sps:$4 sm:$0xff]   ;;  %v1949_v26 = vld [vmem:[%s3312_s1 + $0x10] ss:$8 sps:$4 sm:$0xff]   ;;  %v1951_v28 = vld [vmem:[%s3312_s1 + $0x4] ss:$8 sps:$4 sm:$0xff]  }
   0xa   :  { %v1947_v25 = vld [vmem:[%s3312_s1 + $0x114] ss:$8 sps:$4 sm:$0xff]   ;;  %v1950_v27 = vld [vmem:[%s3312_s1 + $0x110] ss:$8 sps:$4 sm:$0xff]   ;;  %v1953_v29 = vld [vmem:[%s3312_s1 + $0x104] ss:$8 sps:$4 sm:$0xff]  }
   0xb   :  { %1064 = vmatpush1.bf16.msra.mxu0 %v1925_v10  ;;  %v1955_v30 = vld [vmem:[%s3312_s1] ss:$8 sps:$4 sm:$0xff]   ;;  %v1957_v32 = vld [vmem:[%s3312_s1 + $0xf4] ss:$8 sps:$4 sm:$0xff]   ;;  %v1961_v34 = vld [vmem:[%s3312_s1 + $0xf0] ss:$8 sps:$4 sm:$0xff]  }
   0xc   :  { %1165 = vmatpush1.bf16.msra.mxu1 %v1926_v11  ;;  %1065 = vmatprep.subr.bf16.mxu0 %v1927_v12  ;;  %v1956_v31 = vld [vmem:[%s3312_s1 + $0x100] ss:$8 sps:$4 sm:$0xff]   ;;  %v1959_v33 = vld [vmem:[%s3312_s1 + $0x1f4] ss:$8 sps:$4 sm:$0xff]   ;;  %v1962_v35 = vld [vmem:[%s3312_s1 + $0x1f0] ss:$8 sps:$4 sm:$0xff]  }
   0xd   :  { %1166 = vmatprep.subr.bf16.mxu1 %v1929_v13  ;;  %v1963_v36 = vld [vmem:[%s3312_s1 + $0xe4] ss:$8 sps:$4 sm:$0xff]   ;;  %v1967_v38 = vld [vmem:[%s3312_s1 + $0xe0] ss:$8 sps:$4 sm:$0xff]   ;;  %v1969_v40 = vld [vmem:[%s3312_s1 + $0xd4] ss:$8 sps:$4 sm:$0xff]  }
   0xe   :  { %v1965_v37 = vld [vmem:[%s3312_s1 + $0x1e4] ss:$8 sps:$4 sm:$0xff]   ;;  %v1968_v39 = vld [vmem:[%s3312_s1 + $0x1e0] ss:$8 sps:$4 sm:$0xff]   ;;  %v1971_v41 = vld [vmem:[%s3312_s1 + $0x1d4] ss:$8 sps:$4 sm:$0xff]  }
   0xf   :  { %1066 = vmatpush1.bf16.msra.mxu0 %v1931_v14  ;;  %v1973_v42 = vld [vmem:[%s3312_s1 + $0xd0] ss:$8 sps:$4 sm:$0xff]   ;;  %v1975_v44 = vld [vmem:[%s3312_s1 + $0xc4] ss:$8 sps:$4 sm:$0xff]   ;;  %v1979_v50 = vld [vmem:[%s3312_s1 + $0xc0] ss:$8 sps:$4 sm:$0xff]  }
  0x10   :  { %1167 = vmatpush1.bf16.msra.mxu1 %v1932_v15  ;;  %1067 = vmatprep.subr.bf16.mxu0 %v1933_v16  ;;  %v1974_v43 = vld [vmem:[%s3312_s1 + $0x1d0] ss:$8 sps:$4 sm:$0xff]   ;;  %v1977_v45 = vld [vmem:[%s3312_s1 + $0x1c4] ss:$8 sps:$4 sm:$0xff]   ;;  %v1980_v51 = vld [vmem:[%s3312_s1 + $0x1c0] ss:$8 sps:$4 sm:$0xff]  }
  0x11   :  { %1168 = vmatprep.subr.bf16.mxu1 %v1935_v17  ;;  %v16_v46 = vld [vmem:[%s3313_s0 + $0x8] sm:$0xff]  ;;  %v25_v47 = vld [vmem:[%s3313_s0 + $0x50] sm:$0xff]  ;;  %v18_v48 = vld [vmem:[%s3313_s0 + $0x18] sm:$0xff] }
  0x12   :  { %v27_v49 = vld [vmem:[%s3313_s0 + $0x60] sm:$0xff]  ;;  %v1981_v52 = vld [vmem:[%s3312_s1 + $0xb4] ss:$8 sps:$4 sm:$0xff]   ;;  %v133_v53 = vpack.c.bf16 %v25_v47, %v16_v46  ;;  %v1985_v56 = vld [vmem:[%s3312_s1 + $0xb0] ss:$8 sps:$4 sm:$0xff]  }
  0x13   :  { %1068 = vmatpush1.bf16.msra.mxu0 %v1937_v18  ;;  %v135_v54 = vpack.c.bf16 %v27_v49, %v18_v48  ;;  %v1983_v55 = vld [vmem:[%s3312_s1 + $0x1b4] ss:$8 sps:$4 sm:$0xff]   ;;  %v1986_v57 = vld [vmem:[%s3312_s1 + $0x1b0] ss:$8 sps:$4 sm:$0xff]   ;;  %v1987_v58 = vld [vmem:[%s3312_s1 + $0xa4] ss:$8 sps:$4 sm:$0xff]  }
  0x14   :  { %1169 = vmatpush1.bf16.msra.mxu1 %v1938_v19  ;;  %1069 = vmatprep.subr.bf16.mxu0 %v1939_v20  ;;  %v1989_v59 = vld [vmem:[%s3312_s1 + $0x1a4] ss:$8 sps:$4 sm:$0xff]   ;;  %v1991_v60 = vld [vmem:[%s3312_s1 + $0xa0] ss:$8 sps:$4 sm:$0xff]   ;;  %v1993_v62 = vld [vmem:[%s3312_s1 + $0x94] ss:$8 sps:$4 sm:$0xff]  }
  0x15   :  { %1170 = vmatprep.subr.bf16.mxu1 %v1941_v21  ;;  %1091 = vmatprep.mubr.bf16.mxu0 %v133_v53  ;;  %v1992_v61 = vld [vmem:[%s3312_s1 + $0x1a0] ss:$8 sps:$4 sm:$0xff]   ;;  %v1995_v63 = vld [vmem:[%s3312_s1 + $0x194] ss:$8 sps:$4 sm:$0xff]   ;;  %v1997_v0 = vld [vmem:[%s3312_s1 + $0x90] ss:$8 sps:$4 sm:$0xff]  }
  0x16   :  { %1192 = vmatprep.mubr.bf16.mxu1 %v135_v54  ;;  %v1998_v1 = vld [vmem:[%s3312_s1 + $0x190] ss:$8 sps:$4 sm:$0xff]   ;;  %v1999_v2 = vld [vmem:[%s3312_s1 + $0x84] ss:$8 sps:$4 sm:$0xff]   ;;  %v2003_v4 = vld [vmem:[%s3312_s1 + $0x80] ss:$8 sps:$4 sm:$0xff]  }
  0x17   :  { %1070 = vmatpush1.bf16.msra.mxu0 %v1943_v22  ;;  %v2001_v3 = vld [vmem:[%s3312_s1 + $0x184] ss:$8 sps:$4 sm:$0xff]   ;;  %v2004_v5 = vld [vmem:[%s3312_s1 + $0x180] ss:$8 sps:$4 sm:$0xff]   ;;  %v17_v8 = vld [vmem:[%s3313_s0 + $0x10] sm:$0xff] }
  0x18   :  { %1171 = vmatpush1.bf16.msra.mxu1 %v1944_v23  ;;  %1071 = vmatprep.subr.bf16.mxu0 %v1945_v24  ;;  %v15_v6 = vld [vmem:[%s3313_s0] sm:$0xff]  ;;  %v24_v7 = vld [vmem:[%s3313_s0 + $0x48] sm:$0xff]  ;;  %v26_v9 = vld [vmem:[%s3313_s0 + $0x58] sm:$0xff] }
  0x19   :  { %1172 = vmatprep.subr.bf16.mxu1 %v1947_v25  ;;  %v2007_v10 = vld [vmem:[%s3312_s1 + $0x274] ss:$8 sps:$4 sm:$0xff]   ;;  %v2005_v12 = vld [vmem:[%s3312_s1 + $0x270] ss:$8 sps:$4 sm:$0xff]   ;;  %v132_v15 = vpack.c.bf16 %v24_v7, %v15_v6  ;;  %v134_v16 = vpack.c.bf16 %v26_v9, %v17_v8  ;;  %v43_v17 = vld [vmem:[%s3313_s0 + $0xe0] sm:$0xff] }
  0x1a   :  { %v2010_v11 = vld [vmem:[%s3312_s1 + $0x374] ss:$8 sps:$4 sm:$0xff]   ;;  %v2008_v13 = vld [vmem:[%s3312_s1 + $0x370] ss:$8 sps:$4 sm:$0xff]   ;;  %v36_v18 = vld [vmem:[%s3313_s0 + $0xa8] sm:$0xff] }
  0x1b   :  { %1072 = vmatpush1.bf16.msra.mxu0 %v1949_v26  ;;  %v34_v14 = vld [vmem:[%s3313_s0 + $0x98] sm:$0xff]  ;;  %v45_v19 = vld [vmem:[%s3313_s0 + $0xf0] sm:$0xff]  ;;  %v2013_v20 = vld [vmem:[%s3312_s1 + $0x264] ss:$8 sps:$4 sm:$0xff]  }
  0x1c   :  { %1173 = vmatpush1.bf16.msra.mxu1 %v1950_v27  ;;  %1073 = vmatprep.subr.bf16.mxu0 %v1951_v28  ;;  %v2016_v21 = vld [vmem:[%s3312_s1 + $0x364] ss:$8 sps:$4 sm:$0xff]   ;;  %v2011_v22 = vld [vmem:[%s3312_s1 + $0x260] ss:$8 sps:$4 sm:$0xff]   ;;  %v142_v24 = vpack.c.bf16 %v43_v17, %v34_v14  ;;  %v144_v25 = vpack.c.bf16 %v45_v19, %v36_v18  ;;  %v33_v26 = vld [vmem:[%s3313_s0 + $0x90] sm:$0xff] }
  0x1d   :  { %1174 = vmatprep.subr.bf16.mxu1 %v1953_v29  ;;  %v2014_v23 = vld [vmem:[%s3312_s1 + $0x360] ss:$8 sps:$4 sm:$0xff]   ;;  %v42_v27 = vld [vmem:[%s3313_s0 + $0xd8] sm:$0xff]  ;;  %v53_v48 = vld [vmem:[%s3313_s0 + $0x130] sm:$0xff] }
  0x1e   :  { %v35_v28 = vld [vmem:[%s3313_s0 + $0xa0] sm:$0xff]  ;;  %v44_v29 = vld [vmem:[%s3313_s0 + $0xe8] sm:$0xff]  ;;  %v62_v49 = vld [vmem:[%s3313_s0 + $0x178] sm:$0xff] }
  0x1f   :  { %1074 = vmatpush1.bf16.msra.mxu0 %v1955_v30  ;;  %v2019_v30 = vld [vmem:[%s3312_s1 + $0x254] ss:$8 sps:$4 sm:$0xff]   ;;  %v51_v46 = vld [vmem:[%s3313_s0 + $0x120] sm:$0xff]  ;;  %v60_v47 = vld [vmem:[%s3313_s0 + $0x168] sm:$0xff] }
  0x20   :  { %1175 = vmatpush1.bf16.msra.mxu1 %v1956_v31  ;;  %1075 = vmatprep.subr.bf16.mxu0 %v1957_v32  ;;  %v2022_v31 = vld [vmem:[%s3312_s1 + $0x354] ss:$8 sps:$4 sm:$0xff]   ;;  %v2017_v32 = vld [vmem:[%s3312_s1 + $0x250] ss:$8 sps:$4 sm:$0xff]   ;;  %v2052_v17 = vld [vmem:[%s3312_s1 + $0x304] ss:$8 sps:$4 sm:$0xff]  }
  0x21   :  { %1176 = vmatprep.subr.bf16.mxu1 %v1959_v33  ;;  %v2020_v33 = vld [vmem:[%s3312_s1 + $0x350] ss:$8 sps:$4 sm:$0xff]   ;;  %v2043_v6 = vld [vmem:[%s3312_s1 + $0x214] ss:$8 sps:$4 sm:$0xff]   ;;  %v2047_v18 = vld [vmem:[%s3312_s1 + $0x200] ss:$8 sps:$4 sm:$0xff]  }
  0x22   :  { %v2032_v53 = vld [vmem:[%s3312_s1 + $0x330] ss:$8 sps:$4 sm:$0xff]   ;;  %v2046_v7 = vld [vmem:[%s3312_s1 + $0x314] ss:$8 sps:$4 sm:$0xff]   ;;  %v2050_v19 = vld [vmem:[%s3312_s1 + $0x300] ss:$8 sps:$4 sm:$0xff]  }
  0x23   :  { %1076 = vmatpush2.bf16.msra.mxu0 %v1961_v34  ;;  %v52_v34 = vld [vmem:[%s3313_s0 + $0x128] sm:$0xff]  ;;  %v70_v54 = vld [vmem:[%s3313_s0 + $0x1b8] sm:$0xff] }
  0x24   :  { %1177 = vmatpush2.bf16.msra.mxu1 %v1962_v35  ;;  %1077 = vmatprep.subr.bf16.mxu0 %v1963_v36  ;;  %v141_v35 = vpack.c.bf16 %v42_v27, %v33_v26  ;;  %v143_v36 = vpack.c.bf16 %v44_v29, %v35_v28  ;;  %v2041_v8 = vld [vmem:[%s3312_s1 + $0x210] ss:$8 sps:$4 sm:$0xff]   ;;  %v2058_v27 = vld [vmem:[%s3312_s1 + $0x3f4] ss:$8 sps:$4 sm:$0xff]   ;;  %v115_v29 = vld [vmem:[%s3313_s0 + $0x320] sm:$0xff] }
  0x25   :  { %1178 = vmatprep.subr.bf16.mxu1 %v1965_v37  ;;  %v61_v37 = vld [vmem:[%s3313_s0 + $0x170] sm:$0xff]  ;;  %v90_v14 = vld [vmem:[%s3313_s0 + $0x258] sm:$0xff] }
  0x26   :  { %v2044_v9 = vld [vmem:[%s3312_s1 + $0x310] ss:$8 sps:$4 sm:$0xff]  }
  0x27   :  { %1078 = vmatpush2.bf16.msra.mxu0 %v1967_v38  ;;  %v54_v38 = vld [vmem:[%s3313_s0 + $0x138] sm:$0xff] }
  0x28   :  { %1179 = vmatpush2.bf16.msra.mxu1 %v1968_v39  ;;  %1079 = vmatprep.subr.bf16.mxu0 %v1969_v40  ;;  %v63_v39 = vld [vmem:[%s3313_s0 + $0x180] sm:$0xff]  ;;  %v98_v26 = vld [vmem:[%s3313_s0 + $0x298] sm:$0xff] }
  0x29   :  { %1180 = vmatprep.subr.bf16.mxu1 %v1971_v41  ;;  %v2025_v40 = vld [vmem:[%s3312_s1 + $0x244] ss:$8 sps:$4 sm:$0xff]   ;;  %v106_v28 = vld [vmem:[%s3313_s0 + $0x2d8] sm:$0xff] }
  0x2a   :  { %v2028_v41 = vld [vmem:[%s3312_s1 + $0x344] ss:$8 sps:$4 sm:$0xff]  }
  0x2b   :  { %1080 = vmatpush2.bf16.msra.mxu0 %v1973_v42  ;;  %v2023_v42 = vld [vmem:[%s3312_s1 + $0x240] ss:$8 sps:$4 sm:$0xff]  }
  0x2c   :  { %1181 = vmatpush2.bf16.msra.mxu1 %v1974_v43  ;;  %1081 = vmatprep.subr.bf16.mxu0 %v1975_v44  ;;  %v2026_v43 = vld [vmem:[%s3312_s1 + $0x340] ss:$8 sps:$4 sm:$0xff]   ;;  %v151_v44 = vpack.c.bf16 %v61_v37, %v52_v34  ;;  %v2053_v34 = vld [vmem:[%s3312_s1 + $0x2f0] ss:$8 sps:$4 sm:$0xff]   ;;  %v2064_v37 = vld [vmem:[%s3312_s1 + $0x3e4] ss:$8 sps:$4 sm:$0xff]  }
  0x2d   :  { %1182 = vmatprep.subr.bf16.mxu1 %v1977_v45  ;;  %v153_v45 = vpack.c.bf16 %v63_v39, %v54_v38  ;;  %v2059_v38 = vld [vmem:[%s3312_s1 + $0x2e0] ss:$8 sps:$4 sm:$0xff]  }
  0x2e   :  { %v2062_v39 = vld [vmem:[%s3312_s1 + $0x3e0] ss:$8 sps:$4 sm:$0xff]  }
  0x2f   :  { %1082 = vmatpush2.bf16.msra.mxu0 %v1979_v50  ;;  %v2031_v50 = vld [vmem:[%s3312_s1 + $0x234] ss:$8 sps:$4 sm:$0xff]  }
  0x30   :  { %1183 = vmatpush2.bf16.msra.mxu1 %v1980_v51  ;;  %1083 = vmatprep.subr.bf16.mxu0 %v1981_v52  ;;  %v2034_v51 = vld [vmem:[%s3312_s1 + $0x334] ss:$8 sps:$4 sm:$0xff]   ;;  %v2029_v52 = vld [vmem:[%s3312_s1 + $0x230] ss:$8 sps:$4 sm:$0xff]  }
  0x31   :  { %1184 = vmatprep.subr.bf16.mxu1 %v1983_v55  ;;  %v150_v55 = vpack.c.bf16 %v60_v47, %v51_v46  ;;  %v116_v46 = vld [vmem:[%s3313_s0 + $0x328] sm:$0xff]  ;;  %v2070_v47 = vld [vmem:[%s3312_s1 + $0x3d4] ss:$8 sps:$4 sm:$0xff]  }
  0x33   :  { %1084 = vmatpush2.bf16.msra.mxu0 %v1985_v56  ;;  %v152_v56 = vpack.c.bf16 %v62_v49, %v53_v48 }
  0x34   :  { %1185 = vmatpush2.bf16.msra.mxu1 %v1986_v57  ;;  %1085 = vmatprep.subr.bf16.mxu0 %v1987_v58  ;;  %v79_v57 = vld [vmem:[%s3313_s0 + $0x200] sm:$0xff]  ;;  %v72_v58 = vld [vmem:[%s3313_s0 + $0x1c8] sm:$0xff] }
  0x35   :  { %1186 = vmatprep.subr.bf16.mxu1 %v1989_v59  ;;  %v81_v59 = vld [vmem:[%s3313_s0 + $0x210] sm:$0xff] }
  0x37   :  { %1086 = vmatpush2.bf16.msra.mxu0 %v1991_v60  ;;  %v2037_v60 = vld [vmem:[%s3312_s1 + $0x224] ss:$8 sps:$4 sm:$0xff]  }
  0x38   :  { %1187 = vmatpush2.bf16.msra.mxu1 %v1992_v61  ;;  %1087 = vmatprep.subr.bf16.mxu0 %v1993_v62  ;;  %v2040_v61 = vld [vmem:[%s3312_s1 + $0x324] ss:$8 sps:$4 sm:$0xff]   ;;  %v2035_v62 = vld [vmem:[%s3312_s1 + $0x220] ss:$8 sps:$4 sm:$0xff]  }
  0x39   :  { %1188 = vmatprep.subr.bf16.mxu1 %v1995_v63  ;;  %v2038_v63 = vld [vmem:[%s3312_s1 + $0x320] ss:$8 sps:$4 sm:$0xff]  }
  0x3b   :  { %1088 = vmatpush2.bf16.msra.mxu0 %v1997_v0  ;;  %v160_v0 = vpack.c.bf16 %v79_v57, %v70_v54  ;;  %v2073_v54 = vld [vmem:[%s3312_s1 + $0x2c4] ss:$8 sps:$4 sm:$0xff]  }
  0x3c   :  { %1189 = vmatpush2.bf16.msra.mxu1 %v1998_v1  ;;  %1089 = vmatprep.subr.bf16.mxu0 %v1999_v2  ;;  %v162_v1 = vpack.c.bf16 %v81_v59, %v72_v58  ;;  %v69_v2 = vld [vmem:[%s3313_s0 + $0x1b0] sm:$0xff]  ;;  %v2071_v58 = vld [vmem:[%s3312_s1 + $0x2c0] ss:$8 sps:$4 sm:$0xff]  }
  0x3d   :  { %1190 = vmatprep.subr.bf16.mxu1 %v2001_v3  ;;  %v78_v3 = vld [vmem:[%s3313_s0 + $0x1f8] sm:$0xff]  ;;  %v2074_v59 = vld [vmem:[%s3312_s1 + $0x3c0] ss:$8 sps:$4 sm:$0xff]  }
  0x3f   :  { %1090 = vmatpush2.bf16.msra.mxu0 %v2003_v4  ;;  %v71_v4 = vld [vmem:[%s3313_s0 + $0x1c0] sm:$0xff] }
  0x40   :  { %1191 = vmatpush2.bf16.msra.mxu1 %v2004_v5  ;;  %1261 = vmatprep.subr.bf16.mxu0 %v2007_v10  ;;  %v80_v5 = vld [vmem:[%s3313_s0 + $0x208] sm:$0xff] }
  0x41   :  { %1362 = vmatprep.subr.bf16.mxu1 %v2010_v11  ;;  %v88_v10 = vld [vmem:[%s3313_s0 + $0x248] sm:$0xff]  ;;  %v159_v11 = vpack.c.bf16 %v78_v3, %v69_v2 }
  0x42   :  { %1092 = vmatmul.mubr.bf16.vlgmr.msra.gmra.mxu0 %v132_v15  ;;  %v99_v15 = vld [vmem:[%s3313_s0 + $0x2a0] sm:$0xff] }
  0x43   :  { %1193 = vmatmul.mubr.bf16.vlgmr.msra.gmra.mxu1 %v134_v16  ;;  %1262 = vmatpush1.bf16.msra.mxu0 %v2005_v12  ;;  %v161_v12 = vpack.c.bf16 %v80_v5, %v71_v4  ;;  %v2049_v16 = vld [vmem:[%s3312_s1 + $0x204] ss:$8 sps:$4 sm:$0xff]   ;;  %v22_v4 = vld [vmem:[%s3313_s0 + $0x38] sm:$0xff] }
  0x44   :  { %1363 = vmatpush1.bf16.msra.mxu1 %v2008_v13  ;;  %1263 = vmatprep.subr.bf16.mxu0 %v2013_v20  ;;  %v97_v13 = vld [vmem:[%s3313_s0 + $0x290] sm:$0xff]  ;;  %v31_v5 = vld [vmem:[%s3313_s0 + $0x80] sm:$0xff] }
  0x45   :  { %1364 = vmatprep.subr.bf16.mxu1 %v2016_v21  ;;  %1101 = vmatprep.mubr.bf16.mxu0 %v142_v24  ;;  %v169_v20 = vpack.c.bf16 %v97_v13, %v88_v10  ;;  %v171_v21 = vpack.c.bf16 %v99_v15, %v90_v14  ;;  %v96_v24 = vld [vmem:[%s3313_s0 + $0x288] sm:$0xff]  ;;  %v2091_v14 = vld [vmem:[%s3312_s1 + $0x294] ss:$8 sps:$4 sm:$0xff]  }
  0x46   :  { %1202 = vmatprep.mubr.bf16.mxu1 %v144_v25  ;;  %v89_v25 = vld [vmem:[%s3313_s0 + $0x250] sm:$0xff]  ;;  %v2086_v13 = vld [vmem:[%s3312_s1 + $0x3a0] ss:$8 sps:$4 sm:$0xff]  }
  0x47   :  { %1264 = vmatpush1.bf16.msra.mxu0 %v2011_v22  ;;  %v87_v22 = vld [vmem:[%s3313_s0 + $0x240] sm:$0xff]  ;;  %v2094_v15 = vld [vmem:[%s3312_s1 + $0x394] ss:$8 sps:$4 sm:$0xff]  }
  0x48   :  { %1365 = vmatpush1.bf16.msra.mxu1 %v2014_v23  ;;  %1265 = vmatprep.subr.bf16.mxu0 %v2019_v30  ;;  %v2055_v23 = vld [vmem:[%s3312_s1 + $0x2f4] ss:$8 sps:$4 sm:$0xff]   ;;  %v108_v30 = vld [vmem:[%s3313_s0 + $0x2e8] sm:$0xff] }
  0x49   :  { %1366 = vmatprep.subr.bf16.mxu1 %v2022_v31  ;;  %v168_v31 = vpack.c.bf16 %v96_v24, %v87_v22  ;;  %v19_v22 = vld [vmem:[%s3313_s0 + $0x20] sm:$0xff]  ;;  %v21_v24 = vld [vmem:[%s3313_s0 + $0x30] sm:$0xff] }
  0x4a   :  { %1102 = vmatmul.mubr.bf16.gmra.mxu0 %v141_v35  ;;  %v2056_v35 = vld [vmem:[%s3312_s1 + $0x3f0] ss:$8 sps:$4 sm:$0xff]  }
  0x4b   :  { %1203 = vmatmul.mubr.bf16.gmra.mxu1 %v143_v36  ;;  %1266 = vmatpush1.bf16.msra.mxu0 %v2017_v32  ;;  %v170_v32 = vpack.c.bf16 %v98_v26, %v89_v25  ;;  %v2061_v36 = vld [vmem:[%s3312_s1 + $0x2e4] ss:$8 sps:$4 sm:$0xff]   ;;  %v30_v25 = vld [vmem:[%s3313_s0 + $0x78] sm:$0xff] }
  0x4c   :  { %1367 = vmatpush1.bf16.msra.mxu1 %v2020_v33  ;;  %1267 = vmatprep.subr.bf16.mxu0 %v2025_v40  ;;  %v117_v33 = vld [vmem:[%s3313_s0 + $0x330] sm:$0xff]  ;;  %v178_v40 = vpack.c.bf16 %v115_v29, %v106_v28  ;;  %v47_v28 = vld [vmem:[%s3313_s0 + $0x100] sm:$0xff]  ;;  %v40_v29 = vld [vmem:[%s3313_s0 + $0xc8] sm:$0xff] }
  0x4d   :  { %1368 = vmatprep.subr.bf16.mxu1 %v2028_v41  ;;  %1111 = vmatprep.mubr.bf16.mxu0 %v151_v44  ;;  %v180_v41 = vpack.c.bf16 %v117_v33, %v108_v30  ;;  %v114_v44 = vld [vmem:[%s3313_s0 + $0x318] sm:$0xff]  ;;  %v49_v30 = vld [vmem:[%s3313_s0 + $0x110] sm:$0xff] }
  0x4e   :  { %1212 = vmatprep.mubr.bf16.mxu1 %v153_v45  ;;  %v107_v45 = vld [vmem:[%s3313_s0 + $0x2e0] sm:$0xff]  ;;  %v2103_v26 = vld [vmem:[%s3312_s1 + $0x474] ss:$8 sps:$4 sm:$0xff]   ;;  %v2101_v33 = vld [vmem:[%s3312_s1 + $0x470] ss:$8 sps:$4 sm:$0xff]  }
  0x4f   :  { %1268 = vmatpush1.bf16.msra.mxu0 %v2023_v42  ;;  %v105_v42 = vld [vmem:[%s3313_s0 + $0x2d0] sm:$0xff]  ;;  %v179_v49 = vpack.c.bf16 %v116_v46, %v107_v45  ;;  %v58_v45 = vld [vmem:[%s3313_s0 + $0x158] sm:$0xff]  ;;  %v67_v46 = vld [vmem:[%s3313_s0 + $0x1a0] sm:$0xff] }
  0x50   :  { %1369 = vmatpush1.bf16.msra.mxu1 %v2026_v43  ;;  %1269 = vmatprep.subr.bf16.mxu0 %v2031_v50  ;;  %v2067_v43 = vld [vmem:[%s3312_s1 + $0x2d4] ss:$8 sps:$4 sm:$0xff]   ;;  %v177_v48 = vpack.c.bf16 %v114_v44, %v105_v42  ;;  %v124_v50 = vld [vmem:[%s3313_s0 + $0x368] sm:$0x3] }
  0x51   :  { %1370 = vmatprep.subr.bf16.mxu1 %v2034_v51  ;;  %v126_v51 = vld [vmem:[%s3313_s0 + $0x378] sm:$0x3]  ;;  %v2109_v42 = vld [vmem:[%s3312_s1 + $0x454] ss:$8 sps:$4 sm:$0xff]  }
  0x52   :  { %1112 = vmatmul.mubr.bf16.gmra.mxu0 %v150_v55  ;;  %v2076_v55 = vld [vmem:[%s3312_s1 + $0x3c4] ss:$8 sps:$4 sm:$0xff]   ;;  %v189_v57 = vpack.c.bf16 %v126_v51, %v126_v51  ;;  %v65_v44 = vld [vmem:[%s3313_s0 + $0x190] sm:$0xff] }
  0x53   :  { %1213 = vmatmul.mubr.bf16.gmra.mxu1 %v152_v56  ;;  %1270 = vmatpush1.bf16.msra.mxu0 %v2029_v52  ;;  %v2065_v52 = vld [vmem:[%s3312_s1 + $0x2d0] ss:$8 sps:$4 sm:$0xff]   ;;  %v187_v56 = vpack.c.bf16 %v124_v50, %v124_v50  ;;  %v157_v50 = vpack.c.bf16 %v67_v46, %v58_v45 }
  0x54   :  { %1371 = vmatpush1.bf16.msra.mxu1 %v2032_v53  ;;  %1271 = vmatprep.subr.bf16.mxu0 %v2037_v60  ;;  %v2068_v53 = vld [vmem:[%s3312_s1 + $0x3d0] ss:$8 sps:$4 sm:$0xff]   ;;  %v123_v60 = vld [vmem:[%s3313_s0 + $0x360] sm:$0x3] }
  0x55   :  { %1372 = vmatprep.subr.bf16.mxu1 %v2040_v61  ;;  %1121 = vmatprep.mubr.bf16.mxu0 %v160_v0  ;;  %v125_v61 = vld [vmem:[%s3313_s0 + $0x370] sm:$0x3]  ;;  %v20_v0 = vld [vmem:[%s3313_s0 + $0x28] sm:$0xff]  ;;  %v186_v2 = vpack.c.bf16 %v123_v60, %v123_v60 }
  0x56   :  { %1222 = vmatprep.mubr.bf16.mxu1 %v162_v1  ;;  %v29_v1 = vld [vmem:[%s3313_s0 + $0x70] sm:$0xff]  ;;  %v188_v3 = vpack.c.bf16 %v125_v61, %v125_v61  ;;  %v76_v60 = vld [vmem:[%s3313_s0 + $0x1e8] sm:$0xff] }
  0x57   :  { %1272 = vmatpush1.bf16.msra.mxu0 %v2035_v62  ;;  %v2079_v62 = vld [vmem:[%s3312_s1 + $0x2b4] ss:$8 sps:$4 sm:$0xff]   ;;  %v137_v10 = vpack.c.bf16 %v29_v1, %v20_v0  ;;  %v2107_v51 = vld [vmem:[%s3312_s1 + $0x450] ss:$8 sps:$4 sm:$0xff]  }
  0x58   :  { %1373 = vmatpush1.bf16.msra.mxu1 %v2038_v63  ;;  %1273 = vmatprep.subr.bf16.mxu0 %v2043_v6  ;;  %v2082_v63 = vld [vmem:[%s3312_s1 + $0x3b4] ss:$8 sps:$4 sm:$0xff]   ;;  %v2077_v6 = vld [vmem:[%s3312_s1 + $0x2b0] ss:$8 sps:$4 sm:$0xff]  }
  0x59   :  { %1374 = vmatprep.subr.bf16.mxu1 %v2046_v7  ;;  %v2080_v7 = vld [vmem:[%s3312_s1 + $0x3b0] ss:$8 sps:$4 sm:$0xff]  }
  0x5a   :  { %1122 = vmatmul.mubr.bf16.gmra.mxu0 %v159_v11  ;;  %v139_v11 = vpack.c.bf16 %v31_v5, %v22_v4  ;;  %v85_v61 = vld [vmem:[%s3313_s0 + $0x230] sm:$0xff]  ;;  %v2118_v4 = vld [vmem:[%s3312_s1 + $0x424] ss:$8 sps:$4 sm:$0xff]  }
  0x5b   :  { %1223 = vmatmul.mubr.bf16.gmra.mxu1 %v161_v12  ;;  %1274 = vmatpush1.bf16.msra.mxu0 %v2041_v8  ;;  %v2085_v8 = vld [vmem:[%s3312_s1 + $0x2a4] ss:$8 sps:$4 sm:$0xff]   ;;  %v2083_v12 = vld [vmem:[%s3312_s1 + $0x2a0] ss:$8 sps:$4 sm:$0xff]   ;;  %v73_v5 = vld [vmem:[%s3313_s0 + $0x1d0] sm:$0xff] }
  0x5c   :  { %1375 = vmatpush1.bf16.msra.mxu1 %v2044_v9  ;;  %1275 = vmatprep.subr.bf16.mxu0 %v2049_v16  ;;  %v2088_v9 = vld [vmem:[%s3312_s1 + $0x3a4] ss:$8 sps:$4 sm:$0xff]   ;;  %v2089_v16 = vld [vmem:[%s3312_s1 + $0x290] ss:$8 sps:$4 sm:$0xff]  }
  0x5d   :  { %1376 = vmatprep.subr.bf16.mxu1 %v2052_v17  ;;  %1131 = vmatprep.mubr.bf16.mxu0 %v169_v20  ;;  %v2092_v17 = vld [vmem:[%s3312_s1 + $0x390] ss:$8 sps:$4 sm:$0xff]   ;;  %v2095_v20 = vld [vmem:[%s3312_s1 + $0x280] ss:$8 sps:$4 sm:$0xff]  }
  0x5e   :  { %1232 = vmatprep.mubr.bf16.mxu1 %v171_v21  ;;  %v2098_v21 = vld [vmem:[%s3312_s1 + $0x380] ss:$8 sps:$4 sm:$0xff]   ;;  %v129_v45 = vld [vmem:[%s3313_s0 + $0x390] sm:$0x3] }
  0x5f   :  { %1276 = vmatpush1.bf16.msra.mxu0 %v2047_v18  ;;  %v2097_v18 = vld [vmem:[%s3312_s1 + $0x284] ss:$8 sps:$4 sm:$0xff]  }
  0x60   :  { %1377 = vmatpush1.bf16.msra.mxu1 %v2050_v19  ;;  %1277 = vmatprep.subr.bf16.mxu0 %v2055_v23  ;;  %v2100_v19 = vld [vmem:[%s3312_s1 + $0x384] ss:$8 sps:$4 sm:$0xff]  }
  0x61   :  { %1378 = vmatprep.subr.bf16.mxu1 %v2058_v27  ;;  %v28_v23 = vld [vmem:[%s3313_s0 + $0x68] sm:$0xff]  ;;  %v38_v27 = vld [vmem:[%s3313_s0 + $0xb8] sm:$0xff] }
  0x62   :  { %1132 = vmatmul.mubr.bf16.gmra.mxu0 %v168_v31  ;;  %v136_v31 = vpack.c.bf16 %v28_v23, %v19_v22  ;;  %v100_v22 = vld [vmem:[%s3313_s0 + $0x2a8] sm:$0xff]  ;;  %v93_v23 = vld [vmem:[%s3313_s0 + $0x270] sm:$0xff] }
  0x63   :  { %1233 = vmatmul.mubr.bf16.gmra.mxu1 %v170_v32  ;;  %1278 = vmatpush2.bf16.msra.mxu0 %v2053_v34  ;;  %v138_v32 = vpack.c.bf16 %v30_v25, %v21_v24  ;;  %v146_v34 = vpack.c.bf16 %v47_v28, %v38_v27  ;;  %v102_v24 = vld [vmem:[%s3313_s0 + $0x2b8] sm:$0xff]  ;;  %v112_v27 = vld [vmem:[%s3313_s0 + $0x308] sm:$0xff]  ;;  %v121_v28 = vld [vmem:[%s3313_s0 + $0x350] sm:$0xff] }
  0x64   :  { %1379 = vmatpush2.bf16.msra.mxu1 %v2056_v35  ;;  %1279 = vmatprep.subr.bf16.mxu0 %v2061_v36  ;;  %v148_v35 = vpack.c.bf16 %v49_v30, %v40_v29  ;;  %v2104_v36 = vld [vmem:[%s3312_s1 + $0x460] ss:$8 sps:$4 sm:$0xff]   ;;  %v110_v25 = vld [vmem:[%s3313_s0 + $0x2f8] sm:$0xff] }
  0x65   :  { %1380 = vmatprep.subr.bf16.mxu1 %v2064_v37  ;;  %1141 = vmatprep.mubr.bf16.mxu0 %v178_v40  ;;  %v2106_v37 = vld [vmem:[%s3312_s1 + $0x464] ss:$8 sps:$4 sm:$0xff]   ;;  %v2122_v29 = vld [vmem:[%s3312_s1 + $0x400] ss:$8 sps:$4 sm:$0xff]  }
  0x66   :  { %1242 = vmatprep.mubr.bf16.mxu1 %v180_v41  ;;  %v39_v40 = vld [vmem:[%s3313_s0 + $0xc0] sm:$0xff]  ;;  %v48_v41 = vld [vmem:[%s3313_s0 + $0x108] sm:$0xff] }
  0x67   :  { %1280 = vmatpush2.bf16.msra.mxu0 %v2059_v38  ;;  %v37_v38 = vld [vmem:[%s3313_s0 + $0xb0] sm:$0xff] }
  0x68   :  { %1381 = vmatpush2.bf16.msra.mxu1 %v2062_v39  ;;  %1281 = vmatprep.subr.bf16.mxu0 %v2067_v43  ;;  %v46_v39 = vld [vmem:[%s3313_s0 + $0xf8] sm:$0xff]  ;;  %v56_v43 = vld [vmem:[%s3313_s0 + $0x148] sm:$0xff] }
  0x69   :  { %1382 = vmatprep.subr.bf16.mxu1 %v2070_v47  ;;  %v145_v47 = vpack.c.bf16 %v46_v39, %v37_v38  ;;  %v128_v38 = vld [vmem:[%s3313_s0 + $0x388] sm:$0x3]  ;;  %v130_v39 = vld [vmem:[%s3313_s0 + $0x398] sm:$0x3] }
  0x6a   :  { %1142 = vmatmul.mubr.bf16.gmra.mxu0 %v177_v48  ;;  %v147_v48 = vpack.c.bf16 %v48_v41, %v39_v40 }
  0x6b   :  { %1243 = vmatmul.mubr.bf16.gmra.mxu1 %v179_v49  ;;  %1282 = vmatpush2.bf16.msra.mxu0 %v2065_v52  ;;  %v155_v49 = vpack.c.bf16 %v65_v44, %v56_v43  ;;  %v2112_v52 = vld [vmem:[%s3312_s1 + $0x444] ss:$8 sps:$4 sm:$0xff]   ;;  %v193_v43 = vpack.c.bf16 %v130_v39, %v130_v39  ;;  %v127_v44 = vld [vmem:[%s3313_s0 + $0x380] sm:$0x3] }
  0x6c   :  { %1383 = vmatpush2.bf16.msra.mxu1 %v2068_v53  ;;  %1283 = vmatprep.subr.bf16.mxu0 %v2073_v54  ;;  %v55_v53 = vld [vmem:[%s3313_s0 + $0x140] sm:$0xff]  ;;  %v64_v54 = vld [vmem:[%s3313_s0 + $0x188] sm:$0xff]  ;;  %v190_v46 = vpack.c.bf16 %v127_v44, %v127_v44 }
  0x6d   :  { %1384 = vmatprep.subr.bf16.mxu1 %v2076_v55  ;;  %1151 = vmatprep.mubr.bf16.mxu0 %v187_v56  ;;  %v57_v55 = vld [vmem:[%s3313_s0 + $0x150] sm:$0xff]  ;;  %v66_v56 = vld [vmem:[%s3313_s0 + $0x198] sm:$0xff] }
  0x6e   :  { %1252 = vmatprep.mubr.bf16.mxu1 %v189_v57  ;;  %v2110_v57 = vld [vmem:[%s3312_s1 + $0x440] ss:$8 sps:$4 sm:$0xff]   ;;  %v156_v0 = vpack.c.bf16 %v66_v56, %v57_v55  ;;  %v41_v55 = vld [vmem:[%s3313_s0 + $0xd0] sm:$0xff]  ;;  %v50_v56 = vld [vmem:[%s3313_s0 + $0x118] sm:$0xff] }
  0x6f   :  { %1284 = vmatpush2.bf16.msra.mxu0 %v2071_v58  ;;  %v74_v58 = vld [vmem:[%s3313_s0 + $0x1d8] sm:$0xff] }
  0x70   :  { %1385 = vmatpush2.bf16.msra.mxu1 %v2074_v59  ;;  %1285 = vmatprep.subr.bf16.mxu0 %v2079_v62  ;;  %v83_v59 = vld [vmem:[%s3313_s0 + $0x220] sm:$0xff]  ;;  %v2115_v62 = vld [vmem:[%s3312_s1 + $0x434] ss:$8 sps:$4 sm:$0xff]  }
  0x71   :  { %1386 = vmatprep.subr.bf16.mxu1 %v2082_v63  ;;  %v154_v63 = vpack.c.bf16 %v64_v54, %v55_v53  ;;  %v164_v1 = vpack.c.bf16 %v83_v59, %v74_v58  ;;  %v122_v58 = vld [vmem:[%s3313_s0 + $0x358] sm:$0xff]  ;;  %v149_v59 = vpack.c.bf16 %v50_v56, %v41_v55 }
  0x72   :  { %1152 = vmatmul.mubr.bf16.gmra.mxu0 %v186_v2  ;;  %v166_v2 = vpack.c.bf16 %v85_v61, %v76_v60  ;;  %v59_v61 = vld [vmem:[%s3313_s0 + $0x160] sm:$0xff] }
  0x73   :  { %1253 = vmatmul.mubr.bf16.gmra.mxu1 %v188_v3  ;;  %1286 = vmatpush2.bf16.msra.mxu0 %v2077_v6  ;;  %v2113_v3 = vld [vmem:[%s3312_s1 + $0x430] ss:$8 sps:$4 sm:$0xff]  }
  0x74   :  { %1387 = vmatpush2.bf16.msra.mxu1 %v2080_v7  ;;  %1287 = vmatprep.subr.bf16.mxu0 %v2085_v8  ;;  %v82_v6 = vld [vmem:[%s3313_s0 + $0x218] sm:$0xff]  ;;  %v75_v7 = vld [vmem:[%s3313_s0 + $0x1e0] sm:$0xff]  ;;  %v84_v8 = vld [vmem:[%s3313_s0 + $0x228] sm:$0xff] }
  0x75   :  { %1388 = vmatprep.subr.bf16.mxu1 %v2088_v9  ;;  %1293 = vmatprep.mubr.bf16.mxu0 %v137_v10  ;;  %v92_v9 = vld [vmem:[%s3313_s0 + $0x268] sm:$0xff]  ;;  %v101_v10 = vld [vmem:[%s3313_s0 + $0x2b0] sm:$0xff] }
  0x76   :  { %1394 = vmatprep.mubr.bf16.mxu1 %v139_v11  ;;  %v94_v11 = vld [vmem:[%s3313_s0 + $0x278] sm:$0xff] }
  0x77   :  { %1288 = vmatpush2.bf16.msra.mxu0 %v2083_v12  ;;  %v103_v12 = vld [vmem:[%s3313_s0 + $0x2c0] sm:$0xff] }
  0x78   :  { %1389 = vmatpush2.bf16.msra.mxu1 %v2086_v13  ;;  %1289 = vmatprep.subr.bf16.mxu0 %v2091_v14  ;;  %v2116_v13 = vld [vmem:[%s3312_s1 + $0x420] ss:$8 sps:$4 sm:$0xff]   ;;  %v2121_v14 = vld [vmem:[%s3312_s1 + $0x414] ss:$8 sps:$4 sm:$0xff]  }
  0x79   :  { %1390 = vmatprep.subr.bf16.mxu1 %v2094_v15  ;;  %v163_v15 = vpack.c.bf16 %v82_v6, %v73_v5 }
  0x7b   :  { %1290 = vmatpush2.bf16.msra.mxu0 %v2089_v16  ;;  %v165_v16 = vpack.c.bf16 %v84_v8, %v75_v7 }
  0x7c   :  { %1391 = vmatpush2.bf16.msra.mxu1 %v2092_v17  ;;  %1291 = vmatprep.subr.bf16.mxu0 %v2097_v18  ;;  %v173_v17 = vpack.c.bf16 %v101_v10, %v92_v9  ;;  %v175_v18 = vpack.c.bf16 %v103_v12, %v94_v11 }
  0x7d   :  { %1392 = vmatprep.subr.bf16.mxu1 %v2100_v19  ;;  %v2119_v19 = vld [vmem:[%s3312_s1 + $0x410] ss:$8 sps:$4 sm:$0xff]  }
  0x7f   :  { %1292 = vmatpush2.bf16.msra.mxu0 %v2095_v20  ;;  %v2124_v20 = vld [vmem:[%s3312_s1 + $0x404] ss:$8 sps:$4 sm:$0xff]  }
  0x80   :  { %1393 = vmatpush2.bf16.msra.mxu1 %v2098_v21  ;;  %1463 = vmatprep.subr.bf16.mxu0 %v2103_v26  ;;  %v91_v21 = vld [vmem:[%s3313_s0 + $0x260] sm:$0xff] }
  0x81   :  { %1891 = vmatprep.subr.bf16.mxu1 %v2103_v26  ;;  %v119_v26 = vld [vmem:[%s3313_s0 + $0x340] sm:$0xff]  ;;  %v172_v30 = vpack.c.bf16 %v100_v22, %v91_v21 }
  0x82   :  { %1294 = vmatmul.mubr.bf16.vlgmr.msra.gmra.mxu0 %v136_v31  ;;  %v174_v31 = vpack.c.bf16 %v102_v24, %v93_v23 }
  0x83   :  { %1395 = vmatmul.mubr.bf16.vlgmr.msra.gmra.mxu1 %v138_v32  ;;  %1464 = vmatpush1.bf16.msra.mxu0 %v2101_v33  ;;  %v182_v32 = vpack.c.bf16 %v119_v26, %v110_v25 }
  0x84   :  { %1899 = vmatpush1.bf16.msra.mxu1 %v2101_v33  ;;  %1303 = vmatprep.mubr.bf16.mxu0 %v146_v34  ;;  %v184_v33 = vpack.c.bf16 %v121_v28, %v112_v27  ;;  %v109_v34 = vld [vmem:[%s3313_s0 + $0x2f0] sm:$0xff] }
  0x85   :  { %1404 = vmatprep.mubr.bf16.mxu1 %v148_v35  ;;  %1465 = vmatprep.subr.bf16.mxu0 %v2106_v37  ;;  %v118_v35 = vld [vmem:[%s3313_s0 + $0x338] sm:$0xff] }
  0x86   :  { %1892 = vmatprep.subr.bf16.mxu1 %v2106_v37  ;;  %v120_v37 = vld [vmem:[%s3313_s0 + $0x348] sm:$0xff]  ;;  %v181_v40 = vpack.c.bf16 %v118_v35, %v109_v34 }
  0x87   :  { %1466 = vmatpush1.bf16.msra.mxu0 %v2104_v36 }
  0x88   :  { %1900 = vmatpush1.bf16.msra.mxu1 %v2104_v36  ;;  %1467 = vmatprep.subr.bf16.mxu0 %v2109_v42  ;;  %v111_v36 = vld [vmem:[%s3313_s0 + $0x300] sm:$0xff] }
  0x89   :  { %1893 = vmatprep.subr.bf16.mxu1 %v2109_v42  ;;  %v183_v41 = vpack.c.bf16 %v120_v37, %v111_v36  ;;  %v191_v42 = vpack.c.bf16 %v128_v38, %v128_v38 }
  0x8a   :  { %1304 = vmatmul.mubr.bf16.gmra.mxu0 %v145_v47  ;;  %v192_v47 = vpack.c.bf16 %v129_v45, %v129_v45 }
  0x8b   :  { %1405 = vmatmul.mubr.bf16.gmra.mxu1 %v147_v48  ;;  %1313 = vmatprep.mubr.bf16.mxu0 %v155_v49  ;;  %v23_v48 = vld [vmem:[%s3313_s0 + $0x40] sm:$0xff]  ;;  %v2125_v49 = vmov 0  }
  0x8c   :  { %1414 = vmatprep.mubr.bf16.mxu1 %v157_v50  ;;  %1468 = vmatpush1.bf16.msra.mxu0 %v2107_v51  ;;  %v32_v50 = vld [vmem:[%s3313_s0 + $0x88] sm:$0xff] }
  0x8d   :  { %1901 = vmatpush1.bf16.msra.mxu1 %v2107_v51  ;;  %1469 = vmatprep.subr.bf16.mxu0 %v2112_v52  ;;  %v95_v51 = vld [vmem:[%s3313_s0 + $0x280] sm:$0xff]  ;;  %v140_v53 = vpack.c.bf16 %v32_v50, %v23_v48 }
  0x8e   :  { %1894 = vmatprep.subr.bf16.mxu1 %v2112_v52  ;;  %v104_v52 = vld [vmem:[%s3313_s0 + $0x2c8] sm:$0xff] }
  0x8f   :  { %v176_v54 = vpack.c.bf16 %v104_v52, %v95_v51 }
  0x90   :  { %1470 = vmatpush1.bf16.msra.mxu0 %v2110_v57 }
  0x91   :  { %1902 = vmatpush1.bf16.msra.mxu1 %v2110_v57  ;;  %1471 = vmatprep.subr.bf16.mxu0 %v2115_v62  ;;  %v113_v57 = vld [vmem:[%s3313_s0 + $0x310] sm:$0xff] }
  0x92   :  { %1895 = vmatprep.subr.bf16.mxu1 %v2115_v62  ;;  %1314 = vmatmul.mubr.bf16.gmra.mxu0 %v154_v63  ;;  %v185_v60 = vpack.c.bf16 %v122_v58, %v113_v57  ;;  %v68_v62 = vld [vmem:[%s3313_s0 + $0x1a8] sm:$0xff]  ;;  %v131_v63 = vld [vmem:[%s3313_s0 + $0x3a0] sm:$0x3] }
  0x93   :  { %1415 = vmatmul.mubr.bf16.gmra.mxu1 %v156_v0  ;;  %1323 = vmatprep.mubr.bf16.mxu0 %v164_v1  ;;  %v158_v0 = vpack.c.bf16 %v68_v62, %v59_v61  ;;  %v194_v1 = vpack.c.bf16 %v131_v63, %v131_v63 }
  0x94   :  { %1424 = vmatprep.mubr.bf16.mxu1 %v166_v2  ;;  %1472 = vmatpush1.bf16.msra.mxu0 %v2113_v3  ;;  %v77_v2 = vld [vmem:[%s3313_s0 + $0x1f0] sm:$0xff] }
  0x95   :  { %1903 = vmatpush1.bf16.msra.mxu1 %v2113_v3  ;;  %1473 = vmatprep.subr.bf16.mxu0 %v2118_v4  ;;  %v86_v3 = vld [vmem:[%s3313_s0 + $0x238] sm:$0xff]  ;;  %s2126_s0 = smov 64  }
  0x96   :  { %1896 = vmatprep.subr.bf16.mxu1 %v2118_v4  ;;  %v167_v4 = vpack.c.bf16 %v86_v3, %v77_v2 }
  0x98   :  { %1474 = vmatpush1.bf16.msra.mxu0 %v2116_v13 }
  0x99   :  { %1904 = vmatpush1.bf16.msra.mxu1 %v2116_v13  ;;  %1475 = vmatprep.subr.bf16.mxu0 %v2121_v14 }
  0x9a   :  { %1897 = vmatprep.subr.bf16.mxu1 %v2121_v14  ;;  %1324 = vmatmul.mubr.bf16.gmra.mxu0 %v163_v15 }
  0x9b   :  { %1425 = vmatmul.mubr.bf16.gmra.mxu1 %v165_v16  ;;  %1333 = vmatprep.mubr.bf16.mxu0 %v173_v17 }
  0x9c   :  { %1434 = vmatprep.mubr.bf16.mxu1 %v175_v18  ;;  %1476 = vmatpush1.bf16.msra.mxu0 %v2119_v19 }
  0x9d   :  { %1905 = vmatpush1.bf16.msra.mxu1 %v2119_v19  ;;  %1477 = vmatprep.subr.bf16.mxu0 %v2124_v20 }
  0x9e   :  { %1898 = vmatprep.subr.bf16.mxu1 %v2124_v20 }
  0xa0   :  { %1478 = vmatpush1.bf16.msra.mxu0 %v2122_v29 }
  0xa1   :  { %1906 = vmatpush1.bf16.msra.mxu1 %v2122_v29 }
  0xa2   :  { %1334 = vmatmul.mubr.bf16.gmra.mxu0 %v172_v30 }
  0xa3   :  { %1435 = vmatmul.mubr.bf16.gmra.mxu1 %v174_v31  ;;  %1343 = vmatprep.mubr.bf16.mxu0 %v182_v32 }
  0xa4   :  { %1444 = vmatprep.mubr.bf16.mxu1 %v184_v33 }
  0xaa   :  { %1344 = vmatmul.mubr.bf16.gmra.mxu0 %v181_v40 }
  0xab   :  { %1445 = vmatmul.mubr.bf16.gmra.mxu1 %v183_v41  ;;  %1353 = vmatprep.mubr.bf16.mxu0 %v191_v42 }
  0xac   :  { %1454 = vmatprep.mubr.bf16.mxu1 %v193_v43 }
  0xb2   :  { %1354 = vmatmul.mubr.bf16.gmra.mxu0 %v190_v46 }
  0xb3   :  { %1455 = vmatmul.mubr.bf16.gmra.mxu1 %v192_v47  ;;  %1495 = vmatprep.mubr.bf16.mxu0 %v2125_v49 }
  0xb4   :  { %1535 = vmatprep.mubr.bf16.mxu1 %v2125_v49 }
  0xba   :  { %1496 = vmatmul.mubr.bf16.vlgmr.msra.gmra.mxu0 %v140_v53 }
  0xbb   :  { %1536 = vmatmul.mubr.bf16.vlgmr.msra.gmra.mxu1 %v176_v54  ;;  %1505 = vmatprep.mubr.bf16.mxu0 %v2125_v49 }
  0xbc   :  { %1545 = vmatprep.mubr.bf16.mxu1 %v2125_v49 }
  0xc2   :  { %1506 = vmatmul.mubr.bf16.gmra.mxu0 %v149_v59 }
  0xc3   :  { %1546 = vmatmul.mubr.bf16.gmra.mxu1 %v185_v60  ;;  %1515 = vmatprep.mubr.bf16.mxu0 %v2125_v49 }
  0xc4   :  { %1555 = vmatprep.mubr.bf16.mxu1 %v2125_v49 }
  0xca   :  { %1516 = vmatmul.mubr.bf16.gmra.mxu0 %v158_v0 }
  0xcb   :  { %1556 = vmatmul.mubr.bf16.gmra.mxu1 %v194_v1  ;;  %1525 = vmatprep.mubr.bf16.mxu0 %v2125_v49 }
  0xd2   :  { %1526 = vmatmul.mubr.bf16.gmra.mxu0 %v167_v4 }
 0x102   :  { %v1093_v5 = vpop.f32.mrf.mxu0 }
 0x103   :  { %v1194_v6 = vpop.f32.mrf.mxu1 }
 0x104   :  { %v2930_v7 = vadd.f32 %v1194_v6, %v1093_v5  ;;  %v1095_v8 = vpop.f32.mrf.mxu0 }
 0x105   :  { %v1196_v9 = vpop.f32.mrf.mxu1 }
 0x106   :  { %v2932_v10 = vadd.f32 %v1196_v9, %v1095_v8  ;;  %v1097_v11 = vpop.f32.mrf.mxu0 }
 0x107   :  { %v1198_v12 = vpop.f32.mrf.mxu1 }
 0x108   :  { %v2934_v13 = vadd.f32 %v1198_v12, %v1097_v11  ;;  %v1099_v14 = vpop.f32.mrf.mxu0 }
 0x109   :  { %v1200_v15 = vpop.f32.mrf.mxu1 }
 0x10a   :  { %v2936_v16 = vadd.f32 %v1200_v15, %v1099_v14  ;;  %v1103_v17 = vpop.f32.mrf.mxu0 }
 0x10b   :  { %v1204_v18 = vpop.f32.mrf.mxu1 }
 0x10c   :  { %v2938_v19 = vadd.f32 %v1204_v18, %v1103_v17  ;;  %v1105_v20 = vpop.f32.mrf.mxu0 }
 0x10d   :  { %v1206_v21 = vpop.f32.mrf.mxu1 }
 0x10e   :  { %v2940_v22 = vadd.f32 %v1206_v21, %v1105_v20  ;;  %v1107_v23 = vpop.f32.mrf.mxu0 }
 0x10f   :  { %v1208_v24 = vpop.f32.mrf.mxu1 }
 0x110   :  { %v2942_v25 = vadd.f32 %v1208_v24, %v1107_v23  ;;  %v1109_v26 = vpop.f32.mrf.mxu0 }
 0x111   :  { %v1210_v27 = vpop.f32.mrf.mxu1 }
 0x112   :  { %v2944_v28 = vadd.f32 %v1210_v27, %v1109_v26  ;;  %v1113_v29 = vpop.f32.mrf.mxu0 }
 0x113   :  { %v1214_v30 = vpop.f32.mrf.mxu1 }
 0x114   :  { %v2946_v31 = vadd.f32 %v1214_v30, %v1113_v29  ;;  %v1115_v32 = vpop.f32.mrf.mxu0 }
 0x115   :  { %v1216_v33 = vpop.f32.mrf.mxu1 }
 0x116   :  { %v2948_v34 = vadd.f32 %v1216_v33, %v1115_v32  ;;  %v1117_v35 = vpop.f32.mrf.mxu0 }
 0x117   :  { %v1218_v36 = vpop.f32.mrf.mxu1 }
 0x118   :  { %v2950_v37 = vadd.f32 %v1218_v36, %v1117_v35  ;;  %v1119_v38 = vpop.f32.mrf.mxu0 }
 0x119   :  { %v1220_v39 = vpop.f32.mrf.mxu1 }
 0x11a   :  { %v2952_v40 = vadd.f32 %v1220_v39, %v1119_v38  ;;  %v1123_v41 = vpop.f32.mrf.mxu0 }
 0x11b   :  { %v1224_v42 = vpop.f32.mrf.mxu1 }
 0x11c   :  { %v2954_v43 = vadd.f32 %v1224_v42, %v1123_v41  ;;  %v1125_v44 = vpop.f32.mrf.mxu0 }
 0x11d   :  { %v1226_v45 = vpop.f32.mrf.mxu1 }
 0x11e   :  { %v2956_v46 = vadd.f32 %v1226_v45, %v1125_v44  ;;  %v1127_v47 = vpop.f32.mrf.mxu0 }
 0x11f   :  { %v1228_v48 = vpop.f32.mrf.mxu1 }
 0x120   :  { %v2958_v49 = vadd.f32 %v1228_v48, %v1127_v47  ;;  %v1129_v50 = vpop.f32.mrf.mxu0 }
 0x121   :  { %v1230_v51 = vpop.f32.mrf.mxu1 }
 0x122   :  { %v2960_v52 = vadd.f32 %v1230_v51, %v1129_v50  ;;  %v1133_v53 = vpop.f32.mrf.mxu0 }
 0x123   :  { %v1234_v54 = vpop.f32.mrf.mxu1 }
 0x124   :  { %v2962_v55 = vadd.f32 %v1234_v54, %v1133_v53  ;;  %v1135_v56 = vpop.f32.mrf.mxu0 }
 0x125   :  { %v1236_v57 = vpop.f32.mrf.mxu1 }
 0x126   :  { %v2964_v58 = vadd.f32 %v1236_v57, %v1135_v56  ;;  %v1137_v59 = vpop.f32.mrf.mxu0 }
 0x127   :  { %v1238_v60 = vpop.f32.mrf.mxu1 }
 0x128   :  { %v2966_v61 = vadd.f32 %v1238_v60, %v1137_v59  ;;  %v1139_v62 = vpop.f32.mrf.mxu0 }
 0x129   :  { %v1240_v63 = vpop.f32.mrf.mxu1 }
 0x12a   :  { %v2968_v0 = vadd.f32 %v1240_v63, %v1139_v62  ;;  %v1143_v1 = vpop.f32.mrf.mxu0 }
 0x12b   :  { %v1244_v2 = vpop.f32.mrf.mxu1 }
 0x12c   :  { %v2970_v3 = vadd.f32 %v1244_v2, %v1143_v1  ;;  %v1145_v4 = vpop.f32.mrf.mxu0 }
 0x12d   :  { %v1246_v5 = vpop.f32.mrf.mxu1 }
 0x12e   :  { %v2972_v6 = vadd.f32 %v1246_v5, %v1145_v4  ;;  %v1147_v8 = vpop.f32.mrf.mxu0 }
 0x12f   :  { %v1248_v9 = vpop.f32.mrf.mxu1 }
 0x130   :  { %v2974_v11 = vadd.f32 %v1248_v9, %v1147_v8  ;;  %v1149_v12 = vpop.f32.mrf.mxu0 }
 0x131   :  { %v1250_v14 = vpop.f32.mrf.mxu1 }
 0x132   :  { %v2976_v15 = vadd.f32 %v1250_v14, %v1149_v12  ;;  %v1153_v17 = vpop.f32.mrf.mxu0 }
 0x133   :  { %v1254_v18 = vpop.f32.mrf.mxu1 }
 0x134   :  { %v2978_v20 = vadd.f32 %v1254_v18, %v1153_v17  ;;  %v1155_v21 = vpop.f32.mrf.mxu0 }
 0x135   :  { %v1256_v23 = vpop.f32.mrf.mxu1 }
 0x136   :  { %v2980_v24 = vadd.f32 %v1256_v23, %v1155_v21  ;;  %v1157_v26 = vpop.f32.mrf.mxu0 }
 0x137   :  { %v1258_v27 = vpop.f32.mrf.mxu1 }
 0x138   :  { %3316 = vst [vmem:[#allocation2_spill] sm:$0xff] %v2980_v24  ;;  %v1158_v29 = vpop.f32.mrf.mxu0 }
 0x139   :  { %v1259_v30 = vpop.f32.mrf.mxu1 }
 0x142   :  { %v2982_v32 = vpop.f32.mrf.mxu0 }
 0x143   :  { %v2984_v33 = vpop.f32.mrf.mxu1 }
 0x144   :  { %v2986_v35 = vpop.f32.mrf.mxu0 }
 0x145   :  { %v2988_v36 = vpop.f32.mrf.mxu1 }
 0x146   :  { %v2990_v38 = vpop.f32.mrf.mxu0 }
 0x147   :  { %v2992_v39 = vpop.f32.mrf.mxu1 }
 0x148   :  { %v2994_v41 = vpop.f32.mrf.mxu0 }
 0x149   :  { %v2996_v42 = vpop.f32.mrf.mxu1 }
 0x14a   :  { %v2998_v44 = vpop.f32.mrf.mxu0 }
 0x14b   :  { %v3000_v45 = vpop.f32.mrf.mxu1 }
 0x14c   :  { %v3002_v47 = vpop.f32.mrf.mxu0 }
 0x14d   :  { %v3004_v48 = vpop.f32.mrf.mxu1 }
 0x14e   :  { %v1309_v50 = vpop.f32.mrf.mxu0 }
 0x14f   :  { %v1410_v51 = vpop.f32.mrf.mxu1  ;;  %v1310_v53 = vadd.f32 %v1309_v50, %v2942_v25 }
 0x150   :  { %v1311_v54 = vpop.f32.mrf.mxu0 }
 0x151   :  { %v1412_v56 = vpop.f32.mrf.mxu1  ;;  %v3007_v57 = vadd.f32 %v1410_v51, %v1310_v53  ;;  %v1312_v59 = vadd.f32 %v1311_v54, %v2944_v28 }
 0x152   :  { %v1315_v60 = vpop.f32.mrf.mxu0 }
 0x153   :  { %v1416_v62 = vpop.f32.mrf.mxu1  ;;  %v3010_v63 = vadd.f32 %v1412_v56, %v1312_v59  ;;  %v1316_v1 = vadd.f32 %v1315_v60, %v2946_v31 }
 0x154   :  { %v1317_v2 = vpop.f32.mrf.mxu0 }
 0x155   :  { %v1418_v4 = vpop.f32.mrf.mxu1  ;;  %v3013_v5 = vadd.f32 %v1416_v62, %v1316_v1  ;;  %v1318_v8 = vadd.f32 %v1317_v2, %v2948_v34 }
 0x156   :  { %v1319_v9 = vpop.f32.mrf.mxu0 }
 0x157   :  { %v1420_v25 = vpop.f32.mrf.mxu1  ;;  %v3016_v12 = vadd.f32 %v1418_v4, %v1318_v8  ;;  %v1320_v14 = vadd.f32 %v1319_v9, %v2950_v37 }
 0x158   :  { %v1321_v17 = vpop.f32.mrf.mxu0 }
 0x159   :  { %v1422_v28 = vpop.f32.mrf.mxu1  ;;  %v3019_v18 = vadd.f32 %v1420_v25, %v1320_v14  ;;  %v1322_v21 = vadd.f32 %v1321_v17, %v2952_v40 }
 0x15a   :  { %v1325_v23 = vpop.f32.mrf.mxu0 }
 0x15b   :  { %v1426_v31 = vpop.f32.mrf.mxu1  ;;  %v3022_v26 = vadd.f32 %v1422_v28, %v1322_v21  ;;  %v1326_v27 = vadd.f32 %v1325_v23, %v2954_v43 }
 0x15c   :  { %v1327_v29 = vpop.f32.mrf.mxu0 }
 0x15d   :  { %v1428_v34 = vpop.f32.mrf.mxu1  ;;  %v3025_v30 = vadd.f32 %v1426_v31, %v1326_v27  ;;  %v1328_v50 = vadd.f32 %v1327_v29, %v2956_v46 }
 0x15e   :  { %v1329_v51 = vpop.f32.mrf.mxu0 }
 0x15f   :  { %v1430_v37 = vpop.f32.mrf.mxu1  ;;  %v3028_v53 = vadd.f32 %v1428_v34, %v1328_v50  ;;  %v1330_v54 = vadd.f32 %v1329_v51, %v2958_v49  ;;  %v1296_v51 = vadd.f32 %v2982_v32, %v2930_v7 }
 0x160   :  { %v1331_v56 = vpop.f32.mrf.mxu0 }
 0x161   :  { %3317 = vst [vmem:[#allocation3_spill] sm:$0xff] %v3028_v53  ;;  %v1432_v40 = vpop.f32.mrf.mxu1  ;;  %v3031_v59 = vadd.f32 %v1430_v37, %v1330_v54  ;;  %v1332_v60 = vadd.f32 %v1331_v56, %v2960_v52  ;;  %v1298_v56 = vadd.f32 %v2986_v35, %v2932_v10 }
 0x162   :  { %v1335_v62 = vpop.f32.mrf.mxu0 }
 0x163   :  { %3318 = vst [vmem:[#allocation4_spill] sm:$0xff] %v3031_v59  ;;  %v1436_v43 = vpop.f32.mrf.mxu1  ;;  %v3034_v1 = vadd.f32 %v1432_v40, %v1332_v60  ;;  %v1397_v59 = vadd.f32 %v2984_v33, %v1296_v51 }
 0x164   :  { %v1337_v2 = vpop.f32.mrf.mxu0 }
 0x165   :  { %3319 = vst [vmem:[#allocation5_spill] sm:$0xff] %v3034_v1  ;;  %v1438_v4 = vpop.f32.mrf.mxu1 }
 0x166   :  { %v1339_v8 = vpop.f32.mrf.mxu0 }
 0x167   :  { %v1440_v46 = vpop.f32.mrf.mxu1 }
 0x168   :  { %v1341_v9 = vpop.f32.mrf.mxu0 }
 0x169   :  { %v3036_v25 = vpop.f32.mrf.mxu1 }
 0x16a   :  { %v3038_v14 = vpop.f32.mrf.mxu0 }
 0x16b   :  { %v3040_v49 = vpop.f32.mrf.mxu1 }
 0x16c   :  { %v3042_v17 = vpop.f32.mrf.mxu0 }
 0x16d   :  { %v3044_v28 = vpop.f32.mrf.mxu1 }
 0x16e   :  { %v3046_v52 = vpop.f32.mrf.mxu0 }
 0x16f   :  { %v3048_v21 = vpop.f32.mrf.mxu1 }
 0x170   :  { %v3050_v23 = vpop.f32.mrf.mxu0 }
 0x171   :  { %v3052_v31 = vpop.f32.mrf.mxu1 }
 0x172   :  { %3320 = vst [vmem:[#allocation6_spill] sm:$0xff] %v3052_v31  ;;  %v3054_v27 = vpop.f32.mrf.mxu0  ;;  %v1336_v31 = vadd.f32 %v1335_v62, %v2962_v55 }
 0x173   :  { %v3056_v29 = vpop.f32.mrf.mxu1 }
 0x174   :  { %v3058_v34 = vpop.f32.mrf.mxu0  ;;  %v1437_v10 = vadd.f32 %v1436_v43, %v1336_v31 }
 0x175   :  { %3321 = vst [vmem:[#allocation7_spill] sm:$0xff] %v3058_v34  ;;  %v3060_v50 = vpop.f32.mrf.mxu1  ;;  %v1399_v34 = vadd.f32 %v2988_v36, %v1298_v56  ;;  %v1340_v36 = vadd.f32 %v1339_v8, %v2966_v61  ;;  %v1306_v61 = vadd.f32 %v2998_v44, %v2938_v19  ;;  %v1308_v44 = vadd.f32 %v3002_v47, %v2940_v22 }
 0x176   :  { %3322 = vst [vmem:[#allocation8_spill] sm:$0xff] %v3060_v50  ;;  %v1359_v37 = vpop.f32.mrf.mxu0  ;;  %v1338_v50 = vadd.f32 %v1337_v2, %v2964_v58  ;;  %v1348_v47 = vadd.f32 %v3042_v17, %v2972_v6 }
 0x177   :  { %v1460_v54 = vpop.f32.mrf.mxu1  ;;  %v1300_v37 = vadd.f32 %v2990_v38, %v2934_v13  ;;  %v1302_v38 = vadd.f32 %v2994_v41, %v2936_v16  ;;  %v1342_v41 = vadd.f32 %v1341_v9, %v2968_v0  ;;  %v1407_v19 = vadd.f32 %v3000_v45, %v1306_v61  ;;  %v3326_v61 = vld [vmem:[#allocation5_spill] sm:$0xff] }
 0x178   :  { %v1360_v40 = vpop.f32.mrf.mxu0  ;;  %v1439_v62 = vadd.f32 %v1438_v4, %v1338_v50  ;;  %v1346_v9 = vadd.f32 %v3038_v14, %v2970_v3  ;;  %v1409_v22 = vadd.f32 %v3004_v48, %v1308_v44  ;;  %v1449_v48 = vadd.f32 %v3044_v28, %v1348_v47 }
 0x179   :  { %v1461_v60 = vpop.f32.mrf.mxu1  ;;  %v1401_v13 = vadd.f32 %v2992_v39, %v1300_v37  ;;  %v1403_v16 = vadd.f32 %v2996_v42, %v1302_v38  ;;  %v1443_v0 = vadd.f32 %v3036_v25, %v1342_v41 }
 0x17a   :  { %v1497_v1 = vpop.f32.mrf.mxu0  ;;  %v1447_v3 = vadd.f32 %v3040_v49, %v1346_v9  ;;  %v1350_v49 = vadd.f32 %v3046_v52, %v2974_v11 }
 0x17b   :  { %v1537_v24 = vpop.f32.mrf.mxu1  ;;  %v3070_v53 = vadd.f32 %v1497_v1, %v1397_v59 }
 0x17c   :  { %v1499_v7 = vpop.f32.mrf.mxu0  ;;  %v3079_v58 = vadd.f32 %v1537_v24, %v1437_v10  ;;  %v1441_v24 = vadd.f32 %v1440_v46, %v1340_v36  ;;  %v1451_v36 = vadd.f32 %v3048_v21, %v1350_v49 }
 0x17d   :  { %v1539_v32 = vpop.f32.mrf.mxu1  ;;  %v3074_v35 = vadd.f32 %v1499_v7, %v1399_v34  ;;  %1577 = vrot.lane.b32.xlu0 %v3070_v53, %s2126_s0 }
 0x17e   :  { %v1501_v55 = vpop.f32.mrf.mxu0  ;;  %v3086_v43 = vadd.f32 %v1539_v32, %v1439_v62 }
 0x17f   :  { %v1541_v33 = vpop.f32.mrf.mxu1  ;;  %1642 = vrot.lane.b32.xlu1 %v3074_v35, %s2126_s0  ;;  %v3092_v8 = vadd.f32 %v1501_v55, %v1401_v13  ;;  %v3323_v13 = vld [vmem:[#allocation3_spill] sm:$0xff] }
 0x180   :  { %v1503_v59 = vpop.f32.mrf.mxu0  ;;  %v3098_v34 = vadd.f32 %v1541_v33, %v1441_v24  ;;  %v1356_v33 = vadd.f32 %v3054_v27, %v2978_v20 }
 0x181   :  { %v1543_v1 = vpop.f32.mrf.mxu1  ;;  %1593 = vrot.lane.b32.xlu0 %v3079_v58, %s2126_s0  ;;  %v3105_v46 = vadd.f32 %v1503_v59, %v1403_v16 }
 0x182   :  { %v1507_v2 = vpop.f32.mrf.mxu0  ;;  %v3119_v60 = vadd.f32 %v1543_v1, %v1443_v0  ;;  %v1457_v52 = vadd.f32 %v3056_v29, %v1356_v33 }
 0x183   :  { %v1547_v4 = vpop.f32.mrf.mxu1  ;;  %1658 = vrot.lane.b32.xlu1 %v3086_v43, %s2126_s0  ;;  %v3112_v56 = vadd.f32 %v1507_v2, %v1407_v19  ;;  %v3325_v2 = vld [vmem:[#allocation7_spill] sm:$0xff] }
 0x184   :  { %v1509_v39 = vpop.f32.mrf.mxu0  ;;  %v3129_v37 = vadd.f32 %v1547_v4, %v1447_v3 }
 0x185   :  { %v1549_v31 = vpop.f32.mrf.mxu1  ;;  %1579 = vrot.lane.b32.xlu0 %v3092_v8, %s2126_s0  ;;  %v3124_v14 = vadd.f32 %v1509_v39, %v1409_v22 }
 0x186   :  { %v1511_v50 = vpop.f32.mrf.mxu0  ;;  %v3133_v10 = vadd.f32 %v1549_v31, %v1449_v48  ;;  %v3328_v31 = vld [vmem:[#allocation4_spill] sm:$0xff] }
 0x187   :  { %v1551_v51 = vpop.f32.mrf.mxu1  ;;  %1595 = vrot.lane.b32.xlu1 %v3098_v34, %s2126_s0  ;;  %v3147_v62 = vadd.f32 %v1511_v50, %v3007_v57 }
 0x188   :  { %v1513_v42 = vpop.f32.mrf.mxu0  ;;  %v3158_v59 = vadd.f32 %v1551_v51, %v1451_v36 }
 0x189   :  { %v1553_v54 = vpop.f32.mrf.mxu1  ;;  %1644 = vrot.lane.b32.xlu0 %v3105_v46, %s2126_s0  ;;  %v3140_v55 = vadd.f32 %v1513_v42, %v3010_v63 }
 0x18a   :  { %v1517_v45 = vpop.f32.mrf.mxu0 }
 0x18b   :  { %v1557_v40 = vpop.f32.mrf.mxu1  ;;  %1581 = vrot.lane.b32.xlu1 %v3112_v56, %s2126_s0  ;;  %v3153_v11 = vadd.f32 %v1517_v45, %v3013_v5 }
 0x18c   :  { %v1519_v25 = vpop.f32.mrf.mxu0  ;;  %v3162_v20 = vadd.f32 %v1557_v40, %v1457_v52 }
 0x18d   :  { %v1559_v7 = vpop.f32.mrf.mxu1  ;;  %1660 = vrot.lane.b32.xlu0 %v3119_v60, %s2126_s0  ;;  %v3167_v5 = vadd.f32 %v1519_v25, %v3016_v12 }
 0x18e   :  { %v1521_v6 = vpop.f32.mrf.mxu0 }
 0x18f   :  { %v1561_v32 = vpop.f32.mrf.mxu1  ;;  %1646 = vrot.lane.b32.xlu1 %v3124_v14, %s2126_s0  ;;  %v3177_v29 = vadd.f32 %v1521_v6, %v3019_v18  ;;  %v3324_v18 = vld [vmem:[#allocation2_spill] sm:$0xff] }
 0x190   :  { %v1523_v28 = vpop.f32.mrf.mxu0  ;;  %v1358_v4 = vadd.f32 %v3325_v2, %v3324_v18 }
 0x191   :  { %v1562_v17 = vpop.f32.mrf.mxu1  ;;  %1597 = vrot.lane.b32.xlu0 %v3129_v37, %s2126_s0  ;;  %v3172_v21 = vadd.f32 %v1523_v28, %v3022_v26  ;;  %v1352_v26 = vadd.f32 %v3050_v23, %v2976_v15  ;;  %v3329_v15 = vld [vmem:[#allocation8_spill] sm:$0xff] }
 0x192   :  { %v1527_v63 = vpop.f32.mrf.mxu0  ;;  %v1459_v23 = vadd.f32 %v3329_v15, %v1358_v4 }
 0x193   :  { %1662 = vrot.lane.b32.xlu1 %v3133_v10, %s2126_s0  ;;  %v3182_v1 = vadd.f32 %v1527_v63, %v3025_v30  ;;  %v3327_v30 = vld [vmem:[#allocation6_spill] sm:$0xff] }
 0x194   :  { %v1529_v57 = vpop.f32.mrf.mxu0  ;;  %v1453_v39 = vadd.f32 %v3327_v30, %v1352_v26  ;;  %v3211_v50 = vadd.f32 %v1559_v7, %v1459_v23 }
 0x195   :  { %1648 = vrot.lane.b32.xlu0 %v3140_v55, %s2126_s0  ;;  %v3189_v38 = vadd.f32 %v1529_v57, %v3323_v13 }
 0x196   :  { %v1531_v27 = vpop.f32.mrf.mxu0  ;;  %v3207_v41 = vadd.f32 %v1553_v54, %v1453_v39  ;;  %v3222_v54 = vld [vmem:[%s3314_s2] ss:$0 sm:$0xff] }
 0x197   :  { %1583 = vrot.lane.b32.xlu1 %v3147_v62, %s2126_s0  ;;  %v3202_v16 = vadd.f32 %v1531_v27, %v3328_v31 }
 0x198   :  { %v1533_v12 = vpop.f32.mrf.mxu0 }
 0x199   :  { %1585 = vrot.lane.b32.xlu0 %v3153_v11, %s2126_s0  ;;  %v3196_v24 = vadd.f32 %v1533_v12, %v3326_v61 }
 0x19b   :  { %1599 = vrot.lane.b32.xlu1 %v3158_v59, %s2126_s0 }
 0x19d   :  { %1601 = vrot.lane.b32.xlu0 %v3162_v20, %s2126_s0 }
 0x19f   :  { %1650 = vrot.lane.b32.xlu1 %v3167_v5, %s2126_s0 }
 0x1a1   :  { %1652 = vrot.lane.b32.xlu0 %v3172_v21, %s2126_s0 }
 0x1a3   :  { %1587 = vrot.lane.b32.xlu1 %v3177_v29, %s2126_s0 }
 0x1a5   :  { %1589 = vrot.lane.b32.xlu0 %v3182_v1, %s2126_s0 }
 0x1a7   :  { %1654 = vrot.lane.b32.xlu1 %v3189_v38, %s2126_s0 }
 0x1a9   :  { %1656 = vrot.lane.b32.xlu0 %v3196_v24, %s2126_s0 }
 0x1ab   :  { %1591 = vrot.lane.b32.xlu1 %v3202_v16, %s2126_s0 }
 0x1ad   :  { %1664 = vrot.lane.b32.xlu0 %v3207_v41, %s2126_s0 }
 0x1af   :  { %1666 = vrot.lane.b32.xlu1 %v3211_v50, %s2126_s0 }
 0x1ef   :  { %v1578_v51 = vpop.permute.xlu0 %1577 }
 0x1f0   :  { %v1616_v44 = vmax.f32 %v3070_v53, %v1578_v51 }
 0x1f1   :  { %v1643_v19 = vpop.permute.xlu1 %1642 }
 0x1f2   :  { %v1681_v42 = vmax.f32 %v3074_v35, %v1643_v19 }
 0x1f3   :  { %v1594_v0 = vpop.permute.xlu0 %1593 }
 0x1f4   :  { %v1694_v9 = vmax.f32 %v1616_v44, %v1681_v42  ;;  %v1624_v22 = vmax.f32 %v3079_v58, %v1594_v0 }
 0x1f5   :  { %v1659_v45 = vpop.permute.xlu1 %1658 }
 0x1f6   :  { %v1714_v40 = vadd.f32 %v3222_v54, %v1694_v9  ;;  %v1689_v47 = vmax.f32 %v3086_v43, %v1659_v45 }
 0x1f7   :  { %v1580_v25 = vpop.permute.xlu0 %1579 }
 0x1f8   :  { %1728 = vst.msk [vmem:[%s3315_s3] sm:$0xff] %vm1727_vm0, %v1714_v40  ;;  %v1702_v53 = vmax.f32 %v1624_v22, %v1689_v47  ;;  %v1617_v58 = vmax.f32 %v3092_v8, %v1580_v25 }
 0x1f9   :  { %v1596_v35 = vpop.permute.xlu1 %1595 }
 0x1fa   :  { %v1722_v7 = vadd.f32 %v3222_v54, %v1702_v53  ;;  %v1625_v17 = vmax.f32 %v3098_v34, %v1596_v35 }
 0x1fb   :  { %v1645_v3 = vpop.permute.xlu0 %1644 }
 0x1fc   :  { %1736 = vst.msk [vmem:[%s3315_s3 + $0x40] sm:$0xff] %vm1727_vm0, %v1722_v7  ;;  %v1682_v43 = vmax.f32 %v3105_v46, %v1645_v3 }
 0x1fd   :  { %v1582_v32 = vpop.permute.xlu1 %1581 }
 0x1fe   :  { %v1695_v48 = vmax.f32 %v1617_v58, %v1682_v43  ;;  %v1618_v36 = vmax.f32 %v3112_v56, %v1582_v32 }
 0x1ff   :  { %v1661_v6 = vpop.permute.xlu0 %1660 }
 0x200   :  { %v1715_v49 = vadd.f32 %v3222_v54, %v1695_v48  ;;  %v1690_v28 = vmax.f32 %v3119_v60, %v1661_v6 }
 0x201   :  { %v1647_v33 = vpop.permute.xlu1 %1646 }
 0x202   :  { %1729 = vst.msk [vmem:[%s3315_s3 + $0x8] sm:$0xff] %vm1727_vm0, %v1715_v49  ;;  %v1703_v8 = vmax.f32 %v1625_v17, %v1690_v28  ;;  %v1683_v46 = vmax.f32 %v3124_v14, %v1647_v33 }
 0x203   :  { %v1598_v63 = vpop.permute.xlu0 %1597 }
 0x204   :  { %v1723_v52 = vadd.f32 %v3222_v54, %v1703_v8  ;;  %v1696_v57 = vmax.f32 %v1618_v36, %v1683_v46  ;;  %v1626_v27 = vmax.f32 %v3129_v37, %v1598_v63 }
 0x205   :  { %v1663_v34 = vpop.permute.xlu1 %1662 }
 0x206   :  { %1737 = vst.msk [vmem:[%s3315_s3 + $0x48] sm:$0xff] %vm1727_vm0, %v1723_v52  ;;  %v1716_v60 = vadd.f32 %v3222_v54, %v1696_v57  ;;  %v1691_v12 = vmax.f32 %v3133_v10, %v1663_v34 }
 0x207   :  { %v1649_v56 = vpop.permute.xlu0 %1648 }
 0x208   :  { %1730 = vst.msk [vmem:[%s3315_s3 + $0x10] sm:$0xff] %vm1727_vm0, %v1716_v60  ;;  %v1704_v14 = vmax.f32 %v1626_v27, %v1691_v12  ;;  %v1684_v18 = vmax.f32 %v3140_v55, %v1649_v56 }
 0x209   :  { %v1584_v26 = vpop.permute.xlu1 %1583 }
 0x20a   :  { %v1724_v13 = vadd.f32 %v3222_v54, %v1704_v14  ;;  %v1619_v2 = vmax.f32 %v3147_v62, %v1584_v26 }
 0x20b   :  { %v1586_v4 = vpop.permute.xlu0 %1585 }
 0x20c   :  { %1738 = vst.msk [vmem:[%s3315_s3 + $0x50] sm:$0xff] %vm1727_vm0, %v1724_v13  ;;  %v1697_v37 = vmax.f32 %v1619_v2, %v1684_v18  ;;  %v1620_v55 = vmax.f32 %v3153_v11, %v1586_v4 }
 0x20d   :  { %v1600_v10 = vpop.permute.xlu1 %1599 }
 0x20e   :  { %v1717_v61 = vadd.f32 %v3222_v54, %v1697_v37  ;;  %v1627_v35 = vmax.f32 %v3158_v59, %v1600_v10 }
 0x20f   :  { %v1602_v30 = vpop.permute.xlu0 %1601 }
 0x210   :  { %1731 = vst.msk [vmem:[%s3315_s3 + $0x18] sm:$0xff] %vm1727_vm0, %v1717_v61  ;;  %v1628_v3 = vmax.f32 %v3162_v20, %v1602_v30 }
 0x211   :  { %v1651_v39 = vpop.permute.xlu1 %1650 }
 0x212   :  { %v1685_v62 = vmax.f32 %v3167_v5, %v1651_v39 }
 0x213   :  { %v1653_v31 = vpop.permute.xlu0 %1652 }
 0x214   :  { %v1698_v15 = vmax.f32 %v1620_v55, %v1685_v62  ;;  %v1686_v19 = vmax.f32 %v3172_v21, %v1653_v31 }
 0x215   :  { %v1588_v23 = vpop.permute.xlu1 %1587 }
 0x216   :  { %v1718_v51 = vadd.f32 %v3222_v54, %v1698_v15  ;;  %v1621_v44 = vmax.f32 %v3177_v29, %v1588_v23 }
 0x217   :  { %v1590_v42 = vpop.permute.xlu0 %1589 }
 0x218   :  { %1732 = vst.msk [vmem:[%s3315_s3 + $0x20] sm:$0xff] %vm1727_vm0, %v1718_v51  ;;  %v1699_v0 = vmax.f32 %v1621_v44, %v1686_v19  ;;  %v1622_v5 = vmax.f32 %v3182_v1, %v1590_v42 }
 0x219   :  { %v1655_v9 = vpop.permute.xlu1 %1654 }
 0x21a   :  { %v1719_v11 = vadd.f32 %v3222_v54, %v1699_v0  ;;  %v1687_v45 = vmax.f32 %v3189_v38, %v1655_v9 }
 0x21b   :  { %v1657_v40 = vpop.permute.xlu0 %1656 }
 0x21c   :  { %1733 = vst.msk [vmem:[%s3315_s3 + $0x28] sm:$0xff] %vm1727_vm0, %v1719_v11  ;;  %v1700_v21 = vmax.f32 %v1622_v5, %v1687_v45  ;;  %v1688_v47 = vmax.f32 %v3196_v24, %v1657_v40 }
 0x21d   :  { %v1592_v29 = vpop.permute.xlu1 %1591 }
 0x21e   :  { %v1720_v22 = vadd.f32 %v3222_v54, %v1700_v21  ;;  %v1623_v25 = vmax.f32 %v3202_v16, %v1592_v29 }
 0x21f   :  { %v1665_v53 = vpop.permute.xlu0 %1664 }
 0x220   :  { %1734 = vst.msk [vmem:[%s3315_s3 + $0x30] sm:$0xff] %vm1727_vm0, %v1720_v22  ;;  %v1701_v1 = vmax.f32 %v1623_v25, %v1688_v47  ;;  %v1692_v38 = vmax.f32 %v3207_v41, %v1665_v53 }
 0x221   :  { %v1667_v7 = vpop.permute.xlu1 %1666 }
 0x222   :  { %v1721_v58 = vadd.f32 %v3222_v54, %v1701_v1  ;;  %v1705_v43 = vmax.f32 %v1627_v35, %v1692_v38  ;;  %v1693_v24 = vmax.f32 %v3211_v50, %v1667_v7 }
 0x224   :  { %1735 = vst.msk [vmem:[%s3315_s3 + $0x38] sm:$0xff] %vm1727_vm0, %v1721_v58  ;;  %v1725_v59 = vadd.f32 %v3222_v54, %v1705_v43  ;;  %v1706_v16 = vmax.f32 %v1628_v3, %v1693_v24 }
 0x226   :  { %1739 = vst.msk [vmem:[%s3315_s3 + $0x58] sm:$0xff] %vm1727_vm0, %v1725_v59  ;;  %v1726_v20 = vadd.f32 %v3222_v54, %v1706_v16 }
 0x228   :  { %1741 = vst.msk [vmem:[%s3315_s3 + $0x60] sm:$0x3] %vm1740_vm1, %v1726_v20 }

// kernel: net3_forward.5
= control target key start
LH: loop header
LB: loop body
LE: loop exit
PB: predicated region body
PF: predicated region fallthrough
CT: control target
= control target key end

     0   :  { %11 = vsyncpa [#allocation5], 0  ;;  %s4304_s21 = smov 0   ;;  %s4306_s22 = smov 0   ;;  %s5891_s0 = inlined_call_operand.vmem [shape: f32[2,3136], index: 0, kind: input, shape index: {}]   ;;  %s5892_s1 = inlined_call_operand.vmem [shape: s8[3136,1024], index: 1, kind: input, shape index: {}]   ;;  %s5893_s2 = inlined_call_operand.vmem [shape: f32[1,1024], index: 2, kind: input, shape index: {}]   ;;  %s5894_s3 = inlined_call_operand.vmem [shape: f32[1,1024], index: 3, kind: input, shape index: {}]   ;;  %s5895_s4 = inlined_call_operand.vmem [shape: bf16[1024,128], index: 4, kind: input, shape index: {}]   ;;  %s5896_s5 = inlined_call_operand.vmem [shape: f32[1,128], index: 5, kind: input, shape index: {}]   ;;  %s5897_s6 = inlined_call_operand.hbm [shape: f32[2,128], index: 6, kind: output, shape index: {}]  }
   0x1   :  { %s4308_s23 = smov 0  }
   0x2 LB: > { %s4320_s24 = sadd.s32 4294967295, %s4263_s23   ;;  %s4323_s25 = sadd.s32 1, %s4263_s23   ;;  %s4263_s23 = sphi %s4308_s23, %s5900_s23   ;;  %s4259_s22 = sphi %s4306_s22, %s5899_s22   ;;  %s4255_s21 = sphi %s4304_s21, %s5898_s21  }
   0x3   : > { %s42_s26 = ssub.s32 %s4263_s23, %s4323_s25  ;;  %s45_s27 = sadd.s32 1, %s4259_s22 }
   0x4   : > { %p43_p0 = scmp.eq.s32.totalorder %s42_s26, 0  ;;  %p52_p1 = scmp.ne.s32.totalorder %s4259_s22, %s4255_s21 }
   0x5   : > { %p53_p2 = scmp.eq.s32.totalorder %s4263_s23, 0  ;;  %p4040_p4 = scmp.ge.s32.totalorder %s4263_s23, 2 }
   0x6   : > { %s4332_s28 = scalar_select %p43_p0, %s4259_s22, %s45_s27  }
   0x7   : > { %p54_p3 = por %p53_p2, %p52_p1  ;;  %204 = sbr.rel (%p4040_p4) target bundleno = 213 (0xd5), region = 24 }
   0xc   : > { %207 = sbr.rel (!%p54_p3) target bundleno = 213 (0xd5), region = 28  ;;  %s209_s29 = sand.u32 (%p54_p3), 1, %s4259_s22  }
   0xd   : > { %s4090_s30 = sshll.u32 (%p54_p3), %s4263_s23, 5  ;;  %s4135_s7 = smul.u32 (%p54_p3), 3136, %s209_s29 }
   0xe   : > { %s4340_s10 = scalar_lea.vmem (%p54_p3), %s5892_s1, %s4090_s30 }
   0xf   : > { %v227_v0 = vld [vmem:[%s4340_s10] sm:$0xff] (%p54_p3)  ;;  %v229_v1 = vld [vmem:[%s4340_s10 + $0x8] sm:$0xff] (%p54_p3)  ;;  %v231_v2 = vld [vmem:[%s4340_s10 + $0x10] sm:$0xff] (%p54_p3)  ;;  %s4348_s11 = scalar_lea.vmem (%p54_p3), [#allocation3], %s4135_s7 }
  0x10   : > { %v233_v3 = vld [vmem:[%s4340_s10 + $0x18] sm:$0xff] (%p54_p3)  ;;  %v235_v4 = vld [vmem:[%s4340_s10 + $0x40] sm:$0xff] (%p54_p3)  ;;  %v237_v5 = vld [vmem:[%s4340_s10 + $0x48] sm:$0xff] (%p54_p3)  ;;  %228 = vst [vmem:[%s4348_s11] sm:$0xff] (%p54_p3), %v227_v0 }
  0x11   : > { %230 = vst [vmem:[%s4348_s11 + $0x8] sm:$0xff] %v229_v1  ;;  %232 = vst [vmem:[%s4348_s11 + $0x10] sm:$0xff] %v231_v2  ;;  %v239_v6 = vld [vmem:[%s4340_s10 + $0x50] sm:$0xff]  ;;  %v241_v7 = vld [vmem:[%s4340_s10 + $0x58] sm:$0xff] }
  0x12   : > { %234 = vst [vmem:[%s4348_s11 + $0x18] sm:$0xff] %v233_v3  ;;  %236 = vst [vmem:[%s4348_s11 + $0x20] sm:$0xff] %v235_v4  ;;  %v243_v8 = vld [vmem:[%s4340_s10 + $0x80] sm:$0xff]  ;;  %v245_v9 = vld [vmem:[%s4340_s10 + $0x88] sm:$0xff] }
  0x13   : > { %238 = vst [vmem:[%s4348_s11 + $0x28] sm:$0xff] %v237_v5  ;;  %240 = vst [vmem:[%s4348_s11 + $0x30] sm:$0xff] %v239_v6  ;;  %v247_v10 = vld [vmem:[%s4340_s10 + $0x90] sm:$0xff]  ;;  %v249_v11 = vld [vmem:[%s4340_s10 + $0x98] sm:$0xff] }
  0x14   : > { %242 = vst [vmem:[%s4348_s11 + $0x38] sm:$0xff] %v241_v7  ;;  %244 = vst [vmem:[%s4348_s11 + $0x40] sm:$0xff] %v243_v8  ;;  %v251_v12 = vld [vmem:[%s4340_s10 + $0xc0] sm:$0xff]  ;;  %v253_v13 = vld [vmem:[%s4340_s10 + $0xc8] sm:$0xff] }
  0x15   : > { %246 = vst [vmem:[%s4348_s11 + $0x48] sm:$0xff] %v245_v9  ;;  %248 = vst [vmem:[%s4348_s11 + $0x50] sm:$0xff] %v247_v10  ;;  %v255_v14 = vld [vmem:[%s4340_s10 + $0xd0] sm:$0xff]  ;;  %v257_v15 = vld [vmem:[%s4340_s10 + $0xd8] sm:$0xff] }
  0x16   : > { %250 = vst [vmem:[%s4348_s11 + $0x58] sm:$0xff] %v249_v11  ;;  %252 = vst [vmem:[%s4348_s11 + $0x60] sm:$0xff] %v251_v12  ;;  %v259_v16 = vld [vmem:[%s4340_s10 + $0x100] sm:$0xff]  ;;  %v261_v17 = vld [vmem:[%s4340_s10 + $0x108] sm:$0xff] }
  0x17   : > { %254 = vst [vmem:[%s4348_s11 + $0x68] sm:$0xff] %v253_v13  ;;  %256 = vst [vmem:[%s4348_s11 + $0x70] sm:$0xff] %v255_v14  ;;  %v263_v18 = vld [vmem:[%s4340_s10 + $0x110] sm:$0xff]  ;;  %v265_v19 = vld [vmem:[%s4340_s10 + $0x118] sm:$0xff] }
  0x18   : > { %258 = vst [vmem:[%s4348_s11 + $0x78] sm:$0xff] %v257_v15  ;;  %260 = vst [vmem:[%s4348_s11 + $0x80] sm:$0xff] %v259_v16  ;;  %v267_v20 = vld [vmem:[%s4340_s10 + $0x140] sm:$0xff]  ;;  %v269_v21 = vld [vmem:[%s4340_s10 + $0x148] sm:$0xff] }
  0x19   : > { %262 = vst [vmem:[%s4348_s11 + $0x88] sm:$0xff] %v261_v17  ;;  %264 = vst [vmem:[%s4348_s11 + $0x90] sm:$0xff] %v263_v18  ;;  %v271_v22 = vld [vmem:[%s4340_s10 + $0x150] sm:$0xff]  ;;  %v273_v23 = vld [vmem:[%s4340_s10 + $0x158] sm:$0xff] }
  0x1a   : > { %266 = vst [vmem:[%s4348_s11 + $0x98] sm:$0xff] %v265_v19  ;;  %268 = vst [vmem:[%s4348_s11 + $0xa0] sm:$0xff] %v267_v20  ;;  %v275_v24 = vld [vmem:[%s4340_s10 + $0x180] sm:$0xff]  ;;  %v277_v25 = vld [vmem:[%s4340_s10 + $0x188] sm:$0xff] }
  0x1b   : > { %270 = vst [vmem:[%s4348_s11 + $0xa8] sm:$0xff] %v269_v21  ;;  %272 = vst [vmem:[%s4348_s11 + $0xb0] sm:$0xff] %v271_v22  ;;  %v279_v26 = vld [vmem:[%s4340_s10 + $0x190] sm:$0xff]  ;;  %v281_v27 = vld [vmem:[%s4340_s10 + $0x198] sm:$0xff] }
  0x1c   : > { %274 = vst [vmem:[%s4348_s11 + $0xb8] sm:$0xff] %v273_v23  ;;  %276 = vst [vmem:[%s4348_s11 + $0xc0] sm:$0xff] %v275_v24  ;;  %v283_v28 = vld [vmem:[%s4340_s10 + $0x1c0] sm:$0xff]  ;;  %v285_v29 = vld [vmem:[%s4340_s10 + $0x1c8] sm:$0xff] }
  0x1d   : > { %278 = vst [vmem:[%s4348_s11 + $0xc8] sm:$0xff] %v277_v25  ;;  %280 = vst [vmem:[%s4348_s11 + $0xd0] sm:$0xff] %v279_v26  ;;  %v287_v30 = vld [vmem:[%s4340_s10 + $0x1d0] sm:$0xff]  ;;  %v289_v31 = vld [vmem:[%s4340_s10 + $0x1d8] sm:$0xff] }
  0x1e   : > { %282 = vst [vmem:[%s4348_s11 + $0xd8] sm:$0xff] %v281_v27  ;;  %284 = vst [vmem:[%s4348_s11 + $0xe0] sm:$0xff] %v283_v28  ;;  %v291_v32 = vld [vmem:[%s4340_s10 + $0x200] sm:$0xff]  ;;  %v293_v33 = vld [vmem:[%s4340_s10 + $0x208] sm:$0xff] }
  0x1f   : > { %286 = vst [vmem:[%s4348_s11 + $0xe8] sm:$0xff] %v285_v29  ;;  %288 = vst [vmem:[%s4348_s11 + $0xf0] sm:$0xff] %v287_v30  ;;  %v295_v34 = vld [vmem:[%s4340_s10 + $0x210] sm:$0xff]  ;;  %v297_v35 = vld [vmem:[%s4340_s10 + $0x218] sm:$0xff] }
  0x20   : > { %290 = vst [vmem:[%s4348_s11 + $0xf8] sm:$0xff] %v289_v31  ;;  %292 = vst [vmem:[%s4348_s11 + $0x100] sm:$0xff] %v291_v32  ;;  %v299_v36 = vld [vmem:[%s4340_s10 + $0x240] sm:$0xff]  ;;  %v301_v37 = vld [vmem:[%s4340_s10 + $0x248] sm:$0xff] }
  0x21   : > { %294 = vst [vmem:[%s4348_s11 + $0x108] sm:$0xff] %v293_v33  ;;  %296 = vst [vmem:[%s4348_s11 + $0x110] sm:$0xff] %v295_v34  ;;  %v303_v38 = vld [vmem:[%s4340_s10 + $0x250] sm:$0xff]  ;;  %v305_v39 = vld [vmem:[%s4340_s10 + $0x258] sm:$0xff] }
  0x22   : > { %298 = vst [vmem:[%s4348_s11 + $0x118] sm:$0xff] %v297_v35  ;;  %300 = vst [vmem:[%s4348_s11 + $0x120] sm:$0xff] %v299_v36  ;;  %v307_v40 = vld [vmem:[%s4340_s10 + $0x280] sm:$0xff]  ;;  %v309_v41 = vld [vmem:[%s4340_s10 + $0x288] sm:$0xff] }
  0x23   : > { %302 = vst [vmem:[%s4348_s11 + $0x128] sm:$0xff] %v301_v37  ;;  %304 = vst [vmem:[%s4348_s11 + $0x130] sm:$0xff] %v303_v38  ;;  %v311_v42 = vld [vmem:[%s4340_s10 + $0x290] sm:$0xff]  ;;  %v313_v43 = vld [vmem:[%s4340_s10 + $0x298] sm:$0xff] }
  0x24   : > { %306 = vst [vmem:[%s4348_s11 + $0x138] sm:$0xff] %v305_v39  ;;  %308 = vst [vmem:[%s4348_s11 + $0x140] sm:$0xff] %v307_v40  ;;  %v315_v44 = vld [vmem:[%s4340_s10 + $0x2c0] sm:$0xff]  ;;  %v317_v45 = vld [vmem:[%s4340_s10 + $0x2c8] sm:$0xff] }
  0x25   : > { %310 = vst [vmem:[%s4348_s11 + $0x148] sm:$0xff] %v309_v41  ;;  %312 = vst [vmem:[%s4348_s11 + $0x150] sm:$0xff] %v311_v42  ;;  %v319_v46 = vld [vmem:[%s4340_s10 + $0x2d0] sm:$0xff]  ;;  %v321_v47 = vld [vmem:[%s4340_s10 + $0x2d8] sm:$0xff] }
  0x26   : > { %314 = vst [vmem:[%s4348_s11 + $0x158] sm:$0xff] %v313_v43  ;;  %316 = vst [vmem:[%s4348_s11 + $0x160] sm:$0xff] %v315_v44  ;;  %v323_v48 = vld [vmem:[%s4340_s10 + $0x300] sm:$0xff]  ;;  %v325_v49 = vld [vmem:[%s4340_s10 + $0x308] sm:$0xff] }
  0x27   : > { %318 = vst [vmem:[%s4348_s11 + $0x168] sm:$0xff] %v317_v45  ;;  %320 = vst [vmem:[%s4348_s11 + $0x170] sm:$0xff] %v319_v46  ;;  %v327_v50 = vld [vmem:[%s4340_s10 + $0x310] sm:$0xff]  ;;  %v329_v51 = vld [vmem:[%s4340_s10 + $0x318] sm:$0xff] }
  0x28   : > { %322 = vst [vmem:[%s4348_s11 + $0x178] sm:$0xff] %v321_v47  ;;  %324 = vst [vmem:[%s4348_s11 + $0x180] sm:$0xff] %v323_v48  ;;  %v331_v52 = vld [vmem:[%s4340_s10 + $0x340] sm:$0xff]  ;;  %v333_v53 = vld [vmem:[%s4340_s10 + $0x348] sm:$0xff] }
  0x29   : > { %326 = vst [vmem:[%s4348_s11 + $0x188] sm:$0xff] %v325_v49  ;;  %328 = vst [vmem:[%s4348_s11 + $0x190] sm:$0xff] %v327_v50  ;;  %v335_v54 = vld [vmem:[%s4340_s10 + $0x350] sm:$0xff]  ;;  %v337_v55 = vld [vmem:[%s4340_s10 + $0x358] sm:$0xff] }
  0x2a   : > { %330 = vst [vmem:[%s4348_s11 + $0x198] sm:$0xff] %v329_v51  ;;  %332 = vst [vmem:[%s4348_s11 + $0x1a0] sm:$0xff] %v331_v52  ;;  %v339_v56 = vld [vmem:[%s4340_s10 + $0x380] sm:$0xff]  ;;  %v341_v57 = vld [vmem:[%s4340_s10 + $0x388] sm:$0xff] }
  0x2b   : > { %334 = vst [vmem:[%s4348_s11 + $0x1a8] sm:$0xff] %v333_v53  ;;  %336 = vst [vmem:[%s4348_s11 + $0x1b0] sm:$0xff] %v335_v54  ;;  %v343_v58 = vld [vmem:[%s4340_s10 + $0x390] sm:$0xff]  ;;  %v345_v59 = vld [vmem:[%s4340_s10 + $0x398] sm:$0xff] }
  0x2c   : > { %338 = vst [vmem:[%s4348_s11 + $0x1b8] sm:$0xff] %v337_v55  ;;  %340 = vst [vmem:[%s4348_s11 + $0x1c0] sm:$0xff] %v339_v56  ;;  %v347_v60 = vld [vmem:[%s4340_s10 + $0x3c0] sm:$0xff]  ;;  %v349_v61 = vld [vmem:[%s4340_s10 + $0x3c8] sm:$0xff] }
  0x2d   : > { %342 = vst [vmem:[%s4348_s11 + $0x1c8] sm:$0xff] %v341_v57  ;;  %344 = vst [vmem:[%s4348_s11 + $0x1d0] sm:$0xff] %v343_v58  ;;  %v351_v62 = vld [vmem:[%s4340_s10 + $0x3d0] sm:$0xff]  ;;  %v353_v63 = vld [vmem:[%s4340_s10 + $0x3d8] sm:$0xff] }
  0x2e   : > { %346 = vst [vmem:[%s4348_s11 + $0x1d8] sm:$0xff] %v345_v59  ;;  %348 = vst [vmem:[%s4348_s11 + $0x1e0] sm:$0xff] %v347_v60  ;;  %v355_v0 = vld [vmem:[%s4340_s10 + $0x400] sm:$0xff]  ;;  %v357_v1 = vld [vmem:[%s4340_s10 + $0x408] sm:$0xff] }
  0x2f   : > { %350 = vst [vmem:[%s4348_s11 + $0x1e8] sm:$0xff] %v349_v61  ;;  %352 = vst [vmem:[%s4348_s11 + $0x1f0] sm:$0xff] %v351_v62  ;;  %v359_v2 = vld [vmem:[%s4340_s10 + $0x410] sm:$0xff]  ;;  %v361_v3 = vld [vmem:[%s4340_s10 + $0x418] sm:$0xff] }
  0x30   : > { %354 = vst [vmem:[%s4348_s11 + $0x1f8] sm:$0xff] %v353_v63  ;;  %356 = vst [vmem:[%s4348_s11 + $0x200] sm:$0xff] %v355_v0  ;;  %v363_v4 = vld [vmem:[%s4340_s10 + $0x440] sm:$0xff]  ;;  %v365_v5 = vld [vmem:[%s4340_s10 + $0x448] sm:$0xff] }
  0x31   : > { %358 = vst [vmem:[%s4348_s11 + $0x208] sm:$0xff] %v357_v1  ;;  %360 = vst [vmem:[%s4348_s11 + $0x210] sm:$0xff] %v359_v2  ;;  %v367_v6 = vld [vmem:[%s4340_s10 + $0x450] sm:$0xff]  ;;  %v369_v7 = vld [vmem:[%s4340_s10 + $0x458] sm:$0xff] }
  0x32   : > { %362 = vst [vmem:[%s4348_s11 + $0x218] sm:$0xff] %v361_v3  ;;  %364 = vst [vmem:[%s4348_s11 + $0x220] sm:$0xff] %v363_v4  ;;  %v371_v8 = vld [vmem:[%s4340_s10 + $0x480] sm:$0xff]  ;;  %v373_v9 = vld [vmem:[%s4340_s10 + $0x488] sm:$0xff] }
  0x33   : > { %366 = vst [vmem:[%s4348_s11 + $0x228] sm:$0xff] %v365_v5  ;;  %368 = vst [vmem:[%s4348_s11 + $0x230] sm:$0xff] %v367_v6  ;;  %v375_v10 = vld [vmem:[%s4340_s10 + $0x490] sm:$0xff]  ;;  %v377_v11 = vld [vmem:[%s4340_s10 + $0x498] sm:$0xff] }
  0x34   : > { %370 = vst [vmem:[%s4348_s11 + $0x238] sm:$0xff] %v369_v7  ;;  %372 = vst [vmem:[%s4348_s11 + $0x240] sm:$0xff] %v371_v8  ;;  %v379_v12 = vld [vmem:[%s4340_s10 + $0x4c0] sm:$0xff]  ;;  %v381_v13 = vld [vmem:[%s4340_s10 + $0x4c8] sm:$0xff] }
  0x35   : > { %374 = vst [vmem:[%s4348_s11 + $0x248] sm:$0xff] %v373_v9  ;;  %376 = vst [vmem:[%s4348_s11 + $0x250] sm:$0xff] %v375_v10  ;;  %v383_v14 = vld [vmem:[%s4340_s10 + $0x4d0] sm:$0xff]  ;;  %v385_v15 = vld [vmem:[%s4340_s10 + $0x4d8] sm:$0xff] }
  0x36   : > { %378 = vst [vmem:[%s4348_s11 + $0x258] sm:$0xff] %v377_v11  ;;  %380 = vst [vmem:[%s4348_s11 + $0x260] sm:$0xff] %v379_v12  ;;  %v387_v16 = vld [vmem:[%s4340_s10 + $0x500] sm:$0xff]  ;;  %v389_v17 = vld [vmem:[%s4340_s10 + $0x508] sm:$0xff] }
  0x37   : > { %382 = vst [vmem:[%s4348_s11 + $0x268] sm:$0xff] %v381_v13  ;;  %384 = vst [vmem:[%s4348_s11 + $0x270] sm:$0xff] %v383_v14  ;;  %v391_v18 = vld [vmem:[%s4340_s10 + $0x510] sm:$0xff]  ;;  %v393_v19 = vld [vmem:[%s4340_s10 + $0x518] sm:$0xff] }
  0x38   : > { %386 = vst [vmem:[%s4348_s11 + $0x278] sm:$0xff] %v385_v15  ;;  %388 = vst [vmem:[%s4348_s11 + $0x280] sm:$0xff] %v387_v16  ;;  %v395_v20 = vld [vmem:[%s4340_s10 + $0x540] sm:$0xff]  ;;  %v397_v21 = vld [vmem:[%s4340_s10 + $0x548] sm:$0xff] }
  0x39   : > { %390 = vst [vmem:[%s4348_s11 + $0x288] sm:$0xff] %v389_v17  ;;  %392 = vst [vmem:[%s4348_s11 + $0x290] sm:$0xff] %v391_v18  ;;  %v399_v22 = vld [vmem:[%s4340_s10 + $0x550] sm:$0xff]  ;;  %v401_v23 = vld [vmem:[%s4340_s10 + $0x558] sm:$0xff] }
  0x3a   : > { %394 = vst [vmem:[%s4348_s11 + $0x298] sm:$0xff] %v393_v19  ;;  %396 = vst [vmem:[%s4348_s11 + $0x2a0] sm:$0xff] %v395_v20  ;;  %v403_v24 = vld [vmem:[%s4340_s10 + $0x580] sm:$0xff]  ;;  %v405_v25 = vld [vmem:[%s4340_s10 + $0x588] sm:$0xff] }
  0x3b   : > { %398 = vst [vmem:[%s4348_s11 + $0x2a8] sm:$0xff] %v397_v21  ;;  %400 = vst [vmem:[%s4348_s11 + $0x2b0] sm:$0xff] %v399_v22  ;;  %v407_v26 = vld [vmem:[%s4340_s10 + $0x590] sm:$0xff]  ;;  %v409_v27 = vld [vmem:[%s4340_s10 + $0x598] sm:$0xff] }
  0x3c   : > { %402 = vst [vmem:[%s4348_s11 + $0x2b8] sm:$0xff] %v401_v23  ;;  %404 = vst [vmem:[%s4348_s11 + $0x2c0] sm:$0xff] %v403_v24  ;;  %v411_v28 = vld [vmem:[%s4340_s10 + $0x5c0] sm:$0xff]  ;;  %v413_v29 = vld [vmem:[%s4340_s10 + $0x5c8] sm:$0xff] }
  0x3d   : > { %406 = vst [vmem:[%s4348_s11 + $0x2c8] sm:$0xff] %v405_v25  ;;  %408 = vst [vmem:[%s4348_s11 + $0x2d0] sm:$0xff] %v407_v26  ;;  %v415_v30 = vld [vmem:[%s4340_s10 + $0x5d0] sm:$0xff]  ;;  %v417_v31 = vld [vmem:[%s4340_s10 + $0x5d8] sm:$0xff] }
  0x3e   : > { %410 = vst [vmem:[%s4348_s11 + $0x2d8] sm:$0xff] %v409_v27  ;;  %412 = vst [vmem:[%s4348_s11 + $0x2e0] sm:$0xff] %v411_v28  ;;  %v419_v32 = vld [vmem:[%s4340_s10 + $0x600] sm:$0xff]  ;;  %v421_v33 = vld [vmem:[%s4340_s10 + $0x608] sm:$0xff] }
  0x3f   : > { %414 = vst [vmem:[%s4348_s11 + $0x2e8] sm:$0xff] %v413_v29  ;;  %416 = vst [vmem:[%s4348_s11 + $0x2f0] sm:$0xff] %v415_v30  ;;  %v423_v34 = vld [vmem:[%s4340_s10 + $0x610] sm:$0xff]  ;;  %v425_v35 = vld [vmem:[%s4340_s10 + $0x618] sm:$0xff] }
  0x40   : > { %418 = vst [vmem:[%s4348_s11 + $0x2f8] sm:$0xff] %v417_v31  ;;  %420 = vst [vmem:[%s4348_s11 + $0x300] sm:$0xff] %v419_v32  ;;  %v427_v36 = vld [vmem:[%s4340_s10 + $0x640] sm:$0xff]  ;;  %v429_v37 = vld [vmem:[%s4340_s10 + $0x648] sm:$0xff] }
  0x41   : > { %422 = vst [vmem:[%s4348_s11 + $0x308] sm:$0xff] %v421_v33  ;;  %424 = vst [vmem:[%s4348_s11 + $0x310] sm:$0xff] %v423_v34  ;;  %v431_v38 = vld [vmem:[%s4340_s10 + $0x650] sm:$0xff]  ;;  %v433_v39 = vld [vmem:[%s4340_s10 + $0x658] sm:$0xff] }
  0x42   : > { %426 = vst [vmem:[%s4348_s11 + $0x318] sm:$0xff] %v425_v35  ;;  %428 = vst [vmem:[%s4348_s11 + $0x320] sm:$0xff] %v427_v36  ;;  %v435_v40 = vld [vmem:[%s4340_s10 + $0x680] sm:$0xff]  ;;  %v437_v41 = vld [vmem:[%s4340_s10 + $0x688] sm:$0xff] }
  0x43   : > { %430 = vst [vmem:[%s4348_s11 + $0x328] sm:$0xff] %v429_v37  ;;  %432 = vst [vmem:[%s4348_s11 + $0x330] sm:$0xff] %v431_v38  ;;  %v439_v42 = vld [vmem:[%s4340_s10 + $0x690] sm:$0xff]  ;;  %v441_v43 = vld [vmem:[%s4340_s10 + $0x698] sm:$0xff] }
  0x44   : > { %434 = vst [vmem:[%s4348_s11 + $0x338] sm:$0xff] %v433_v39  ;;  %436 = vst [vmem:[%s4348_s11 + $0x340] sm:$0xff] %v435_v40  ;;  %v443_v44 = vld [vmem:[%s4340_s10 + $0x6c0] sm:$0xff]  ;;  %v445_v45 = vld [vmem:[%s4340_s10 + $0x6c8] sm:$0xff] }
  0x45   : > { %438 = vst [vmem:[%s4348_s11 + $0x348] sm:$0xff] %v437_v41  ;;  %440 = vst [vmem:[%s4348_s11 + $0x350] sm:$0xff] %v439_v42  ;;  %v447_v46 = vld [vmem:[%s4340_s10 + $0x6d0] sm:$0xff]  ;;  %v449_v47 = vld [vmem:[%s4340_s10 + $0x6d8] sm:$0xff] }
  0x46   : > { %442 = vst [vmem:[%s4348_s11 + $0x358] sm:$0xff] %v441_v43  ;;  %444 = vst [vmem:[%s4348_s11 + $0x360] sm:$0xff] %v443_v44  ;;  %v451_v48 = vld [vmem:[%s4340_s10 + $0x700] sm:$0xff]  ;;  %v453_v49 = vld [vmem:[%s4340_s10 + $0x708] sm:$0xff] }
  0x47   : > { %446 = vst [vmem:[%s4348_s11 + $0x368] sm:$0xff] %v445_v45  ;;  %448 = vst [vmem:[%s4348_s11 + $0x370] sm:$0xff] %v447_v46  ;;  %v455_v50 = vld [vmem:[%s4340_s10 + $0x710] sm:$0xff]  ;;  %v457_v51 = vld [vmem:[%s4340_s10 + $0x718] sm:$0xff] }
  0x48   : > { %450 = vst [vmem:[%s4348_s11 + $0x378] sm:$0xff] %v449_v47  ;;  %452 = vst [vmem:[%s4348_s11 + $0x380] sm:$0xff] %v451_v48  ;;  %v459_v52 = vld [vmem:[%s4340_s10 + $0x740] sm:$0xff]  ;;  %v461_v53 = vld [vmem:[%s4340_s10 + $0x748] sm:$0xff] }
  0x49   : > { %454 = vst [vmem:[%s4348_s11 + $0x388] sm:$0xff] %v453_v49  ;;  %456 = vst [vmem:[%s4348_s11 + $0x390] sm:$0xff] %v455_v50  ;;  %v463_v54 = vld [vmem:[%s4340_s10 + $0x750] sm:$0xff]  ;;  %v465_v55 = vld [vmem:[%s4340_s10 + $0x758] sm:$0xff] }
  0x4a   : > { %458 = vst [vmem:[%s4348_s11 + $0x398] sm:$0xff] %v457_v51  ;;  %460 = vst [vmem:[%s4348_s11 + $0x3a0] sm:$0xff] %v459_v52  ;;  %v467_v56 = vld [vmem:[%s4340_s10 + $0x780] sm:$0xff]  ;;  %v469_v57 = vld [vmem:[%s4340_s10 + $0x788] sm:$0xff] }
  0x4b   : > { %462 = vst [vmem:[%s4348_s11 + $0x3a8] sm:$0xff] %v461_v53  ;;  %464 = vst [vmem:[%s4348_s11 + $0x3b0] sm:$0xff] %v463_v54  ;;  %v471_v58 = vld [vmem:[%s4340_s10 + $0x790] sm:$0xff]  ;;  %v473_v59 = vld [vmem:[%s4340_s10 + $0x798] sm:$0xff] }
  0x4c   : > { %466 = vst [vmem:[%s4348_s11 + $0x3b8] sm:$0xff] %v465_v55  ;;  %468 = vst [vmem:[%s4348_s11 + $0x3c0] sm:$0xff] %v467_v56  ;;  %v475_v60 = vld [vmem:[%s4340_s10 + $0x7c0] sm:$0xff]  ;;  %v477_v61 = vld [vmem:[%s4340_s10 + $0x7c8] sm:$0xff] }
  0x4d   : > { %470 = vst [vmem:[%s4348_s11 + $0x3c8] sm:$0xff] %v469_v57  ;;  %472 = vst [vmem:[%s4348_s11 + $0x3d0] sm:$0xff] %v471_v58  ;;  %v479_v62 = vld [vmem:[%s4340_s10 + $0x7d0] sm:$0xff]  ;;  %v481_v63 = vld [vmem:[%s4340_s10 + $0x7d8] sm:$0xff] }
  0x4e   : > { %474 = vst [vmem:[%s4348_s11 + $0x3d8] sm:$0xff] %v473_v59  ;;  %476 = vst [vmem:[%s4348_s11 + $0x3e0] sm:$0xff] %v475_v60  ;;  %v483_v0 = vld [vmem:[%s4340_s10 + $0x800] sm:$0xff]  ;;  %v485_v1 = vld [vmem:[%s4340_s10 + $0x808] sm:$0xff] }
  0x4f   : > { %478 = vst [vmem:[%s4348_s11 + $0x3e8] sm:$0xff] %v477_v61  ;;  %480 = vst [vmem:[%s4348_s11 + $0x3f0] sm:$0xff] %v479_v62  ;;  %v487_v2 = vld [vmem:[%s4340_s10 + $0x810] sm:$0xff]  ;;  %v489_v3 = vld [vmem:[%s4340_s10 + $0x818] sm:$0xff] }
  0x50   : > { %482 = vst [vmem:[%s4348_s11 + $0x3f8] sm:$0xff] %v481_v63  ;;  %484 = vst [vmem:[%s4348_s11 + $0x400] sm:$0xff] %v483_v0  ;;  %v491_v4 = vld [vmem:[%s4340_s10 + $0x840] sm:$0xff]  ;;  %v493_v5 = vld [vmem:[%s4340_s10 + $0x848] sm:$0xff] }
  0x51   : > { %486 = vst [vmem:[%s4348_s11 + $0x408] sm:$0xff] %v485_v1  ;;  %488 = vst [vmem:[%s4348_s11 + $0x410] sm:$0xff] %v487_v2  ;;  %v495_v6 = vld [vmem:[%s4340_s10 + $0x850] sm:$0xff]  ;;  %v497_v7 = vld [vmem:[%s4340_s10 + $0x858] sm:$0xff] }
  0x52   : > { %490 = vst [vmem:[%s4348_s11 + $0x418] sm:$0xff] %v489_v3  ;;  %492 = vst [vmem:[%s4348_s11 + $0x420] sm:$0xff] %v491_v4  ;;  %v499_v8 = vld [vmem:[%s4340_s10 + $0x880] sm:$0xff]  ;;  %v501_v9 = vld [vmem:[%s4340_s10 + $0x888] sm:$0xff] }
  0x53   : > { %494 = vst [vmem:[%s4348_s11 + $0x428] sm:$0xff] %v493_v5  ;;  %496 = vst [vmem:[%s4348_s11 + $0x430] sm:$0xff] %v495_v6  ;;  %v503_v10 = vld [vmem:[%s4340_s10 + $0x890] sm:$0xff]  ;;  %v505_v11 = vld [vmem:[%s4340_s10 + $0x898] sm:$0xff] }
  0x54   : > { %498 = vst [vmem:[%s4348_s11 + $0x438] sm:$0xff] %v497_v7  ;;  %500 = vst [vmem:[%s4348_s11 + $0x440] sm:$0xff] %v499_v8  ;;  %v507_v12 = vld [vmem:[%s4340_s10 + $0x8c0] sm:$0xff]  ;;  %v509_v13 = vld [vmem:[%s4340_s10 + $0x8c8] sm:$0xff] }
  0x55   : > { %502 = vst [vmem:[%s4348_s11 + $0x448] sm:$0xff] %v501_v9  ;;  %504 = vst [vmem:[%s4348_s11 + $0x450] sm:$0xff] %v503_v10  ;;  %v511_v14 = vld [vmem:[%s4340_s10 + $0x8d0] sm:$0xff]  ;;  %v513_v15 = vld [vmem:[%s4340_s10 + $0x8d8] sm:$0xff] }
  0x56   : > { %506 = vst [vmem:[%s4348_s11 + $0x458] sm:$0xff] %v505_v11  ;;  %508 = vst [vmem:[%s4348_s11 + $0x460] sm:$0xff] %v507_v12  ;;  %v515_v16 = vld [vmem:[%s4340_s10 + $0x900] sm:$0xff]  ;;  %v517_v17 = vld [vmem:[%s4340_s10 + $0x908] sm:$0xff] }
  0x57   : > { %510 = vst [vmem:[%s4348_s11 + $0x468] sm:$0xff] %v509_v13  ;;  %512 = vst [vmem:[%s4348_s11 + $0x470] sm:$0xff] %v511_v14  ;;  %v519_v18 = vld [vmem:[%s4340_s10 + $0x910] sm:$0xff]  ;;  %v521_v19 = vld [vmem:[%s4340_s10 + $0x918] sm:$0xff] }
  0x58   : > { %514 = vst [vmem:[%s4348_s11 + $0x478] sm:$0xff] %v513_v15  ;;  %516 = vst [vmem:[%s4348_s11 + $0x480] sm:$0xff] %v515_v16  ;;  %v523_v20 = vld [vmem:[%s4340_s10 + $0x940] sm:$0xff]  ;;  %v525_v21 = vld [vmem:[%s4340_s10 + $0x948] sm:$0xff] }
  0x59   : > { %518 = vst [vmem:[%s4348_s11 + $0x488] sm:$0xff] %v517_v17  ;;  %520 = vst [vmem:[%s4348_s11 + $0x490] sm:$0xff] %v519_v18  ;;  %v527_v22 = vld [vmem:[%s4340_s10 + $0x950] sm:$0xff]  ;;  %v529_v23 = vld [vmem:[%s4340_s10 + $0x958] sm:$0xff] }
  0x5a   : > { %522 = vst [vmem:[%s4348_s11 + $0x498] sm:$0xff] %v521_v19  ;;  %524 = vst [vmem:[%s4348_s11 + $0x4a0] sm:$0xff] %v523_v20  ;;  %v531_v24 = vld [vmem:[%s4340_s10 + $0x980] sm:$0xff]  ;;  %v533_v25 = vld [vmem:[%s4340_s10 + $0x988] sm:$0xff] }
  0x5b   : > { %526 = vst [vmem:[%s4348_s11 + $0x4a8] sm:$0xff] %v525_v21  ;;  %528 = vst [vmem:[%s4348_s11 + $0x4b0] sm:$0xff] %v527_v22  ;;  %v535_v26 = vld [vmem:[%s4340_s10 + $0x990] sm:$0xff]  ;;  %v537_v27 = vld [vmem:[%s4340_s10 + $0x998] sm:$0xff] }
  0x5c   : > { %530 = vst [vmem:[%s4348_s11 + $0x4b8] sm:$0xff] %v529_v23  ;;  %532 = vst [vmem:[%s4348_s11 + $0x4c0] sm:$0xff] %v531_v24  ;;  %v539_v28 = vld [vmem:[%s4340_s10 + $0x9c0] sm:$0xff]  ;;  %v541_v29 = vld [vmem:[%s4340_s10 + $0x9c8] sm:$0xff] }
  0x5d   : > { %534 = vst [vmem:[%s4348_s11 + $0x4c8] sm:$0xff] %v533_v25  ;;  %536 = vst [vmem:[%s4348_s11 + $0x4d0] sm:$0xff] %v535_v26  ;;  %v543_v30 = vld [vmem:[%s4340_s10 + $0x9d0] sm:$0xff]  ;;  %v545_v31 = vld [vmem:[%s4340_s10 + $0x9d8] sm:$0xff] }
  0x5e   : > { %538 = vst [vmem:[%s4348_s11 + $0x4d8] sm:$0xff] %v537_v27  ;;  %540 = vst [vmem:[%s4348_s11 + $0x4e0] sm:$0xff] %v539_v28  ;;  %v547_v32 = vld [vmem:[%s4340_s10 + $0xa00] sm:$0xff]  ;;  %v549_v33 = vld [vmem:[%s4340_s10 + $0xa08] sm:$0xff] }
  0x5f   : > { %542 = vst [vmem:[%s4348_s11 + $0x4e8] sm:$0xff] %v541_v29  ;;  %544 = vst [vmem:[%s4348_s11 + $0x4f0] sm:$0xff] %v543_v30  ;;  %v551_v34 = vld [vmem:[%s4340_s10 + $0xa10] sm:$0xff]  ;;  %v553_v35 = vld [vmem:[%s4340_s10 + $0xa18] sm:$0xff] }
  0x60   : > { %546 = vst [vmem:[%s4348_s11 + $0x4f8] sm:$0xff] %v545_v31  ;;  %548 = vst [vmem:[%s4348_s11 + $0x500] sm:$0xff] %v547_v32  ;;  %v555_v36 = vld [vmem:[%s4340_s10 + $0xa40] sm:$0xff]  ;;  %v557_v37 = vld [vmem:[%s4340_s10 + $0xa48] sm:$0xff] }
  0x61   : > { %550 = vst [vmem:[%s4348_s11 + $0x508] sm:$0xff] %v549_v33  ;;  %552 = vst [vmem:[%s4348_s11 + $0x510] sm:$0xff] %v551_v34  ;;  %v559_v38 = vld [vmem:[%s4340_s10 + $0xa50] sm:$0xff]  ;;  %v561_v39 = vld [vmem:[%s4340_s10 + $0xa58] sm:$0xff] }
  0x62   : > { %554 = vst [vmem:[%s4348_s11 + $0x518] sm:$0xff] %v553_v35  ;;  %556 = vst [vmem:[%s4348_s11 + $0x520] sm:$0xff] %v555_v36  ;;  %v563_v40 = vld [vmem:[%s4340_s10 + $0xa80] sm:$0xff]  ;;  %v565_v41 = vld [vmem:[%s4340_s10 + $0xa88] sm:$0xff] }
  0x63   : > { %558 = vst [vmem:[%s4348_s11 + $0x528] sm:$0xff] %v557_v37  ;;  %560 = vst [vmem:[%s4348_s11 + $0x530] sm:$0xff] %v559_v38  ;;  %v567_v42 = vld [vmem:[%s4340_s10 + $0xa90] sm:$0xff]  ;;  %v569_v43 = vld [vmem:[%s4340_s10 + $0xa98] sm:$0xff] }
  0x64   : > { %562 = vst [vmem:[%s4348_s11 + $0x538] sm:$0xff] %v561_v39  ;;  %564 = vst [vmem:[%s4348_s11 + $0x540] sm:$0xff] %v563_v40  ;;  %v571_v44 = vld [vmem:[%s4340_s10 + $0xac0] sm:$0xff]  ;;  %v573_v45 = vld [vmem:[%s4340_s10 + $0xac8] sm:$0xff] }
  0x65   : > { %566 = vst [vmem:[%s4348_s11 + $0x548] sm:$0xff] %v565_v41  ;;  %568 = vst [vmem:[%s4348_s11 + $0x550] sm:$0xff] %v567_v42  ;;  %v575_v46 = vld [vmem:[%s4340_s10 + $0xad0] sm:$0xff]  ;;  %v577_v47 = vld [vmem:[%s4340_s10 + $0xad8] sm:$0xff] }
  0x66   : > { %570 = vst [vmem:[%s4348_s11 + $0x558] sm:$0xff] %v569_v43  ;;  %572 = vst [vmem:[%s4348_s11 + $0x560] sm:$0xff] %v571_v44  ;;  %v579_v48 = vld [vmem:[%s4340_s10 + $0xb00] sm:$0xff]  ;;  %v581_v49 = vld [vmem:[%s4340_s10 + $0xb08] sm:$0xff] }
  0x67   : > { %574 = vst [vmem:[%s4348_s11 + $0x568] sm:$0xff] %v573_v45  ;;  %576 = vst [vmem:[%s4348_s11 + $0x570] sm:$0xff] %v575_v46  ;;  %v583_v50 = vld [vmem:[%s4340_s10 + $0xb10] sm:$0xff]  ;;  %v585_v51 = vld [vmem:[%s4340_s10 + $0xb18] sm:$0xff] }
  0x68   : > { %578 = vst [vmem:[%s4348_s11 + $0x578] sm:$0xff] %v577_v47  ;;  %580 = vst [vmem:[%s4348_s11 + $0x580] sm:$0xff] %v579_v48  ;;  %v587_v52 = vld [vmem:[%s4340_s10 + $0xb40] sm:$0xff]  ;;  %v589_v53 = vld [vmem:[%s4340_s10 + $0xb48] sm:$0xff] }
  0x69   : > { %582 = vst [vmem:[%s4348_s11 + $0x588] sm:$0xff] %v581_v49  ;;  %584 = vst [vmem:[%s4348_s11 + $0x590] sm:$0xff] %v583_v50  ;;  %v591_v54 = vld [vmem:[%s4340_s10 + $0xb50] sm:$0xff]  ;;  %v593_v55 = vld [vmem:[%s4340_s10 + $0xb58] sm:$0xff] }
  0x6a   : > { %586 = vst [vmem:[%s4348_s11 + $0x598] sm:$0xff] %v585_v51  ;;  %588 = vst [vmem:[%s4348_s11 + $0x5a0] sm:$0xff] %v587_v52  ;;  %v595_v56 = vld [vmem:[%s4340_s10 + $0xb80] sm:$0xff]  ;;  %v597_v57 = vld [vmem:[%s4340_s10 + $0xb88] sm:$0xff] }
  0x6b   : > { %590 = vst [vmem:[%s4348_s11 + $0x5a8] sm:$0xff] %v589_v53  ;;  %592 = vst [vmem:[%s4348_s11 + $0x5b0] sm:$0xff] %v591_v54  ;;  %v599_v58 = vld [vmem:[%s4340_s10 + $0xb90] sm:$0xff]  ;;  %v601_v59 = vld [vmem:[%s4340_s10 + $0xb98] sm:$0xff] }
  0x6c   : > { %594 = vst [vmem:[%s4348_s11 + $0x5b8] sm:$0xff] %v593_v55  ;;  %596 = vst [vmem:[%s4348_s11 + $0x5c0] sm:$0xff] %v595_v56  ;;  %v603_v60 = vld [vmem:[%s4340_s10 + $0xbc0] sm:$0xff]  ;;  %v605_v61 = vld [vmem:[%s4340_s10 + $0xbc8] sm:$0xff] }
  0x6d   : > { %598 = vst [vmem:[%s4348_s11 + $0x5c8] sm:$0xff] %v597_v57  ;;  %600 = vst [vmem:[%s4348_s11 + $0x5d0] sm:$0xff] %v599_v58  ;;  %v607_v62 = vld [vmem:[%s4340_s10 + $0xbd0] sm:$0xff]  ;;  %v609_v63 = vld [vmem:[%s4340_s10 + $0xbd8] sm:$0xff] }
  0x6e   : > { %602 = vst [vmem:[%s4348_s11 + $0x5d8] sm:$0xff] %v601_v59  ;;  %604 = vst [vmem:[%s4348_s11 + $0x5e0] sm:$0xff] %v603_v60  ;;  %v611_v0 = vld [vmem:[%s4340_s10 + $0xc00] sm:$0xff]  ;;  %v613_v1 = vld [vmem:[%s4340_s10 + $0xc08] sm:$0xff] }
  0x6f   : > { %606 = vst [vmem:[%s4348_s11 + $0x5e8] sm:$0xff] %v605_v61  ;;  %608 = vst [vmem:[%s4348_s11 + $0x5f0] sm:$0xff] %v607_v62  ;;  %v615_v2 = vld [vmem:[%s4340_s10 + $0xc10] sm:$0xff]  ;;  %v617_v3 = vld [vmem:[%s4340_s10 + $0xc18] sm:$0xff] }
  0x70   : > { %610 = vst [vmem:[%s4348_s11 + $0x5f8] sm:$0xff] %v609_v63  ;;  %612 = vst [vmem:[%s4348_s11 + $0x600] sm:$0xff] %v611_v0  ;;  %v619_v4 = vld [vmem:[%s4340_s10 + $0xc40] sm:$0xff]  ;;  %v621_v5 = vld [vmem:[%s4340_s10 + $0xc48] sm:$0xff] }
  0x71   : > { %614 = vst [vmem:[%s4348_s11 + $0x608] sm:$0xff] %v613_v1  ;;  %616 = vst [vmem:[%s4348_s11 + $0x610] sm:$0xff] %v615_v2  ;;  %v623_v6 = vld [vmem:[%s4340_s10 + $0xc50] sm:$0xff]  ;;  %v625_v7 = vld [vmem:[%s4340_s10 + $0xc58] sm:$0xff] }
  0x72   : > { %618 = vst [vmem:[%s4348_s11 + $0x618] sm:$0xff] %v617_v3  ;;  %620 = vst [vmem:[%s4348_s11 + $0x620] sm:$0xff] %v619_v4  ;;  %v627_v8 = vld [vmem:[%s4340_s10 + $0xc80] sm:$0xff]  ;;  %v629_v9 = vld [vmem:[%s4340_s10 + $0xc88] sm:$0xff] }
  0x73   : > { %622 = vst [vmem:[%s4348_s11 + $0x628] sm:$0xff] %v621_v5  ;;  %624 = vst [vmem:[%s4348_s11 + $0x630] sm:$0xff] %v623_v6  ;;  %v631_v10 = vld [vmem:[%s4340_s10 + $0xc90] sm:$0xff]  ;;  %v633_v11 = vld [vmem:[%s4340_s10 + $0xc98] sm:$0xff] }
  0x74   : > { %626 = vst [vmem:[%s4348_s11 + $0x638] sm:$0xff] %v625_v7  ;;  %628 = vst [vmem:[%s4348_s11 + $0x640] sm:$0xff] %v627_v8  ;;  %v635_v12 = vld [vmem:[%s4340_s10 + $0xcc0] sm:$0xff]  ;;  %v637_v13 = vld [vmem:[%s4340_s10 + $0xcc8] sm:$0xff] }
  0x75   : > { %630 = vst [vmem:[%s4348_s11 + $0x648] sm:$0xff] %v629_v9  ;;  %632 = vst [vmem:[%s4348_s11 + $0x650] sm:$0xff] %v631_v10  ;;  %v639_v14 = vld [vmem:[%s4340_s10 + $0xcd0] sm:$0xff]  ;;  %v641_v15 = vld [vmem:[%s4340_s10 + $0xcd8] sm:$0xff] }
  0x76   : > { %634 = vst [vmem:[%s4348_s11 + $0x658] sm:$0xff] %v633_v11  ;;  %636 = vst [vmem:[%s4348_s11 + $0x660] sm:$0xff] %v635_v12  ;;  %v643_v16 = vld [vmem:[%s4340_s10 + $0xd00] sm:$0xff]  ;;  %v645_v17 = vld [vmem:[%s4340_s10 + $0xd08] sm:$0xff] }
  0x77   : > { %638 = vst [vmem:[%s4348_s11 + $0x668] sm:$0xff] %v637_v13  ;;  %640 = vst [vmem:[%s4348_s11 + $0x670] sm:$0xff] %v639_v14  ;;  %v647_v18 = vld [vmem:[%s4340_s10 + $0xd10] sm:$0xff]  ;;  %v649_v19 = vld [vmem:[%s4340_s10 + $0xd18] sm:$0xff] }
  0x78   : > { %642 = vst [vmem:[%s4348_s11 + $0x678] sm:$0xff] %v641_v15  ;;  %644 = vst [vmem:[%s4348_s11 + $0x680] sm:$0xff] %v643_v16  ;;  %v651_v20 = vld [vmem:[%s4340_s10 + $0xd40] sm:$0xff]  ;;  %v653_v21 = vld [vmem:[%s4340_s10 + $0xd48] sm:$0xff] }
  0x79   : > { %646 = vst [vmem:[%s4348_s11 + $0x688] sm:$0xff] %v645_v17  ;;  %648 = vst [vmem:[%s4348_s11 + $0x690] sm:$0xff] %v647_v18  ;;  %v655_v22 = vld [vmem:[%s4340_s10 + $0xd50] sm:$0xff]  ;;  %v657_v23 = vld [vmem:[%s4340_s10 + $0xd58] sm:$0xff] }
  0x7a   : > { %650 = vst [vmem:[%s4348_s11 + $0x698] sm:$0xff] %v649_v19  ;;  %652 = vst [vmem:[%s4348_s11 + $0x6a0] sm:$0xff] %v651_v20  ;;  %v659_v24 = vld [vmem:[%s4340_s10 + $0xd80] sm:$0xff]  ;;  %v661_v25 = vld [vmem:[%s4340_s10 + $0xd88] sm:$0xff] }
  0x7b   : > { %654 = vst [vmem:[%s4348_s11 + $0x6a8] sm:$0xff] %v653_v21  ;;  %656 = vst [vmem:[%s4348_s11 + $0x6b0] sm:$0xff] %v655_v22  ;;  %v663_v26 = vld [vmem:[%s4340_s10 + $0xd90] sm:$0xff]  ;;  %v665_v27 = vld [vmem:[%s4340_s10 + $0xd98] sm:$0xff] }
  0x7c   : > { %658 = vst [vmem:[%s4348_s11 + $0x6b8] sm:$0xff] %v657_v23  ;;  %660 = vst [vmem:[%s4348_s11 + $0x6c0] sm:$0xff] %v659_v24  ;;  %v667_v28 = vld [vmem:[%s4340_s10 + $0xdc0] sm:$0xff]  ;;  %v669_v29 = vld [vmem:[%s4340_s10 + $0xdc8] sm:$0xff] }
  0x7d   : > { %662 = vst [vmem:[%s4348_s11 + $0x6c8] sm:$0xff] %v661_v25  ;;  %664 = vst [vmem:[%s4348_s11 + $0x6d0] sm:$0xff] %v663_v26  ;;  %v671_v30 = vld [vmem:[%s4340_s10 + $0xdd0] sm:$0xff]  ;;  %v673_v31 = vld [vmem:[%s4340_s10 + $0xdd8] sm:$0xff] }
  0x7e   : > { %666 = vst [vmem:[%s4348_s11 + $0x6d8] sm:$0xff] %v665_v27  ;;  %668 = vst [vmem:[%s4348_s11 + $0x6e0] sm:$0xff] %v667_v28  ;;  %v675_v32 = vld [vmem:[%s4340_s10 + $0xe00] sm:$0xff]  ;;  %v677_v33 = vld [vmem:[%s4340_s10 + $0xe08] sm:$0xff] }
  0x7f   : > { %670 = vst [vmem:[%s4348_s11 + $0x6e8] sm:$0xff] %v669_v29  ;;  %672 = vst [vmem:[%s4348_s11 + $0x6f0] sm:$0xff] %v671_v30  ;;  %v679_v34 = vld [vmem:[%s4340_s10 + $0xe10] sm:$0xff]  ;;  %v681_v35 = vld [vmem:[%s4340_s10 + $0xe18] sm:$0xff] }
  0x80   : > { %674 = vst [vmem:[%s4348_s11 + $0x6f8] sm:$0xff] %v673_v31  ;;  %676 = vst [vmem:[%s4348_s11 + $0x700] sm:$0xff] %v675_v32  ;;  %v683_v36 = vld [vmem:[%s4340_s10 + $0xe40] sm:$0xff]  ;;  %v685_v37 = vld [vmem:[%s4340_s10 + $0xe48] sm:$0xff] }
  0x81   : > { %678 = vst [vmem:[%s4348_s11 + $0x708] sm:$0xff] %v677_v33  ;;  %680 = vst [vmem:[%s4348_s11 + $0x710] sm:$0xff] %v679_v34  ;;  %v687_v38 = vld [vmem:[%s4340_s10 + $0xe50] sm:$0xff]  ;;  %v689_v39 = vld [vmem:[%s4340_s10 + $0xe58] sm:$0xff] }
  0x82   : > { %682 = vst [vmem:[%s4348_s11 + $0x718] sm:$0xff] %v681_v35  ;;  %684 = vst [vmem:[%s4348_s11 + $0x720] sm:$0xff] %v683_v36  ;;  %v691_v40 = vld [vmem:[%s4340_s10 + $0xe80] sm:$0xff]  ;;  %v693_v41 = vld [vmem:[%s4340_s10 + $0xe88] sm:$0xff] }
  0x83   : > { %686 = vst [vmem:[%s4348_s11 + $0x728] sm:$0xff] %v685_v37  ;;  %688 = vst [vmem:[%s4348_s11 + $0x730] sm:$0xff] %v687_v38  ;;  %v695_v42 = vld [vmem:[%s4340_s10 + $0xe90] sm:$0xff]  ;;  %v697_v43 = vld [vmem:[%s4340_s10 + $0xe98] sm:$0xff] }
  0x84   : > { %690 = vst [vmem:[%s4348_s11 + $0x738] sm:$0xff] %v689_v39  ;;  %692 = vst [vmem:[%s4348_s11 + $0x740] sm:$0xff] %v691_v40  ;;  %v699_v44 = vld [vmem:[%s4340_s10 + $0xec0] sm:$0xff]  ;;  %v701_v45 = vld [vmem:[%s4340_s10 + $0xec8] sm:$0xff] }
  0x85   : > { %694 = vst [vmem:[%s4348_s11 + $0x748] sm:$0xff] %v693_v41  ;;  %696 = vst [vmem:[%s4348_s11 + $0x750] sm:$0xff] %v695_v42  ;;  %v703_v46 = vld [vmem:[%s4340_s10 + $0xed0] sm:$0xff]  ;;  %v705_v47 = vld [vmem:[%s4340_s10 + $0xed8] sm:$0xff] }
  0x86   : > { %698 = vst [vmem:[%s4348_s11 + $0x758] sm:$0xff] %v697_v43  ;;  %700 = vst [vmem:[%s4348_s11 + $0x760] sm:$0xff] %v699_v44  ;;  %v707_v48 = vld [vmem:[%s4340_s10 + $0xf00] sm:$0xff]  ;;  %v709_v49 = vld [vmem:[%s4340_s10 + $0xf08] sm:$0xff] }
  0x87   : > { %702 = vst [vmem:[%s4348_s11 + $0x768] sm:$0xff] %v701_v45  ;;  %704 = vst [vmem:[%s4348_s11 + $0x770] sm:$0xff] %v703_v46  ;;  %v711_v50 = vld [vmem:[%s4340_s10 + $0xf10] sm:$0xff]  ;;  %v713_v51 = vld [vmem:[%s4340_s10 + $0xf18] sm:$0xff] }
  0x88   : > { %706 = vst [vmem:[%s4348_s11 + $0x778] sm:$0xff] %v705_v47  ;;  %708 = vst [vmem:[%s4348_s11 + $0x780] sm:$0xff] %v707_v48  ;;  %v715_v52 = vld [vmem:[%s4340_s10 + $0xf40] sm:$0xff]  ;;  %v717_v53 = vld [vmem:[%s4340_s10 + $0xf48] sm:$0xff] }
  0x89   : > { %710 = vst [vmem:[%s4348_s11 + $0x788] sm:$0xff] %v709_v49  ;;  %712 = vst [vmem:[%s4348_s11 + $0x790] sm:$0xff] %v711_v50  ;;  %v719_v54 = vld [vmem:[%s4340_s10 + $0xf50] sm:$0xff]  ;;  %v721_v55 = vld [vmem:[%s4340_s10 + $0xf58] sm:$0xff] }
  0x8a   : > { %714 = vst [vmem:[%s4348_s11 + $0x798] sm:$0xff] %v713_v51  ;;  %716 = vst [vmem:[%s4348_s11 + $0x7a0] sm:$0xff] %v715_v52  ;;  %v723_v56 = vld [vmem:[%s4340_s10 + $0xf80] sm:$0xff]  ;;  %v725_v57 = vld [vmem:[%s4340_s10 + $0xf88] sm:$0xff] }
  0x8b   : > { %718 = vst [vmem:[%s4348_s11 + $0x7a8] sm:$0xff] %v717_v53  ;;  %720 = vst [vmem:[%s4348_s11 + $0x7b0] sm:$0xff] %v719_v54  ;;  %v727_v58 = vld [vmem:[%s4340_s10 + $0xf90] sm:$0xff]  ;;  %v729_v59 = vld [vmem:[%s4340_s10 + $0xf98] sm:$0xff] }
  0x8c   : > { %722 = vst [vmem:[%s4348_s11 + $0x7b8] sm:$0xff] %v721_v55  ;;  %724 = vst [vmem:[%s4348_s11 + $0x7c0] sm:$0xff] %v723_v56  ;;  %v731_v60 = vld [vmem:[%s4340_s10 + $0xfc0] sm:$0xff]  ;;  %v733_v61 = vld [vmem:[%s4340_s10 + $0xfc8] sm:$0xff] }
  0x8d   : > { %726 = vst [vmem:[%s4348_s11 + $0x7c8] sm:$0xff] %v725_v57  ;;  %728 = vst [vmem:[%s4348_s11 + $0x7d0] sm:$0xff] %v727_v58  ;;  %v735_v62 = vld [vmem:[%s4340_s10 + $0xfd0] sm:$0xff]  ;;  %v737_v63 = vld [vmem:[%s4340_s10 + $0xfd8] sm:$0xff] }
  0x8e   : > { %730 = vst [vmem:[%s4348_s11 + $0x7d8] sm:$0xff] %v729_v59  ;;  %732 = vst [vmem:[%s4348_s11 + $0x7e0] sm:$0xff] %v731_v60  ;;  %v739_v0 = vld [vmem:[%s4340_s10 + $0x1000] sm:$0xff]  ;;  %v741_v1 = vld [vmem:[%s4340_s10 + $0x1008] sm:$0xff] }
  0x8f   : > { %734 = vst [vmem:[%s4348_s11 + $0x7e8] sm:$0xff] %v733_v61  ;;  %736 = vst [vmem:[%s4348_s11 + $0x7f0] sm:$0xff] %v735_v62  ;;  %v743_v2 = vld [vmem:[%s4340_s10 + $0x1010] sm:$0xff]  ;;  %v745_v3 = vld [vmem:[%s4340_s10 + $0x1018] sm:$0xff] }
  0x90   : > { %738 = vst [vmem:[%s4348_s11 + $0x7f8] sm:$0xff] %v737_v63  ;;  %740 = vst [vmem:[%s4348_s11 + $0x800] sm:$0xff] %v739_v0  ;;  %v747_v4 = vld [vmem:[%s4340_s10 + $0x1040] sm:$0xff]  ;;  %v749_v5 = vld [vmem:[%s4340_s10 + $0x1048] sm:$0xff] }
  0x91   : > { %742 = vst [vmem:[%s4348_s11 + $0x808] sm:$0xff] %v741_v1  ;;  %744 = vst [vmem:[%s4348_s11 + $0x810] sm:$0xff] %v743_v2  ;;  %v751_v6 = vld [vmem:[%s4340_s10 + $0x1050] sm:$0xff]  ;;  %v753_v7 = vld [vmem:[%s4340_s10 + $0x1058] sm:$0xff] }
  0x92   : > { %746 = vst [vmem:[%s4348_s11 + $0x818] sm:$0xff] %v745_v3  ;;  %748 = vst [vmem:[%s4348_s11 + $0x820] sm:$0xff] %v747_v4  ;;  %v755_v8 = vld [vmem:[%s4340_s10 + $0x1080] sm:$0xff]  ;;  %v757_v9 = vld [vmem:[%s4340_s10 + $0x1088] sm:$0xff] }
  0x93   : > { %750 = vst [vmem:[%s4348_s11 + $0x828] sm:$0xff] %v749_v5  ;;  %752 = vst [vmem:[%s4348_s11 + $0x830] sm:$0xff] %v751_v6  ;;  %v759_v10 = vld [vmem:[%s4340_s10 + $0x1090] sm:$0xff]  ;;  %v761_v11 = vld [vmem:[%s4340_s10 + $0x1098] sm:$0xff] }
  0x94   : > { %754 = vst [vmem:[%s4348_s11 + $0x838] sm:$0xff] %v753_v7  ;;  %756 = vst [vmem:[%s4348_s11 + $0x840] sm:$0xff] %v755_v8  ;;  %v763_v12 = vld [vmem:[%s4340_s10 + $0x10c0] sm:$0xff]  ;;  %v765_v13 = vld [vmem:[%s4340_s10 + $0x10c8] sm:$0xff] }
  0x95   : > { %758 = vst [vmem:[%s4348_s11 + $0x848] sm:$0xff] %v757_v9  ;;  %760 = vst [vmem:[%s4348_s11 + $0x850] sm:$0xff] %v759_v10  ;;  %v767_v14 = vld [vmem:[%s4340_s10 + $0x10d0] sm:$0xff]  ;;  %v769_v15 = vld [vmem:[%s4340_s10 + $0x10d8] sm:$0xff] }
  0x96   : > { %762 = vst [vmem:[%s4348_s11 + $0x858] sm:$0xff] %v761_v11  ;;  %764 = vst [vmem:[%s4348_s11 + $0x860] sm:$0xff] %v763_v12  ;;  %v771_v16 = vld [vmem:[%s4340_s10 + $0x1100] sm:$0xff]  ;;  %v773_v17 = vld [vmem:[%s4340_s10 + $0x1108] sm:$0xff] }
  0x97   : > { %766 = vst [vmem:[%s4348_s11 + $0x868] sm:$0xff] %v765_v13  ;;  %768 = vst [vmem:[%s4348_s11 + $0x870] sm:$0xff] %v767_v14  ;;  %v775_v18 = vld [vmem:[%s4340_s10 + $0x1110] sm:$0xff]  ;;  %v777_v19 = vld [vmem:[%s4340_s10 + $0x1118] sm:$0xff] }
  0x98   : > { %770 = vst [vmem:[%s4348_s11 + $0x878] sm:$0xff] %v769_v15  ;;  %772 = vst [vmem:[%s4348_s11 + $0x880] sm:$0xff] %v771_v16  ;;  %v779_v20 = vld [vmem:[%s4340_s10 + $0x1140] sm:$0xff]  ;;  %v781_v21 = vld [vmem:[%s4340_s10 + $0x1148] sm:$0xff] }
  0x99   : > { %774 = vst [vmem:[%s4348_s11 + $0x888] sm:$0xff] %v773_v17  ;;  %776 = vst [vmem:[%s4348_s11 + $0x890] sm:$0xff] %v775_v18  ;;  %v783_v22 = vld [vmem:[%s4340_s10 + $0x1150] sm:$0xff]  ;;  %v785_v23 = vld [vmem:[%s4340_s10 + $0x1158] sm:$0xff] }
  0x9a   : > { %778 = vst [vmem:[%s4348_s11 + $0x898] sm:$0xff] %v777_v19  ;;  %780 = vst [vmem:[%s4348_s11 + $0x8a0] sm:$0xff] %v779_v20  ;;  %v787_v24 = vld [vmem:[%s4340_s10 + $0x1180] sm:$0xff]  ;;  %v789_v25 = vld [vmem:[%s4340_s10 + $0x1188] sm:$0xff] }
  0x9b   : > { %782 = vst [vmem:[%s4348_s11 + $0x8a8] sm:$0xff] %v781_v21  ;;  %784 = vst [vmem:[%s4348_s11 + $0x8b0] sm:$0xff] %v783_v22  ;;  %v791_v26 = vld [vmem:[%s4340_s10 + $0x1190] sm:$0xff]  ;;  %v793_v27 = vld [vmem:[%s4340_s10 + $0x1198] sm:$0xff] }
  0x9c   : > { %786 = vst [vmem:[%s4348_s11 + $0x8b8] sm:$0xff] %v785_v23  ;;  %788 = vst [vmem:[%s4348_s11 + $0x8c0] sm:$0xff] %v787_v24  ;;  %v795_v28 = vld [vmem:[%s4340_s10 + $0x11c0] sm:$0xff]  ;;  %v797_v29 = vld [vmem:[%s4340_s10 + $0x11c8] sm:$0xff] }
  0x9d   : > { %790 = vst [vmem:[%s4348_s11 + $0x8c8] sm:$0xff] %v789_v25  ;;  %792 = vst [vmem:[%s4348_s11 + $0x8d0] sm:$0xff] %v791_v26  ;;  %v799_v30 = vld [vmem:[%s4340_s10 + $0x11d0] sm:$0xff]  ;;  %v801_v31 = vld [vmem:[%s4340_s10 + $0x11d8] sm:$0xff] }
  0x9e   : > { %794 = vst [vmem:[%s4348_s11 + $0x8d8] sm:$0xff] %v793_v27  ;;  %796 = vst [vmem:[%s4348_s11 + $0x8e0] sm:$0xff] %v795_v28  ;;  %v803_v32 = vld [vmem:[%s4340_s10 + $0x1200] sm:$0xff]  ;;  %v805_v33 = vld [vmem:[%s4340_s10 + $0x1208] sm:$0xff] }
  0x9f   : > { %798 = vst [vmem:[%s4348_s11 + $0x8e8] sm:$0xff] %v797_v29  ;;  %800 = vst [vmem:[%s4348_s11 + $0x8f0] sm:$0xff] %v799_v30  ;;  %v807_v34 = vld [vmem:[%s4340_s10 + $0x1210] sm:$0xff]  ;;  %v809_v35 = vld [vmem:[%s4340_s10 + $0x1218] sm:$0xff] }
  0xa0   : > { %802 = vst [vmem:[%s4348_s11 + $0x8f8] sm:$0xff] %v801_v31  ;;  %804 = vst [vmem:[%s4348_s11 + $0x900] sm:$0xff] %v803_v32  ;;  %v811_v36 = vld [vmem:[%s4340_s10 + $0x1240] sm:$0xff]  ;;  %v813_v37 = vld [vmem:[%s4340_s10 + $0x1248] sm:$0xff] }
  0xa1   : > { %806 = vst [vmem:[%s4348_s11 + $0x908] sm:$0xff] %v805_v33  ;;  %808 = vst [vmem:[%s4348_s11 + $0x910] sm:$0xff] %v807_v34  ;;  %v815_v38 = vld [vmem:[%s4340_s10 + $0x1250] sm:$0xff]  ;;  %v817_v39 = vld [vmem:[%s4340_s10 + $0x1258] sm:$0xff] }
  0xa2   : > { %810 = vst [vmem:[%s4348_s11 + $0x918] sm:$0xff] %v809_v35  ;;  %812 = vst [vmem:[%s4348_s11 + $0x920] sm:$0xff] %v811_v36  ;;  %v819_v40 = vld [vmem:[%s4340_s10 + $0x1280] sm:$0xff]  ;;  %v821_v41 = vld [vmem:[%s4340_s10 + $0x1288] sm:$0xff] }
  0xa3   : > { %814 = vst [vmem:[%s4348_s11 + $0x928] sm:$0xff] %v813_v37  ;;  %816 = vst [vmem:[%s4348_s11 + $0x930] sm:$0xff] %v815_v38  ;;  %v823_v42 = vld [vmem:[%s4340_s10 + $0x1290] sm:$0xff]  ;;  %v825_v43 = vld [vmem:[%s4340_s10 + $0x1298] sm:$0xff] }
  0xa4   : > { %818 = vst [vmem:[%s4348_s11 + $0x938] sm:$0xff] %v817_v39  ;;  %820 = vst [vmem:[%s4348_s11 + $0x940] sm:$0xff] %v819_v40  ;;  %v827_v44 = vld [vmem:[%s4340_s10 + $0x12c0] sm:$0xff]  ;;  %v829_v45 = vld [vmem:[%s4340_s10 + $0x12c8] sm:$0xff] }
  0xa5   : > { %822 = vst [vmem:[%s4348_s11 + $0x948] sm:$0xff] %v821_v41  ;;  %824 = vst [vmem:[%s4348_s11 + $0x950] sm:$0xff] %v823_v42  ;;  %v831_v46 = vld [vmem:[%s4340_s10 + $0x12d0] sm:$0xff]  ;;  %v833_v47 = vld [vmem:[%s4340_s10 + $0x12d8] sm:$0xff] }
  0xa6   : > { %826 = vst [vmem:[%s4348_s11 + $0x958] sm:$0xff] %v825_v43  ;;  %828 = vst [vmem:[%s4348_s11 + $0x960] sm:$0xff] %v827_v44  ;;  %v835_v48 = vld [vmem:[%s4340_s10 + $0x1300] sm:$0xff]  ;;  %v837_v49 = vld [vmem:[%s4340_s10 + $0x1308] sm:$0xff] }
  0xa7   : > { %830 = vst [vmem:[%s4348_s11 + $0x968] sm:$0xff] %v829_v45  ;;  %832 = vst [vmem:[%s4348_s11 + $0x970] sm:$0xff] %v831_v46  ;;  %v839_v50 = vld [vmem:[%s4340_s10 + $0x1310] sm:$0xff]  ;;  %v841_v51 = vld [vmem:[%s4340_s10 + $0x1318] sm:$0xff] }
  0xa8   : > { %834 = vst [vmem:[%s4348_s11 + $0x978] sm:$0xff] %v833_v47  ;;  %836 = vst [vmem:[%s4348_s11 + $0x980] sm:$0xff] %v835_v48  ;;  %v843_v52 = vld [vmem:[%s4340_s10 + $0x1340] sm:$0xff]  ;;  %v845_v53 = vld [vmem:[%s4340_s10 + $0x1348] sm:$0xff] }
  0xa9   : > { %838 = vst [vmem:[%s4348_s11 + $0x988] sm:$0xff] %v837_v49  ;;  %840 = vst [vmem:[%s4348_s11 + $0x990] sm:$0xff] %v839_v50  ;;  %v847_v54 = vld [vmem:[%s4340_s10 + $0x1350] sm:$0xff]  ;;  %v849_v55 = vld [vmem:[%s4340_s10 + $0x1358] sm:$0xff] }
  0xaa   : > { %842 = vst [vmem:[%s4348_s11 + $0x998] sm:$0xff] %v841_v51  ;;  %844 = vst [vmem:[%s4348_s11 + $0x9a0] sm:$0xff] %v843_v52  ;;  %v851_v56 = vld [vmem:[%s4340_s10 + $0x1380] sm:$0xff]  ;;  %v853_v57 = vld [vmem:[%s4340_s10 + $0x1388] sm:$0xff] }
  0xab   : > { %846 = vst [vmem:[%s4348_s11 + $0x9a8] sm:$0xff] %v845_v53  ;;  %848 = vst [vmem:[%s4348_s11 + $0x9b0] sm:$0xff] %v847_v54  ;;  %v855_v58 = vld [vmem:[%s4340_s10 + $0x1390] sm:$0xff]  ;;  %v857_v59 = vld [vmem:[%s4340_s10 + $0x1398] sm:$0xff] }
  0xac   : > { %850 = vst [vmem:[%s4348_s11 + $0x9b8] sm:$0xff] %v849_v55  ;;  %852 = vst [vmem:[%s4348_s11 + $0x9c0] sm:$0xff] %v851_v56  ;;  %v859_v60 = vld [vmem:[%s4340_s10 + $0x13c0] sm:$0xff]  ;;  %v861_v61 = vld [vmem:[%s4340_s10 + $0x13c8] sm:$0xff] }
  0xad   : > { %854 = vst [vmem:[%s4348_s11 + $0x9c8] sm:$0xff] %v853_v57  ;;  %856 = vst [vmem:[%s4348_s11 + $0x9d0] sm:$0xff] %v855_v58  ;;  %v863_v62 = vld [vmem:[%s4340_s10 + $0x13d0] sm:$0xff]  ;;  %v865_v63 = vld [vmem:[%s4340_s10 + $0x13d8] sm:$0xff] }
  0xae   : > { %858 = vst [vmem:[%s4348_s11 + $0x9d8] sm:$0xff] %v857_v59  ;;  %860 = vst [vmem:[%s4348_s11 + $0x9e0] sm:$0xff] %v859_v60  ;;  %v867_v0 = vld [vmem:[%s4340_s10 + $0x1400] sm:$0xff]  ;;  %v869_v1 = vld [vmem:[%s4340_s10 + $0x1408] sm:$0xff] }
  0xaf   : > { %862 = vst [vmem:[%s4348_s11 + $0x9e8] sm:$0xff] %v861_v61  ;;  %864 = vst [vmem:[%s4348_s11 + $0x9f0] sm:$0xff] %v863_v62  ;;  %v871_v2 = vld [vmem:[%s4340_s10 + $0x1410] sm:$0xff]  ;;  %v873_v3 = vld [vmem:[%s4340_s10 + $0x1418] sm:$0xff] }
  0xb0   : > { %866 = vst [vmem:[%s4348_s11 + $0x9f8] sm:$0xff] %v865_v63  ;;  %868 = vst [vmem:[%s4348_s11 + $0xa00] sm:$0xff] %v867_v0  ;;  %v875_v4 = vld [vmem:[%s4340_s10 + $0x1440] sm:$0xff]  ;;  %v877_v5 = vld [vmem:[%s4340_s10 + $0x1448] sm:$0xff] }
  0xb1   : > { %870 = vst [vmem:[%s4348_s11 + $0xa08] sm:$0xff] %v869_v1  ;;  %872 = vst [vmem:[%s4348_s11 + $0xa10] sm:$0xff] %v871_v2  ;;  %v879_v6 = vld [vmem:[%s4340_s10 + $0x1450] sm:$0xff]  ;;  %v881_v7 = vld [vmem:[%s4340_s10 + $0x1458] sm:$0xff] }
  0xb2   : > { %874 = vst [vmem:[%s4348_s11 + $0xa18] sm:$0xff] %v873_v3  ;;  %876 = vst [vmem:[%s4348_s11 + $0xa20] sm:$0xff] %v875_v4  ;;  %v883_v8 = vld [vmem:[%s4340_s10 + $0x1480] sm:$0xff]  ;;  %v885_v9 = vld [vmem:[%s4340_s10 + $0x1488] sm:$0xff] }
  0xb3   : > { %878 = vst [vmem:[%s4348_s11 + $0xa28] sm:$0xff] %v877_v5  ;;  %880 = vst [vmem:[%s4348_s11 + $0xa30] sm:$0xff] %v879_v6  ;;  %v887_v10 = vld [vmem:[%s4340_s10 + $0x1490] sm:$0xff]  ;;  %v889_v11 = vld [vmem:[%s4340_s10 + $0x1498] sm:$0xff] }
  0xb4   : > { %882 = vst [vmem:[%s4348_s11 + $0xa38] sm:$0xff] %v881_v7  ;;  %884 = vst [vmem:[%s4348_s11 + $0xa40] sm:$0xff] %v883_v8  ;;  %v891_v12 = vld [vmem:[%s4340_s10 + $0x14c0] sm:$0xff]  ;;  %v893_v13 = vld [vmem:[%s4340_s10 + $0x14c8] sm:$0xff] }
  0xb5   : > { %886 = vst [vmem:[%s4348_s11 + $0xa48] sm:$0xff] %v885_v9  ;;  %888 = vst [vmem:[%s4348_s11 + $0xa50] sm:$0xff] %v887_v10  ;;  %v895_v14 = vld [vmem:[%s4340_s10 + $0x14d0] sm:$0xff]  ;;  %v897_v15 = vld [vmem:[%s4340_s10 + $0x14d8] sm:$0xff] }
  0xb6   : > { %890 = vst [vmem:[%s4348_s11 + $0xa58] sm:$0xff] %v889_v11  ;;  %892 = vst [vmem:[%s4348_s11 + $0xa60] sm:$0xff] %v891_v12  ;;  %v899_v16 = vld [vmem:[%s4340_s10 + $0x1500] sm:$0xff]  ;;  %v901_v17 = vld [vmem:[%s4340_s10 + $0x1508] sm:$0xff] }
  0xb7   : > { %894 = vst [vmem:[%s4348_s11 + $0xa68] sm:$0xff] %v893_v13  ;;  %896 = vst [vmem:[%s4348_s11 + $0xa70] sm:$0xff] %v895_v14  ;;  %v903_v18 = vld [vmem:[%s4340_s10 + $0x1510] sm:$0xff]  ;;  %v905_v19 = vld [vmem:[%s4340_s10 + $0x1518] sm:$0xff] }
  0xb8   : > { %898 = vst [vmem:[%s4348_s11 + $0xa78] sm:$0xff] %v897_v15  ;;  %900 = vst [vmem:[%s4348_s11 + $0xa80] sm:$0xff] %v899_v16  ;;  %v907_v20 = vld [vmem:[%s4340_s10 + $0x1540] sm:$0xff]  ;;  %v909_v21 = vld [vmem:[%s4340_s10 + $0x1548] sm:$0xff] }
  0xb9   : > { %902 = vst [vmem:[%s4348_s11 + $0xa88] sm:$0xff] %v901_v17  ;;  %904 = vst [vmem:[%s4348_s11 + $0xa90] sm:$0xff] %v903_v18  ;;  %v911_v22 = vld [vmem:[%s4340_s10 + $0x1550] sm:$0xff]  ;;  %v913_v23 = vld [vmem:[%s4340_s10 + $0x1558] sm:$0xff] }
  0xba   : > { %906 = vst [vmem:[%s4348_s11 + $0xa98] sm:$0xff] %v905_v19  ;;  %908 = vst [vmem:[%s4348_s11 + $0xaa0] sm:$0xff] %v907_v20  ;;  %v915_v24 = vld [vmem:[%s4340_s10 + $0x1580] sm:$0xff]  ;;  %v917_v25 = vld [vmem:[%s4340_s10 + $0x1588] sm:$0xff] }
  0xbb   : > { %910 = vst [vmem:[%s4348_s11 + $0xaa8] sm:$0xff] %v909_v21  ;;  %912 = vst [vmem:[%s4348_s11 + $0xab0] sm:$0xff] %v911_v22  ;;  %v919_v26 = vld [vmem:[%s4340_s10 + $0x1590] sm:$0xff]  ;;  %v921_v27 = vld [vmem:[%s4340_s10 + $0x1598] sm:$0xff] }
  0xbc   : > { %914 = vst [vmem:[%s4348_s11 + $0xab8] sm:$0xff] %v913_v23  ;;  %916 = vst [vmem:[%s4348_s11 + $0xac0] sm:$0xff] %v915_v24  ;;  %v923_v28 = vld [vmem:[%s4340_s10 + $0x15c0] sm:$0xff]  ;;  %v925_v29 = vld [vmem:[%s4340_s10 + $0x15c8] sm:$0xff] }
  0xbd   : > { %918 = vst [vmem:[%s4348_s11 + $0xac8] sm:$0xff] %v917_v25  ;;  %920 = vst [vmem:[%s4348_s11 + $0xad0] sm:$0xff] %v919_v26  ;;  %v927_v30 = vld [vmem:[%s4340_s10 + $0x15d0] sm:$0xff]  ;;  %v929_v31 = vld [vmem:[%s4340_s10 + $0x15d8] sm:$0xff] }
  0xbe   : > { %922 = vst [vmem:[%s4348_s11 + $0xad8] sm:$0xff] %v921_v27  ;;  %924 = vst [vmem:[%s4348_s11 + $0xae0] sm:$0xff] %v923_v28  ;;  %v931_v32 = vld [vmem:[%s4340_s10 + $0x1600] sm:$0xff]  ;;  %v933_v33 = vld [vmem:[%s4340_s10 + $0x1608] sm:$0xff] }
  0xbf   : > { %926 = vst [vmem:[%s4348_s11 + $0xae8] sm:$0xff] %v925_v29  ;;  %928 = vst [vmem:[%s4348_s11 + $0xaf0] sm:$0xff] %v927_v30  ;;  %v935_v34 = vld [vmem:[%s4340_s10 + $0x1610] sm:$0xff]  ;;  %v937_v35 = vld [vmem:[%s4340_s10 + $0x1618] sm:$0xff] }
  0xc0   : > { %930 = vst [vmem:[%s4348_s11 + $0xaf8] sm:$0xff] %v929_v31  ;;  %932 = vst [vmem:[%s4348_s11 + $0xb00] sm:$0xff] %v931_v32  ;;  %v939_v36 = vld [vmem:[%s4340_s10 + $0x1640] sm:$0xff]  ;;  %v941_v37 = vld [vmem:[%s4340_s10 + $0x1648] sm:$0xff] }
  0xc1   : > { %934 = vst [vmem:[%s4348_s11 + $0xb08] sm:$0xff] %v933_v33  ;;  %936 = vst [vmem:[%s4348_s11 + $0xb10] sm:$0xff] %v935_v34  ;;  %v943_v38 = vld [vmem:[%s4340_s10 + $0x1650] sm:$0xff]  ;;  %v945_v39 = vld [vmem:[%s4340_s10 + $0x1658] sm:$0xff] }
  0xc2   : > { %938 = vst [vmem:[%s4348_s11 + $0xb18] sm:$0xff] %v937_v35  ;;  %940 = vst [vmem:[%s4348_s11 + $0xb20] sm:$0xff] %v939_v36  ;;  %v947_v40 = vld [vmem:[%s4340_s10 + $0x1680] sm:$0xff]  ;;  %v949_v41 = vld [vmem:[%s4340_s10 + $0x1688] sm:$0xff] }
  0xc3   : > { %942 = vst [vmem:[%s4348_s11 + $0xb28] sm:$0xff] %v941_v37  ;;  %944 = vst [vmem:[%s4348_s11 + $0xb30] sm:$0xff] %v943_v38  ;;  %v951_v42 = vld [vmem:[%s4340_s10 + $0x1690] sm:$0xff]  ;;  %v953_v43 = vld [vmem:[%s4340_s10 + $0x1698] sm:$0xff] }
  0xc4   : > { %946 = vst [vmem:[%s4348_s11 + $0xb38] sm:$0xff] %v945_v39  ;;  %948 = vst [vmem:[%s4348_s11 + $0xb40] sm:$0xff] %v947_v40  ;;  %v955_v44 = vld [vmem:[%s4340_s10 + $0x16c0] sm:$0xff]  ;;  %v957_v45 = vld [vmem:[%s4340_s10 + $0x16c8] sm:$0xff] }
  0xc5   : > { %950 = vst [vmem:[%s4348_s11 + $0xb48] sm:$0xff] %v949_v41  ;;  %952 = vst [vmem:[%s4348_s11 + $0xb50] sm:$0xff] %v951_v42  ;;  %v959_v46 = vld [vmem:[%s4340_s10 + $0x16d0] sm:$0xff]  ;;  %v961_v47 = vld [vmem:[%s4340_s10 + $0x16d8] sm:$0xff] }
  0xc6   : > { %954 = vst [vmem:[%s4348_s11 + $0xb58] sm:$0xff] %v953_v43  ;;  %956 = vst [vmem:[%s4348_s11 + $0xb60] sm:$0xff] %v955_v44  ;;  %v963_v48 = vld [vmem:[%s4340_s10 + $0x1700] sm:$0xff]  ;;  %v965_v49 = vld [vmem:[%s4340_s10 + $0x1708] sm:$0xff] }
  0xc7   : > { %958 = vst [vmem:[%s4348_s11 + $0xb68] sm:$0xff] %v957_v45  ;;  %960 = vst [vmem:[%s4348_s11 + $0xb70] sm:$0xff] %v959_v46  ;;  %v967_v50 = vld [vmem:[%s4340_s10 + $0x1710] sm:$0xff]  ;;  %v969_v51 = vld [vmem:[%s4340_s10 + $0x1718] sm:$0xff] }
  0xc8   : > { %962 = vst [vmem:[%s4348_s11 + $0xb78] sm:$0xff] %v961_v47  ;;  %964 = vst [vmem:[%s4348_s11 + $0xb80] sm:$0xff] %v963_v48  ;;  %v971_v52 = vld [vmem:[%s4340_s10 + $0x1740] sm:$0xff]  ;;  %v973_v53 = vld [vmem:[%s4340_s10 + $0x1748] sm:$0xff] }
  0xc9   : > { %966 = vst [vmem:[%s4348_s11 + $0xb88] sm:$0xff] %v965_v49  ;;  %968 = vst [vmem:[%s4348_s11 + $0xb90] sm:$0xff] %v967_v50  ;;  %v975_v54 = vld [vmem:[%s4340_s10 + $0x1750] sm:$0xff]  ;;  %v977_v55 = vld [vmem:[%s4340_s10 + $0x1758] sm:$0xff] }
  0xca   : > { %970 = vst [vmem:[%s4348_s11 + $0xb98] sm:$0xff] %v969_v51  ;;  %972 = vst [vmem:[%s4348_s11 + $0xba0] sm:$0xff] %v971_v52  ;;  %v979_v56 = vld [vmem:[%s4340_s10 + $0x1780] sm:$0xff]  ;;  %v981_v57 = vld [vmem:[%s4340_s10 + $0x1788] sm:$0xff] }
  0xcb   : > { %974 = vst [vmem:[%s4348_s11 + $0xba8] sm:$0xff] %v973_v53  ;;  %976 = vst [vmem:[%s4348_s11 + $0xbb0] sm:$0xff] %v975_v54  ;;  %v983_v58 = vld [vmem:[%s4340_s10 + $0x1790] sm:$0xff]  ;;  %v985_v59 = vld [vmem:[%s4340_s10 + $0x1798] sm:$0xff] }
  0xcc   : > { %978 = vst [vmem:[%s4348_s11 + $0xbb8] sm:$0xff] %v977_v55  ;;  %980 = vst [vmem:[%s4348_s11 + $0xbc0] sm:$0xff] %v979_v56  ;;  %v987_v60 = vld [vmem:[%s4340_s10 + $0x17c0] sm:$0xff]  ;;  %v989_v61 = vld [vmem:[%s4340_s10 + $0x17c8] sm:$0xff] }
  0xcd   : > { %982 = vst [vmem:[%s4348_s11 + $0xbc8] sm:$0xff] %v981_v57  ;;  %984 = vst [vmem:[%s4348_s11 + $0xbd0] sm:$0xff] %v983_v58  ;;  %v991_v62 = vld [vmem:[%s4340_s10 + $0x17d0] sm:$0xff]  ;;  %v993_v63 = vld [vmem:[%s4340_s10 + $0x17d8] sm:$0xff] }
  0xce   : > { %986 = vst [vmem:[%s4348_s11 + $0xbd8] sm:$0xff] %v985_v59  ;;  %988 = vst [vmem:[%s4348_s11 + $0xbe0] sm:$0xff] %v987_v60  ;;  %v995_v0 = vld [vmem:[%s4340_s10 + $0x1800] sm:$0xff]  ;;  %v997_v1 = vld [vmem:[%s4340_s10 + $0x1808] sm:$0xff] }
  0xcf   : > { %990 = vst [vmem:[%s4348_s11 + $0xbe8] sm:$0xff] %v989_v61  ;;  %992 = vst [vmem:[%s4348_s11 + $0xbf0] sm:$0xff] %v991_v62  ;;  %v999_v2 = vld [vmem:[%s4340_s10 + $0x1810] sm:$0xff]  ;;  %v1001_v3 = vld [vmem:[%s4340_s10 + $0x1818] sm:$0xff] }
  0xd0   : > { %994 = vst [vmem:[%s4348_s11 + $0xbf8] sm:$0xff] %v993_v63  ;;  %996 = vst [vmem:[%s4348_s11 + $0xc00] sm:$0xff] %v995_v0  ;;  %v1003_v4 = vld [vmem:[%s4340_s10 + $0x1840] sm:$0xff]  ;;  %v1005_v5 = vld [vmem:[%s4340_s10 + $0x1848] sm:$0xff] }
  0xd1   : > { %998 = vst [vmem:[%s4348_s11 + $0xc08] sm:$0xff] %v997_v1  ;;  %1000 = vst [vmem:[%s4348_s11 + $0xc10] sm:$0xff] %v999_v2  ;;  %v1007_v6 = vld [vmem:[%s4340_s10 + $0x1850] sm:$0xff]  ;;  %v1009_v7 = vld [vmem:[%s4340_s10 + $0x1858] sm:$0xff] }
  0xd2   : > { %1002 = vst [vmem:[%s4348_s11 + $0xc18] sm:$0xff] %v1001_v3  ;;  %1004 = vst [vmem:[%s4348_s11 + $0xc20] sm:$0xff] %v1003_v4 }
  0xd3   : > { %1006 = vst [vmem:[%s4348_s11 + $0xc28] sm:$0xff] %v1005_v5  ;;  %1008 = vst [vmem:[%s4348_s11 + $0xc30] sm:$0xff] %v1007_v6 }
  0xd4   : > { %1010 = vst [vmem:[%s4348_s11 + $0xc38] sm:$0xff] %v1009_v7 }
  0xd5 PF: > { %p4043_p5 = scmp.ge.s32.totalorder %s4263_s23, 1  ;;  %p1040_p6 = scmp.lt.s32.totalorder %s4263_s23, 3 }
  0xd7   : > { %p1041_p7 = pnand %p4043_p5, %p1040_p6 }
  0xd8   : > { %s1047_s12 = sand.u32 (!%p1041_p7), 1, %s4255_s21   ;;  %s4044_s13 = sshll.u32 (!%p1041_p7), %s4320_s24, 2 }
  0xd9   : > { %1044 = sbr.rel (%p1041_p7) target bundleno = 1768 (0x6e8), region = 63  ;;  %p1086_p8 = scmp.lt.s32.totalorder (!%p1041_p7), %s4044_s13, 7 }
  0xda   : > { %s4136_s14 = smul.u32 (!%p1041_p7), 3136, %s1047_s12  ;;  %s4046_s15 = sshll.u32 (!%p1041_p7), %s4320_s24, 6 }
  0xdb   : > { %p1096_p9 = scmp.lt.s32.totalorder (!%p1041_p7), %s4046_s15, 127  ;;  %p4048_p10 = scmp.ne.s32.totalorder (!%p1041_p7), %s4320_s24, 0 }
  0xdc   : > { %s5148_s30 = scalar_lea.vmem (!%p1041_p7), [#allocation3], %s4136_s14 }
  0xde   : > { %s5902_s13 = smov (!%p1086_p8, %s4044_s13), 7  ;;  %s5904_s15 = smov (!%p1096_p9, %s4046_s15), 127 }
  0xdf   : > { %s1088_s18 = scalar_lea.vmem %s5893_s2, %s5902_s13  ;;  %s1093_s23 = scalar_lea.vmem %s5894_s3, %s5902_s13 }
  0xe0   : > { %s4047_s26 = sshll.u32 %s5904_s15, 2  ;;  %1105 = sbr.rel (%p4048_p10) target bundleno = 231 (0xe7), region = 71 }
  0xe1   : > { %s5146_s29 = scalar_lea.vmem %s5895_s4, %s4047_s26 }
  0xe5   : > { %v4265_v8 = vmov 0.0  }
  0xe6   : > { %1106 = vst [vmem:[#allocation2] sm:$0x3] %v4265_v8 }
  0xe7 PF: > { %v1293_v9 = vld [vmem:[%s5148_s30 + $0x68] sm:$0xff]  ;;  %v1292_v11 = vld [vmem:[%s5148_s30 + $0x60] sm:$0xff]  ;;  %v1125_v39 = vlaneseq  ;;  %v4266_v45 = vmov 1983009808   ;;  %vm2456_vm0 = vcmask 523264   ;;  %p4084_p11 = scmp.ne.s32.totalorder %s4320_s24, 1 }
  0xe8   : > { %v1325_v10 = vld [vmem:[%s5148_s30 + $0x168] sm:$0xff]  ;;  %v1697_v12 = vunpack.c.l.s8.bf16 %v1293_v9  ;;  %v1701_v13 = vunpack.c.h.s8.bf16 %v1293_v9  ;;  %v1324_v16 = vld [vmem:[%s5148_s30 + $0x160] sm:$0xff]  ;;  %v1700_v17 = vunpack.c.h.s8.bf16 %v1292_v11  ;;  %v1696_v21 = vunpack.c.l.s8.bf16 %v1292_v11 }
  0xe9   : > { %v1761_v14 = vunpack.c.l.s8.bf16 %v1325_v10  ;;  %v1765_v15 = vunpack.c.h.s8.bf16 %v1325_v10  ;;  %v1764_v18 = vunpack.c.h.s8.bf16 %v1324_v16  ;;  %v1289_v19 = vld [vmem:[%s5148_s30 + $0x48] sm:$0xff]  ;;  %v1760_v22 = vunpack.c.l.s8.bf16 %v1324_v16  ;;  %v1288_v25 = vld [vmem:[%s5148_s30 + $0x40] sm:$0xff] }
  0xea   : > { %v1321_v20 = vld [vmem:[%s5148_s30 + $0x148] sm:$0xff]  ;;  %2460 = vmatprep.subr.bf16.mxu0 %v1701_v13  ;;  %v1693_v23 = vunpack.c.h.s8.bf16 %v1289_v19  ;;  %v1320_v26 = vld [vmem:[%s5148_s30 + $0x140] sm:$0xff]  ;;  %v1692_v27 = vunpack.c.h.s8.bf16 %v1288_v25  ;;  %v1689_v29 = vunpack.c.l.s8.bf16 %v1289_v19  ;;  %v1688_v33 = vunpack.c.l.s8.bf16 %v1288_v25 }
  0xeb   : > { %2501 = vmatprep.subr.bf16.mxu1 %v1765_v15  ;;  %2461 = vmatpush1.bf16.msra.mxu0 %v1700_v17  ;;  %v1757_v24 = vunpack.c.h.s8.bf16 %v1321_v20  ;;  %v1756_v28 = vunpack.c.h.s8.bf16 %v1320_v26  ;;  %v1753_v30 = vunpack.c.l.s8.bf16 %v1321_v20  ;;  %v1285_v31 = vld [vmem:[%s5148_s30 + $0x28] sm:$0xff]  ;;  %v1752_v34 = vunpack.c.l.s8.bf16 %v1320_v26  ;;  %v1284_v37 = vld [vmem:[%s5148_s30 + $0x20] sm:$0xff] }
  0xec   : > { %2502 = vmatpush1.bf16.msra.mxu1 %v1764_v18  ;;  %2462 = vmatprep.subr.bf16.mxu0 %v1697_v12  ;;  %v1317_v32 = vld [vmem:[%s5148_s30 + $0x128] sm:$0xff]  ;;  %v1685_v35 = vunpack.c.h.s8.bf16 %v1285_v31  ;;  %v1316_v38 = vld [vmem:[%s5148_s30 + $0x120] sm:$0xff]  ;;  %v1684_v40 = vunpack.c.h.s8.bf16 %v1284_v37  ;;  %v1681_v43 = vunpack.c.l.s8.bf16 %v1285_v31  ;;  %v1123_v46 = vunpack.c.l.s4 %v4266_v45 }
  0xed   : > { %2503 = vmatprep.subr.bf16.mxu1 %v1761_v14  ;;  %v1749_v36 = vunpack.c.h.s8.bf16 %v1317_v32  ;;  %v1748_v41 = vunpack.c.h.s8.bf16 %v1316_v38  ;;  %v1107_v42 = vld [vmem:[%s5891_s0] sm:$0xff]  ;;  %v1745_v44 = vunpack.c.l.s8.bf16 %v1317_v32  ;;  %v5167_v47 = vshrl.u32 %v1125_v39, 7  ;;  %v1281_v48 = vld [vmem:[%s5148_s30 + $0x8] sm:$0xff] }
  0xee   : > { %v1313_v49 = vld [vmem:[%s5148_s30 + $0x108] sm:$0xff]  ;;  %v1124_v50 = vunpack.c.0.s8 %v1123_v46  ;;  %v1121_v51 = vcombine.high %v1107_v42, %v1107_v42  ;;  %v1680_v52 = vunpack.c.l.s8.bf16 %v1284_v37  ;;  %v1744_v53 = vunpack.c.l.s8.bf16 %v1316_v38  ;;  %v1280_v56 = vld [vmem:[%s5148_s30] sm:$0xff] }
  0xef   : > { %2463 = vmatpush1.bf16.msra.mxu0 %v1696_v21  ;;  %v1677_v54 = vunpack.c.h.s8.bf16 %v1281_v48  ;;  %v1741_v55 = vunpack.c.h.s8.bf16 %v1313_v49  ;;  %v1312_v57 = vld [vmem:[%s5148_s30 + $0x100] sm:$0xff]  ;;  %v1676_v61 = vunpack.c.h.s8.bf16 %v1280_v56  ;;  %v1673_v63 = vunpack.c.l.s8.bf16 %v1281_v48  ;;  %v1309_v3 = vld [vmem:[%s5148_s30 + $0xe8] sm:$0xff] }
  0xf0   : > { %2504 = vmatpush1.bf16.msra.mxu1 %v1760_v22  ;;  %2464 = vmatprep.subr.bf16.mxu0 %v1693_v23  ;;  %v5174_v58 = vsub.s32 %v1124_v50, %v5167_v47  ;;  %v1740_v62 = vunpack.c.h.s8.bf16 %v1312_v57  ;;  %v1737_v0 = vunpack.c.l.s8.bf16 %v1313_v49  ;;  %v1341_v4 = vld [vmem:[%s5148_s30 + $0x1e8] sm:$0xff]  ;;  %v1308_v5 = vld [vmem:[%s5148_s30 + $0xe0] sm:$0xff]  ;;  %v1672_v9 = vunpack.c.l.s8.bf16 %v1280_v56 }
  0xf1   : > { %2505 = vmatprep.subr.bf16.mxu1 %v1757_v24  ;;  %v1340_v6 = vld [vmem:[%s5148_s30 + $0x1e0] sm:$0xff]  ;;  %v1736_v10 = vunpack.c.l.s8.bf16 %v1312_v57  ;;  %v1733_v11 = vunpack.c.h.s8.bf16 %v1309_v3  ;;  %v1797_v12 = vunpack.c.h.s8.bf16 %v1341_v4  ;;  %v1732_v13 = vunpack.c.h.s8.bf16 %v1308_v5  ;;  %v1305_v17 = vld [vmem:[%s5148_s30 + $0xc8] sm:$0xff] }
  0xf2   : > { %v5177_v59 = vrot.slane %v1107_v42, %v5174_v58  ;;  %v5180_v60 = vrot.slane %v1121_v51, %v5174_v58  ;;  %v1796_v14 = vunpack.c.h.s8.bf16 %v1340_v6  ;;  %v1729_v15 = vunpack.c.l.s8.bf16 %v1309_v3  ;;  %v1337_v18 = vld [vmem:[%s5148_s30 + $0x1c8] sm:$0xff]  ;;  %v1304_v19 = vld [vmem:[%s5148_s30 + $0xc0] sm:$0xff] }
  0xf3   : > { %2465 = vmatpush1.bf16.msra.mxu0 %v1692_v27  ;;  %v1793_v16 = vunpack.c.l.s8.bf16 %v1341_v4  ;;  %v1336_v20 = vld [vmem:[%s5148_s30 + $0x1c0] sm:$0xff]  ;;  %v1728_v21 = vunpack.c.l.s8.bf16 %v1308_v5  ;;  %v1792_v22 = vunpack.c.l.s8.bf16 %v1340_v6  ;;  %v1725_v23 = vunpack.c.h.s8.bf16 %v1305_v17  ;;  %v1357_v57 = vld [vmem:[%s5148_s30 + $0x268] sm:$0xff] }
  0xf4   : > { %2506 = vmatpush1.bf16.msra.mxu1 %v1756_v28  ;;  %2466 = vmatprep.subr.bf16.mxu0 %v1689_v29  ;;  %v1136_v1 = vcombine.high %v5177_v59, %v5177_v59  ;;  %v1137_v2 = vcombine.high %v5180_v60, %v5180_v60  ;;  %v1789_v24 = vunpack.c.h.s8.bf16 %v1337_v18  ;;  %v1724_v25 = vunpack.c.h.s8.bf16 %v1304_v19  ;;  %v1301_v29 = vld [vmem:[%s5148_s30 + $0xa8] sm:$0xff]  ;;  %v1300_v31 = vld [vmem:[%s5148_s30 + $0xa0] sm:$0xff] }
  0xf5   : > { %2507 = vmatprep.subr.bf16.mxu1 %v1753_v30  ;;  %v1788_v26 = vunpack.c.h.s8.bf16 %v1336_v20  ;;  %v1721_v27 = vunpack.c.l.s8.bf16 %v1305_v17  ;;  %v1785_v28 = vunpack.c.l.s8.bf16 %v1337_v18  ;;  %v1333_v30 = vld [vmem:[%s5148_s30 + $0x1a8] sm:$0xff]  ;;  %v1332_v32 = vld [vmem:[%s5148_s30 + $0x1a0] sm:$0xff]  ;;  %v1716_v37 = vunpack.c.h.s8.bf16 %v1300_v31 }
  0xf6   : > { %v5190_v7 = vpack.c.bf16 %v1136_v1, %v1136_v1  ;;  %v5192_v8 = vpack.c.bf16 %v1137_v2, %v1137_v2  ;;  %v1780_v38 = vunpack.c.h.s8.bf16 %v1332_v32  ;;  %v1777_v42 = vunpack.c.l.s8.bf16 %v1333_v30  ;;  %v1296_v50 = vld [vmem:[%s5148_s30 + $0x80] sm:$0xff]  ;;  %v1385_v17 = vld [vmem:[%s5148_s30 + $0x348] sm:$0xff] }
  0xf7   : > { %2467 = vmatpush1.bf16.msra.mxu0 %v1688_v33  ;;  %v1720_v33 = vunpack.c.l.s8.bf16 %v1304_v19  ;;  %v1712_v45 = vunpack.c.l.s8.bf16 %v1300_v31  ;;  %v1776_v46 = vunpack.c.l.s8.bf16 %v1332_v32  ;;  %v1328_v51 = vld [vmem:[%s5148_s30 + $0x180] sm:$0xff]  ;;  %v1829_v2 = vunpack.c.h.s8.bf16 %v1357_v57 }
  0xf8   : > { %2508 = vmatpush1.bf16.msra.mxu1 %v1752_v34  ;;  %2468 = vmatprep.subr.bf16.mxu0 %v1685_v35  ;;  %v1784_v34 = vunpack.c.l.s8.bf16 %v1336_v20  ;;  %v1717_v35 = vunpack.c.h.s8.bf16 %v1301_v29  ;;  %v1768_v1 = vunpack.c.l.s8.bf16 %v1328_v51  ;;  %v1356_v4 = vld [vmem:[%s5148_s30 + $0x260] sm:$0xff] }
  0xf9   : > { %2509 = vmatprep.subr.bf16.mxu1 %v1749_v36  ;;  %2492 = vmatprep.mubr.bf16.mxu0 %v5190_v7  ;;  %v1781_v36 = vunpack.c.h.s8.bf16 %v1333_v30  ;;  %v1388_v5 = vld [vmem:[%s5148_s30 + $0x360] sm:$0xff] }
  0xfa   : > { %2533 = vmatprep.mubr.bf16.mxu1 %v5192_v8  ;;  %v1888_v19 = vunpack.c.l.s8.bf16 %v1388_v5 }
  0xfb   : > { %2469 = vmatpush1.bf16.msra.mxu0 %v1684_v40  ;;  %v1297_v40 = vld [vmem:[%s5148_s30 + $0x88] sm:$0xff] }
  0xfc   : > { %2510 = vmatpush1.bf16.msra.mxu1 %v1748_v41  ;;  %2470 = vmatprep.subr.bf16.mxu0 %v1681_v43  ;;  %v1713_v41 = vunpack.c.l.s8.bf16 %v1301_v29  ;;  %v1329_v43 = vld [vmem:[%s5148_s30 + $0x188] sm:$0xff]  ;;  %v1709_v48 = vunpack.c.h.s8.bf16 %v1297_v40 }
  0xfd   : > { %2511 = vmatprep.subr.bf16.mxu1 %v1745_v44  ;;  %v1108_v44 = vld [vmem:[%s5891_s0 + $0x8] sm:$0xff]  ;;  %v1773_v49 = vunpack.c.h.s8.bf16 %v1329_v43  ;;  %v1769_v56 = vunpack.c.l.s8.bf16 %v1329_v43 }
  0xfe   : > { %v1381_v29 = vld [vmem:[%s5148_s30 + $0x328] sm:$0xff] }
  0xff   : > { %2471 = vmatpush1.bf16.msra.mxu0 %v1680_v52  ;;  %v1138_v52 = vcombine.high %v1108_v44, %v1108_v44 }
 0x100   : > { %2512 = vmatpush1.bf16.msra.mxu1 %v1744_v53  ;;  %2472 = vmatprep.subr.bf16.mxu0 %v1677_v54  ;;  %v1708_v53 = vunpack.c.h.s8.bf16 %v1296_v50  ;;  %v1772_v54 = vunpack.c.h.s8.bf16 %v1328_v51 }
 0x101   : > { %2513 = vmatprep.subr.bf16.mxu1 %v1741_v55  ;;  %v1705_v55 = vunpack.c.l.s8.bf16 %v1297_v40  ;;  %v1873_v40 = vunpack.c.l.s8.bf16 %v1381_v29 }
 0x103   : > { %2473 = vmatpush1.bf16.msra.mxu0 %v1676_v61  ;;  %v1389_v61 = vld [vmem:[%s5148_s30 + $0x368] sm:$0xff] }
 0x104   : > { %2514 = vmatpush1.bf16.msra.mxu1 %v1740_v62  ;;  %2474 = vmatprep.subr.bf16.mxu0 %v1673_v63  ;;  %v5214_v62 = vrot.slane %v1108_v44, %v5174_v58  ;;  %v5217_v63 = vrot.slane %v1138_v52, %v5174_v58  ;;  %v1893_v3 = vunpack.c.h.s8.bf16 %v1389_v61 }
 0x105   : > { %2515 = vmatprep.subr.bf16.mxu1 %v1737_v0  ;;  %v1704_v0 = vunpack.c.l.s8.bf16 %v1296_v50 }
 0x106   : > { %v1153_v6 = vcombine.high %v5214_v62, %v5214_v62 }
 0x107   : > { %2475 = vmatpush1.bf16.msra.mxu0 %v1672_v9  ;;  %v1154_v9 = vcombine.high %v5217_v63, %v5217_v63 }
 0x108   : > { %2516 = vmatpush1.bf16.msra.mxu1 %v1736_v10  ;;  %2476 = vmatprep.subr.bf16.mxu0 %v1733_v11  ;;  %v5227_v10 = vpack.c.bf16 %v5177_v59, %v5177_v59  ;;  %v5231_v11 = vpack.c.bf16 %v5180_v60, %v5180_v60  ;;  %v5235_v18 = vpack.c.bf16 %v1153_v6, %v1153_v6  ;;  %v1824_v60 = vunpack.c.l.s8.bf16 %v1356_v4 }
 0x109   : > { %2517 = vmatprep.subr.bf16.mxu1 %v1797_v12  ;;  %v1828_v12 = vunpack.c.h.s8.bf16 %v1356_v4  ;;  %v5237_v59 = vpack.c.bf16 %v1154_v9, %v1154_v9  ;;  %v1369_v9 = vld [vmem:[%s5148_s30 + $0x2c8] sm:$0xff] }
 0x10b   : > { %2477 = vmatpush2.bf16.msra.mxu0 %v1732_v13  ;;  %v1892_v13 = vunpack.c.h.s8.bf16 %v1388_v5 }
 0x10c   : > { %2518 = vmatpush2.bf16.msra.mxu1 %v1796_v14  ;;  %2478 = vmatprep.subr.bf16.mxu0 %v1729_v15  ;;  %v1825_v14 = vunpack.c.l.s8.bf16 %v1357_v57  ;;  %v1889_v15 = vunpack.c.l.s8.bf16 %v1389_v61 }
 0x10d   : > { %2519 = vmatprep.subr.bf16.mxu1 %v1793_v16  ;;  %v1353_v16 = vld [vmem:[%s5148_s30 + $0x248] sm:$0xff] }
 0x10e   : > { %v1821_v20 = vunpack.c.h.s8.bf16 %v1353_v16 }
 0x10f   : > { %2479 = vmatpush2.bf16.msra.mxu0 %v1728_v21  ;;  %v1885_v21 = vunpack.c.h.s8.bf16 %v1385_v17 }
 0x110   : > { %2520 = vmatpush2.bf16.msra.mxu1 %v1792_v22  ;;  %2480 = vmatprep.subr.bf16.mxu0 %v1725_v23  ;;  %v1352_v22 = vld [vmem:[%s5148_s30 + $0x240] sm:$0xff] }
 0x111   : > { %2521 = vmatprep.subr.bf16.mxu1 %v1789_v24  ;;  %v1384_v23 = vld [vmem:[%s5148_s30 + $0x340] sm:$0xff]  ;;  %v1820_v24 = vunpack.c.h.s8.bf16 %v1352_v22  ;;  %v1816_v30 = vunpack.c.l.s8.bf16 %v1352_v22 }
 0x112   : > { %v1880_v31 = vunpack.c.l.s8.bf16 %v1384_v23 }
 0x113   : > { %2481 = vmatpush2.bf16.msra.mxu0 %v1724_v25  ;;  %v1884_v25 = vunpack.c.h.s8.bf16 %v1384_v23  ;;  %v1365_v23 = vld [vmem:[%s5148_s30 + $0x2a8] sm:$0xff] }
 0x114   : > { %2522 = vmatpush2.bf16.msra.mxu1 %v1788_v26  ;;  %2482 = vmatprep.subr.bf16.mxu0 %v1721_v27  ;;  %v1817_v26 = vunpack.c.l.s8.bf16 %v1353_v16  ;;  %v1881_v27 = vunpack.c.l.s8.bf16 %v1385_v17  ;;  %v1368_v17 = vld [vmem:[%s5148_s30 + $0x2c0] sm:$0xff] }
 0x115   : > { %2523 = vmatprep.subr.bf16.mxu1 %v1785_v28  ;;  %v1349_v28 = vld [vmem:[%s5148_s30 + $0x228] sm:$0xff] }
 0x116   : > { %v1813_v32 = vunpack.c.h.s8.bf16 %v1349_v28 }
 0x117   : > { %2483 = vmatpush2.bf16.msra.mxu0 %v1720_v33  ;;  %v1877_v33 = vunpack.c.h.s8.bf16 %v1381_v29  ;;  %v1364_v29 = vld [vmem:[%s5148_s30 + $0x2a0] sm:$0xff] }
 0x118   : > { %2524 = vmatpush2.bf16.msra.mxu1 %v1784_v34  ;;  %2484 = vmatprep.subr.bf16.mxu0 %v1717_v35  ;;  %v1348_v34 = vld [vmem:[%s5148_s30 + $0x220] sm:$0xff] }
 0x119   : > { %2525 = vmatprep.subr.bf16.mxu1 %v1781_v36  ;;  %v1380_v35 = vld [vmem:[%s5148_s30 + $0x320] sm:$0xff]  ;;  %v1812_v36 = vunpack.c.h.s8.bf16 %v1348_v34  ;;  %v1808_v43 = vunpack.c.l.s8.bf16 %v1348_v34 }
 0x11a   : > { %v1872_v44 = vunpack.c.l.s8.bf16 %v1380_v35 }
 0x11b   : > { %2485 = vmatpush2.bf16.msra.mxu0 %v1716_v37  ;;  %v1876_v37 = vunpack.c.h.s8.bf16 %v1380_v35  ;;  %v1361_v35 = vld [vmem:[%s5148_s30 + $0x288] sm:$0xff] }
 0x11c   : > { %2526 = vmatpush2.bf16.msra.mxu1 %v1780_v38  ;;  %2486 = vmatprep.subr.bf16.mxu0 %v1713_v41  ;;  %v1809_v38 = vunpack.c.l.s8.bf16 %v1349_v28  ;;  %v1345_v41 = vld [vmem:[%s5148_s30 + $0x208] sm:$0xff] }
 0x11d   : > { %2527 = vmatprep.subr.bf16.mxu1 %v1777_v42  ;;  %v1377_v42 = vld [vmem:[%s5148_s30 + $0x308] sm:$0xff]  ;;  %v1801_v52 = vunpack.c.l.s8.bf16 %v1345_v41 }
 0x11f   : > { %2487 = vmatpush2.bf16.msra.mxu0 %v1712_v45  ;;  %v1805_v45 = vunpack.c.h.s8.bf16 %v1345_v41  ;;  %v1837_v41 = vunpack.c.h.s8.bf16 %v1361_v35 }
 0x120   : > { %2528 = vmatpush2.bf16.msra.mxu1 %v1776_v46  ;;  %2488 = vmatprep.subr.bf16.mxu0 %v1709_v48  ;;  %v1869_v46 = vunpack.c.h.s8.bf16 %v1377_v42  ;;  %v1344_v48 = vld [vmem:[%s5148_s30 + $0x200] sm:$0xff] }
 0x121   : > { %2529 = vmatprep.subr.bf16.mxu1 %v1773_v49  ;;  %v1376_v49 = vld [vmem:[%s5148_s30 + $0x300] sm:$0xff]  ;;  %v1804_v50 = vunpack.c.h.s8.bf16 %v1344_v48 }
 0x122   : > { %v1868_v51 = vunpack.c.h.s8.bf16 %v1376_v49  ;;  %v1864_v57 = vunpack.c.l.s8.bf16 %v1376_v49  ;;  %v1833_v49 = vunpack.c.l.s8.bf16 %v1361_v35 }
 0x123   : > { %2489 = vmatpush2.bf16.msra.mxu0 %v1708_v53  ;;  %v1865_v53 = vunpack.c.l.s8.bf16 %v1377_v42 }
 0x124   : > { %2530 = vmatpush2.bf16.msra.mxu1 %v1772_v54  ;;  %2490 = vmatprep.subr.bf16.mxu0 %v1705_v55  ;;  %v1373_v54 = vld [vmem:[%s5148_s30 + $0x2e8] sm:$0xff] }
 0x125   : > { %2531 = vmatprep.subr.bf16.mxu1 %v1769_v56  ;;  %v1405_v55 = vld [vmem:[%s5148_s30 + $0x3e8] sm:$0xff]  ;;  %v1800_v56 = vunpack.c.l.s8.bf16 %v1344_v48  ;;  %v1861_v61 = vunpack.c.h.s8.bf16 %v1373_v54  ;;  %v1857_v5 = vunpack.c.l.s8.bf16 %v1373_v54 }
 0x126   : > { %v1921_v6 = vunpack.c.l.s8.bf16 %v1405_v55 }
 0x127   : > { %2491 = vmatpush2.bf16.msra.mxu0 %v1704_v0  ;;  %v1925_v0 = vunpack.c.h.s8.bf16 %v1405_v55 }
 0x128   : > { %2532 = vmatpush2.bf16.msra.mxu1 %v1768_v1  ;;  %2542 = vmatprep.subr.bf16.mxu0 %v1829_v2  ;;  %v1372_v1 = vld [vmem:[%s5148_s30 + $0x2e0] sm:$0xff] }
 0x129   : > { %2583 = vmatprep.subr.bf16.mxu1 %v1893_v3  ;;  %v1404_v2 = vld [vmem:[%s5148_s30 + $0x3e0] sm:$0xff]  ;;  %v1860_v3 = vunpack.c.h.s8.bf16 %v1372_v1 }
 0x12a   : > { %2493 = vmatmul.mubr.bf16.vlgmr.msra.gmra.mxu0 %v5227_v10  ;;  %v1924_v4 = vunpack.c.h.s8.bf16 %v1404_v2 }
 0x12b   : > { %2534 = vmatmul.mubr.bf16.vlgmr.msra.gmra.mxu1 %v5231_v11  ;;  %2543 = vmatpush1.bf16.msra.mxu0 %v1828_v12  ;;  %v1401_v12 = vld [vmem:[%s5148_s30 + $0x3c8] sm:$0xff] }
 0x12c   : > { %2584 = vmatpush1.bf16.msra.mxu1 %v1892_v13  ;;  %2544 = vmatprep.subr.bf16.mxu0 %v1825_v14  ;;  %v1856_v13 = vunpack.c.l.s8.bf16 %v1372_v1  ;;  %v1920_v14 = vunpack.c.l.s8.bf16 %v1404_v2  ;;  %v1917_v16 = vunpack.c.h.s8.bf16 %v1401_v12  ;;  %v1913_v22 = vunpack.c.l.s8.bf16 %v1401_v12  ;;  %v1452_v1 = vld [vmem:[%s5148_s30 + $0x560] sm:$0xff] }
 0x12d   : > { %2585 = vmatprep.subr.bf16.mxu1 %v1889_v15  ;;  %2574 = vmatprep.mubr.bf16.mxu0 %v5235_v18  ;;  %v1853_v15 = vunpack.c.h.s8.bf16 %v1369_v9 }
 0x12e   : > { %2615 = vmatprep.mubr.bf16.mxu1 %v5237_v59 }
 0x12f   : > { %2545 = vmatpush1.bf16.msra.mxu0 %v1824_v60  ;;  %v1400_v60 = vld [vmem:[%s5148_s30 + $0x3c0] sm:$0xff] }
 0x130   : > { %2586 = vmatpush1.bf16.msra.mxu1 %v1888_v19  ;;  %2546 = vmatprep.subr.bf16.mxu0 %v1821_v20  ;;  %v1852_v19 = vunpack.c.h.s8.bf16 %v1368_v17  ;;  %v1916_v20 = vunpack.c.h.s8.bf16 %v1400_v60 }
 0x131   : > { %2587 = vmatprep.subr.bf16.mxu1 %v1885_v21  ;;  %v1849_v21 = vunpack.c.l.s8.bf16 %v1369_v9  ;;  %v2020_v9 = vunpack.c.h.s8.bf16 %v1452_v1 }
 0x133   : > { %2547 = vmatpush1.bf16.msra.mxu0 %v1820_v24  ;;  %v1397_v24 = vld [vmem:[%s5148_s30 + $0x3a8] sm:$0xff] }
 0x134   : > { %2588 = vmatpush1.bf16.msra.mxu1 %v1884_v25  ;;  %2548 = vmatprep.subr.bf16.mxu0 %v1817_v26  ;;  %v1848_v25 = vunpack.c.l.s8.bf16 %v1368_v17  ;;  %v1912_v26 = vunpack.c.l.s8.bf16 %v1400_v60  ;;  %v1909_v28 = vunpack.c.h.s8.bf16 %v1397_v24  ;;  %v1905_v34 = vunpack.c.l.s8.bf16 %v1397_v24 }
 0x135   : > { %2589 = vmatprep.subr.bf16.mxu1 %v1881_v27  ;;  %v1845_v27 = vunpack.c.h.s8.bf16 %v1365_v23  ;;  %v2016_v17 = vunpack.c.l.s8.bf16 %v1452_v1  ;;  %v1436_v1 = vld [vmem:[%s5148_s30 + $0x4e0] sm:$0xff] }
 0x137   : > { %2549 = vmatpush1.bf16.msra.mxu0 %v1816_v30  ;;  %v1396_v30 = vld [vmem:[%s5148_s30 + $0x3a0] sm:$0xff] }
 0x138   : > { %2590 = vmatpush1.bf16.msra.mxu1 %v1880_v31  ;;  %2550 = vmatprep.subr.bf16.mxu0 %v1813_v32  ;;  %v1844_v31 = vunpack.c.h.s8.bf16 %v1364_v29  ;;  %v1908_v32 = vunpack.c.h.s8.bf16 %v1396_v30 }
 0x139   : > { %2591 = vmatprep.subr.bf16.mxu1 %v1877_v33  ;;  %v1841_v33 = vunpack.c.l.s8.bf16 %v1365_v23 }
 0x13b   : > { %2551 = vmatpush1.bf16.msra.mxu0 %v1812_v36  ;;  %v1393_v36 = vld [vmem:[%s5148_s30 + $0x388] sm:$0xff] }
 0x13c   : > { %2592 = vmatpush1.bf16.msra.mxu1 %v1876_v37  ;;  %2552 = vmatprep.subr.bf16.mxu0 %v1809_v38  ;;  %v1109_v37 = vld [vmem:[%s5891_s0 + $0x10] sm:$0xff]  ;;  %v1840_v38 = vunpack.c.l.s8.bf16 %v1364_v29  ;;  %v1901_v42 = vunpack.c.h.s8.bf16 %v1393_v36 }
 0x13d   : > { %2593 = vmatprep.subr.bf16.mxu1 %v1873_v40  ;;  %v1904_v40 = vunpack.c.l.s8.bf16 %v1396_v30 }
 0x13f   : > { %2553 = vmatpush1.bf16.msra.mxu0 %v1808_v43  ;;  %v1360_v43 = vld [vmem:[%s5148_s30 + $0x280] sm:$0xff] }
 0x140   : > { %2594 = vmatpush1.bf16.msra.mxu1 %v1872_v44  ;;  %2554 = vmatprep.subr.bf16.mxu0 %v1805_v45  ;;  %v1392_v44 = vld [vmem:[%s5148_s30 + $0x380] sm:$0xff]  ;;  %v1155_v45 = vcombine.high %v1109_v37, %v1109_v37  ;;  %v1832_v55 = vunpack.c.l.s8.bf16 %v1360_v43 }
 0x141   : > { %2595 = vmatprep.subr.bf16.mxu1 %v1869_v46  ;;  %v1836_v46 = vunpack.c.h.s8.bf16 %v1360_v43  ;;  %v1900_v48 = vunpack.c.h.s8.bf16 %v1392_v44 }
 0x142   : > { %v5278_v54 = vrot.slane %v1155_v45, %v5174_v58  ;;  %v1408_v45 = vld [vmem:[%s5148_s30 + $0x400] sm:$0xff] }
 0x143   : > { %2555 = vmatpush1.bf16.msra.mxu0 %v1804_v50  ;;  %v1897_v50 = vunpack.c.l.s8.bf16 %v1393_v36 }
 0x144   : > { %2596 = vmatpush1.bf16.msra.mxu1 %v1868_v51  ;;  %2556 = vmatprep.subr.bf16.mxu0 %v1801_v52  ;;  %v1421_v51 = vld [vmem:[%s5148_s30 + $0x468] sm:$0xff] }
 0x145   : > { %2597 = vmatprep.subr.bf16.mxu1 %v1865_v53  ;;  %v1453_v52 = vld [vmem:[%s5148_s30 + $0x568] sm:$0xff]  ;;  %v5275_v53 = vrot.slane %v1109_v37, %v5174_v58  ;;  %v1953_v12 = vunpack.c.l.s8.bf16 %v1421_v51 }
 0x147   : > { %2557 = vmatpush1.bf16.msra.mxu0 %v1800_v56  ;;  %v1896_v56 = vunpack.c.l.s8.bf16 %v1392_v44  ;;  %v1170_v2 = vcombine.high %v5275_v53, %v5275_v53 }
 0x148   : > { %2598 = vmatpush1.bf16.msra.mxu1 %v1864_v57  ;;  %2558 = vmatprep.subr.bf16.mxu0 %v1861_v61  ;;  %v1957_v57 = vunpack.c.h.s8.bf16 %v1421_v51  ;;  %v2021_v61 = vunpack.c.h.s8.bf16 %v1453_v52 }
 0x149   : > { %2599 = vmatprep.subr.bf16.mxu1 %v1925_v0  ;;  %v1420_v0 = vld [vmem:[%s5148_s30 + $0x460] sm:$0xff] }
 0x14b   : > { %2559 = vmatpush2.bf16.msra.mxu0 %v1860_v3  ;;  %v1171_v3 = vcombine.high %v5278_v54, %v5278_v54 }
 0x14c   : > { %2600 = vmatpush2.bf16.msra.mxu1 %v1924_v4  ;;  %2560 = vmatprep.subr.bf16.mxu0 %v1857_v5  ;;  %v5288_v4 = vpack.c.bf16 %v5214_v62, %v5214_v62  ;;  %v5292_v5 = vpack.c.bf16 %v5217_v63, %v5217_v63  ;;  %v1952_v63 = vunpack.c.l.s8.bf16 %v1420_v0 }
 0x14d   : > { %2601 = vmatprep.subr.bf16.mxu1 %v1921_v6  ;;  %v1956_v6 = vunpack.c.h.s8.bf16 %v1420_v0  ;;  %v5298_v62 = vpack.c.bf16 %v1171_v3, %v1171_v3  ;;  %v1988_v3 = vunpack.c.h.s8.bf16 %v1436_v1 }
 0x14f   : > { %2561 = vmatpush2.bf16.msra.mxu0 %v1856_v13  ;;  %v2017_v13 = vunpack.c.l.s8.bf16 %v1453_v52  ;;  %v1437_v52 = vld [vmem:[%s5148_s30 + $0x4e8] sm:$0xff] }
 0x150   : > { %2602 = vmatpush2.bf16.msra.mxu1 %v1920_v14  ;;  %2562 = vmatprep.subr.bf16.mxu0 %v1853_v15  ;;  %v1417_v14 = vld [vmem:[%s5148_s30 + $0x448] sm:$0xff] }
 0x151   : > { %2603 = vmatprep.subr.bf16.mxu1 %v1917_v16  ;;  %v1449_v15 = vld [vmem:[%s5148_s30 + $0x548] sm:$0xff]  ;;  %v5296_v16 = vpack.c.bf16 %v1170_v2, %v1170_v2  ;;  %v1949_v60 = vunpack.c.h.s8.bf16 %v1417_v14  ;;  %v1945_v24 = vunpack.c.l.s8.bf16 %v1417_v14  ;;  %v1468_v2 = vld [vmem:[%s5148_s30 + $0x5e0] sm:$0xff] }
 0x152   : > { %v1465_v14 = vld [vmem:[%s5148_s30 + $0x5c8] sm:$0xff] }
 0x153   : > { %2563 = vmatpush2.bf16.msra.mxu0 %v1852_v19  ;;  %v2013_v19 = vunpack.c.h.s8.bf16 %v1449_v15 }
 0x154   : > { %2604 = vmatpush2.bf16.msra.mxu1 %v1916_v20  ;;  %2564 = vmatprep.subr.bf16.mxu0 %v1849_v21  ;;  %v1416_v20 = vld [vmem:[%s5148_s30 + $0x440] sm:$0xff] }
 0x155   : > { %2605 = vmatprep.subr.bf16.mxu1 %v1913_v22  ;;  %v1448_v21 = vld [vmem:[%s5148_s30 + $0x540] sm:$0xff]  ;;  %v1948_v22 = vunpack.c.h.s8.bf16 %v1416_v20 }
 0x156   : > { %v2012_v23 = vunpack.c.h.s8.bf16 %v1448_v21  ;;  %v2008_v29 = vunpack.c.l.s8.bf16 %v1448_v21 }
 0x157   : > { %2565 = vmatpush2.bf16.msra.mxu0 %v1848_v25  ;;  %v2009_v25 = vunpack.c.l.s8.bf16 %v1449_v15  ;;  %v1984_v15 = vunpack.c.l.s8.bf16 %v1436_v1 }
 0x158   : > { %2606 = vmatpush2.bf16.msra.mxu1 %v1912_v26  ;;  %2566 = vmatprep.subr.bf16.mxu0 %v1845_v27  ;;  %v1413_v26 = vld [vmem:[%s5148_s30 + $0x428] sm:$0xff] }
 0x159   : > { %2607 = vmatprep.subr.bf16.mxu1 %v1909_v28  ;;  %v1445_v27 = vld [vmem:[%s5148_s30 + $0x528] sm:$0xff]  ;;  %v1944_v28 = vunpack.c.l.s8.bf16 %v1416_v20  ;;  %v1941_v30 = vunpack.c.h.s8.bf16 %v1413_v26  ;;  %v1937_v36 = vunpack.c.l.s8.bf16 %v1413_v26  ;;  %v1464_v20 = vld [vmem:[%s5148_s30 + $0x5c0] sm:$0xff] }
 0x15a   : > { %v2001_v37 = vunpack.c.l.s8.bf16 %v1445_v27  ;;  %v1461_v26 = vld [vmem:[%s5148_s30 + $0x5a8] sm:$0xff] }
 0x15b   : > { %2567 = vmatpush2.bf16.msra.mxu0 %v1844_v31  ;;  %v2005_v31 = vunpack.c.h.s8.bf16 %v1445_v27 }
 0x15c   : > { %2608 = vmatpush2.bf16.msra.mxu1 %v1908_v32  ;;  %2568 = vmatprep.subr.bf16.mxu0 %v1841_v33  ;;  %v1412_v32 = vld [vmem:[%s5148_s30 + $0x420] sm:$0xff] }
 0x15d   : > { %2609 = vmatprep.subr.bf16.mxu1 %v1905_v34  ;;  %v1444_v33 = vld [vmem:[%s5148_s30 + $0x520] sm:$0xff]  ;;  %v1940_v34 = vunpack.c.h.s8.bf16 %v1412_v32 }
 0x15e   : > { %v2004_v35 = vunpack.c.h.s8.bf16 %v1444_v33 }
 0x15f   : > { %2569 = vmatpush2.bf16.msra.mxu0 %v1840_v38  ;;  %v1409_v38 = vld [vmem:[%s5148_s30 + $0x408] sm:$0xff] }
 0x160   : > { %2610 = vmatpush2.bf16.msra.mxu1 %v1904_v40  ;;  %2570 = vmatprep.subr.bf16.mxu0 %v1837_v41  ;;  %v1441_v40 = vld [vmem:[%s5148_s30 + $0x508] sm:$0xff]  ;;  %v1936_v41 = vunpack.c.l.s8.bf16 %v1412_v32  ;;  %v1933_v43 = vunpack.c.h.s8.bf16 %v1409_v38  ;;  %v1460_v32 = vld [vmem:[%s5148_s30 + $0x5a0] sm:$0xff] }
 0x161   : > { %2611 = vmatprep.subr.bf16.mxu1 %v1901_v42  ;;  %v2000_v42 = vunpack.c.l.s8.bf16 %v1444_v33  ;;  %v1997_v44 = vunpack.c.h.s8.bf16 %v1441_v40  ;;  %v1993_v51 = vunpack.c.l.s8.bf16 %v1441_v40  ;;  %v1110_v40 = vld [vmem:[%s5891_s0 + $0x18] sm:$0xff] }
 0x163   : > { %2571 = vmatpush2.bf16.msra.mxu0 %v1836_v46  ;;  %v1440_v46 = vld [vmem:[%s5148_s30 + $0x500] sm:$0xff] }
 0x164   : > { %2612 = vmatpush2.bf16.msra.mxu1 %v1900_v48  ;;  %2572 = vmatprep.subr.bf16.mxu0 %v1833_v49  ;;  %v1932_v48 = vunpack.c.h.s8.bf16 %v1408_v45  ;;  %v1996_v49 = vunpack.c.h.s8.bf16 %v1440_v46 }
 0x165   : > { %2613 = vmatprep.subr.bf16.mxu1 %v1897_v50  ;;  %v1929_v50 = vunpack.c.l.s8.bf16 %v1409_v38  ;;  %v1457_v38 = vld [vmem:[%s5148_s30 + $0x588] sm:$0xff] }
 0x167   : > { %2573 = vmatpush2.bf16.msra.mxu0 %v1832_v55  ;;  %v1469_v55 = vld [vmem:[%s5148_s30 + $0x5e8] sm:$0xff] }
 0x168   : > { %2614 = vmatpush2.bf16.msra.mxu1 %v1896_v56  ;;  %2624 = vmatprep.subr.bf16.mxu0 %v1957_v57  ;;  %v1928_v56 = vunpack.c.l.s8.bf16 %v1408_v45  ;;  %v1992_v57 = vunpack.c.l.s8.bf16 %v1440_v46  ;;  %v2053_v0 = vunpack.c.h.s8.bf16 %v1469_v55  ;;  %v1424_v45 = vld [vmem:[%s5148_s30 + $0x480] sm:$0xff] }
 0x169   : > { %2665 = vmatprep.subr.bf16.mxu1 %v2021_v61  ;;  %v1989_v61 = vunpack.c.h.s8.bf16 %v1437_v52  ;;  %v1456_v46 = vld [vmem:[%s5148_s30 + $0x580] sm:$0xff] }
 0x16a   : > { %2575 = vmatmul.mubr.bf16.vlgmr.msra.gmra.mxu0 %v5288_v4  ;;  %v2024_v1 = vunpack.c.l.s8.bf16 %v1456_v46 }
 0x16b   : > { %2616 = vmatmul.mubr.bf16.vlgmr.msra.gmra.mxu1 %v5292_v5  ;;  %2625 = vmatpush1.bf16.msra.mxu0 %v1956_v6  ;;  %v2052_v6 = vunpack.c.h.s8.bf16 %v1468_v2 }
 0x16c   : > { %2666 = vmatpush1.bf16.msra.mxu1 %v2020_v9  ;;  %2626 = vmatprep.subr.bf16.mxu0 %v1953_v12  ;;  %v1985_v9 = vunpack.c.l.s8.bf16 %v1437_v52  ;;  %v2049_v12 = vunpack.c.l.s8.bf16 %v1469_v55  ;;  %v2025_v52 = vunpack.c.l.s8.bf16 %v1457_v38  ;;  %v1485_v55 = vld [vmem:[%s5148_s30 + $0x668] sm:$0xff] }
 0x16d   : > { %2667 = vmatprep.subr.bf16.mxu1 %v2017_v13  ;;  %2656 = vmatprep.mubr.bf16.mxu0 %v5296_v16  ;;  %v1433_v13 = vld [vmem:[%s5148_s30 + $0x4c8] sm:$0xff] }
 0x16e   : > { %2697 = vmatprep.mubr.bf16.mxu1 %v5298_v62 }
 0x16f   : > { %2627 = vmatpush1.bf16.msra.mxu0 %v1952_v63  ;;  %v2048_v63 = vunpack.c.l.s8.bf16 %v1468_v2  ;;  %v2085_v2 = vunpack.c.h.s8.bf16 %v1485_v55 }
 0x170   : > { %2668 = vmatpush1.bf16.msra.mxu1 %v2016_v17  ;;  %2628 = vmatprep.subr.bf16.mxu0 %v1949_v60  ;;  %v1981_v17 = vunpack.c.h.s8.bf16 %v1433_v13  ;;  %v2045_v60 = vunpack.c.h.s8.bf16 %v1465_v14 }
 0x171   : > { %2669 = vmatprep.subr.bf16.mxu1 %v2013_v19  ;;  %v1432_v19 = vld [vmem:[%s5148_s30 + $0x4c0] sm:$0xff] }
 0x172   : > { %v1980_v21 = vunpack.c.h.s8.bf16 %v1432_v19  ;;  %v1976_v27 = vunpack.c.l.s8.bf16 %v1432_v19 }
 0x173   : > { %2629 = vmatpush1.bf16.msra.mxu0 %v1948_v22  ;;  %v2044_v22 = vunpack.c.h.s8.bf16 %v1464_v20 }
 0x174   : > { %2670 = vmatpush1.bf16.msra.mxu1 %v2012_v23  ;;  %2630 = vmatprep.subr.bf16.mxu0 %v1945_v24  ;;  %v1977_v23 = vunpack.c.l.s8.bf16 %v1433_v13  ;;  %v2041_v24 = vunpack.c.l.s8.bf16 %v1465_v14  ;;  %v5349_v14 = vpack.c.bf16 %v5275_v53, %v5275_v53 }
 0x175   : > { %2671 = vmatprep.subr.bf16.mxu1 %v2009_v25  ;;  %v1429_v25 = vld [vmem:[%s5148_s30 + $0x4a8] sm:$0xff] }
 0x177   : > { %2631 = vmatpush1.bf16.msra.mxu0 %v1944_v28  ;;  %v2040_v28 = vunpack.c.l.s8.bf16 %v1464_v20  ;;  %v1481_v20 = vld [vmem:[%s5148_s30 + $0x648] sm:$0xff] }
 0x178   : > { %2672 = vmatpush1.bf16.msra.mxu1 %v2008_v29  ;;  %2632 = vmatprep.subr.bf16.mxu0 %v1941_v30  ;;  %v1973_v29 = vunpack.c.h.s8.bf16 %v1429_v25  ;;  %v2037_v30 = vunpack.c.h.s8.bf16 %v1461_v26 }
 0x179   : > { %2673 = vmatprep.subr.bf16.mxu1 %v2005_v31  ;;  %v1428_v31 = vld [vmem:[%s5148_s30 + $0x4a0] sm:$0xff] }
 0x17a   : > { %v1972_v33 = vunpack.c.h.s8.bf16 %v1428_v31 }
 0x17b   : > { %2633 = vmatpush1.bf16.msra.mxu0 %v1940_v34  ;;  %v2036_v34 = vunpack.c.h.s8.bf16 %v1460_v32 }
 0x17c   : > { %2674 = vmatpush1.bf16.msra.mxu1 %v2004_v35  ;;  %2634 = vmatprep.subr.bf16.mxu0 %v1937_v36  ;;  %v1969_v35 = vunpack.c.l.s8.bf16 %v1429_v25  ;;  %v2033_v36 = vunpack.c.l.s8.bf16 %v1461_v26  ;;  %v1480_v26 = vld [vmem:[%s5148_s30 + $0x640] sm:$0xff] }
 0x17d   : > { %2675 = vmatprep.subr.bf16.mxu1 %v2001_v37  ;;  %v1425_v37 = vld [vmem:[%s5148_s30 + $0x488] sm:$0xff] }
 0x17f   : > { %2635 = vmatpush1.bf16.msra.mxu0 %v1936_v41  ;;  %v1968_v41 = vunpack.c.l.s8.bf16 %v1428_v31 }
 0x180   : > { %2676 = vmatpush1.bf16.msra.mxu1 %v2000_v42  ;;  %2636 = vmatprep.subr.bf16.mxu0 %v1933_v43  ;;  %v2032_v42 = vunpack.c.l.s8.bf16 %v1460_v32  ;;  %v1965_v43 = vunpack.c.h.s8.bf16 %v1425_v37  ;;  %v1477_v32 = vld [vmem:[%s5148_s30 + $0x628] sm:$0xff] }
 0x181   : > { %2677 = vmatprep.subr.bf16.mxu1 %v1997_v44  ;;  %v2029_v44 = vunpack.c.h.s8.bf16 %v1457_v38  ;;  %v1476_v38 = vld [vmem:[%s5148_s30 + $0x620] sm:$0xff] }
 0x183   : > { %2637 = vmatpush1.bf16.msra.mxu0 %v1932_v48  ;;  %v1172_v48 = vcombine.high %v1110_v40, %v1110_v40 }
 0x184   : > { %2678 = vmatpush1.bf16.msra.mxu1 %v1996_v49  ;;  %2638 = vmatprep.subr.bf16.mxu0 %v1929_v50  ;;  %v1964_v49 = vunpack.c.h.s8.bf16 %v1424_v45  ;;  %v2028_v50 = vunpack.c.h.s8.bf16 %v1456_v46  ;;  %v1505_v46 = vld [vmem:[%s5148_s30 + $0x708] sm:$0xff] }
 0x185   : > { %2679 = vmatprep.subr.bf16.mxu1 %v1993_v51  ;;  %v1961_v51 = vunpack.c.l.s8.bf16 %v1425_v37 }
 0x187   : > { %2639 = vmatpush1.bf16.msra.mxu0 %v1928_v56  ;;  %v1517_v56 = vld [vmem:[%s5148_s30 + $0x768] sm:$0xff] }
 0x188   : > { %2680 = vmatpush1.bf16.msra.mxu1 %v1992_v57  ;;  %2640 = vmatprep.subr.bf16.mxu0 %v1989_v61  ;;  %v5336_v57 = vrot.slane %v1110_v40, %v5174_v58  ;;  %v5339_v61 = vrot.slane %v1172_v48, %v5174_v58  ;;  %v2145_v19 = vunpack.c.l.s8.bf16 %v1517_v56  ;;  %v1508_v40 = vld [vmem:[%s5148_s30 + $0x720] sm:$0xff]  ;;  %v2064_v48 = vunpack.c.l.s8.bf16 %v1476_v38 }
 0x189   : > { %2681 = vmatprep.subr.bf16.mxu1 %v2053_v0  ;;  %v1960_v0 = vunpack.c.l.s8.bf16 %v1424_v45  ;;  %v1473_v45 = vld [vmem:[%s5148_s30 + $0x608] sm:$0xff] }
 0x18a   : > { %v1188_v13 = vcombine.high %v5339_v61, %v5339_v61 }
 0x18b   : > { %2641 = vmatpush2.bf16.msra.mxu0 %v1988_v3  ;;  %v2149_v3 = vunpack.c.h.s8.bf16 %v1517_v56 }
 0x18c   : > { %2682 = vmatpush2.bf16.msra.mxu1 %v2052_v6  ;;  %2642 = vmatprep.subr.bf16.mxu0 %v1985_v9  ;;  %v1484_v6 = vld [vmem:[%s5148_s30 + $0x660] sm:$0xff]  ;;  %v5359_v53 = vpack.c.bf16 %v1188_v13, %v1188_v13 }
 0x18d   : > { %2683 = vmatprep.subr.bf16.mxu1 %v2049_v12  ;;  %v1516_v9 = vld [vmem:[%s5148_s30 + $0x760] sm:$0xff]  ;;  %v1187_v12 = vcombine.high %v5336_v57, %v5336_v57 }
 0x18f   : > { %2643 = vmatpush2.bf16.msra.mxu0 %v1984_v15  ;;  %v5353_v15 = vpack.c.bf16 %v5278_v54, %v5278_v54  ;;  %v2080_v54 = vunpack.c.l.s8.bf16 %v1484_v6 }
 0x190   : > { %2684 = vmatpush2.bf16.msra.mxu1 %v2048_v63  ;;  %2644 = vmatprep.subr.bf16.mxu0 %v1981_v17  ;;  %v2084_v63 = vunpack.c.h.s8.bf16 %v1484_v6  ;;  %v2148_v17 = vunpack.c.h.s8.bf16 %v1516_v9  ;;  %v1533_v6 = vld [vmem:[%s5148_s30 + $0x7e8] sm:$0xff] }
 0x191   : > { %2685 = vmatprep.subr.bf16.mxu1 %v2045_v60  ;;  %v2081_v60 = vunpack.c.l.s8.bf16 %v1485_v55  ;;  %v1504_v55 = vld [vmem:[%s5148_s30 + $0x700] sm:$0xff] }
 0x193   : > { %2645 = vmatpush2.bf16.msra.mxu0 %v1980_v21  ;;  %v1513_v21 = vld [vmem:[%s5148_s30 + $0x748] sm:$0xff] }
 0x194   : > { %2686 = vmatpush2.bf16.msra.mxu1 %v2044_v22  ;;  %2646 = vmatprep.subr.bf16.mxu0 %v1977_v23  ;;  %v5357_v22 = vpack.c.bf16 %v1187_v12, %v1187_v12  ;;  %v2144_v23 = vunpack.c.l.s8.bf16 %v1516_v9  ;;  %v2141_v25 = vunpack.c.h.s8.bf16 %v1513_v21  ;;  %v2137_v31 = vunpack.c.l.s8.bf16 %v1513_v21 }
 0x195   : > { %2687 = vmatprep.subr.bf16.mxu1 %v2041_v24  ;;  %v2077_v24 = vunpack.c.h.s8.bf16 %v1481_v20  ;;  %v2120_v12 = vunpack.c.l.s8.bf16 %v1504_v55 }
 0x197   : > { %2647 = vmatpush2.bf16.msra.mxu0 %v1976_v27  ;;  %v1512_v27 = vld [vmem:[%s5148_s30 + $0x740] sm:$0xff] }
 0x198   : > { %2688 = vmatpush2.bf16.msra.mxu1 %v2040_v28  ;;  %2648 = vmatprep.subr.bf16.mxu0 %v1973_v29  ;;  %v2076_v28 = vunpack.c.h.s8.bf16 %v1480_v26  ;;  %v2140_v29 = vunpack.c.h.s8.bf16 %v1512_v27 }
 0x199   : > { %2689 = vmatprep.subr.bf16.mxu1 %v2037_v30  ;;  %v2073_v30 = vunpack.c.l.s8.bf16 %v1481_v20 }
 0x19b   : > { %2649 = vmatpush2.bf16.msra.mxu0 %v1972_v33  ;;  %v1509_v33 = vld [vmem:[%s5148_s30 + $0x728] sm:$0xff] }
 0x19c   : > { %2690 = vmatpush2.bf16.msra.mxu1 %v2036_v34  ;;  %2650 = vmatprep.subr.bf16.mxu0 %v1969_v35  ;;  %v2072_v34 = vunpack.c.l.s8.bf16 %v1480_v26  ;;  %v2136_v35 = vunpack.c.l.s8.bf16 %v1512_v27  ;;  %v2133_v37 = vunpack.c.h.s8.bf16 %v1509_v33 }
 0x19d   : > { %2691 = vmatprep.subr.bf16.mxu1 %v2033_v36  ;;  %v2069_v36 = vunpack.c.h.s8.bf16 %v1477_v32 }
 0x19f   : > { %2651 = vmatpush2.bf16.msra.mxu0 %v1968_v41  ;;  %v2068_v41 = vunpack.c.h.s8.bf16 %v1476_v38 }
 0x1a0   : > { %2692 = vmatpush2.bf16.msra.mxu1 %v2032_v42  ;;  %2652 = vmatprep.subr.bf16.mxu0 %v1965_v43  ;;  %v2132_v42 = vunpack.c.h.s8.bf16 %v1508_v40  ;;  %v2065_v43 = vunpack.c.l.s8.bf16 %v1477_v32 }
 0x1a1   : > { %2693 = vmatprep.subr.bf16.mxu1 %v2029_v44  ;;  %v2129_v44 = vunpack.c.l.s8.bf16 %v1509_v33 }
 0x1a3   : > { %2653 = vmatpush2.bf16.msra.mxu0 %v1964_v49  ;;  %v2128_v49 = vunpack.c.l.s8.bf16 %v1508_v40 }
 0x1a4   : > { %2694 = vmatpush2.bf16.msra.mxu1 %v2028_v50  ;;  %2654 = vmatprep.subr.bf16.mxu0 %v1961_v51  ;;  %v2061_v50 = vunpack.c.h.s8.bf16 %v1473_v45  ;;  %v2125_v51 = vunpack.c.h.s8.bf16 %v1505_v46 }
 0x1a5   : > { %2695 = vmatprep.subr.bf16.mxu1 %v2025_v52  ;;  %v1472_v52 = vld [vmem:[%s5148_s30 + $0x600] sm:$0xff] }
 0x1a6   : > { %v2060_v56 = vunpack.c.h.s8.bf16 %v1472_v52  ;;  %v2056_v9 = vunpack.c.l.s8.bf16 %v1472_v52 }
 0x1a7   : > { %2655 = vmatpush2.bf16.msra.mxu0 %v1960_v0  ;;  %v2124_v0 = vunpack.c.h.s8.bf16 %v1504_v55 }
 0x1a8   : > { %2696 = vmatpush2.bf16.msra.mxu1 %v2024_v1  ;;  %2706 = vmatprep.subr.bf16.mxu0 %v2085_v2  ;;  %v2057_v1 = vunpack.c.l.s8.bf16 %v1473_v45  ;;  %v2121_v2 = vunpack.c.l.s8.bf16 %v1505_v46 }
 0x1a9   : > { %2747 = vmatprep.subr.bf16.mxu1 %v2149_v3  ;;  %v1501_v3 = vld [vmem:[%s5148_s30 + $0x6e8] sm:$0xff] }
 0x1aa   : > { %2657 = vmatmul.mubr.bf16.vlgmr.msra.gmra.mxu0 %v5349_v14  ;;  %v2117_v13 = vunpack.c.h.s8.bf16 %v1501_v3  ;;  %v2113_v21 = vunpack.c.l.s8.bf16 %v1501_v3 }
 0x1ab   : > { %2698 = vmatmul.mubr.bf16.vlgmr.msra.gmra.mxu1 %v5353_v15  ;;  %2707 = vmatpush1.bf16.msra.mxu0 %v2084_v63  ;;  %v2181_v63 = vunpack.c.h.s8.bf16 %v1533_v6 }
 0x1ac   : > { %2748 = vmatpush1.bf16.msra.mxu1 %v2148_v17  ;;  %2708 = vmatprep.subr.bf16.mxu0 %v2081_v60  ;;  %v1500_v17 = vld [vmem:[%s5148_s30 + $0x6e0] sm:$0xff] }
 0x1ad   : > { %2749 = vmatprep.subr.bf16.mxu1 %v2145_v19  ;;  %2738 = vmatprep.mubr.bf16.mxu0 %v5357_v22  ;;  %v1532_v60 = vld [vmem:[%s5148_s30 + $0x7e0] sm:$0xff]  ;;  %v2116_v19 = vunpack.c.h.s8.bf16 %v1500_v17 }
 0x1ae   : > { %2779 = vmatprep.mubr.bf16.mxu1 %v5359_v53  ;;  %v2180_v20 = vunpack.c.h.s8.bf16 %v1532_v60  ;;  %v2176_v26 = vunpack.c.l.s8.bf16 %v1532_v60 }
 0x1af   : > { %2709 = vmatpush1.bf16.msra.mxu0 %v2080_v54  ;;  %v2177_v54 = vunpack.c.l.s8.bf16 %v1533_v6 }
 0x1b0   : > { %2750 = vmatpush1.bf16.msra.mxu1 %v2144_v23  ;;  %2710 = vmatprep.subr.bf16.mxu0 %v2077_v24  ;;  %v1497_v23 = vld [vmem:[%s5148_s30 + $0x6c8] sm:$0xff] }
 0x1b1   : > { %2751 = vmatprep.subr.bf16.mxu1 %v2141_v25  ;;  %v1529_v24 = vld [vmem:[%s5148_s30 + $0x7c8] sm:$0xff]  ;;  %v2112_v25 = vunpack.c.l.s8.bf16 %v1500_v17  ;;  %v2109_v27 = vunpack.c.h.s8.bf16 %v1497_v23  ;;  %v2105_v33 = vunpack.c.l.s8.bf16 %v1497_v23 }
 0x1b2   : > { %v1581_v17 = vld [vmem:[%s5148_s30 + $0x968] sm:$0xff] }
 0x1b3   : > { %2711 = vmatpush1.bf16.msra.mxu0 %v2076_v28  ;;  %v2173_v28 = vunpack.c.h.s8.bf16 %v1529_v24  ;;  %v2277_v23 = vunpack.c.h.s8.bf16 %v1581_v17 }
 0x1b4   : > { %2752 = vmatpush1.bf16.msra.mxu1 %v2140_v29  ;;  %2712 = vmatprep.subr.bf16.mxu0 %v2073_v30  ;;  %v1496_v29 = vld [vmem:[%s5148_s30 + $0x6c0] sm:$0xff] }
 0x1b5   : > { %2753 = vmatprep.subr.bf16.mxu1 %v2137_v31  ;;  %v1528_v30 = vld [vmem:[%s5148_s30 + $0x7c0] sm:$0xff]  ;;  %v2108_v31 = vunpack.c.h.s8.bf16 %v1496_v29 }
 0x1b6   : > { %v2172_v32 = vunpack.c.h.s8.bf16 %v1528_v30  ;;  %v2168_v38 = vunpack.c.l.s8.bf16 %v1528_v30 }
 0x1b7   : > { %2713 = vmatpush1.bf16.msra.mxu0 %v2072_v34  ;;  %v2169_v34 = vunpack.c.l.s8.bf16 %v1529_v24  ;;  %v1548_v24 = vld [vmem:[%s5148_s30 + $0x860] sm:$0xff] }
 0x1b8   : > { %2754 = vmatpush1.bf16.msra.mxu1 %v2136_v35  ;;  %2714 = vmatprep.subr.bf16.mxu0 %v2069_v36  ;;  %v1493_v35 = vld [vmem:[%s5148_s30 + $0x6a8] sm:$0xff]  ;;  %v2212_v30 = vunpack.c.h.s8.bf16 %v1548_v24 }
 0x1b9   : > { %2755 = vmatprep.subr.bf16.mxu1 %v2133_v37  ;;  %v1525_v36 = vld [vmem:[%s5148_s30 + $0x7a8] sm:$0xff]  ;;  %v2104_v37 = vunpack.c.l.s8.bf16 %v1496_v29  ;;  %v2101_v40 = vunpack.c.h.s8.bf16 %v1493_v35  ;;  %v2097_v46 = vunpack.c.l.s8.bf16 %v1493_v35  ;;  %v5414_v29 = vpack.c.bf16 %v5339_v61, %v5339_v61 }
 0x1ba   : > { %v1577_v35 = vld [vmem:[%s5148_s30 + $0x948] sm:$0xff] }
 0x1bb   : > { %2715 = vmatpush1.bf16.msra.mxu0 %v2068_v41  ;;  %v2165_v41 = vunpack.c.h.s8.bf16 %v1525_v36 }
 0x1bc   : > { %2756 = vmatpush1.bf16.msra.mxu1 %v2132_v42  ;;  %2716 = vmatprep.subr.bf16.mxu0 %v2065_v43  ;;  %v1492_v42 = vld [vmem:[%s5148_s30 + $0x6a0] sm:$0xff] }
 0x1bd   : > { %2757 = vmatprep.subr.bf16.mxu1 %v2129_v44  ;;  %v1524_v43 = vld [vmem:[%s5148_s30 + $0x7a0] sm:$0xff]  ;;  %v2100_v44 = vunpack.c.h.s8.bf16 %v1492_v42  ;;  %v2096_v52 = vunpack.c.l.s8.bf16 %v1492_v42 }
 0x1be   : > { %v2164_v45 = vunpack.c.h.s8.bf16 %v1524_v43  ;;  %v2160_v55 = vunpack.c.l.s8.bf16 %v1524_v43 }
 0x1bf   : > { %2717 = vmatpush1.bf16.msra.mxu0 %v2064_v48  ;;  %v2161_v48 = vunpack.c.l.s8.bf16 %v1525_v36 }
 0x1c0   : > { %2758 = vmatpush1.bf16.msra.mxu1 %v2128_v49  ;;  %2718 = vmatprep.subr.bf16.mxu0 %v2061_v50  ;;  %v1489_v49 = vld [vmem:[%s5148_s30 + $0x688] sm:$0xff] }
 0x1c1   : > { %2759 = vmatprep.subr.bf16.mxu1 %v2125_v51  ;;  %v1521_v50 = vld [vmem:[%s5148_s30 + $0x788] sm:$0xff]  ;;  %v1111_v51 = vld [vmem:[%s5891_s0 + $0x20] sm:$0xff] }
 0x1c2   : > { %v1189_v3 = vcombine.high %v1111_v51, %v1111_v51  ;;  %v5397_v60 = vrot.slane %v1111_v51, %v5174_v58 }
 0x1c3   : > { %2719 = vmatpush1.bf16.msra.mxu0 %v2060_v56  ;;  %v2093_v56 = vunpack.c.h.s8.bf16 %v1489_v49 }
 0x1c4   : > { %2760 = vmatpush1.bf16.msra.mxu1 %v2124_v0  ;;  %2720 = vmatprep.subr.bf16.mxu0 %v2057_v1  ;;  %v2157_v0 = vunpack.c.h.s8.bf16 %v1521_v50  ;;  %v1488_v1 = vld [vmem:[%s5148_s30 + $0x680] sm:$0xff] }
 0x1c5   : > { %2761 = vmatprep.subr.bf16.mxu1 %v2121_v2  ;;  %v1520_v2 = vld [vmem:[%s5148_s30 + $0x780] sm:$0xff]  ;;  %v2092_v6 = vunpack.c.h.s8.bf16 %v1488_v1 }
 0x1c7   : > { %2721 = vmatpush1.bf16.msra.mxu0 %v2056_v9  ;;  %v2156_v9 = vunpack.c.h.s8.bf16 %v1520_v2 }
 0x1c8   : > { %2762 = vmatpush1.bf16.msra.mxu1 %v2120_v12  ;;  %2722 = vmatprep.subr.bf16.mxu0 %v2117_v13  ;;  %v2089_v12 = vunpack.c.l.s8.bf16 %v1489_v49  ;;  %v2153_v13 = vunpack.c.l.s8.bf16 %v1521_v50 }
 0x1c9   : > { %2763 = vmatprep.subr.bf16.mxu1 %v2181_v63  ;;  %v1549_v63 = vld [vmem:[%s5148_s30 + $0x868] sm:$0xff] }
 0x1cb   : > { %2723 = vmatpush2.bf16.msra.mxu0 %v2116_v19  ;;  %v5400_v19 = vrot.slane %v1189_v3, %v5174_v58  ;;  %v1541_v3 = vld [vmem:[%s5148_s30 + $0x828] sm:$0xff] }
 0x1cc   : > { %2764 = vmatpush2.bf16.msra.mxu1 %v2180_v20  ;;  %2724 = vmatprep.subr.bf16.mxu0 %v2113_v21  ;;  %v2088_v20 = vunpack.c.l.s8.bf16 %v1488_v1  ;;  %v2152_v21 = vunpack.c.l.s8.bf16 %v1520_v2  ;;  %v2265_v2 = vunpack.c.l.s8.bf16 %v1577_v35 }
 0x1cd   : > { %2765 = vmatprep.subr.bf16.mxu1 %v2177_v54  ;;  %v2213_v54 = vunpack.c.h.s8.bf16 %v1549_v63 }
 0x1cf   : > { %2725 = vmatpush2.bf16.msra.mxu0 %v2112_v25  ;;  %v1580_v25 = vld [vmem:[%s5148_s30 + $0x960] sm:$0xff] }
 0x1d0   : > { %2766 = vmatpush2.bf16.msra.mxu1 %v2176_v26  ;;  %2726 = vmatprep.subr.bf16.mxu0 %v2109_v27  ;;  %v1204_v26 = vcombine.high %v5397_v60, %v5397_v60  ;;  %v1205_v27 = vcombine.high %v5400_v19, %v5400_v19 }
 0x1d1   : > { %2767 = vmatprep.subr.bf16.mxu1 %v2173_v28  ;;  %v5410_v28 = vpack.c.bf16 %v5336_v57, %v5336_v57 }
 0x1d2   : > { %v5418_v36 = vpack.c.bf16 %v1204_v26, %v1204_v26  ;;  %v1569_v26 = vld [vmem:[%s5148_s30 + $0x908] sm:$0xff] }
 0x1d3   : > { %2727 = vmatpush2.bf16.msra.mxu0 %v2108_v31  ;;  %v2276_v31 = vunpack.c.h.s8.bf16 %v1580_v25 }
 0x1d4   : > { %2768 = vmatpush2.bf16.msra.mxu1 %v2172_v32  ;;  %2728 = vmatprep.subr.bf16.mxu0 %v2105_v33  ;;  %v2209_v32 = vunpack.c.l.s8.bf16 %v1549_v63  ;;  %v2273_v33 = vunpack.c.l.s8.bf16 %v1581_v17  ;;  %v1540_v17 = vld [vmem:[%s5148_s30 + $0x820] sm:$0xff] }
 0x1d5   : > { %2769 = vmatprep.subr.bf16.mxu1 %v2169_v34  ;;  %v1545_v34 = vld [vmem:[%s5148_s30 + $0x848] sm:$0xff] }
 0x1d6   : > { %v2201_v1 = vunpack.c.l.s8.bf16 %v1545_v34 }
 0x1d7   : > { %2729 = vmatpush2.bf16.msra.mxu0 %v2104_v37  ;;  %v5420_v37 = vpack.c.bf16 %v1205_v27, %v1205_v27  ;;  %v2192_v27 = vunpack.c.l.s8.bf16 %v1540_v17 }
 0x1d8   : > { %2770 = vmatpush2.bf16.msra.mxu1 %v2168_v38  ;;  %2730 = vmatprep.subr.bf16.mxu0 %v2101_v40  ;;  %v2208_v40 = vunpack.c.l.s8.bf16 %v1548_v24 }
 0x1d9   : > { %2771 = vmatprep.subr.bf16.mxu1 %v2165_v41  ;;  %v2272_v41 = vunpack.c.l.s8.bf16 %v1580_v25  ;;  %v1537_v25 = vld [vmem:[%s5148_s30 + $0x808] sm:$0xff] }
 0x1db   : > { %2731 = vmatpush2.bf16.msra.mxu0 %v2100_v44  ;;  %v2205_v44 = vunpack.c.h.s8.bf16 %v1545_v34  ;;  %v1568_v34 = vld [vmem:[%s5148_s30 + $0x900] sm:$0xff] }
 0x1dc   : > { %2772 = vmatpush2.bf16.msra.mxu1 %v2164_v45  ;;  %2732 = vmatprep.subr.bf16.mxu0 %v2097_v46  ;;  %v2269_v45 = vunpack.c.h.s8.bf16 %v1577_v35  ;;  %v1544_v46 = vld [vmem:[%s5148_s30 + $0x840] sm:$0xff] }
 0x1dd   : > { %2773 = vmatprep.subr.bf16.mxu1 %v2161_v48  ;;  %v1576_v48 = vld [vmem:[%s5148_s30 + $0x940] sm:$0xff] }
 0x1df   : > { %2733 = vmatpush2.bf16.msra.mxu0 %v2096_v52  ;;  %v2204_v52 = vunpack.c.h.s8.bf16 %v1544_v46 }
 0x1e0   : > { %2774 = vmatpush2.bf16.msra.mxu1 %v2160_v55  ;;  %2734 = vmatprep.subr.bf16.mxu0 %v2093_v56  ;;  %v2268_v55 = vunpack.c.h.s8.bf16 %v1576_v48 }
 0x1e1   : > { %2775 = vmatprep.subr.bf16.mxu1 %v2157_v0 }
 0x1e3   : > { %2735 = vmatpush2.bf16.msra.mxu0 %v2092_v6  ;;  %v1573_v6 = vld [vmem:[%s5148_s30 + $0x928] sm:$0xff] }
 0x1e4   : > { %2776 = vmatpush2.bf16.msra.mxu1 %v2156_v9  ;;  %2736 = vmatprep.subr.bf16.mxu0 %v2089_v12  ;;  %v2200_v9 = vunpack.c.l.s8.bf16 %v1544_v46  ;;  %v2264_v12 = vunpack.c.l.s8.bf16 %v1576_v48  ;;  %v2261_v63 = vunpack.c.h.s8.bf16 %v1573_v6  ;;  %v2257_v24 = vunpack.c.l.s8.bf16 %v1573_v6  ;;  %v1564_v48 = vld [vmem:[%s5148_s30 + $0x8e0] sm:$0xff] }
 0x1e5   : > { %2777 = vmatprep.subr.bf16.mxu1 %v2153_v13  ;;  %v2197_v13 = vunpack.c.h.s8.bf16 %v1541_v3 }
 0x1e7   : > { %2737 = vmatpush2.bf16.msra.mxu0 %v2088_v20  ;;  %v1572_v20 = vld [vmem:[%s5148_s30 + $0x920] sm:$0xff] }
 0x1e8   : > { %2778 = vmatpush2.bf16.msra.mxu1 %v2152_v21  ;;  %2788 = vmatprep.subr.bf16.mxu0 %v2213_v54  ;;  %v2196_v21 = vunpack.c.h.s8.bf16 %v1540_v17  ;;  %v2260_v54 = vunpack.c.h.s8.bf16 %v1572_v20 }
 0x1e9   : > { %2829 = vmatprep.subr.bf16.mxu1 %v2277_v23  ;;  %v2193_v23 = vunpack.c.l.s8.bf16 %v1541_v3 }
 0x1ea   : > { %v2494_v57 = vpop.f32.mrf.mxu0  ;;  %2739 = vmatmul.mubr.bf16.vlgmr.msra.gmra.mxu0 %v5410_v28 }
 0x1eb   : > { %v2535_v38 = vpop.f32.mrf.mxu1  ;;  %2780 = vmatmul.mubr.bf16.vlgmr.msra.gmra.mxu1 %v5414_v29  ;;  %2789 = vmatpush1.bf16.msra.mxu0 %v2212_v30  ;;  %v2256_v30 = vunpack.c.l.s8.bf16 %v1572_v20 }
 0x1ec   : > { %v5424_v61 = vadd.f32 %v2535_v38, %v2494_v57  ;;  %2830 = vmatpush1.bf16.msra.mxu1 %v2276_v31  ;;  %v2496_v42 = vpop.f32.mrf.mxu0  ;;  %2790 = vmatprep.subr.bf16.mxu0 %v2209_v32  ;;  %v2189_v31 = vunpack.c.h.s8.bf16 %v1537_v25  ;;  %v2253_v32 = vunpack.c.h.s8.bf16 %v1569_v26  ;;  %v2252_v57 = vunpack.c.h.s8.bf16 %v1568_v34 }
 0x1ed   : > { %v2537_v43 = vpop.f32.mrf.mxu1  ;;  %2831 = vmatprep.subr.bf16.mxu1 %v2273_v33  ;;  %2820 = vmatprep.mubr.bf16.mxu0 %v5418_v36  ;;  %v1536_v33 = vld [vmem:[%s5148_s30 + $0x800] sm:$0xff]  ;;  %v2185_v38 = vunpack.c.l.s8.bf16 %v1537_v25 }
 0x1ee   : > { %v5428_v49 = vadd.f32 %v2537_v43, %v2496_v42  ;;  %2861 = vmatprep.mubr.bf16.mxu1 %v5420_v37  ;;  %v2498_v50 = vpop.f32.mrf.mxu0  ;;  %v2188_v35 = vunpack.c.h.s8.bf16 %v1536_v33  ;;  %v1597_v42 = vld [vmem:[%s5148_s30 + $0x9e8] sm:$0xff]  ;;  %v2184_v43 = vunpack.c.l.s8.bf16 %v1536_v33 }
 0x1ef   : > { %v2539_v51 = vpop.f32.mrf.mxu1  ;;  %2791 = vmatpush1.bf16.msra.mxu0 %v2208_v40  ;;  %v2249_v40 = vunpack.c.l.s8.bf16 %v1569_v26  ;;  %v2309_v46 = vunpack.c.h.s8.bf16 %v1597_v42  ;;  %v1596_v50 = vld [vmem:[%s5148_s30 + $0x9e0] sm:$0xff] }
 0x1f0   : > { %2832 = vmatpush1.bf16.msra.mxu1 %v2272_v41  ;;  %v2499_v56 = vpop.f32.mrf.mxu0  ;;  %2792 = vmatprep.subr.bf16.mxu0 %v2205_v44  ;;  %v1565_v41 = vld [vmem:[%s5148_s30 + $0x8e8] sm:$0xff]  ;;  %v2248_v44 = vunpack.c.l.s8.bf16 %v1568_v34  ;;  %v2244_v51 = vunpack.c.h.s8.bf16 %v1564_v48  ;;  %v2304_v3 = vunpack.c.l.s8.bf16 %v1596_v50 }
 0x1f1   : > { %v2540_v0 = vpop.f32.mrf.mxu1  ;;  %2833 = vmatprep.subr.bf16.mxu1 %v2269_v45  ;;  %v2245_v45 = vunpack.c.h.s8.bf16 %v1565_v41  ;;  %v2305_v56 = vunpack.c.l.s8.bf16 %v1597_v42 }
 0x1f2   : > { %v1561_v0 = vld [vmem:[%s5148_s30 + $0x8c8] sm:$0xff] }
 0x1f3   : > { %2793 = vmatpush1.bf16.msra.mxu0 %v2204_v52  ;;  %v2308_v52 = vunpack.c.h.s8.bf16 %v1596_v50  ;;  %v2237_v6 = vunpack.c.h.s8.bf16 %v1561_v0  ;;  %v2233_v20 = vunpack.c.l.s8.bf16 %v1561_v0  ;;  %v1645_v0 = vld [vmem:[%s5148_s30 + $0xb68] sm:$0xff] }
 0x1f4   : > { %2834 = vmatpush1.bf16.msra.mxu1 %v2268_v55  ;;  %2794 = vmatprep.subr.bf16.mxu0 %v2201_v1  ;;  %v2241_v55 = vunpack.c.l.s8.bf16 %v1565_v41  ;;  %v1593_v1 = vld [vmem:[%s5148_s30 + $0x9c8] sm:$0xff] }
 0x1f5   : > { %2835 = vmatprep.subr.bf16.mxu1 %v2265_v2  ;;  %v2240_v2 = vunpack.c.l.s8.bf16 %v1564_v48 }
 0x1f7   : > { %2795 = vmatpush1.bf16.msra.mxu0 %v2200_v9  ;;  %v2301_v9 = vunpack.c.h.s8.bf16 %v1593_v1 }
 0x1f8   : > { %2836 = vmatpush1.bf16.msra.mxu1 %v2264_v12  ;;  %2796 = vmatprep.subr.bf16.mxu0 %v2197_v13  ;;  %v1560_v12 = vld [vmem:[%s5148_s30 + $0x8c0] sm:$0xff] }
 0x1f9   : > { %2837 = vmatprep.subr.bf16.mxu1 %v2261_v63  ;;  %v1592_v13 = vld [vmem:[%s5148_s30 + $0x9c0] sm:$0xff]  ;;  %v2236_v63 = vunpack.c.h.s8.bf16 %v1560_v12 }
 0x1fa   : > { %v2300_v17 = vunpack.c.h.s8.bf16 %v1592_v13  ;;  %v2296_v25 = vunpack.c.l.s8.bf16 %v1592_v13  ;;  %v1612_v13 = vld [vmem:[%s5148_s30 + $0xa60] sm:$0xff] }
 0x1fb   : > { %2797 = vmatpush1.bf16.msra.mxu0 %v2196_v21  ;;  %v2297_v21 = vunpack.c.l.s8.bf16 %v1593_v1 }
 0x1fc   : > { %2838 = vmatpush1.bf16.msra.mxu1 %v2260_v54  ;;  %2798 = vmatprep.subr.bf16.mxu0 %v2193_v23  ;;  %v1557_v54 = vld [vmem:[%s5148_s30 + $0x8a8] sm:$0xff] }
 0x1fd   : > { %2839 = vmatprep.subr.bf16.mxu1 %v2257_v24  ;;  %v1589_v23 = vld [vmem:[%s5148_s30 + $0x9a8] sm:$0xff]  ;;  %v2232_v24 = vunpack.c.l.s8.bf16 %v1560_v12  ;;  %v2229_v26 = vunpack.c.h.s8.bf16 %v1557_v54  ;;  %v2225_v34 = vunpack.c.l.s8.bf16 %v1557_v54  ;;  %v2405_v12 = vunpack.c.h.s8.bf16 %v1645_v0 }
 0x1fe   : > { %v2340_v54 = vunpack.c.h.s8.bf16 %v1612_v13 }
 0x1ff   : > { %2799 = vmatpush1.bf16.msra.mxu0 %v2192_v27  ;;  %v2293_v27 = vunpack.c.h.s8.bf16 %v1589_v23 }
 0x200   : > { %2840 = vmatpush1.bf16.msra.mxu1 %v2256_v30  ;;  %2800 = vmatprep.subr.bf16.mxu0 %v2189_v31  ;;  %v1556_v30 = vld [vmem:[%s5148_s30 + $0x8a0] sm:$0xff] }
 0x201   : > { %2841 = vmatprep.subr.bf16.mxu1 %v2253_v32  ;;  %v1588_v31 = vld [vmem:[%s5148_s30 + $0x9a0] sm:$0xff]  ;;  %v2228_v32 = vunpack.c.h.s8.bf16 %v1556_v30  ;;  %v2224_v41 = vunpack.c.l.s8.bf16 %v1556_v30 }
 0x202   : > { %v2292_v33 = vunpack.c.h.s8.bf16 %v1588_v31  ;;  %v2288_v42 = vunpack.c.l.s8.bf16 %v1588_v31 }
 0x203   : > { %2801 = vmatpush1.bf16.msra.mxu0 %v2188_v35  ;;  %v2289_v35 = vunpack.c.l.s8.bf16 %v1589_v23 }
 0x204   : > { %2842 = vmatpush1.bf16.msra.mxu1 %v2252_v57  ;;  %2802 = vmatprep.subr.bf16.mxu0 %v2185_v38  ;;  %v1553_v57 = vld [vmem:[%s5148_s30 + $0x888] sm:$0xff] }
 0x205   : > { %2843 = vmatprep.subr.bf16.mxu1 %v2249_v40  ;;  %v1585_v38 = vld [vmem:[%s5148_s30 + $0x988] sm:$0xff] }
 0x206   : > { %v1112_v40 = vld [vmem:[%s5891_s0 + $0x28] sm:$0xff] }
 0x207   : > { %2803 = vmatpush1.bf16.msra.mxu0 %v2184_v43  ;;  %v2221_v43 = vunpack.c.h.s8.bf16 %v1553_v57  ;;  %v1206_v48 = vcombine.high %v1112_v40, %v1112_v40  ;;  %v5462_v1 = vrot.slane %v1112_v40, %v5174_v58 }
 0x208   : > { %2844 = vmatpush1.bf16.msra.mxu1 %v2248_v44  ;;  %2804 = vmatprep.subr.bf16.mxu0 %v2245_v45  ;;  %v2285_v44 = vunpack.c.h.s8.bf16 %v1585_v38  ;;  %v1552_v45 = vld [vmem:[%s5148_s30 + $0x880] sm:$0xff] }
 0x209   : > { %2845 = vmatprep.subr.bf16.mxu1 %v2309_v46  ;;  %v1584_v46 = vld [vmem:[%s5148_s30 + $0x980] sm:$0xff]  ;;  %v2220_v50 = vunpack.c.h.s8.bf16 %v1552_v45 }
 0x20b   : > { %2805 = vmatpush2.bf16.msra.mxu0 %v2244_v51  ;;  %v2284_v51 = vunpack.c.h.s8.bf16 %v1584_v46 }
 0x20c   : > { %2846 = vmatpush2.bf16.msra.mxu1 %v2308_v52  ;;  %2806 = vmatprep.subr.bf16.mxu0 %v2241_v55  ;;  %v2217_v52 = vunpack.c.l.s8.bf16 %v1553_v57  ;;  %v2281_v55 = vunpack.c.l.s8.bf16 %v1585_v38 }
 0x20d   : > { %2847 = vmatprep.subr.bf16.mxu1 %v2305_v56  ;;  %v1613_v56 = vld [vmem:[%s5148_s30 + $0xa68] sm:$0xff] }
 0x20f   : > { %2807 = vmatpush2.bf16.msra.mxu0 %v2240_v2  ;;  %v5465_v2 = vrot.slane %v1206_v48, %v5174_v58  ;;  %v5475_v58 = vpack.c.bf16 %v5397_v60, %v5397_v60 }
 0x210   : > { %2848 = vmatpush2.bf16.msra.mxu1 %v2304_v3  ;;  %2808 = vmatprep.subr.bf16.mxu0 %v2237_v6  ;;  %v2216_v3 = vunpack.c.l.s8.bf16 %v1552_v45  ;;  %v2280_v6 = vunpack.c.l.s8.bf16 %v1584_v46 }
 0x211   : > { %2849 = vmatprep.subr.bf16.mxu1 %v2301_v9  ;;  %v2341_v9 = vunpack.c.h.s8.bf16 %v1613_v56 }
 0x213   : > { %2809 = vmatpush2.bf16.msra.mxu0 %v2236_v63  ;;  %v1644_v63 = vld [vmem:[%s5148_s30 + $0xb60] sm:$0xff] }
 0x214   : > { %2850 = vmatpush2.bf16.msra.mxu1 %v2300_v17  ;;  %2810 = vmatprep.subr.bf16.mxu0 %v2233_v20  ;;  %v1221_v17 = vcombine.high %v5462_v1, %v5462_v1  ;;  %v1222_v20 = vcombine.high %v5465_v2, %v5465_v2  ;;  %v2404_v23 = vunpack.c.h.s8.bf16 %v1644_v63 }
 0x215   : > { %2851 = vmatprep.subr.bf16.mxu1 %v2297_v21  ;;  %v5479_v21 = vpack.c.bf16 %v5400_v19, %v5400_v19 }
 0x216   : > { %v5483_v30 = vpack.c.bf16 %v1221_v17, %v1221_v17  ;;  %v5485_v31 = vpack.c.bf16 %v1222_v20, %v1222_v20 }
 0x217   : > { %2811 = vmatpush2.bf16.msra.mxu0 %v2232_v24  ;;  %v2337_v24 = vunpack.c.l.s8.bf16 %v1613_v56  ;;  %v1605_v56 = vld [vmem:[%s5148_s30 + $0xa28] sm:$0xff] }
 0x218   : > { %2852 = vmatpush2.bf16.msra.mxu1 %v2296_v25  ;;  %2812 = vmatprep.subr.bf16.mxu0 %v2229_v26  ;;  %v2401_v25 = vunpack.c.l.s8.bf16 %v1645_v0  ;;  %v1609_v26 = vld [vmem:[%s5148_s30 + $0xa48] sm:$0xff] }
 0x219   : > { %2853 = vmatprep.subr.bf16.mxu1 %v2293_v27  ;;  %v1641_v27 = vld [vmem:[%s5148_s30 + $0xb48] sm:$0xff]  ;;  %v2333_v38 = vunpack.c.h.s8.bf16 %v1609_v26 }
 0x21a   : > { %v2397_v40 = vunpack.c.h.s8.bf16 %v1641_v27  ;;  %v1637_v0 = vld [vmem:[%s5148_s30 + $0xb28] sm:$0xff] }
 0x21b   : > { %2813 = vmatpush2.bf16.msra.mxu0 %v2228_v32 }
 0x21c   : > { %2854 = vmatpush2.bf16.msra.mxu1 %v2292_v33  ;;  %2814 = vmatprep.subr.bf16.mxu0 %v2225_v34  ;;  %v2336_v33 = vunpack.c.l.s8.bf16 %v1612_v13  ;;  %v2400_v34 = vunpack.c.l.s8.bf16 %v1644_v63  ;;  %v1604_v13 = vld [vmem:[%s5148_s30 + $0xa20] sm:$0xff] }
 0x21d   : > { %2855 = vmatprep.subr.bf16.mxu1 %v2289_v35  ;;  %v1636_v63 = vld [vmem:[%s5148_s30 + $0xb20] sm:$0xff]  ;;  %v2324_v17 = vunpack.c.h.s8.bf16 %v1604_v13 }
 0x21e   : > { %v2388_v20 = vunpack.c.h.s8.bf16 %v1636_v63 }
 0x21f   : > { %2815 = vmatpush2.bf16.msra.mxu0 %v2224_v41  ;;  %v1608_v41 = vld [vmem:[%s5148_s30 + $0xa40] sm:$0xff] }
 0x220   : > { %2856 = vmatpush2.bf16.msra.mxu1 %v2288_v42  ;;  %2816 = vmatprep.subr.bf16.mxu0 %v2221_v43  ;;  %v1640_v42 = vld [vmem:[%s5148_s30 + $0xb40] sm:$0xff]  ;;  %v2332_v48 = vunpack.c.h.s8.bf16 %v1608_v41 }
 0x221   : > { %2857 = vmatprep.subr.bf16.mxu1 %v2285_v44 }
 0x223   : > { %2817 = vmatpush2.bf16.msra.mxu0 %v2220_v50  ;;  %v2396_v50 = vunpack.c.h.s8.bf16 %v1640_v42 }
 0x224   : > { %2858 = vmatpush2.bf16.msra.mxu1 %v2284_v51  ;;  %2818 = vmatprep.subr.bf16.mxu0 %v2217_v52 }
 0x225   : > { %2859 = vmatprep.subr.bf16.mxu1 %v2281_v55  ;;  %v2393_v55 = vunpack.c.l.s8.bf16 %v1641_v27  ;;  %v2384_v27 = vunpack.c.l.s8.bf16 %v1636_v63  ;;  %v1656_v63 = vld [vmem:[%s5148_s30 + $0xbc0] sm:$0xff] }
 0x227   : > { %2819 = vmatpush2.bf16.msra.mxu0 %v2216_v3  ;;  %v2328_v3 = vunpack.c.l.s8.bf16 %v1608_v41  ;;  %v1661_v41 = vld [vmem:[%s5148_s30 + $0xbe8] sm:$0xff] }
 0x228   : > { %2860 = vmatpush2.bf16.msra.mxu1 %v2280_v6  ;;  %2870 = vmatprep.subr.bf16.mxu0 %v2341_v9  ;;  %v2392_v6 = vunpack.c.l.s8.bf16 %v1640_v42  ;;  %v2325_v9 = vunpack.c.h.s8.bf16 %v1605_v56 }
 0x229   : > { %2911 = vmatprep.subr.bf16.mxu1 %v2405_v12  ;;  %v2389_v12 = vunpack.c.h.s8.bf16 %v1637_v0 }
 0x22a   : > { %v2576_v60 = vpop.f32.mrf.mxu0  ;;  %2821 = vmatmul.mubr.bf16.vlgmr.msra.gmra.mxu0 %v5475_v58 }
 0x22b   : > { %v2617_v32 = vpop.f32.mrf.mxu1  ;;  %2862 = vmatmul.mubr.bf16.vlgmr.msra.gmra.mxu1 %v5479_v21  ;;  %v2577_v19 = vadd.f32 %v2576_v60, %v5424_v61  ;;  %2871 = vmatpush1.bf16.msra.mxu0 %v2340_v54  ;;  %v2321_v54 = vunpack.c.l.s8.bf16 %v1605_v56  ;;  %v1625_v56 = vld [vmem:[%s5148_s30 + $0xac8] sm:$0xff] }
 0x22c   : > { %2912 = vmatpush1.bf16.msra.mxu1 %v2404_v23  ;;  %v2578_v35 = vpop.f32.mrf.mxu0  ;;  %2872 = vmatprep.subr.bf16.mxu0 %v2337_v24  ;;  %v2385_v23 = vunpack.c.l.s8.bf16 %v1637_v0  ;;  %v1601_v24 = vld [vmem:[%s5148_s30 + $0xa08] sm:$0xff] }
 0x22d   : > { %v2619_v57 = vpop.f32.mrf.mxu1  ;;  %2913 = vmatprep.subr.bf16.mxu1 %v2401_v25  ;;  %v5492_v43 = vadd.f32 %v2617_v32, %v2577_v19  ;;  %v2579_v44 = vadd.f32 %v2578_v35, %v5428_v49  ;;  %2902 = vmatprep.mubr.bf16.mxu0 %v5483_v30  ;;  %v2329_v49 = vunpack.c.l.s8.bf16 %v1609_v26  ;;  %v1633_v25 = vld [vmem:[%s5148_s30 + $0xb08] sm:$0xff]  ;;  %v2320_v26 = vunpack.c.l.s8.bf16 %v1604_v13  ;;  %v1600_v19 = vld [vmem:[%s5148_s30 + $0xa00] sm:$0xff] }
 0x22e   : > { %2943 = vmatprep.mubr.bf16.mxu1 %v5485_v31  ;;  %v2580_v61 = vpop.f32.mrf.mxu0  ;;  %v2317_v60 = vunpack.c.h.s8.bf16 %v1601_v24  ;;  %v2381_v32 = vunpack.c.h.s8.bf16 %v1633_v25  ;;  %v2312_v42 = vunpack.c.l.s8.bf16 %v1600_v19  ;;  %v1657_v0 = vld [vmem:[%s5148_s30 + $0xbc8] sm:$0xff]  ;;  %v1624_v13 = vld [vmem:[%s5148_s30 + $0xac0] sm:$0xff] }
 0x22f   : > { %v2621_v45 = vpop.f32.mrf.mxu1  ;;  %v5497_v46 = vadd.f32 %v2619_v57, %v2579_v44  ;;  %2873 = vmatpush1.bf16.msra.mxu0 %v2336_v33  ;;  %v1632_v33 = vld [vmem:[%s5148_s30 + $0xb00] sm:$0xff]  ;;  %v2313_v57 = vunpack.c.l.s8.bf16 %v1601_v24  ;;  %v1621_v24 = vld [vmem:[%s5148_s30 + $0xaa8] sm:$0xff] }
 0x230   : > { %2914 = vmatpush1.bf16.msra.mxu1 %v2400_v34  ;;  %v2581_v51 = vpop.f32.mrf.mxu0  ;;  %2874 = vmatprep.subr.bf16.mxu0 %v2333_v38  ;;  %v2316_v34 = vunpack.c.h.s8.bf16 %v1600_v19  ;;  %v2380_v35 = vunpack.c.h.s8.bf16 %v1632_v33  ;;  %v2377_v38 = vunpack.c.l.s8.bf16 %v1633_v25  ;;  %v2376_v44 = vunpack.c.l.s8.bf16 %v1632_v33  ;;  %v1653_v25 = vld [vmem:[%s5148_s30 + $0xba8] sm:$0xff]  ;;  %v1620_v19 = vld [vmem:[%s5148_s30 + $0xaa0] sm:$0xff] }
 0x231   : > { %v2622_v52 = vpop.f32.mrf.mxu1  ;;  %2915 = vmatprep.subr.bf16.mxu1 %v2397_v40  ;;  %v1629_v40 = vld [vmem:[%s5148_s30 + $0xae8] sm:$0xff]  ;;  %v2437_v45 = vunpack.c.h.s8.bf16 %v1661_v41  ;;  %v1652_v33 = vld [vmem:[%s5148_s30 + $0xba0] sm:$0xff] }
 0x232   : > { %v2373_v61 = vunpack.c.h.s8.bf16 %v1629_v40 }
 0x233   : > { %2875 = vmatpush1.bf16.msra.mxu0 %v2332_v48  ;;  %v1628_v48 = vld [vmem:[%s5148_s30 + $0xae0] sm:$0xff] }
 0x234   : > { %2916 = vmatpush1.bf16.msra.mxu1 %v2396_v50  ;;  %2876 = vmatprep.subr.bf16.mxu0 %v2329_v49  ;;  %v1660_v50 = vld [vmem:[%s5148_s30 + $0xbe0] sm:$0xff]  ;;  %v2372_v51 = vunpack.c.h.s8.bf16 %v1628_v48  ;;  %v2369_v49 = vunpack.c.l.s8.bf16 %v1629_v40  ;;  %v1617_v40 = vld [vmem:[%s5148_s30 + $0xa88] sm:$0xff] }
 0x235   : > { %2917 = vmatprep.subr.bf16.mxu1 %v2393_v55  ;;  %v2436_v52 = vunpack.c.h.s8.bf16 %v1660_v50  ;;  %v2433_v55 = vunpack.c.l.s8.bf16 %v1661_v41  ;;  %v1649_v41 = vld [vmem:[%s5148_s30 + $0xb88] sm:$0xff] }
 0x237   : > { %2877 = vmatpush1.bf16.msra.mxu0 %v2328_v3  ;;  %v2368_v3 = vunpack.c.l.s8.bf16 %v1628_v48  ;;  %v1616_v48 = vld [vmem:[%s5148_s30 + $0xa80] sm:$0xff] }
 0x238   : > { %2918 = vmatpush1.bf16.msra.mxu1 %v2392_v6  ;;  %2878 = vmatprep.subr.bf16.mxu0 %v2325_v9  ;;  %v2432_v6 = vunpack.c.l.s8.bf16 %v1660_v50  ;;  %v2365_v9 = vunpack.c.h.s8.bf16 %v1625_v56  ;;  %v1648_v50 = vld [vmem:[%s5148_s30 + $0xb80] sm:$0xff] }
 0x239   : > { %2919 = vmatprep.subr.bf16.mxu1 %v2389_v12  ;;  %v2429_v12 = vunpack.c.h.s8.bf16 %v1657_v0 }
 0x23b   : > { %2879 = vmatpush1.bf16.msra.mxu0 %v2324_v17  ;;  %v2364_v17 = vunpack.c.h.s8.bf16 %v1624_v13 }
 0x23c   : > { %2920 = vmatpush1.bf16.msra.mxu1 %v2388_v20  ;;  %2880 = vmatprep.subr.bf16.mxu0 %v2321_v54  ;;  %v2428_v20 = vunpack.c.h.s8.bf16 %v1656_v63  ;;  %v2361_v54 = vunpack.c.l.s8.bf16 %v1625_v56  ;;  %v1669_v56 = vld [vmem:[%s5148_s30 + $0xc28] sm:$0xff] }
 0x23d   : > { %2921 = vmatprep.subr.bf16.mxu1 %v2385_v23  ;;  %v2425_v23 = vunpack.c.l.s8.bf16 %v1657_v0  ;;  %v1295_v0 = vld [vmem:[%s5148_s30 + $0x78] sm:$0xff] }
 0x23f   : > { %2881 = vmatpush1.bf16.msra.mxu0 %v2320_v26  ;;  %v2360_v26 = vunpack.c.l.s8.bf16 %v1624_v13  ;;  %v1668_v13 = vld [vmem:[%s5148_s30 + $0xc20] sm:$0xff] }
 0x240   : > { %2922 = vmatpush1.bf16.msra.mxu1 %v2384_v27  ;;  %2882 = vmatprep.subr.bf16.mxu0 %v2317_v60  ;;  %v2424_v27 = vunpack.c.l.s8.bf16 %v1656_v63  ;;  %v2357_v60 = vunpack.c.h.s8.bf16 %v1621_v24  ;;  %v1294_v63 = vld [vmem:[%s5148_s30 + $0x70] sm:$0xff] }
 0x241   : > { %2923 = vmatprep.subr.bf16.mxu1 %v2381_v32  ;;  %v2421_v32 = vunpack.c.h.s8.bf16 %v1653_v25 }
 0x243   : > { %2883 = vmatpush1.bf16.msra.mxu0 %v2316_v34  ;;  %v2356_v34 = vunpack.c.h.s8.bf16 %v1620_v19 }
 0x244   : > { %2924 = vmatpush1.bf16.msra.mxu1 %v2380_v35  ;;  %2884 = vmatprep.subr.bf16.mxu0 %v2313_v57  ;;  %v2420_v35 = vunpack.c.h.s8.bf16 %v1652_v33  ;;  %v2353_v57 = vunpack.c.l.s8.bf16 %v1621_v24  ;;  %v2449_v24 = vunpack.c.l.s8.bf16 %v1669_v56 }
 0x245   : > { %2925 = vmatprep.subr.bf16.mxu1 %v2377_v38  ;;  %v2417_v38 = vunpack.c.l.s8.bf16 %v1653_v25  ;;  %v1699_v25 = vunpack.c.l.s8.bf16 %v1295_v0 }
 0x247   : > { %2885 = vmatpush1.bf16.msra.mxu0 %v2312_v42  ;;  %v2352_v42 = vunpack.c.l.s8.bf16 %v1620_v19  ;;  %v1698_v19 = vunpack.c.l.s8.bf16 %v1294_v63 }
 0x248   : > { %2926 = vmatpush1.bf16.msra.mxu1 %v2376_v44  ;;  %2886 = vmatprep.subr.bf16.mxu0 %v2373_v61  ;;  %v2416_v44 = vunpack.c.l.s8.bf16 %v1652_v33  ;;  %v2349_v61 = vunpack.c.h.s8.bf16 %v1617_v40 }
 0x249   : > { %2927 = vmatprep.subr.bf16.mxu1 %v2437_v45  ;;  %v2413_v45 = vunpack.c.h.s8.bf16 %v1649_v41 }
 0x24b   : > { %2887 = vmatpush2.bf16.msra.mxu0 %v2372_v51  ;;  %v2348_v51 = vunpack.c.h.s8.bf16 %v1616_v48 }
 0x24c   : > { %2928 = vmatpush2.bf16.msra.mxu1 %v2436_v52  ;;  %2888 = vmatprep.subr.bf16.mxu0 %v2369_v49  ;;  %v2412_v52 = vunpack.c.h.s8.bf16 %v1648_v50  ;;  %v2345_v49 = vunpack.c.l.s8.bf16 %v1617_v40  ;;  %v1290_v40 = vld [vmem:[%s5148_s30 + $0x50] sm:$0xff] }
 0x24d   : > { %2929 = vmatprep.subr.bf16.mxu1 %v2433_v55  ;;  %v2409_v55 = vunpack.c.l.s8.bf16 %v1649_v41 }
 0x24f   : > { %2889 = vmatpush2.bf16.msra.mxu0 %v2368_v3  ;;  %v2344_v3 = vunpack.c.l.s8.bf16 %v1616_v48 }
 0x250   : > { %2930 = vmatpush2.bf16.msra.mxu1 %v2432_v6  ;;  %2890 = vmatprep.subr.bf16.mxu0 %v2365_v9  ;;  %v2408_v6 = vunpack.c.l.s8.bf16 %v1648_v50  ;;  %v2453_v9 = vunpack.c.h.s8.bf16 %v1669_v56  ;;  %v1694_v50 = vunpack.c.h.s8.bf16 %v1290_v40  ;;  %v1327_v56 = vld [vmem:[%s5148_s30 + $0x178] sm:$0xff] }
 0x251   : > { %2931 = vmatprep.subr.bf16.mxu1 %v2429_v12  ;;  %v1703_v12 = vunpack.c.h.s8.bf16 %v1295_v0  ;;  %v1690_v0 = vunpack.c.l.s8.bf16 %v1290_v40  ;;  %v1311_v40 = vld [vmem:[%s5148_s30 + $0xf8] sm:$0xff] }
 0x253   : > { %2891 = vmatpush2.bf16.msra.mxu0 %v2364_v17  ;;  %v5529_v17 = vpack.c.bf16 %v5462_v1, %v5462_v1 }
 0x254   : > { %2932 = vmatpush2.bf16.msra.mxu1 %v2428_v20  ;;  %2892 = vmatprep.subr.bf16.mxu0 %v2361_v54  ;;  %v5533_v20 = vpack.c.bf16 %v5465_v2, %v5465_v2  ;;  %v2452_v54 = vunpack.c.h.s8.bf16 %v1668_v13  ;;  %v2448_v2 = vunpack.c.l.s8.bf16 %v1668_v13  ;;  %v1326_v13 = vld [vmem:[%s5148_s30 + $0x170] sm:$0xff] }
 0x255   : > { %2933 = vmatprep.subr.bf16.mxu1 %v2425_v23  ;;  %v1702_v23 = vunpack.c.h.s8.bf16 %v1294_v63 }
 0x257   : > { %2893 = vmatpush2.bf16.msra.mxu0 %v2360_v26  ;;  %v1665_v26 = vld [vmem:[%s5148_s30 + $0xc08] sm:$0xff] }
 0x258   : > { %2934 = vmatpush2.bf16.msra.mxu1 %v2424_v27  ;;  %2894 = vmatprep.subr.bf16.mxu0 %v2357_v60  ;;  %v1291_v27 = vld [vmem:[%s5148_s30 + $0x58] sm:$0xff] }
 0x259   : > { %2935 = vmatprep.subr.bf16.mxu1 %v2421_v32 }
 0x25b   : > { %2895 = vmatpush2.bf16.msra.mxu0 %v2356_v34 }
 0x25c   : > { %2936 = vmatpush2.bf16.msra.mxu1 %v2420_v35  ;;  %2896 = vmatprep.subr.bf16.mxu0 %v2353_v57  ;;  %v2445_v35 = vunpack.c.h.s8.bf16 %v1665_v26  ;;  %v1695_v57 = vunpack.c.h.s8.bf16 %v1291_v27 }
 0x25d   : > { %2937 = vmatprep.subr.bf16.mxu1 %v2417_v38  ;;  %v1664_v38 = vld [vmem:[%s5148_s30 + $0xc00] sm:$0xff] }
 0x25e   : > { %v2444_v48 = vunpack.c.h.s8.bf16 %v1664_v38 }
 0x25f   : > { %2897 = vmatpush2.bf16.msra.mxu0 %v2352_v42 }
 0x260   : > { %2938 = vmatpush2.bf16.msra.mxu1 %v2416_v44  ;;  %2898 = vmatprep.subr.bf16.mxu0 %v2349_v61  ;;  %v4267_v44 = vmov 0  }
 0x261   : > { %2939 = vmatprep.subr.bf16.mxu1 %v2413_v45 }
 0x263   : > { %2899 = vmatpush2.bf16.msra.mxu0 %v2348_v51 }
 0x264   : > { %2940 = vmatpush2.bf16.msra.mxu1 %v2412_v52  ;;  %2900 = vmatprep.subr.bf16.mxu0 %v2345_v49  ;;  %v1691_v49 = vunpack.c.l.s8.bf16 %v1291_v27  ;;  %v1323_v27 = vld [vmem:[%s5148_s30 + $0x158] sm:$0xff] }
 0x265   : > { %2941 = vmatprep.subr.bf16.mxu1 %v2409_v55  ;;  %v1287_v55 = vld [vmem:[%s5148_s30 + $0x38] sm:$0xff] }
 0x267   : > { %2901 = vmatpush2.bf16.msra.mxu0 %v2344_v3  ;;  %v4049_v3 = vld.sshfl [vmem:[%s5891_s0 + $0x30] sm:$0x3 pattern:$0x76325410] }
 0x268   : > { %2942 = vmatpush2.bf16.msra.mxu1 %v2408_v6  ;;  %2960 = vmatprep.subr.bf16.mxu0 %v2453_v9  ;;  %v1687_v6 = vunpack.c.h.s8.bf16 %v1287_v55  ;;  %v1767_v9 = vunpack.c.h.s8.bf16 %v1327_v56  ;;  %v5556_v63 = vpack.c.bf16 %v4049_v3, %v4049_v3 }
 0x269   : > { %2993 = vmatprep.subr.bf16.mxu1 %v1703_v12  ;;  %v1286_v12 = vld [vmem:[%s5148_s30 + $0x30] sm:$0xff] }
 0x26a   : > { %v2658_v60 = vpop.f32.mrf.mxu0  ;;  %2903 = vmatmul.mubr.bf16.vlgmr.msra.gmra.mxu0 %v5529_v17 }
 0x26b   : > { %v2699_v32 = vpop.f32.mrf.mxu1  ;;  %2944 = vmatmul.mubr.bf16.vlgmr.msra.gmra.mxu1 %v5533_v20  ;;  %v2659_v1 = vadd.f32 %v2658_v60, %v5492_v43  ;;  %2961 = vmatpush1.bf16.msra.mxu0 %v2452_v54  ;;  %v1686_v54 = vunpack.c.h.s8.bf16 %v1286_v12  ;;  %v1682_v60 = vunpack.c.l.s8.bf16 %v1286_v12  ;;  %v1306_v12 = vld [vmem:[%s5148_s30 + $0xd0] sm:$0xff] }
 0x26c   : > { %2994 = vmatpush1.bf16.msra.mxu1 %v1702_v23  ;;  %v2660_v33 = vpop.f32.mrf.mxu0  ;;  %2962 = vmatprep.subr.bf16.mxu0 %v2449_v24  ;;  %v1766_v23 = vunpack.c.h.s8.bf16 %v1326_v13  ;;  %v1683_v24 = vunpack.c.l.s8.bf16 %v1287_v55 }
 0x26d   : > { %v2701_v34 = vpop.f32.mrf.mxu1  ;;  %2995 = vmatprep.subr.bf16.mxu1 %v1699_v25  ;;  %v5542_v41 = vadd.f32 %v2699_v32, %v2659_v1  ;;  %v2661_v42 = vadd.f32 %v2660_v33, %v5497_v46  ;;  %2984 = vmatprep.mubr.bf16.mxu0 %v4267_v44  ;;  %v2441_v46 = vunpack.c.l.s8.bf16 %v1665_v26  ;;  %v1763_v25 = vunpack.c.l.s8.bf16 %v1327_v56  ;;  %v1283_v26 = vld [vmem:[%s5148_s30 + $0x18] sm:$0xff]  ;;  %v1322_v33 = vld [vmem:[%s5148_s30 + $0x150] sm:$0xff] }
 0x26e   : > { %3025 = vmatprep.mubr.bf16.mxu1 %v5190_v7  ;;  %v2662_v43 = vpop.f32.mrf.mxu0  ;;  %v2440_v7 = vunpack.c.l.s8.bf16 %v1664_v38  ;;  %v1762_v32 = vunpack.c.l.s8.bf16 %v1326_v13  ;;  %v1679_v1 = vunpack.c.h.s8.bf16 %v1283_v26  ;;  %v1755_v38 = vunpack.c.l.s8.bf16 %v1323_v27  ;;  %v1307_v56 = vld [vmem:[%s5148_s30 + $0xd8] sm:$0xff]  ;;  %v1314_v13 = vld [vmem:[%s5148_s30 + $0x110] sm:$0xff] }
 0x26f   : > { %v2703_v61 = vpop.f32.mrf.mxu1  ;;  %v5547_v45 = vadd.f32 %v2701_v34, %v2661_v42  ;;  %2963 = vmatpush1.bf16.msra.mxu0 %v2448_v2  ;;  %v1759_v2 = vunpack.c.h.s8.bf16 %v1323_v27  ;;  %v1319_v42 = vld [vmem:[%s5148_s30 + $0x138] sm:$0xff] }
 0x270   : > { %2996 = vmatpush1.bf16.msra.mxu1 %v1698_v19  ;;  %v2663_v51 = vpop.f32.mrf.mxu0  ;;  %2964 = vmatprep.subr.bf16.mxu0 %v2445_v35  ;;  %v1282_v19 = vld [vmem:[%s5148_s30 + $0x10] sm:$0xff]  ;;  %v1758_v35 = vunpack.c.h.s8.bf16 %v1322_v33  ;;  %v1754_v61 = vunpack.c.l.s8.bf16 %v1322_v33  ;;  %v1747_v55 = vunpack.c.l.s8.bf16 %v1319_v42  ;;  %v1343_v27 = vld [vmem:[%s5148_s30 + $0x1f8] sm:$0xff] }
 0x271   : > { %v2704_v52 = vpop.f32.mrf.mxu1  ;;  %2997 = vmatprep.subr.bf16.mxu1 %v1695_v57  ;;  %v1678_v34 = vunpack.c.h.s8.bf16 %v1282_v19  ;;  %v1675_v57 = vunpack.c.l.s8.bf16 %v1283_v26  ;;  %v1674_v43 = vunpack.c.l.s8.bf16 %v1282_v19  ;;  %v1318_v51 = vld [vmem:[%s5148_s30 + $0x130] sm:$0xff]  ;;  %v1303_v26 = vld [vmem:[%s5148_s30 + $0xb8] sm:$0xff] }
 0x272   : > { %v1746_v3 = vunpack.c.l.s8.bf16 %v1318_v51  ;;  %v1302_v19 = vld [vmem:[%s5148_s30 + $0xb0] sm:$0xff] }
 0x273   : > { %2965 = vmatpush1.bf16.msra.mxu0 %v2444_v48  ;;  %v1751_v48 = vunpack.c.h.s8.bf16 %v1319_v42  ;;  %v1342_v33 = vld [vmem:[%s5148_s30 + $0x1f0] sm:$0xff]  ;;  %v1339_v42 = vld [vmem:[%s5148_s30 + $0x1d8] sm:$0xff] }
 0x274   : > { %2998 = vmatpush1.bf16.msra.mxu1 %v1694_v50  ;;  %2966 = vmatprep.subr.bf16.mxu0 %v2441_v46  ;;  %v1310_v50 = vld [vmem:[%s5148_s30 + $0xf0] sm:$0xff]  ;;  %v1750_v46 = vunpack.c.h.s8.bf16 %v1318_v51 }
 0x275   : > { %2999 = vmatprep.subr.bf16.mxu1 %v1691_v49  ;;  %v1734_v52 = vunpack.c.h.s8.bf16 %v1310_v50  ;;  %v1731_v49 = vunpack.c.l.s8.bf16 %v1311_v40  ;;  %v1338_v51 = vld [vmem:[%s5148_s30 + $0x1d0] sm:$0xff] }
 0x277   : > { %2967 = vmatpush1.bf16.msra.mxu0 %v2440_v7  ;;  %v1315_v7 = vld [vmem:[%s5148_s30 + $0x118] sm:$0xff] }
 0x278   : > { %3000 = vmatpush1.bf16.msra.mxu1 %v1690_v0  ;;  %3034 = vmatprep.subr.bf16.mxu0 %v1767_v9  ;;  %v1730_v0 = vunpack.c.l.s8.bf16 %v1310_v50  ;;  %v1743_v9 = vunpack.c.h.s8.bf16 %v1315_v7  ;;  %v1298_v50 = vld [vmem:[%s5148_s30 + $0x90] sm:$0xff] }
 0x279   : > { %3001 = vmatprep.subr.bf16.mxu1 %v1687_v6  ;;  %v1727_v6 = vunpack.c.h.s8.bf16 %v1307_v56 }
 0x27a   : > { %4050 = vmatmul.mubr.msk.bf16.vlgmr.msra.gmra.mxu0 %vm2456_vm0, %v5556_v63 }
 0x27b   : > { %3035 = vmatpush1.bf16.msra.mxu0 %v1766_v23  ;;  %3066 = vmatprep.mubr.bf16.mxu0 %v5192_v8  ;;  %v1735_v8 = vunpack.c.h.s8.bf16 %v1311_v40  ;;  %v1742_v23 = vunpack.c.h.s8.bf16 %v1314_v13  ;;  %v1299_v40 = vld [vmem:[%s5148_s30 + $0x98] sm:$0xff] }
 0x27c   : > { %3002 = vmatpush1.bf16.msra.mxu1 %v1686_v54  ;;  %3036 = vmatprep.subr.bf16.mxu0 %v1763_v25  ;;  %v1726_v54 = vunpack.c.h.s8.bf16 %v1306_v12  ;;  %v1739_v25 = vunpack.c.l.s8.bf16 %v1315_v7  ;;  %v1359_v7 = vld [vmem:[%s5148_s30 + $0x278] sm:$0xff] }
 0x27d   : > { %3003 = vmatprep.subr.bf16.mxu1 %v1683_v24  ;;  %v1723_v24 = vunpack.c.l.s8.bf16 %v1307_v56  ;;  %v1335_v56 = vld [vmem:[%s5148_s30 + $0x1b8] sm:$0xff] }
 0x27f   : > { %3037 = vmatpush1.bf16.msra.mxu0 %v1762_v32  ;;  %v1738_v32 = vunpack.c.l.s8.bf16 %v1314_v13  ;;  %v1358_v13 = vld [vmem:[%s5148_s30 + $0x270] sm:$0xff] }
 0x280   : > { %3004 = vmatpush1.bf16.msra.mxu1 %v1682_v60  ;;  %3038 = vmatprep.subr.bf16.mxu0 %v1759_v2  ;;  %v1722_v60 = vunpack.c.l.s8.bf16 %v1306_v12  ;;  %v1799_v2 = vunpack.c.h.s8.bf16 %v1343_v27  ;;  %v1334_v12 = vld [vmem:[%s5148_s30 + $0x1b0] sm:$0xff] }
 0x281   : > { %3005 = vmatprep.subr.bf16.mxu1 %v1679_v1  ;;  %v1719_v1 = vunpack.c.h.s8.bf16 %v1303_v26 }
 0x283   : > { %3039 = vmatpush1.bf16.msra.mxu0 %v1758_v35  ;;  %v1798_v35 = vunpack.c.h.s8.bf16 %v1342_v33 }
 0x284   : > { %3006 = vmatpush1.bf16.msra.mxu1 %v1678_v34  ;;  %3040 = vmatprep.subr.bf16.mxu0 %v1755_v38  ;;  %v1718_v34 = vunpack.c.h.s8.bf16 %v1302_v19  ;;  %v1795_v38 = vunpack.c.l.s8.bf16 %v1343_v27  ;;  %v1355_v27 = vld [vmem:[%s5148_s30 + $0x258] sm:$0xff] }
 0x285   : > { %3007 = vmatprep.subr.bf16.mxu1 %v1675_v57  ;;  %v1715_v57 = vunpack.c.l.s8.bf16 %v1303_v26  ;;  %v1331_v26 = vld [vmem:[%s5148_s30 + $0x198] sm:$0xff] }
 0x287   : > { %3041 = vmatpush1.bf16.msra.mxu0 %v1754_v61  ;;  %v1794_v61 = vunpack.c.l.s8.bf16 %v1342_v33 }
 0x288   : > { %3008 = vmatpush1.bf16.msra.mxu1 %v1674_v43  ;;  %3042 = vmatprep.subr.bf16.mxu0 %v1751_v48  ;;  %v1714_v43 = vunpack.c.l.s8.bf16 %v1302_v19  ;;  %v1791_v48 = vunpack.c.h.s8.bf16 %v1339_v42  ;;  %v1826_v19 = vunpack.c.l.s8.bf16 %v1358_v13 }
 0x289   : > { %3009 = vmatprep.subr.bf16.mxu1 %v1735_v8  ;;  %v1711_v8 = vunpack.c.h.s8.bf16 %v1299_v40 }
 0x28b   : > { %3043 = vmatpush1.bf16.msra.mxu0 %v1750_v46  ;;  %v1790_v46 = vunpack.c.h.s8.bf16 %v1338_v51 }
 0x28c   : > { %3010 = vmatpush2.bf16.msra.mxu1 %v1734_v52  ;;  %3044 = vmatprep.subr.bf16.mxu0 %v1747_v55  ;;  %v1710_v52 = vunpack.c.h.s8.bf16 %v1298_v50  ;;  %v1787_v55 = vunpack.c.l.s8.bf16 %v1339_v42 }
 0x28d   : > { %3011 = vmatprep.subr.bf16.mxu1 %v1731_v49  ;;  %v1707_v49 = vunpack.c.l.s8.bf16 %v1299_v40  ;;  %v1354_v40 = vld [vmem:[%s5148_s30 + $0x250] sm:$0xff] }
 0x28f   : > { %3045 = vmatpush1.bf16.msra.mxu0 %v1746_v3  ;;  %v1786_v3 = vunpack.c.l.s8.bf16 %v1338_v51 }
 0x290   : > { %3012 = vmatpush2.bf16.msra.mxu1 %v1730_v0  ;;  %3046 = vmatprep.subr.bf16.mxu0 %v1743_v9  ;;  %v1706_v0 = vunpack.c.l.s8.bf16 %v1298_v50  ;;  %v1831_v9 = vunpack.c.h.s8.bf16 %v1359_v7 }
 0x291   : > { %3013 = vmatprep.subr.bf16.mxu1 %v1727_v6  ;;  %v1783_v6 = vunpack.c.h.s8.bf16 %v1335_v56 }
 0x293   : > { %3047 = vmatpush1.bf16.msra.mxu0 %v1742_v23  ;;  %v1830_v23 = vunpack.c.h.s8.bf16 %v1358_v13 }
 0x294   : > { %3014 = vmatpush2.bf16.msra.mxu1 %v1726_v54  ;;  %3048 = vmatprep.subr.bf16.mxu0 %v1739_v25  ;;  %v1782_v54 = vunpack.c.h.s8.bf16 %v1334_v12  ;;  %v1827_v25 = vunpack.c.l.s8.bf16 %v1359_v7 }
 0x295   : > { %3015 = vmatprep.subr.bf16.mxu1 %v1723_v24  ;;  %v1779_v24 = vunpack.c.l.s8.bf16 %v1335_v56 }
 0x297   : > { %3049 = vmatpush1.bf16.msra.mxu0 %v1738_v32 }
 0x298   : > { %3016 = vmatpush2.bf16.msra.mxu1 %v1722_v60  ;;  %3050 = vmatprep.subr.bf16.mxu0 %v1799_v2  ;;  %v1778_v2 = vunpack.c.l.s8.bf16 %v1334_v12 }
 0x299   : > { %3017 = vmatprep.subr.bf16.mxu1 %v1719_v1 }
 0x29b   : > { %3051 = vmatpush2.bf16.msra.mxu0 %v1798_v35  ;;  %v1775_v35 = vunpack.c.h.s8.bf16 %v1331_v26 }
 0x29c   : > { %3018 = vmatpush2.bf16.msra.mxu1 %v1718_v34  ;;  %3052 = vmatprep.subr.bf16.mxu0 %v1795_v38  ;;  %v1330_v38 = vld [vmem:[%s5148_s30 + $0x190] sm:$0xff] }
 0x29d   : > { %3019 = vmatprep.subr.bf16.mxu1 %v1715_v57  ;;  %v1823_v57 = vunpack.c.h.s8.bf16 %v1355_v27 }
 0x29f   : > { %3053 = vmatpush2.bf16.msra.mxu0 %v1794_v61 }
 0x2a0   : > { %3020 = vmatpush2.bf16.msra.mxu1 %v1714_v43  ;;  %3054 = vmatprep.subr.bf16.mxu0 %v1791_v48  ;;  %v1822_v48 = vunpack.c.h.s8.bf16 %v1354_v40 }
 0x2a1   : > { %3021 = vmatprep.subr.bf16.mxu1 %v1711_v8  ;;  %v1774_v8 = vunpack.c.h.s8.bf16 %v1330_v38 }
 0x2a3   : > { %3055 = vmatpush2.bf16.msra.mxu0 %v1790_v46  ;;  %v1819_v46 = vunpack.c.l.s8.bf16 %v1355_v27 }
 0x2a4   : > { %3022 = vmatpush2.bf16.msra.mxu1 %v1710_v52  ;;  %3056 = vmatprep.subr.bf16.mxu0 %v1787_v55  ;;  %v1771_v52 = vunpack.c.l.s8.bf16 %v1331_v26  ;;  %v1818_v55 = vunpack.c.l.s8.bf16 %v1354_v40  ;;  %v1374_v40 = vld [vmem:[%s5148_s30 + $0x2f0] sm:$0xff] }
 0x2a5   : > { %3023 = vmatprep.subr.bf16.mxu1 %v1707_v49  ;;  %v1391_v49 = vld [vmem:[%s5148_s30 + $0x378] sm:$0xff] }
 0x2a6   : > { %v1895_v7 = vunpack.c.h.s8.bf16 %v1391_v49  ;;  %v1891_v13 = vunpack.c.l.s8.bf16 %v1391_v49 }
 0x2a7   : > { %3057 = vmatpush2.bf16.msra.mxu0 %v1786_v3  ;;  %v1390_v3 = vld [vmem:[%s5148_s30 + $0x370] sm:$0xff] }
 0x2a8   : > { %3024 = vmatpush2.bf16.msra.mxu1 %v1706_v0  ;;  %3058 = vmatprep.subr.bf16.mxu0 %v1783_v6  ;;  %v1350_v0 = vld [vmem:[%s5148_s30 + $0x230] sm:$0xff] }
 0x2a9   : > { %3075 = vmatprep.subr.bf16.mxu1 %v1831_v9  ;;  %v1814_v6 = vunpack.c.h.s8.bf16 %v1350_v0  ;;  %v1894_v9 = vunpack.c.h.s8.bf16 %v1390_v3 }
 0x2aa   : > { %v2740_v60 = vpop.f32.mrf.mxu0 }
 0x2ab   : > { %v2781_v32 = vpop.f32.mrf.mxu1  ;;  %3026 = vmatmul.mubr.bf16.vlgmr.msra.gmra.mxu1 %v5227_v10  ;;  %v2741_v1 = vadd.f32 %v2740_v60, %v5542_v41  ;;  %3059 = vmatpush2.bf16.msra.mxu0 %v1782_v54  ;;  %v1347_v54 = vld [vmem:[%s5148_s30 + $0x218] sm:$0xff]  ;;  %v1346_v60 = vld [vmem:[%s5148_s30 + $0x210] sm:$0xff] }
 0x2ac   : > { %3076 = vmatpush1.bf16.msra.mxu1 %v1830_v23  ;;  %v2742_v33 = vpop.f32.mrf.mxu0  ;;  %3060 = vmatprep.subr.bf16.mxu0 %v1779_v24  ;;  %v1387_v23 = vld [vmem:[%s5148_s30 + $0x358] sm:$0xff]  ;;  %v1810_v24 = vunpack.c.l.s8.bf16 %v1350_v0  ;;  %v1807_v26 = vunpack.c.h.s8.bf16 %v1347_v54 }
 0x2ad   : > { %v2783_v34 = vpop.f32.mrf.mxu1  ;;  %3077 = vmatprep.subr.bf16.mxu1 %v1827_v25  ;;  %v5591_v42 = vadd.f32 %v2781_v32, %v2741_v1  ;;  %v2743_v43 = vadd.f32 %v2742_v33, %v5547_v45  ;;  %3107 = vmatprep.mubr.bf16.mxu1 %v5235_v18  ;;  %v1351_v45 = vld [vmem:[%s5148_s30 + $0x238] sm:$0xff]  ;;  %v1770_v18 = vunpack.c.l.s8.bf16 %v1330_v38  ;;  %v1890_v25 = vunpack.c.l.s8.bf16 %v1390_v3  ;;  %v1386_v32 = vld [vmem:[%s5148_s30 + $0x350] sm:$0xff] }
 0x2ae   : > { %v2744_v10 = vpop.f32.mrf.mxu0  ;;  %v1815_v56 = vunpack.c.h.s8.bf16 %v1351_v45  ;;  %v1811_v12 = vunpack.c.l.s8.bf16 %v1351_v45  ;;  %v1887_v27 = vunpack.c.h.s8.bf16 %v1387_v23  ;;  %v1806_v1 = vunpack.c.h.s8.bf16 %v1346_v60  ;;  %v1375_v33 = vld [vmem:[%s5148_s30 + $0x2f8] sm:$0xff] }
 0x2af   : > { %v2785_v41 = vpop.f32.mrf.mxu1  ;;  %v5595_v61 = vadd.f32 %v2783_v34, %v2743_v43  ;;  %3061 = vmatpush2.bf16.msra.mxu0 %v1778_v2  ;;  %v1886_v2 = vunpack.c.h.s8.bf16 %v1386_v32  ;;  %v1383_v34 = vld [vmem:[%s5148_s30 + $0x338] sm:$0xff]  ;;  %v1382_v43 = vld [vmem:[%s5148_s30 + $0x330] sm:$0xff]  ;;  %v1862_v10 = vunpack.c.h.s8.bf16 %v1374_v40 }
 0x2b0   : > { %3078 = vmatpush1.bf16.msra.mxu1 %v1826_v19  ;;  %v2745_v50 = vpop.f32.mrf.mxu0  ;;  %3062 = vmatprep.subr.bf16.mxu0 %v1775_v35  ;;  %v1883_v19 = vunpack.c.l.s8.bf16 %v1387_v23  ;;  %v1802_v35 = vunpack.c.l.s8.bf16 %v1346_v60  ;;  %v1879_v38 = vunpack.c.h.s8.bf16 %v1383_v34  ;;  %v1878_v41 = vunpack.c.h.s8.bf16 %v1382_v43 }
 0x2b1   : > { %v2786_v51 = vpop.f32.mrf.mxu1  ;;  %3079 = vmatprep.subr.bf16.mxu1 %v1823_v57  ;;  %v1882_v57 = vunpack.c.l.s8.bf16 %v1386_v32  ;;  %v1371_v50 = vld [vmem:[%s5148_s30 + $0x2d8] sm:$0xff] }
 0x2b2   : > { %v1379_v51 = vld [vmem:[%s5148_s30 + $0x318] sm:$0xff]  ;;  %v1855_v45 = vunpack.c.h.s8.bf16 %v1371_v50  ;;  %v1851_v0 = vunpack.c.l.s8.bf16 %v1371_v50 }
 0x2b3   : > { %3063 = vmatpush2.bf16.msra.mxu0 %v1774_v8  ;;  %v1859_v8 = vunpack.c.l.s8.bf16 %v1375_v33  ;;  %v1871_v49 = vunpack.c.h.s8.bf16 %v1379_v51  ;;  %v1867_v3 = vunpack.c.l.s8.bf16 %v1379_v51 }
 0x2b4   : > { %3080 = vmatpush1.bf16.msra.mxu1 %v1822_v48  ;;  %3064 = vmatprep.subr.bf16.mxu0 %v1771_v52  ;;  %v1875_v48 = vunpack.c.l.s8.bf16 %v1383_v34  ;;  %v1858_v52 = vunpack.c.l.s8.bf16 %v1374_v40 }
 0x2b5   : > { %3081 = vmatprep.subr.bf16.mxu1 %v1819_v46  ;;  %v1874_v46 = vunpack.c.l.s8.bf16 %v1382_v43 }
 0x2b7   : > { %3065 = vmatpush2.bf16.msra.mxu0 %v1770_v18  ;;  %v1370_v18 = vld [vmem:[%s5148_s30 + $0x2d0] sm:$0xff] }
 0x2b8   : > { %3082 = vmatpush1.bf16.msra.mxu1 %v1818_v55  ;;  %3116 = vmatprep.subr.bf16.mxu0 %v1895_v7  ;;  %v1378_v55 = vld [vmem:[%s5148_s30 + $0x310] sm:$0xff] }
 0x2b9   : > { %3083 = vmatprep.subr.bf16.mxu1 %v1815_v56  ;;  %v1854_v56 = vunpack.c.h.s8.bf16 %v1370_v18  ;;  %v1870_v7 = vunpack.c.h.s8.bf16 %v1378_v55 }
 0x2ba   : > { %3067 = vmatmul.mubr.bf16.vlgmr.msra.gmra.mxu0 %v5231_v11  ;;  %v1803_v11 = vunpack.c.l.s8.bf16 %v1347_v54 }
 0x2bb   : > { %3117 = vmatpush1.bf16.msra.mxu0 %v1894_v9  ;;  %3148 = vmatprep.mubr.bf16.mxu0 %v5237_v59  ;;  %v1863_v59 = vunpack.c.h.s8.bf16 %v1375_v33  ;;  %v1407_v9 = vld [vmem:[%s5148_s30 + $0x3f8] sm:$0xff] }
 0x2bc   : > { %3084 = vmatpush1.bf16.msra.mxu1 %v1814_v6  ;;  %3118 = vmatprep.subr.bf16.mxu0 %v1891_v13  ;;  %v1367_v6 = vld [vmem:[%s5148_s30 + $0x2b8] sm:$0xff]  ;;  %v1866_v13 = vunpack.c.l.s8.bf16 %v1378_v55  ;;  %v1927_v23 = vunpack.c.h.s8.bf16 %v1407_v9  ;;  %v1923_v32 = vunpack.c.l.s8.bf16 %v1407_v9 }
 0x2bd   : > { %3085 = vmatprep.subr.bf16.mxu1 %v1811_v12  ;;  %v1850_v12 = vunpack.c.l.s8.bf16 %v1370_v18  ;;  %v1847_v54 = vunpack.c.h.s8.bf16 %v1367_v6  ;;  %v1843_v60 = vunpack.c.l.s8.bf16 %v1367_v6 }
 0x2bf   : > { %3119 = vmatpush1.bf16.msra.mxu0 %v1890_v25  ;;  %v1406_v25 = vld [vmem:[%s5148_s30 + $0x3f0] sm:$0xff] }
 0x2c0   : > { %3086 = vmatpush1.bf16.msra.mxu1 %v1810_v24  ;;  %3120 = vmatprep.subr.bf16.mxu0 %v1887_v27  ;;  %v1366_v24 = vld [vmem:[%s5148_s30 + $0x2b0] sm:$0xff]  ;;  %v1926_v27 = vunpack.c.h.s8.bf16 %v1406_v25 }
 0x2c1   : > { %3087 = vmatprep.subr.bf16.mxu1 %v1807_v26  ;;  %v1846_v26 = vunpack.c.h.s8.bf16 %v1366_v24 }
 0x2c3   : > { %3121 = vmatpush1.bf16.msra.mxu0 %v1886_v2  ;;  %v1403_v2 = vld [vmem:[%s5148_s30 + $0x3d8] sm:$0xff] }
 0x2c4   : > { %3088 = vmatpush1.bf16.msra.mxu1 %v1806_v1  ;;  %3122 = vmatprep.subr.bf16.mxu0 %v1883_v19  ;;  %v1363_v1 = vld [vmem:[%s5148_s30 + $0x298] sm:$0xff]  ;;  %v1922_v19 = vunpack.c.l.s8.bf16 %v1406_v25  ;;  %v1919_v34 = vunpack.c.h.s8.bf16 %v1403_v2  ;;  %v1915_v43 = vunpack.c.l.s8.bf16 %v1403_v2  ;;  %v1394_v25 = vld [vmem:[%s5148_s30 + $0x390] sm:$0xff] }
 0x2c5   : > { %3089 = vmatprep.subr.bf16.mxu1 %v1803_v11  ;;  %v1842_v11 = vunpack.c.l.s8.bf16 %v1366_v24  ;;  %v1839_v33 = vunpack.c.h.s8.bf16 %v1363_v1  ;;  %v1835_v40 = vunpack.c.l.s8.bf16 %v1363_v1  ;;  %v1902_v1 = vunpack.c.h.s8.bf16 %v1394_v25 }
 0x2c7   : > { %3123 = vmatpush1.bf16.msra.mxu0 %v1882_v57  ;;  %v1402_v57 = vld [vmem:[%s5148_s30 + $0x3d0] sm:$0xff] }
 0x2c8   : > { %3090 = vmatpush1.bf16.msra.mxu1 %v1802_v35  ;;  %3124 = vmatprep.subr.bf16.mxu0 %v1879_v38  ;;  %v1362_v35 = vld [vmem:[%s5148_s30 + $0x290] sm:$0xff]  ;;  %v1918_v38 = vunpack.c.h.s8.bf16 %v1402_v57 }
 0x2c9   : > { %3091 = vmatprep.subr.bf16.mxu1 %v1863_v59  ;;  %v1838_v59 = vunpack.c.h.s8.bf16 %v1362_v35 }
 0x2cb   : > { %3125 = vmatpush1.bf16.msra.mxu0 %v1878_v41  ;;  %v1423_v41 = vld [vmem:[%s5148_s30 + $0x478] sm:$0xff] }
 0x2cc   : > { %3092 = vmatpush2.bf16.msra.mxu1 %v1862_v10  ;;  %3126 = vmatprep.subr.bf16.mxu0 %v1875_v48  ;;  %v1399_v10 = vld [vmem:[%s5148_s30 + $0x3b8] sm:$0xff]  ;;  %v1914_v48 = vunpack.c.l.s8.bf16 %v1402_v57  ;;  %v1959_v51 = vunpack.c.h.s8.bf16 %v1423_v41  ;;  %v1955_v55 = vunpack.c.l.s8.bf16 %v1423_v41 }
 0x2cd   : > { %3093 = vmatprep.subr.bf16.mxu1 %v1859_v8  ;;  %v1834_v8 = vunpack.c.l.s8.bf16 %v1362_v35  ;;  %v1911_v50 = vunpack.c.h.s8.bf16 %v1399_v10  ;;  %v1907_v18 = vunpack.c.l.s8.bf16 %v1399_v10  ;;  %v1455_v35 = vld [vmem:[%s5148_s30 + $0x578] sm:$0xff] }
 0x2cf   : > { %3127 = vmatpush1.bf16.msra.mxu0 %v1874_v46  ;;  %v1422_v46 = vld [vmem:[%s5148_s30 + $0x470] sm:$0xff] }
 0x2d0   : > { %3094 = vmatpush2.bf16.msra.mxu1 %v1858_v52  ;;  %3128 = vmatprep.subr.bf16.mxu0 %v1871_v49  ;;  %v1398_v52 = vld [vmem:[%s5148_s30 + $0x3b0] sm:$0xff]  ;;  %v1958_v49 = vunpack.c.h.s8.bf16 %v1422_v46 }
 0x2d1   : > { %3095 = vmatprep.subr.bf16.mxu1 %v1855_v45  ;;  %v1910_v45 = vunpack.c.h.s8.bf16 %v1398_v52  ;;  %v1906_v9 = vunpack.c.l.s8.bf16 %v1398_v52 }
 0x2d3   : > { %3129 = vmatpush1.bf16.msra.mxu0 %v1870_v7  ;;  %v1419_v7 = vld [vmem:[%s5148_s30 + $0x458] sm:$0xff] }
 0x2d4   : > { %3096 = vmatpush2.bf16.msra.mxu1 %v1854_v56  ;;  %3130 = vmatprep.subr.bf16.mxu0 %v1867_v3  ;;  %v1395_v56 = vld [vmem:[%s5148_s30 + $0x398] sm:$0xff]  ;;  %v1951_v24 = vunpack.c.h.s8.bf16 %v1419_v7 }
 0x2d5   : > { %3097 = vmatprep.subr.bf16.mxu1 %v1851_v0 }
 0x2d7   : > { %3131 = vmatpush1.bf16.msra.mxu0 %v1866_v13 }
 0x2d8   : > { %3098 = vmatpush2.bf16.msra.mxu1 %v1850_v12  ;;  %3132 = vmatprep.subr.bf16.mxu0 %v1927_v23  ;;  %v1954_v12 = vunpack.c.l.s8.bf16 %v1422_v46  ;;  %v1903_v23 = vunpack.c.h.s8.bf16 %v1395_v56 }
 0x2d9   : > { %3099 = vmatprep.subr.bf16.mxu1 %v1847_v54 }
 0x2db   : > { %3133 = vmatpush2.bf16.msra.mxu0 %v1926_v27 }
 0x2dc   : > { %3100 = vmatpush2.bf16.msra.mxu1 %v1846_v26  ;;  %3134 = vmatprep.subr.bf16.mxu0 %v1923_v32  ;;  %v1418_v26 = vld [vmem:[%s5148_s30 + $0x450] sm:$0xff] }
 0x2dd   : > { %3101 = vmatprep.subr.bf16.mxu1 %v1843_v60  ;;  %v1950_v2 = vunpack.c.h.s8.bf16 %v1418_v26  ;;  %v1946_v57 = vunpack.c.l.s8.bf16 %v1418_v26 }
 0x2df   : > { %3135 = vmatpush2.bf16.msra.mxu0 %v1922_v19 }
 0x2e0   : > { %3102 = vmatpush2.bf16.msra.mxu1 %v1842_v11  ;;  %3136 = vmatprep.subr.bf16.mxu0 %v1919_v34  ;;  %v1947_v34 = vunpack.c.l.s8.bf16 %v1419_v7 }
 0x2e1   : > { %3103 = vmatprep.subr.bf16.mxu1 %v1839_v33  ;;  %v1899_v33 = vunpack.c.l.s8.bf16 %v1395_v56 }
 0x2e3   : > { %3137 = vmatpush2.bf16.msra.mxu0 %v1918_v38  ;;  %v2023_v38 = vunpack.c.h.s8.bf16 %v1455_v35 }
 0x2e4   : > { %3104 = vmatpush2.bf16.msra.mxu1 %v1838_v59  ;;  %3138 = vmatprep.subr.bf16.mxu0 %v1915_v43  ;;  %v1454_v43 = vld [vmem:[%s5148_s30 + $0x570] sm:$0xff] }
 0x2e5   : > { %3105 = vmatprep.subr.bf16.mxu1 %v1835_v40  ;;  %v1414_v40 = vld [vmem:[%s5148_s30 + $0x430] sm:$0xff]  ;;  %v2022_v41 = vunpack.c.h.s8.bf16 %v1454_v43  ;;  %v2018_v46 = vunpack.c.l.s8.bf16 %v1454_v43 }
 0x2e6   : > { %v1942_v10 = vunpack.c.h.s8.bf16 %v1414_v40  ;;  %v1938_v52 = vunpack.c.l.s8.bf16 %v1414_v40 }
 0x2e7   : > { %3139 = vmatpush2.bf16.msra.mxu0 %v1914_v48  ;;  %v2019_v48 = vunpack.c.l.s8.bf16 %v1455_v35 }
 0x2e8   : > { %3106 = vmatpush2.bf16.msra.mxu1 %v1834_v8  ;;  %3140 = vmatprep.subr.bf16.mxu0 %v1911_v50  ;;  %v1411_v50 = vld [vmem:[%s5148_s30 + $0x418] sm:$0xff] }
 0x2e9   : > { %3157 = vmatprep.subr.bf16.mxu1 %v1959_v51  ;;  %v1451_v51 = vld [vmem:[%s5148_s30 + $0x558] sm:$0xff] }
 0x2ea   : > { %v2822_v0 = vpop.f32.mrf.mxu0 }
 0x2eb   : > { %v2863_v3 = vpop.f32.mrf.mxu1  ;;  %3108 = vmatmul.mubr.bf16.vlgmr.msra.gmra.mxu1 %v5288_v4  ;;  %v2823_v6 = vadd.f32 %v2822_v0, %v5591_v42  ;;  %3141 = vmatpush2.bf16.msra.mxu0 %v1910_v45  ;;  %v1935_v45 = vunpack.c.h.s8.bf16 %v1411_v50  ;;  %v2011_v0 = vunpack.c.l.s8.bf16 %v1451_v51 }
 0x2ec   : > { %3158 = vmatpush1.bf16.msra.mxu1 %v1958_v49  ;;  %v2824_v13 = vpop.f32.mrf.mxu0  ;;  %3142 = vmatprep.subr.bf16.mxu0 %v1907_v18  ;;  %v2015_v49 = vunpack.c.h.s8.bf16 %v1451_v51  ;;  %v1410_v18 = vld [vmem:[%s5148_s30 + $0x410] sm:$0xff] }
 0x2ed   : > { %v2865_v54 = vpop.f32.mrf.mxu1  ;;  %3159 = vmatprep.subr.bf16.mxu1 %v1955_v55  ;;  %v5633_v27 = vadd.f32 %v2863_v3, %v2823_v6  ;;  %v2825_v60 = vadd.f32 %v2824_v13, %v5595_v61  ;;  %3189 = vmatprep.mubr.bf16.mxu1 %v5296_v16  ;;  %v1415_v61 = vld [vmem:[%s5148_s30 + $0x438] sm:$0xff]  ;;  %v1898_v16 = vunpack.c.l.s8.bf16 %v1394_v25  ;;  %v1450_v55 = vld [vmem:[%s5148_s30 + $0x550] sm:$0xff]  ;;  %v1934_v56 = vunpack.c.h.s8.bf16 %v1410_v18 }
 0x2ee   : > { %v2826_v4 = vpop.f32.mrf.mxu0  ;;  %v1943_v59 = vunpack.c.h.s8.bf16 %v1415_v61  ;;  %v1939_v8 = vunpack.c.l.s8.bf16 %v1415_v61  ;;  %v2014_v7 = vunpack.c.h.s8.bf16 %v1450_v55  ;;  %v1439_v3 = vld [vmem:[%s5148_s30 + $0x4f8] sm:$0xff] }
 0x2ef   : > { %v2867_v42 = vpop.f32.mrf.mxu1  ;;  %v5637_v32 = vadd.f32 %v2865_v54, %v2825_v60  ;;  %3143 = vmatpush2.bf16.msra.mxu0 %v1906_v9  ;;  %v1447_v6 = vld [vmem:[%s5148_s30 + $0x538] sm:$0xff]  ;;  %v1930_v9 = vunpack.c.l.s8.bf16 %v1410_v18  ;;  %v1438_v54 = vld [vmem:[%s5148_s30 + $0x4f0] sm:$0xff]  ;;  %v1987_v26 = vunpack.c.l.s8.bf16 %v1439_v3 }
 0x2f0   : > { %3160 = vmatpush1.bf16.msra.mxu1 %v1954_v12  ;;  %v2827_v11 = vpop.f32.mrf.mxu0  ;;  %3144 = vmatprep.subr.bf16.mxu0 %v1903_v23  ;;  %v2010_v12 = vunpack.c.l.s8.bf16 %v1450_v55  ;;  %v2007_v13 = vunpack.c.h.s8.bf16 %v1447_v6  ;;  %v1446_v23 = vld [vmem:[%s5148_s30 + $0x530] sm:$0xff]  ;;  %v2003_v60 = vunpack.c.l.s8.bf16 %v1447_v6  ;;  %v1435_v4 = vld [vmem:[%s5148_s30 + $0x4d8] sm:$0xff] }
 0x2f1   : > { %v2868_v19 = vpop.f32.mrf.mxu1  ;;  %3161 = vmatprep.subr.bf16.mxu1 %v1951_v24  ;;  %v1990_v24 = vunpack.c.h.s8.bf16 %v1438_v54  ;;  %v2006_v25 = vunpack.c.h.s8.bf16 %v1446_v23  ;;  %v1443_v42 = vld [vmem:[%s5148_s30 + $0x518] sm:$0xff]  ;;  %v1983_v11 = vunpack.c.h.s8.bf16 %v1435_v4 }
 0x2f2   : > { %v1999_v19 = vunpack.c.h.s8.bf16 %v1443_v42 }
 0x2f3   : > { %3145 = vmatpush2.bf16.msra.mxu0 %v1902_v1  ;;  %v1986_v1 = vunpack.c.l.s8.bf16 %v1438_v54 }
 0x2f4   : > { %3162 = vmatpush1.bf16.msra.mxu1 %v1950_v2  ;;  %3146 = vmatprep.subr.bf16.mxu0 %v1899_v33  ;;  %v2002_v2 = vunpack.c.l.s8.bf16 %v1446_v23  ;;  %v1434_v33 = vld [vmem:[%s5148_s30 + $0x4d0] sm:$0xff] }
 0x2f5   : > { %3163 = vmatprep.subr.bf16.mxu1 %v1947_v34  ;;  %v1442_v34 = vld [vmem:[%s5148_s30 + $0x510] sm:$0xff]  ;;  %v1982_v61 = vunpack.c.h.s8.bf16 %v1434_v33  ;;  %v1978_v40 = vunpack.c.l.s8.bf16 %v1434_v33 }
 0x2f6   : > { %v1998_v35 = vunpack.c.h.s8.bf16 %v1442_v34  ;;  %v1994_v43 = vunpack.c.l.s8.bf16 %v1442_v34 }
 0x2f7   : > { %3147 = vmatpush2.bf16.msra.mxu0 %v1898_v16  ;;  %v1979_v16 = vunpack.c.l.s8.bf16 %v1435_v4 }
 0x2f8   : > { %3164 = vmatpush1.bf16.msra.mxu1 %v1946_v57  ;;  %3198 = vmatprep.subr.bf16.mxu0 %v2023_v38  ;;  %v1995_v57 = vunpack.c.l.s8.bf16 %v1443_v42  ;;  %v1471_v38 = vld [vmem:[%s5148_s30 + $0x5f8] sm:$0xff] }
 0x2f9   : > { %3165 = vmatprep.subr.bf16.mxu1 %v1943_v59  ;;  %v1431_v59 = vld [vmem:[%s5148_s30 + $0x4b8] sm:$0xff] }
 0x2fa   : > { %3149 = vmatmul.mubr.bf16.vlgmr.msra.gmra.mxu0 %v5292_v5  ;;  %v1931_v5 = vunpack.c.l.s8.bf16 %v1411_v50 }
 0x2fb   : > { %3199 = vmatpush1.bf16.msra.mxu0 %v2022_v41  ;;  %3230 = vmatprep.mubr.bf16.mxu0 %v5298_v62  ;;  %v1991_v62 = vunpack.c.h.s8.bf16 %v1439_v3  ;;  %v2055_v41 = vunpack.c.h.s8.bf16 %v1471_v38 }
 0x2fc   : > { %3166 = vmatpush1.bf16.msra.mxu1 %v1942_v10  ;;  %3200 = vmatprep.subr.bf16.mxu0 %v2019_v48  ;;  %v1975_v10 = vunpack.c.h.s8.bf16 %v1431_v59  ;;  %v1470_v48 = vld [vmem:[%s5148_s30 + $0x5f0] sm:$0xff] }
 0x2fd   : > { %3167 = vmatprep.subr.bf16.mxu1 %v1939_v8  ;;  %v1430_v8 = vld [vmem:[%s5148_s30 + $0x4b0] sm:$0xff]  ;;  %v2054_v51 = vunpack.c.h.s8.bf16 %v1470_v48  ;;  %v2050_v55 = vunpack.c.l.s8.bf16 %v1470_v48 }
 0x2fe   : > { %v1974_v50 = vunpack.c.h.s8.bf16 %v1430_v8  ;;  %v1970_v18 = vunpack.c.l.s8.bf16 %v1430_v8 }
 0x2ff   : > { %3201 = vmatpush1.bf16.msra.mxu0 %v2018_v46  ;;  %v2051_v46 = vunpack.c.l.s8.bf16 %v1471_v38 }
 0x300   : > { %3168 = vmatpush1.bf16.msra.mxu1 %v1938_v52  ;;  %3202 = vmatprep.subr.bf16.mxu0 %v2015_v49  ;;  %v1971_v52 = vunpack.c.l.s8.bf16 %v1431_v59  ;;  %v1467_v49 = vld [vmem:[%s5148_s30 + $0x5d8] sm:$0xff] }
 0x301   : > { %3169 = vmatprep.subr.bf16.mxu1 %v1935_v45  ;;  %v1427_v45 = vld [vmem:[%s5148_s30 + $0x498] sm:$0xff] }
 0x303   : > { %3203 = vmatpush1.bf16.msra.mxu0 %v2014_v7  ;;  %v2047_v7 = vunpack.c.h.s8.bf16 %v1467_v49 }
 0x304   : > { %3170 = vmatpush1.bf16.msra.mxu1 %v1934_v56  ;;  %3204 = vmatprep.subr.bf16.mxu0 %v2011_v0  ;;  %v1967_v56 = vunpack.c.h.s8.bf16 %v1427_v45  ;;  %v1466_v0 = vld [vmem:[%s5148_s30 + $0x5d0] sm:$0xff] }
 0x305   : > { %3171 = vmatprep.subr.bf16.mxu1 %v1931_v5  ;;  %v1426_v5 = vld [vmem:[%s5148_s30 + $0x490] sm:$0xff]  ;;  %v2046_v6 = vunpack.c.h.s8.bf16 %v1466_v0  ;;  %v2042_v23 = vunpack.c.l.s8.bf16 %v1466_v0 }
 0x306   : > { %v1966_v3 = vunpack.c.h.s8.bf16 %v1426_v5  ;;  %v1962_v54 = vunpack.c.l.s8.bf16 %v1426_v5  ;;  %v1478_v5 = vld [vmem:[%s5148_s30 + $0x630] sm:$0xff] }
 0x307   : > { %3205 = vmatpush1.bf16.msra.mxu0 %v2010_v12  ;;  %v2043_v12 = vunpack.c.l.s8.bf16 %v1467_v49  ;;  %v1518_v0 = vld [vmem:[%s5148_s30 + $0x770] sm:$0xff] }
 0x308   : > { %3172 = vmatpush1.bf16.msra.mxu1 %v1930_v9  ;;  %3206 = vmatprep.subr.bf16.mxu0 %v2007_v13  ;;  %v1963_v9 = vunpack.c.l.s8.bf16 %v1427_v45  ;;  %v1487_v13 = vld [vmem:[%s5148_s30 + $0x678] sm:$0xff] }
 0x309   : > { %3173 = vmatprep.subr.bf16.mxu1 %v1991_v62  ;;  %v1463_v62 = vld [vmem:[%s5148_s30 + $0x5b8] sm:$0xff] }
 0x30b   : > { %3207 = vmatpush1.bf16.msra.mxu0 %v2006_v25  ;;  %v2087_v25 = vunpack.c.h.s8.bf16 %v1487_v13 }
 0x30c   : > { %3174 = vmatpush2.bf16.msra.mxu1 %v1990_v24  ;;  %3208 = vmatprep.subr.bf16.mxu0 %v2003_v60  ;;  %v2039_v24 = vunpack.c.h.s8.bf16 %v1463_v62  ;;  %v1486_v60 = vld [vmem:[%s5148_s30 + $0x670] sm:$0xff] }
 0x30d   : > { %3175 = vmatprep.subr.bf16.mxu1 %v1987_v26  ;;  %v1462_v26 = vld [vmem:[%s5148_s30 + $0x5b0] sm:$0xff]  ;;  %v2086_v42 = vunpack.c.h.s8.bf16 %v1486_v60 }
 0x30e   : > { %v2038_v4 = vunpack.c.h.s8.bf16 %v1462_v26 }
 0x30f   : > { %3209 = vmatpush1.bf16.msra.mxu0 %v2002_v2  ;;  %v2083_v2 = vunpack.c.l.s8.bf16 %v1487_v13  ;;  %v1515_v13 = vld [vmem:[%s5148_s30 + $0x758] sm:$0xff] }
 0x310   : > { %3176 = vmatpush2.bf16.msra.mxu1 %v1986_v1  ;;  %3210 = vmatprep.subr.bf16.mxu0 %v1999_v19  ;;  %v2035_v1 = vunpack.c.l.s8.bf16 %v1463_v62  ;;  %v1483_v19 = vld [vmem:[%s5148_s30 + $0x658] sm:$0xff] }
 0x311   : > { %3177 = vmatprep.subr.bf16.mxu1 %v1983_v11  ;;  %v1459_v11 = vld [vmem:[%s5148_s30 + $0x598] sm:$0xff]  ;;  %v2075_v49 = vunpack.c.l.s8.bf16 %v1483_v19 }
 0x312   : > { %v2031_v38 = vunpack.c.h.s8.bf16 %v1459_v11  ;;  %v2027_v45 = vunpack.c.l.s8.bf16 %v1459_v11  ;;  %v1475_v62 = vld [vmem:[%s5148_s30 + $0x618] sm:$0xff] }
 0x313   : > { %3211 = vmatpush1.bf16.msra.mxu0 %v1998_v35  ;;  %v2034_v35 = vunpack.c.l.s8.bf16 %v1462_v26 }
 0x314   : > { %3178 = vmatpush2.bf16.msra.mxu1 %v1982_v61  ;;  %3212 = vmatprep.subr.bf16.mxu0 %v1995_v57 }
 0x315   : > { %3179 = vmatprep.subr.bf16.mxu1 %v1979_v16  ;;  %v2082_v16 = vunpack.c.l.s8.bf16 %v1486_v60  ;;  %v2063_v60 = vunpack.c.h.s8.bf16 %v1475_v62 }
 0x317   : > { %3213 = vmatpush1.bf16.msra.mxu0 %v1994_v43  ;;  %v1458_v43 = vld [vmem:[%s5148_s30 + $0x590] sm:$0xff] }
 0x318   : > { %3180 = vmatpush2.bf16.msra.mxu1 %v1978_v40  ;;  %3214 = vmatprep.subr.bf16.mxu0 %v2055_v41  ;;  %v2079_v40 = vunpack.c.h.s8.bf16 %v1483_v19 }
 0x319   : > { %3181 = vmatprep.subr.bf16.mxu1 %v1975_v10  ;;  %v1482_v10 = vld [vmem:[%s5148_s30 + $0x650] sm:$0xff] }
 0x31b   : > { %3215 = vmatpush2.bf16.msra.mxu0 %v2054_v51  ;;  %v2078_v51 = vunpack.c.h.s8.bf16 %v1482_v10 }
 0x31c   : > { %3182 = vmatpush2.bf16.msra.mxu1 %v1974_v50  ;;  %3216 = vmatprep.subr.bf16.mxu0 %v2051_v46  ;;  %v2030_v50 = vunpack.c.h.s8.bf16 %v1458_v43 }
 0x31d   : > { %3183 = vmatprep.subr.bf16.mxu1 %v1971_v52 }
 0x31f   : > { %3217 = vmatpush2.bf16.msra.mxu0 %v2050_v55  ;;  %v2074_v55 = vunpack.c.l.s8.bf16 %v1482_v10 }
 0x320   : > { %3184 = vmatpush2.bf16.msra.mxu1 %v1970_v18  ;;  %3218 = vmatprep.subr.bf16.mxu0 %v2047_v7  ;;  %v1479_v18 = vld [vmem:[%s5148_s30 + $0x638] sm:$0xff] }
 0x321   : > { %3185 = vmatprep.subr.bf16.mxu1 %v1967_v56  ;;  %v2071_v56 = vunpack.c.h.s8.bf16 %v1479_v18 }
 0x323   : > { %3219 = vmatpush2.bf16.msra.mxu0 %v2046_v6  ;;  %v2150_v6 = vunpack.c.h.s8.bf16 %v1518_v0 }
 0x324   : > { %3186 = vmatpush2.bf16.msra.mxu1 %v1966_v3  ;;  %3220 = vmatprep.subr.bf16.mxu0 %v2043_v12  ;;  %v2070_v3 = vunpack.c.h.s8.bf16 %v1478_v5 }
 0x325   : > { %3187 = vmatprep.subr.bf16.mxu1 %v1963_v9  ;;  %v2067_v9 = vunpack.c.l.s8.bf16 %v1479_v18 }
 0x327   : > { %3221 = vmatpush2.bf16.msra.mxu0 %v2042_v23 }
 0x328   : > { %3188 = vmatpush2.bf16.msra.mxu1 %v1962_v54  ;;  %3222 = vmatprep.subr.bf16.mxu0 %v2039_v24  ;;  %v2066_v24 = vunpack.c.l.s8.bf16 %v1478_v5 }
 0x329   : > { %3239 = vmatprep.subr.bf16.mxu1 %v2087_v25  ;;  %v2146_v25 = vunpack.c.l.s8.bf16 %v1518_v0 }
 0x32a   : > { %v2904_v33 = vpop.f32.mrf.mxu0 }
 0x32b   : > { %v2945_v34 = vpop.f32.mrf.mxu1  ;;  %3190 = vmatmul.mubr.bf16.vlgmr.msra.gmra.mxu1 %v5349_v14  ;;  %v2905_v61 = vadd.f32 %v2904_v33, %v5633_v27  ;;  %3223 = vmatpush2.bf16.msra.mxu0 %v2038_v4  ;;  %v2143_v4 = vunpack.c.h.s8.bf16 %v1515_v13 }
 0x32c   : > { %3240 = vmatpush1.bf16.msra.mxu1 %v2086_v42  ;;  %v2906_v57 = vpop.f32.mrf.mxu0  ;;  %3224 = vmatprep.subr.bf16.mxu0 %v2035_v1  ;;  %v1474_v42 = vld [vmem:[%s5148_s30 + $0x610] sm:$0xff] }
 0x32d   : > { %v2947_v59 = vpop.f32.mrf.mxu1  ;;  %3241 = vmatprep.subr.bf16.mxu1 %v2083_v2  ;;  %v2946_v41 = vadd.f32 %v2945_v34, %v2905_v61  ;;  %v2907_v8 = vadd.f32 %v2906_v57, %v5637_v32  ;;  %3271 = vmatprep.mubr.bf16.mxu1 %v5357_v22  ;;  %v1519_v32 = vld [vmem:[%s5148_s30 + $0x778] sm:$0xff]  ;;  %v2026_v22 = vunpack.c.l.s8.bf16 %v1458_v43  ;;  %v1514_v1 = vld [vmem:[%s5148_s30 + $0x750] sm:$0xff]  ;;  %v2062_v11 = vunpack.c.h.s8.bf16 %v1474_v42 }
 0x32e   : > { %v2908_v14 = vpop.f32.mrf.mxu0  ;;  %v2151_v7 = vunpack.c.h.s8.bf16 %v1519_v32  ;;  %v2147_v12 = vunpack.c.l.s8.bf16 %v1519_v32  ;;  %v2142_v19 = vunpack.c.h.s8.bf16 %v1514_v1  ;;  %v2059_v34 = vunpack.c.l.s8.bf16 %v1475_v62  ;;  %v1510_v43 = vld [vmem:[%s5148_s30 + $0x730] sm:$0xff] }
 0x32f   : > { %v2949_v27 = vpop.f32.mrf.mxu1  ;;  %v2948_v48 = vadd.f32 %v2947_v59, %v2907_v8  ;;  %3225 = vmatpush2.bf16.msra.mxu0 %v2034_v35  ;;  %v2139_v61 = vunpack.c.l.s8.bf16 %v1515_v13  ;;  %v1503_v35 = vld [vmem:[%s5148_s30 + $0x6f8] sm:$0xff]  ;;  %v2058_v57 = vunpack.c.l.s8.bf16 %v1474_v42  ;;  %v2138_v59 = vunpack.c.l.s8.bf16 %v1514_v1 }
 0x330   : > { %3242 = vmatpush1.bf16.msra.mxu1 %v2082_v16  ;;  %v2909_v52 = vpop.f32.mrf.mxu0  ;;  %3226 = vmatprep.subr.bf16.mxu0 %v2031_v38  ;;  %v1511_v16 = vld [vmem:[%s5148_s30 + $0x738] sm:$0xff]  ;;  %v2115_v8 = vunpack.c.l.s8.bf16 %v1503_v35 }
 0x331   : > { %v2950_v46 = vpop.f32.mrf.mxu1  ;;  %3243 = vmatprep.subr.bf16.mxu1 %v2079_v40  ;;  %v2135_v38 = vunpack.c.h.s8.bf16 %v1511_v16  ;;  %v1502_v40 = vld [vmem:[%s5148_s30 + $0x6f0] sm:$0xff]  ;;  %v2131_v14 = vunpack.c.l.s8.bf16 %v1511_v16  ;;  %v1499_v27 = vld [vmem:[%s5148_s30 + $0x6d8] sm:$0xff] }
 0x332   : > { %v2118_v10 = vunpack.c.h.s8.bf16 %v1502_v40  ;;  %v2111_v52 = vunpack.c.h.s8.bf16 %v1499_v27  ;;  %v1551_v16 = vld [vmem:[%s5148_s30 + $0x878] sm:$0xff] }
 0x333   : > { %3227 = vmatpush2.bf16.msra.mxu0 %v2030_v50  ;;  %v2114_v50 = vunpack.c.l.s8.bf16 %v1502_v40  ;;  %v1526_v40 = vld [vmem:[%s5148_s30 + $0x7b0] sm:$0xff] }
 0x334   : > { %3244 = vmatpush1.bf16.msra.mxu1 %v2078_v51  ;;  %3228 = vmatprep.subr.bf16.mxu0 %v2027_v45  ;;  %v2130_v51 = vunpack.c.l.s8.bf16 %v1510_v43  ;;  %v1498_v45 = vld [vmem:[%s5148_s30 + $0x6d0] sm:$0xff] }
 0x335   : > { %3245 = vmatprep.subr.bf16.mxu1 %v2075_v49  ;;  %v1506_v49 = vld [vmem:[%s5148_s30 + $0x710] sm:$0xff]  ;;  %v2110_v18 = vunpack.c.h.s8.bf16 %v1498_v45  ;;  %v2106_v5 = vunpack.c.l.s8.bf16 %v1498_v45 }
 0x336   : > { %v2126_v32 = vunpack.c.h.s8.bf16 %v1506_v49  ;;  %v2122_v0 = vunpack.c.l.s8.bf16 %v1506_v49 }
 0x337   : > { %3229 = vmatpush2.bf16.msra.mxu0 %v2026_v22  ;;  %v2107_v22 = vunpack.c.l.s8.bf16 %v1499_v27  ;;  %v1523_v27 = vld [vmem:[%s5148_s30 + $0x798] sm:$0xff] }
 0x338   : > { %3246 = vmatpush1.bf16.msra.mxu1 %v2074_v55  ;;  %3280 = vmatprep.subr.bf16.mxu0 %v2151_v7  ;;  %v1535_v7 = vld [vmem:[%s5148_s30 + $0x7f8] sm:$0xff]  ;;  %v2159_v45 = vunpack.c.h.s8.bf16 %v1523_v27 }
 0x339   : > { %3247 = vmatprep.subr.bf16.mxu1 %v2071_v56  ;;  %v1495_v56 = vld [vmem:[%s5148_s30 + $0x6b8] sm:$0xff] }
 0x33a   : > { %v2986_v54 = vpop.f32.mrf.mxu0  ;;  %3231 = vmatmul.mubr.bf16.vlgmr.msra.gmra.mxu0 %v5353_v15 }
 0x33b   : > { %v5684_v23 = vadd.f32 %v2986_v54, %v2946_v41  ;;  %3281 = vmatpush1.bf16.msra.mxu0 %v2150_v6  ;;  %3312 = vmatprep.mubr.bf16.mxu0 %v5359_v53  ;;  %v2119_v53 = vunpack.c.h.s8.bf16 %v1503_v35  ;;  %v2134_v41 = vunpack.c.h.s8.bf16 %v1510_v43  ;;  %v2183_v6 = vunpack.c.h.s8.bf16 %v1535_v7  ;;  %v1527_v35 = vld [vmem:[%s5148_s30 + $0x7b8] sm:$0xff]  ;;  %v1550_v43 = vld [vmem:[%s5148_s30 + $0x870] sm:$0xff] }
 0x33c   : > { %3248 = vmatpush1.bf16.msra.mxu1 %v2070_v3  ;;  %v2988_v26 = vpop.f32.mrf.mxu0  ;;  %3282 = vmatprep.subr.bf16.mxu0 %v2147_v12  ;;  %v2103_v3 = vunpack.c.h.s8.bf16 %v1495_v56  ;;  %v1534_v12 = vld [vmem:[%s5148_s30 + $0x7f0] sm:$0xff]  ;;  %v2099_v54 = vunpack.c.l.s8.bf16 %v1495_v56 }
 0x33d   : > { %3249 = vmatprep.subr.bf16.mxu1 %v2067_v9  ;;  %v5688_v2 = vadd.f32 %v2988_v26, %v2948_v48  ;;  %v1507_v48 = vld [vmem:[%s5148_s30 + $0x718] sm:$0xff]  ;;  %v1494_v9 = vld [vmem:[%s5148_s30 + $0x6b0] sm:$0xff]  ;;  %v2182_v13 = vunpack.c.h.s8.bf16 %v1534_v12 }
 0x33e   : > { %v2990_v15 = vpop.f32.mrf.mxu0  ;;  %v2127_v46 = vunpack.c.h.s8.bf16 %v1507_v48  ;;  %v2123_v55 = vunpack.c.l.s8.bf16 %v1507_v48  ;;  %v2102_v62 = vunpack.c.h.s8.bf16 %v1494_v9  ;;  %v1531_v26 = vld [vmem:[%s5148_s30 + $0x7d8] sm:$0xff] }
 0x33f   : > { %3283 = vmatpush1.bf16.msra.mxu0 %v2146_v25  ;;  %v1491_v25 = vld [vmem:[%s5148_s30 + $0x698] sm:$0xff]  ;;  %v2175_v1 = vunpack.c.h.s8.bf16 %v1531_v26  ;;  %v1490_v15 = vld [vmem:[%s5148_s30 + $0x690] sm:$0xff] }
 0x340   : > { %3250 = vmatpush1.bf16.msra.mxu1 %v2066_v24  ;;  %v2991_v33 = vpop.f32.mrf.mxu0  ;;  %3284 = vmatprep.subr.bf16.mxu0 %v2143_v4  ;;  %v2179_v24 = vunpack.c.l.s8.bf16 %v1535_v7  ;;  %v2178_v4 = vunpack.c.l.s8.bf16 %v1534_v12  ;;  %v2095_v42 = vunpack.c.h.s8.bf16 %v1491_v25  ;;  %v1547_v48 = vld [vmem:[%s5148_s30 + $0x858] sm:$0xff]  ;;  %v2155_v7 = vunpack.c.l.s8.bf16 %v1523_v27  ;;  %v1566_v27 = vld [vmem:[%s5148_s30 + $0x8f0] sm:$0xff] }
 0x341   : > { %3251 = vmatprep.subr.bf16.mxu1 %v2063_v60  ;;  %v2098_v60 = vunpack.c.l.s8.bf16 %v1494_v9  ;;  %v2207_v49 = vunpack.c.h.s8.bf16 %v1547_v48 }
 0x343   : > { %3285 = vmatpush1.bf16.msra.mxu0 %v2142_v19  ;;  %v2094_v19 = vunpack.c.h.s8.bf16 %v1490_v15 }
 0x344   : > { %3252 = vmatpush1.bf16.msra.mxu1 %v2062_v11  ;;  %3286 = vmatprep.subr.bf16.mxu0 %v2139_v61  ;;  %v1530_v11 = vld [vmem:[%s5148_s30 + $0x7d0] sm:$0xff]  ;;  %v2171_v61 = vunpack.c.l.s8.bf16 %v1531_v26 }
 0x345   : > { %3253 = vmatprep.subr.bf16.mxu1 %v2059_v34  ;;  %v2174_v33 = vunpack.c.h.s8.bf16 %v1530_v11  ;;  %v2091_v34 = vunpack.c.l.s8.bf16 %v1491_v25 }
 0x347   : > { %3287 = vmatpush1.bf16.msra.mxu0 %v2138_v59  ;;  %v2170_v59 = vunpack.c.l.s8.bf16 %v1530_v11 }
 0x348   : > { %3254 = vmatpush1.bf16.msra.mxu1 %v2058_v57  ;;  %3288 = vmatprep.subr.bf16.mxu0 %v2135_v38  ;;  %v2090_v57 = vunpack.c.l.s8.bf16 %v1490_v15  ;;  %v2215_v38 = vunpack.c.h.s8.bf16 %v1551_v16 }
 0x349   : > { %3255 = vmatprep.subr.bf16.mxu1 %v2119_v53  ;;  %v2167_v53 = vunpack.c.h.s8.bf16 %v1527_v35 }
 0x34b   : > { %3289 = vmatpush1.bf16.msra.mxu0 %v2134_v41  ;;  %v2214_v41 = vunpack.c.h.s8.bf16 %v1550_v43 }
 0x34c   : > { %3256 = vmatpush2.bf16.msra.mxu1 %v2118_v10  ;;  %3290 = vmatprep.subr.bf16.mxu0 %v2131_v14  ;;  %v2166_v10 = vunpack.c.h.s8.bf16 %v1526_v40  ;;  %v2211_v14 = vunpack.c.l.s8.bf16 %v1551_v16 }
 0x34d   : > { %3257 = vmatprep.subr.bf16.mxu1 %v2115_v8  ;;  %v2163_v8 = vunpack.c.l.s8.bf16 %v1527_v35  ;;  %v1578_v35 = vld [vmem:[%s5148_s30 + $0x950] sm:$0xff] }
 0x34f   : > { %3291 = vmatpush1.bf16.msra.mxu0 %v2130_v51  ;;  %v2162_v51 = vunpack.c.l.s8.bf16 %v1526_v40 }
 0x350   : > { %3258 = vmatpush2.bf16.msra.mxu1 %v2114_v50  ;;  %3292 = vmatprep.subr.bf16.mxu0 %v2127_v46 }
 0x351   : > { %3259 = vmatprep.subr.bf16.mxu1 %v2111_v52  ;;  %v2210_v52 = vunpack.c.l.s8.bf16 %v1550_v43  ;;  %v1567_v43 = vld [vmem:[%s5148_s30 + $0x8f8] sm:$0xff] }
 0x353   : > { %3293 = vmatpush1.bf16.msra.mxu0 %v2126_v32  ;;  %v1546_v32 = vld [vmem:[%s5148_s30 + $0x850] sm:$0xff] }
 0x354   : > { %3260 = vmatpush2.bf16.msra.mxu1 %v2110_v18  ;;  %3294 = vmatprep.subr.bf16.mxu0 %v2123_v55  ;;  %v1522_v18 = vld [vmem:[%s5148_s30 + $0x790] sm:$0xff]  ;;  %v2202_v9 = vunpack.c.l.s8.bf16 %v1546_v32 }
 0x355   : > { %3261 = vmatprep.subr.bf16.mxu1 %v2107_v22  ;;  %v2158_v55 = vunpack.c.h.s8.bf16 %v1522_v18 }
 0x357   : > { %3295 = vmatpush1.bf16.msra.mxu0 %v2122_v0  ;;  %v1543_v0 = vld [vmem:[%s5148_s30 + $0x838] sm:$0xff] }
 0x358   : > { %3262 = vmatpush2.bf16.msra.mxu1 %v2106_v5  ;;  %3296 = vmatprep.subr.bf16.mxu0 %v2183_v6  ;;  %v2203_v5 = vunpack.c.l.s8.bf16 %v1547_v48  ;;  %v2154_v6 = vunpack.c.l.s8.bf16 %v1522_v18  ;;  %v2195_v25 = vunpack.c.l.s8.bf16 %v1543_v0  ;;  %v1574_v48 = vld [vmem:[%s5148_s30 + $0x930] sm:$0xff]  ;;  %v2242_v18 = vunpack.c.l.s8.bf16 %v1566_v27 }
 0x359   : > { %3263 = vmatprep.subr.bf16.mxu1 %v2103_v3  ;;  %v1583_v3 = vld [vmem:[%s5148_s30 + $0x978] sm:$0xff] }
 0x35a   : > { %v2279_v12 = vunpack.c.h.s8.bf16 %v1583_v3  ;;  %v2275_v26 = vunpack.c.l.s8.bf16 %v1583_v3 }
 0x35b   : > { %3297 = vmatpush2.bf16.msra.mxu0 %v2182_v13  ;;  %v1582_v13 = vld [vmem:[%s5148_s30 + $0x970] sm:$0xff] }
 0x35c   : > { %3264 = vmatpush2.bf16.msra.mxu1 %v2102_v62  ;;  %3298 = vmatprep.subr.bf16.mxu0 %v2179_v24  ;;  %v1542_v62 = vld [vmem:[%s5148_s30 + $0x830] sm:$0xff]  ;;  %v2278_v24 = vunpack.c.h.s8.bf16 %v1582_v13  ;;  %v2274_v11 = vunpack.c.l.s8.bf16 %v1582_v13 }
 0x35d   : > { %3265 = vmatprep.subr.bf16.mxu1 %v2099_v54  ;;  %v2198_v54 = vunpack.c.h.s8.bf16 %v1542_v62  ;;  %v2194_v15 = vunpack.c.l.s8.bf16 %v1542_v62 }
 0x35f   : > { %3299 = vmatpush2.bf16.msra.mxu0 %v2178_v4  ;;  %v1579_v4 = vld [vmem:[%s5148_s30 + $0x958] sm:$0xff] }
 0x360   : > { %3266 = vmatpush2.bf16.msra.mxu1 %v2098_v60  ;;  %3300 = vmatprep.subr.bf16.mxu0 %v2175_v1  ;;  %v1539_v60 = vld [vmem:[%s5148_s30 + $0x818] sm:$0xff]  ;;  %v2267_v40 = vunpack.c.l.s8.bf16 %v1579_v4 }
 0x361   : > { %3267 = vmatprep.subr.bf16.mxu1 %v2095_v42 }
 0x363   : > { %3301 = vmatpush2.bf16.msra.mxu0 %v2174_v33  ;;  %v2191_v33 = vunpack.c.h.s8.bf16 %v1539_v60 }
 0x364   : > { %3268 = vmatpush2.bf16.msra.mxu1 %v2094_v19  ;;  %3302 = vmatprep.subr.bf16.mxu0 %v2171_v61  ;;  %v1538_v61 = vld [vmem:[%s5148_s30 + $0x810] sm:$0xff] }
 0x365   : > { %3269 = vmatprep.subr.bf16.mxu1 %v2091_v34  ;;  %v2271_v34 = vunpack.c.h.s8.bf16 %v1579_v4 }
 0x367   : > { %3303 = vmatpush2.bf16.msra.mxu0 %v2170_v59  ;;  %v2270_v59 = vunpack.c.h.s8.bf16 %v1578_v35 }
 0x368   : > { %3270 = vmatpush2.bf16.msra.mxu1 %v2090_v57  ;;  %3304 = vmatprep.subr.bf16.mxu0 %v2167_v53  ;;  %v2190_v57 = vunpack.c.h.s8.bf16 %v1538_v61 }
 0x369   : > { %3321 = vmatprep.subr.bf16.mxu1 %v2215_v38  ;;  %v2187_v38 = vunpack.c.l.s8.bf16 %v1539_v60 }
 0x36b   : > { %v3027_v50 = vpop.f32.mrf.mxu1  ;;  %3272 = vmatmul.mubr.bf16.vlgmr.msra.gmra.mxu1 %v5410_v28  ;;  %3305 = vmatpush2.bf16.msra.mxu0 %v2166_v10  ;;  %v2206_v28 = vunpack.c.h.s8.bf16 %v1546_v32  ;;  %v1575_v10 = vld [vmem:[%s5148_s30 + $0x938] sm:$0xff]  ;;  %v2258_v32 = vunpack.c.l.s8.bf16 %v1574_v48 }
 0x36c   : > { %3322 = vmatpush1.bf16.msra.mxu1 %v2214_v41  ;;  %3306 = vmatprep.subr.bf16.mxu0 %v2163_v8  ;;  %v2186_v41 = vunpack.c.l.s8.bf16 %v1538_v61  ;;  %v2266_v8 = vunpack.c.l.s8.bf16 %v1578_v35  ;;  %v1554_v61 = vld [vmem:[%s5148_s30 + $0x890] sm:$0xff] }
 0x36d   : > { %v3029_v46 = vpop.f32.mrf.mxu1  ;;  %3323 = vmatprep.subr.bf16.mxu1 %v2211_v14  ;;  %3353 = vmatprep.mubr.bf16.mxu1 %v5418_v36  ;;  %v2199_v36 = vunpack.c.h.s8.bf16 %v1543_v0  ;;  %v2263_v14 = vunpack.c.h.s8.bf16 %v1575_v10  ;;  %v1594_v35 = vld [vmem:[%s5148_s30 + $0x9d0] sm:$0xff] }
 0x36f   : > { %v3031_v22 = vpop.f32.mrf.mxu1  ;;  %3307 = vmatpush2.bf16.msra.mxu0 %v2162_v51  ;;  %v2262_v51 = vunpack.c.h.s8.bf16 %v1574_v48 }
 0x370   : > { %3324 = vmatpush1.bf16.msra.mxu1 %v2210_v52  ;;  %3308 = vmatprep.subr.bf16.mxu0 %v2159_v45  ;;  %v2243_v52 = vunpack.c.l.s8.bf16 %v1567_v43  ;;  %v1563_v45 = vld [vmem:[%s5148_s30 + $0x8d8] sm:$0xff] }
 0x371   : > { %v3032_v56 = vpop.f32.mrf.mxu1  ;;  %3325 = vmatprep.subr.bf16.mxu1 %v2207_v49  ;;  %v1571_v49 = vld [vmem:[%s5148_s30 + $0x918] sm:$0xff]  ;;  %v2239_v22 = vunpack.c.h.s8.bf16 %v1563_v45  ;;  %v2235_v0 = vunpack.c.l.s8.bf16 %v1563_v45 }
 0x372   : > { %v1570_v56 = vld [vmem:[%s5148_s30 + $0x910] sm:$0xff]  ;;  %v2251_v3 = vunpack.c.l.s8.bf16 %v1571_v49 }
 0x373   : > { %3309 = vmatpush2.bf16.msra.mxu0 %v2158_v55  ;;  %v2255_v55 = vunpack.c.h.s8.bf16 %v1571_v49 }
 0x374   : > { %3326 = vmatpush1.bf16.msra.mxu1 %v2206_v28  ;;  %3310 = vmatprep.subr.bf16.mxu0 %v2155_v7  ;;  %v1562_v28 = vld [vmem:[%s5148_s30 + $0x8d0] sm:$0xff] }
 0x375   : > { %3327 = vmatprep.subr.bf16.mxu1 %v2203_v5  ;;  %v2238_v7 = vunpack.c.h.s8.bf16 %v1562_v28  ;;  %v2254_v5 = vunpack.c.h.s8.bf16 %v1570_v56 }
 0x377   : > { %3311 = vmatpush2.bf16.msra.mxu0 %v2154_v6  ;;  %v1559_v6 = vld [vmem:[%s5148_s30 + $0x8b8] sm:$0xff] }
 0x378   : > { %3328 = vmatpush1.bf16.msra.mxu1 %v2202_v9  ;;  %3362 = vmatprep.subr.bf16.mxu0 %v2279_v12  ;;  %v1599_v9 = vld [vmem:[%s5148_s30 + $0x9f8] sm:$0xff]  ;;  %v2250_v12 = vunpack.c.l.s8.bf16 %v1570_v56  ;;  %v2231_v62 = vunpack.c.h.s8.bf16 %v1559_v6  ;;  %v2227_v60 = vunpack.c.l.s8.bf16 %v1559_v6  ;;  %v1586_v56 = vld [vmem:[%s5148_s30 + $0x990] sm:$0xff] }
 0x379   : > { %3329 = vmatprep.subr.bf16.mxu1 %v2199_v36  ;;  %v2234_v36 = vunpack.c.l.s8.bf16 %v1562_v28  ;;  %v2311_v13 = vunpack.c.h.s8.bf16 %v1599_v9  ;;  %v2307_v4 = vunpack.c.l.s8.bf16 %v1599_v9 }
 0x37a   : > { %v3068_v42 = vpop.f32.mrf.mxu0  ;;  %3313 = vmatmul.mubr.bf16.vlgmr.msra.gmra.mxu0 %v5414_v29 }
 0x37b   : > { %v5724_v1 = vadd.f32 %v3068_v42, %v3027_v50  ;;  %3363 = vmatpush1.bf16.msra.mxu0 %v2278_v24  ;;  %3394 = vmatprep.mubr.bf16.mxu0 %v5420_v37  ;;  %v2247_v37 = vunpack.c.h.s8.bf16 %v1567_v43  ;;  %v2246_v50 = vunpack.c.h.s8.bf16 %v1566_v27  ;;  %v1598_v24 = vld [vmem:[%s5148_s30 + $0x9f0] sm:$0xff]  ;;  %v1555_v42 = vld [vmem:[%s5148_s30 + $0x898] sm:$0xff]  ;;  %v2218_v43 = vunpack.c.l.s8.bf16 %v1554_v61 }
 0x37c   : > { %3330 = vmatpush1.bf16.msra.mxu1 %v2198_v54  ;;  %v3070_v19 = vpop.f32.mrf.mxu0  ;;  %3364 = vmatprep.subr.bf16.mxu0 %v2275_v26  ;;  %v1558_v54 = vld [vmem:[%s5148_s30 + $0x8b0] sm:$0xff]  ;;  %v2310_v26 = vunpack.c.h.s8.bf16 %v1598_v24 }
 0x37d   : > { %3331 = vmatprep.subr.bf16.mxu1 %v2195_v25  ;;  %v5728_v16 = vadd.f32 %v3070_v19, %v3029_v46  ;;  %v2259_v46 = vunpack.c.l.s8.bf16 %v1575_v10  ;;  %v2230_v25 = vunpack.c.h.s8.bf16 %v1558_v54  ;;  %v2306_v19 = vunpack.c.l.s8.bf16 %v1598_v24  ;;  %v1646_v24 = vld [vmem:[%s5148_s30 + $0xb70] sm:$0xff] }
 0x37e   : > { %v3072_v29 = vpop.f32.mrf.mxu0  ;;  %v2298_v10 = vunpack.c.l.s8.bf16 %v1594_v35 }
 0x37f   : > { %3365 = vmatpush1.bf16.msra.mxu0 %v2274_v11  ;;  %v2226_v11 = vunpack.c.l.s8.bf16 %v1558_v54  ;;  %v2222_v29 = vunpack.c.h.s8.bf16 %v1554_v61  ;;  %v1606_v54 = vld [vmem:[%s5148_s30 + $0xa30] sm:$0xff] }
 0x380   : > { %3332 = vmatpush1.bf16.msra.mxu1 %v2194_v15  ;;  %v3073_v53 = vpop.f32.mrf.mxu0  ;;  %3366 = vmatprep.subr.bf16.mxu0 %v2271_v34  ;;  %v1595_v15 = vld [vmem:[%s5148_s30 + $0x9d8] sm:$0xff] }
 0x381   : > { %3333 = vmatprep.subr.bf16.mxu1 %v2191_v33  ;;  %v2223_v33 = vunpack.c.h.s8.bf16 %v1555_v42  ;;  %v2303_v34 = vunpack.c.h.s8.bf16 %v1595_v15  ;;  %v2299_v53 = vunpack.c.l.s8.bf16 %v1595_v15  ;;  %v1643_v15 = vld [vmem:[%s5148_s30 + $0xb58] sm:$0xff] }
 0x383   : > { %3367 = vmatpush1.bf16.msra.mxu0 %v2270_v59  ;;  %v2219_v59 = vunpack.c.l.s8.bf16 %v1555_v42  ;;  %v1603_v42 = vld [vmem:[%s5148_s30 + $0xa18] sm:$0xff] }
 0x384   : > { %3334 = vmatpush1.bf16.msra.mxu1 %v2190_v57  ;;  %3368 = vmatprep.subr.bf16.mxu0 %v2267_v40  ;;  %v2302_v57 = vunpack.c.h.s8.bf16 %v1594_v35  ;;  %v1615_v40 = vld [vmem:[%s5148_s30 + $0xa78] sm:$0xff]  ;;  %v2319_v35 = vunpack.c.h.s8.bf16 %v1603_v42 }
 0x385   : > { %3335 = vmatprep.subr.bf16.mxu1 %v2187_v38  ;;  %v1591_v38 = vld [vmem:[%s5148_s30 + $0x9b8] sm:$0xff] }
 0x387   : > { %3369 = vmatpush1.bf16.msra.mxu0 %v2266_v8  ;;  %v2343_v8 = vunpack.c.h.s8.bf16 %v1615_v40 }
 0x388   : > { %3336 = vmatpush1.bf16.msra.mxu1 %v2186_v41  ;;  %3370 = vmatprep.subr.bf16.mxu0 %v2263_v14  ;;  %v2295_v41 = vunpack.c.h.s8.bf16 %v1591_v38  ;;  %v1614_v14 = vld [vmem:[%s5148_s30 + $0xa70] sm:$0xff] }
 0x389   : > { %3337 = vmatprep.subr.bf16.mxu1 %v2247_v37  ;;  %v1590_v37 = vld [vmem:[%s5148_s30 + $0x9b0] sm:$0xff]  ;;  %v2342_v48 = vunpack.c.h.s8.bf16 %v1614_v14 }
 0x38a   : > { %v2294_v27 = vunpack.c.h.s8.bf16 %v1590_v37 }
 0x38b   : > { %3371 = vmatpush1.bf16.msra.mxu0 %v2262_v51  ;;  %v2339_v51 = vunpack.c.l.s8.bf16 %v1615_v40 }
 0x38c   : > { %3338 = vmatpush2.bf16.msra.mxu1 %v2246_v50  ;;  %3372 = vmatprep.subr.bf16.mxu0 %v2259_v46  ;;  %v2291_v50 = vunpack.c.l.s8.bf16 %v1591_v38  ;;  %v1611_v46 = vld [vmem:[%s5148_s30 + $0xa58] sm:$0xff] }
 0x38d   : > { %3339 = vmatprep.subr.bf16.mxu1 %v2243_v52  ;;  %v1587_v52 = vld [vmem:[%s5148_s30 + $0x998] sm:$0xff]  ;;  %v2335_v28 = vunpack.c.h.s8.bf16 %v1611_v46  ;;  %v2331_v9 = vunpack.c.l.s8.bf16 %v1611_v46 }
 0x38e   : > { %v2283_v6 = vunpack.c.l.s8.bf16 %v1587_v52 }
 0x38f   : > { %3373 = vmatpush1.bf16.msra.mxu0 %v2258_v32  ;;  %v2338_v32 = vunpack.c.l.s8.bf16 %v1614_v14 }
 0x390   : > { %3340 = vmatpush2.bf16.msra.mxu1 %v2242_v18  ;;  %3374 = vmatprep.subr.bf16.mxu0 %v2255_v55  ;;  %v2290_v18 = vunpack.c.l.s8.bf16 %v1590_v37  ;;  %v2287_v55 = vunpack.c.h.s8.bf16 %v1587_v52  ;;  %v1639_v37 = vld [vmem:[%s5148_s30 + $0xb38] sm:$0xff] }
 0x391   : > { %3341 = vmatprep.subr.bf16.mxu1 %v2239_v22 }
 0x393   : > { %3375 = vmatpush1.bf16.msra.mxu0 %v2254_v5 }
 0x394   : > { %3342 = vmatpush2.bf16.msra.mxu1 %v2238_v7  ;;  %3376 = vmatprep.subr.bf16.mxu0 %v2251_v3  ;;  %v1610_v7 = vld [vmem:[%s5148_s30 + $0xa50] sm:$0xff] }
 0x395   : > { %3343 = vmatprep.subr.bf16.mxu1 %v2235_v0  ;;  %v2334_v0 = vunpack.c.h.s8.bf16 %v1610_v7 }
 0x397   : > { %3377 = vmatpush1.bf16.msra.mxu0 %v2250_v12  ;;  %v1647_v12 = vld [vmem:[%s5148_s30 + $0xb78] sm:$0xff] }
 0x398   : > { %3344 = vmatpush2.bf16.msra.mxu1 %v2234_v36  ;;  %3378 = vmatprep.subr.bf16.mxu0 %v2311_v13  ;;  %v1607_v36 = vld [vmem:[%s5148_s30 + $0xa38] sm:$0xff]  ;;  %v2407_v13 = vunpack.c.h.s8.bf16 %v1647_v12 }
 0x399   : > { %3345 = vmatprep.subr.bf16.mxu1 %v2231_v62  ;;  %v2282_v62 = vunpack.c.l.s8.bf16 %v1586_v56 }
 0x39b   : > { %3379 = vmatpush2.bf16.msra.mxu0 %v2310_v26  ;;  %v2406_v26 = vunpack.c.h.s8.bf16 %v1646_v24 }
 0x39c   : > { %3346 = vmatpush2.bf16.msra.mxu1 %v2230_v25  ;;  %3380 = vmatprep.subr.bf16.mxu0 %v2307_v4  ;;  %v2326_v25 = vunpack.c.h.s8.bf16 %v1606_v54  ;;  %v2403_v4 = vunpack.c.l.s8.bf16 %v1647_v12 }
 0x39d   : > { %3347 = vmatprep.subr.bf16.mxu1 %v2227_v60  ;;  %v2323_v60 = vunpack.c.l.s8.bf16 %v1607_v36 }
 0x39f   : > { %3381 = vmatpush2.bf16.msra.mxu0 %v2306_v19 }
 0x3a0   : > { %3348 = vmatpush2.bf16.msra.mxu1 %v2226_v11  ;;  %3382 = vmatprep.subr.bf16.mxu0 %v2303_v34  ;;  %v2402_v34 = vunpack.c.l.s8.bf16 %v1646_v24 }
 0x3a1   : > { %3349 = vmatprep.subr.bf16.mxu1 %v2223_v33  ;;  %v2322_v33 = vunpack.c.l.s8.bf16 %v1606_v54 }
 0x3a3   : > { %3383 = vmatpush2.bf16.msra.mxu0 %v2302_v57  ;;  %v1602_v57 = vld [vmem:[%s5148_s30 + $0xa10] sm:$0xff] }
 0x3a4   : > { %3350 = vmatpush2.bf16.msra.mxu1 %v2222_v29  ;;  %3384 = vmatprep.subr.bf16.mxu0 %v2299_v53  ;;  %v2399_v29 = vunpack.c.h.s8.bf16 %v1643_v15  ;;  %v2318_v38 = vunpack.c.h.s8.bf16 %v1602_v57  ;;  %v2314_v14 = vunpack.c.l.s8.bf16 %v1602_v57 }
 0x3a5   : > { %3351 = vmatprep.subr.bf16.mxu1 %v2219_v59  ;;  %v1642_v59 = vld [vmem:[%s5148_s30 + $0xb50] sm:$0xff] }
 0x3a6   : > { %v2398_v40 = vunpack.c.h.s8.bf16 %v1642_v59 }
 0x3a7   : > { %3385 = vmatpush2.bf16.msra.mxu0 %v2298_v10  ;;  %v2315_v10 = vunpack.c.l.s8.bf16 %v1603_v42 }
 0x3a8   : > { %3352 = vmatpush2.bf16.msra.mxu1 %v2218_v43  ;;  %3386 = vmatprep.subr.bf16.mxu0 %v2295_v41  ;;  %v2395_v41 = vunpack.c.l.s8.bf16 %v1643_v15 }
 0x3a9   : > { %3403 = vmatprep.subr.bf16.mxu1 %v2343_v8  ;;  %v1631_v8 = vld [vmem:[%s5148_s30 + $0xaf8] sm:$0xff] }
 0x3ab   : > { %v3109_v45 = vpop.f32.mrf.mxu1  ;;  %3354 = vmatmul.mubr.bf16.vlgmr.msra.gmra.mxu1 %v5475_v58  ;;  %3387 = vmatpush2.bf16.msra.mxu0 %v2294_v27  ;;  %v2394_v27 = vunpack.c.l.s8.bf16 %v1642_v59 }
 0x3ac   : > { %v3110_v49 = vadd.f32 %v3109_v45, %v5724_v1  ;;  %3404 = vmatpush1.bf16.msra.mxu1 %v2342_v48  ;;  %3388 = vmatprep.subr.bf16.mxu0 %v2291_v50  ;;  %v2286_v1 = vunpack.c.h.s8.bf16 %v1586_v56  ;;  %v2391_v48 = vunpack.c.h.s8.bf16 %v1639_v37  ;;  %v1630_v50 = vld [vmem:[%s5148_s30 + $0xaf0] sm:$0xff]  ;;  %v2371_v45 = vunpack.c.l.s8.bf16 %v1631_v8 }
 0x3ad   : > { %v3111_v22 = vpop.f32.mrf.mxu1  ;;  %3405 = vmatprep.subr.bf16.mxu1 %v2339_v51  ;;  %3435 = vmatprep.mubr.bf16.mxu1 %v5483_v30  ;;  %v2327_v30 = vunpack.c.h.s8.bf16 %v1607_v36  ;;  %v1638_v51 = vld [vmem:[%s5148_s30 + $0xb30] sm:$0xff]  ;;  %v2374_v52 = vunpack.c.h.s8.bf16 %v1630_v50 }
 0x3ae   : > { %v3112_v5 = vadd.f32 %v3111_v22, %v5728_v16  ;;  %v2330_v16 = vunpack.c.l.s8.bf16 %v1610_v7  ;;  %v2390_v46 = vunpack.c.h.s8.bf16 %v1638_v51  ;;  %v2370_v22 = vunpack.c.l.s8.bf16 %v1630_v50  ;;  %v1626_v7 = vld [vmem:[%s5148_s30 + $0xad0] sm:$0xff] }
 0x3af   : > { %v3113_v58 = vpop.f32.mrf.mxu1  ;;  %3389 = vmatpush2.bf16.msra.mxu0 %v2290_v18  ;;  %v1627_v18 = vld [vmem:[%s5148_s30 + $0xad8] sm:$0xff]  ;;  %v2362_v36 = vunpack.c.l.s8.bf16 %v1626_v7 }
 0x3b0   : > { %3406 = vmatpush1.bf16.msra.mxu1 %v2338_v32  ;;  %3390 = vmatprep.subr.bf16.mxu0 %v2287_v55  ;;  %v1635_v32 = vld [vmem:[%s5148_s30 + $0xb18] sm:$0xff]  ;;  %v2386_v55 = vunpack.c.l.s8.bf16 %v1638_v51  ;;  %v2366_v58 = vunpack.c.h.s8.bf16 %v1626_v7 }
 0x3b1   : > { %v3114_v3 = vpop.f32.mrf.mxu1  ;;  %3407 = vmatprep.subr.bf16.mxu1 %v2335_v28  ;;  %v2367_v28 = vunpack.c.h.s8.bf16 %v1627_v18  ;;  %v2383_v56 = vunpack.c.h.s8.bf16 %v1635_v32 }
 0x3b2   : > { %v2379_v3 = vunpack.c.l.s8.bf16 %v1635_v32 }
 0x3b3   : > { %3391 = vmatpush2.bf16.msra.mxu0 %v2286_v1 }
 0x3b4   : > { %3408 = vmatpush1.bf16.msra.mxu1 %v2334_v0  ;;  %3392 = vmatprep.subr.bf16.mxu0 %v2283_v6  ;;  %v2363_v0 = vunpack.c.l.s8.bf16 %v1627_v18  ;;  %v1623_v6 = vld [vmem:[%s5148_s30 + $0xab8] sm:$0xff] }
 0x3b5   : > { %3409 = vmatprep.subr.bf16.mxu1 %v2331_v9  ;;  %v1663_v9 = vld [vmem:[%s5148_s30 + $0xbf8] sm:$0xff] }
 0x3b7   : > { %3393 = vmatpush2.bf16.msra.mxu0 %v2282_v62  ;;  %v2359_v62 = vunpack.c.h.s8.bf16 %v1623_v6 }
 0x3b8   : > { %3410 = vmatpush1.bf16.msra.mxu1 %v2330_v16  ;;  %3444 = vmatprep.subr.bf16.mxu0 %v2407_v13  ;;  %v2439_v16 = vunpack.c.h.s8.bf16 %v1663_v9  ;;  %v1662_v13 = vld [vmem:[%s5148_s30 + $0xbf0] sm:$0xff] }
 0x3b9   : > { %3411 = vmatprep.subr.bf16.mxu1 %v2327_v30  ;;  %v1622_v30 = vld [vmem:[%s5148_s30 + $0xab0] sm:$0xff]  ;;  %v2438_v24 = vunpack.c.h.s8.bf16 %v1662_v13  ;;  %v2434_v15 = vunpack.c.l.s8.bf16 %v1662_v13 }
 0x3ba   : > { %v3150_v11 = vpop.f32.mrf.mxu0  ;;  %3395 = vmatmul.mubr.bf16.vlgmr.msra.gmra.mxu0 %v5479_v21  ;;  %v2358_v54 = vunpack.c.h.s8.bf16 %v1622_v30  ;;  %v2354_v42 = vunpack.c.l.s8.bf16 %v1622_v30  ;;  %v4178_v30 = vld [vmem:[%s5146_s29 + $0x38] sm:$0xff]   ;;  %v4179_v13 = vld [vmem:[%s5146_s29 + $0x70] sm:$0xff]  }
 0x3bb   : > { %v5766_v19 = vadd.f32 %v3150_v11, %v3110_v49  ;;  %3445 = vmatpush1.bf16.msra.mxu0 %v2406_v26  ;;  %3476 = vmatprep.mubr.bf16.mxu0 %v5485_v31  ;;  %v2375_v31 = vunpack.c.h.s8.bf16 %v1631_v8  ;;  %v2387_v49 = vunpack.c.l.s8.bf16 %v1639_v37  ;;  %v2435_v26 = vunpack.c.l.s8.bf16 %v1663_v9  ;;  %v1654_v8 = vld [vmem:[%s5148_s30 + $0xbb0] sm:$0xff] }
 0x3bc   : > { %3412 = vmatpush1.bf16.msra.mxu1 %v2326_v25  ;;  %v3152_v61 = vpop.f32.mrf.mxu0  ;;  %3446 = vmatprep.subr.bf16.mxu0 %v2403_v4  ;;  %v2355_v25 = vunpack.c.l.s8.bf16 %v1623_v6  ;;  %v1659_v4 = vld [vmem:[%s5148_s30 + $0xbd8] sm:$0xff]  ;;  %v1670_v37 = vld [vmem:[%s5148_s30 + $0xc30] sm:$0xff]  ;;  %v2418_v32 = vunpack.c.l.s8.bf16 %v1654_v8 }
 0x3bd   : > { %3413 = vmatprep.subr.bf16.mxu1 %v2323_v60  ;;  %v5770_v53 = vadd.f32 %v3152_v61, %v3112_v5  ;;  %v1634_v5 = vld [vmem:[%s5148_s30 + $0xb10] sm:$0xff]  ;;  %v1619_v60 = vld [vmem:[%s5148_s30 + $0xa98] sm:$0xff]  ;;  %v2427_v59 = vunpack.c.l.s8.bf16 %v1659_v4 }
 0x3be   : > { %v3154_v21 = vpop.f32.mrf.mxu0  ;;  %v2382_v1 = vunpack.c.h.s8.bf16 %v1634_v5  ;;  %v2378_v12 = vunpack.c.l.s8.bf16 %v1634_v5  ;;  %v2351_v11 = vunpack.c.h.s8.bf16 %v1619_v60  ;;  %v1658_v61 = vld [vmem:[%s5148_s30 + $0xbd0] sm:$0xff]  ;;  %v2347_v57 = vunpack.c.l.s8.bf16 %v1619_v60 }
 0x3bf   : > { %3447 = vmatpush1.bf16.msra.mxu0 %v2402_v34  ;;  %v1618_v34 = vld [vmem:[%s5148_s30 + $0xa90] sm:$0xff]  ;;  %v1655_v21 = vld [vmem:[%s5148_s30 + $0xbb8] sm:$0xff] }
 0x3c0   : > { %3414 = vmatpush1.bf16.msra.mxu1 %v2322_v33  ;;  %v3155_v43 = vpop.f32.mrf.mxu0  ;;  %3448 = vmatprep.subr.bf16.mxu0 %v2399_v29  ;;  %v2431_v33 = vunpack.c.h.s8.bf16 %v1659_v4  ;;  %v2430_v29 = vunpack.c.h.s8.bf16 %v1658_v61  ;;  %v2419_v50 = vunpack.c.l.s8.bf16 %v1655_v21  ;;  %v1650_v5 = vld [vmem:[%s5148_s30 + $0xb90] sm:$0xff]  ;;  %v4181_v4 = vld [vmem:[%s5146_s29 + $0x68] sm:$0xff]  }
 0x3c1   : > { %3415 = vmatprep.subr.bf16.mxu1 %v2319_v35  ;;  %v2350_v35 = vunpack.c.h.s8.bf16 %v1618_v34  ;;  %v2426_v43 = vunpack.c.l.s8.bf16 %v1658_v61  ;;  %v4185_v61 = vld [vmem:[%s5146_s29 + $0x58] sm:$0xff]  }
 0x3c3   : > { %3449 = vmatpush1.bf16.msra.mxu0 %v2398_v40  ;;  %v2346_v40 = vunpack.c.l.s8.bf16 %v1618_v34  ;;  %v3530_v34 = vsub.s32 0, %v5167_v47 }
 0x3c4   : > { %3416 = vmatpush1.bf16.msra.mxu1 %v2318_v38  ;;  %3450 = vmatprep.subr.bf16.mxu0 %v2395_v41  ;;  %v1671_v38 = vld [vmem:[%s5148_s30 + $0xc38] sm:$0xff] }
 0x3c5   : > { %3417 = vmatprep.subr.bf16.mxu1 %v2315_v10  ;;  %v2423_v10 = vunpack.c.h.s8.bf16 %v1655_v21  ;;  %v2455_v41 = vunpack.c.h.s8.bf16 %v1671_v38  ;;  %v2451_v51 = vunpack.c.l.s8.bf16 %v1671_v38 }
 0x3c7   : > { %3451 = vmatpush1.bf16.msra.mxu0 %v2394_v27  ;;  %v2422_v27 = vunpack.c.h.s8.bf16 %v1654_v8  ;;  %v4192_v8 = vld [vmem:[%s5146_s29] sm:$0xff]  }
 0x3c8   : > { %3418 = vmatpush1.bf16.msra.mxu1 %v2314_v14  ;;  %3452 = vmatprep.subr.bf16.mxu0 %v2391_v48  ;;  %v3534_v14 = vsub.s32 1, %v5167_v47  ;;  %v5799_v48 = vld [vmem:[%s1088_s18] sm:$0xf] }
 0x3c9   : > { %3419 = vmatprep.subr.bf16.mxu1 %v2375_v31  ;;  %v2454_v31 = vunpack.c.h.s8.bf16 %v1670_v37 }
 0x3cb   : > { %3453 = vmatpush1.bf16.msra.mxu0 %v2390_v46  ;;  %v1651_v46 = vld [vmem:[%s5148_s30 + $0xb98] sm:$0xff] }
 0x3cc   : > { %3420 = vmatpush2.bf16.msra.mxu1 %v2374_v52  ;;  %3454 = vmatprep.subr.bf16.mxu0 %v2387_v49  ;;  %v3535_v52 = vrot.slane %v5799_v48, %v3534_v14 }
 0x3cd   : > { %3421 = vmatprep.subr.bf16.mxu1 %v2371_v45  ;;  %v1667_v45 = vld [vmem:[%s5148_s30 + $0xc18] sm:$0xff] }
 0x3ce   : > { %v2447_v7 = vunpack.c.h.s8.bf16 %v1667_v45 }
 0x3cf   : > { %3455 = vmatpush1.bf16.msra.mxu0 %v2386_v55  ;;  %v5811_v55 = vld [vmem:[%s1093_s23] sm:$0xf] }
 0x3d0   : > { %3422 = vmatpush2.bf16.msra.mxu1 %v2370_v22  ;;  %3456 = vmatprep.subr.bf16.mxu0 %v2383_v56  ;;  %v2450_v22 = vunpack.c.l.s8.bf16 %v1670_v37  ;;  %v2415_v56 = vunpack.c.h.s8.bf16 %v1651_v46  ;;  %v3557_v38 = vrot.slane %v5811_v55, %v3530_v34 }
 0x3d1   : > { %3423 = vmatprep.subr.bf16.mxu1 %v2367_v28 }
 0x3d3   : > { %3457 = vmatpush1.bf16.msra.mxu0 %v2382_v1 }
 0x3d4   : > { %3424 = vmatpush2.bf16.msra.mxu1 %v2366_v58  ;;  %3458 = vmatprep.subr.bf16.mxu0 %v2379_v3  ;;  %v1666_v58 = vld [vmem:[%s5148_s30 + $0xc10] sm:$0xff]  ;;  %v2414_v3 = vunpack.c.h.s8.bf16 %v1650_v5 }
 0x3d5   : > { %3425 = vmatprep.subr.bf16.mxu1 %v2363_v0  ;;  %v2446_v6 = vunpack.c.h.s8.bf16 %v1666_v58 }
 0x3d7   : > { %3459 = vmatpush1.bf16.msra.mxu0 %v2378_v12  ;;  %v2443_v12 = vunpack.c.l.s8.bf16 %v1667_v45  ;;  %v4196_v45 = vld [vmem:[%s5146_s29 + $0xb0] sm:$0xff]  }
 0x3d8   : > { %3426 = vmatpush2.bf16.msra.mxu1 %v2362_v36  ;;  %3460 = vmatprep.subr.bf16.mxu0 %v2439_v16  ;;  %v2411_v36 = vunpack.c.l.s8.bf16 %v1651_v46 }
 0x3d9   : > { %3427 = vmatprep.subr.bf16.mxu1 %v2359_v62  ;;  %v2410_v62 = vunpack.c.l.s8.bf16 %v1650_v5  ;;  %v4202_v5 = vld [vmem:[%s5146_s29 + $0x98] sm:$0xff]  }
 0x3db   : > { %3461 = vmatpush2.bf16.msra.mxu0 %v2438_v24 }
 0x3dc   : > { %3428 = vmatpush2.bf16.msra.mxu1 %v2358_v54  ;;  %3462 = vmatprep.subr.bf16.mxu0 %v2435_v26  ;;  %v4180_v26 = vld [vmem:[%s5146_s29 + $0x30] sm:$0xff]  }
 0x3dd   : > { %3429 = vmatprep.subr.bf16.mxu1 %v2355_v25 }
 0x3df   : > { %3463 = vmatpush2.bf16.msra.mxu0 %v2434_v15 }
 0x3e0   : > { %3430 = vmatpush2.bf16.msra.mxu1 %v2354_v42  ;;  %3464 = vmatprep.subr.bf16.mxu0 %v2431_v33  ;;  %v4183_v33 = vld [vmem:[%s5146_s29 + $0x60] sm:$0xff]  }
 0x3e1   : > { %3431 = vmatprep.subr.bf16.mxu1 %v2351_v11  ;;  %v4182_v11 = vld [vmem:[%s5146_s29 + $0x28] sm:$0xff]  }
 0x3e3   : > { %3465 = vmatpush2.bf16.msra.mxu0 %v2430_v29  ;;  %v3531_v29 = vrot.slane %v5799_v48, %v3530_v34 }
 0x3e4   : > { %3432 = vmatpush2.bf16.msra.mxu1 %v2350_v35  ;;  %3466 = vmatprep.subr.bf16.mxu0 %v2427_v59  ;;  %v4186_v35 = vld [vmem:[%s5146_s29 + $0x18] sm:$0xff]   ;;  %v4188_v59 = vld [vmem:[%s5146_s29 + $0x10] sm:$0xff]  }
 0x3e5   : > { %3433 = vmatprep.subr.bf16.mxu1 %v2347_v57  ;;  %v4187_v57 = vld [vmem:[%s5146_s29 + $0x50] sm:$0xff]   ;;  %v3548_v21 = vmul.f32 %v3531_v29, %v5684_v23  ;;  %v4193_v23 = vld [vmem:[%s5146_s29 + $0xf8] sm:$0xff]  }
 0x3e7   : > { %3467 = vmatpush2.bf16.msra.mxu0 %v2426_v43  ;;  %v4190_v43 = vld [vmem:[%s5146_s29 + $0x8] sm:$0xff]  }
 0x3e8   : > { %3434 = vmatpush2.bf16.msra.mxu1 %v2346_v40  ;;  %3468 = vmatprep.subr.bf16.mxu0 %v2423_v10  ;;  %v4189_v40 = vld [vmem:[%s5146_s29 + $0x48] sm:$0xff]   ;;  %v3574_v10 = vadd.f32 %v3557_v38, %v3548_v21 }
 0x3e9   : > { %3493 = vmatprep.subr.bf16.mxu1 %v2455_v41  ;;  %v4191_v41 = vld [vmem:[%s5146_s29 + $0x40] sm:$0xff]  }
 0x3ea   : > { %v3578_v37 = vmax.f32 %v3574_v10, 0.0 }
 0x3eb   : > { %v3191_v49 = vpop.f32.mrf.mxu1  ;;  %3436 = vmatmul.mubr.bf16.vlgmr.msra.gmra.mxu1 %v5529_v17  ;;  %3469 = vmatpush2.bf16.msra.mxu0 %v2422_v27  ;;  %v3549_v17 = vmul.f32 %v3535_v52, %v5688_v2  ;;  %v4194_v27 = vld [vmem:[%s5146_s29 + $0xb8] sm:$0xff]   ;;  %v4195_v52 = vld [vmem:[%s5146_s29 + $0xf0] sm:$0xff]  }
 0x3ec   : > { %v3192_v18 = vadd.f32 %v3191_v49, %v5766_v19  ;;  %3494 = vmatpush1.bf16.msra.mxu1 %v2454_v31  ;;  %3470 = vmatprep.subr.bf16.mxu0 %v2419_v50  ;;  %v3561_v19 = vrot.slane %v5811_v55, %v3534_v14  ;;  %v3583_v14 = vpack.c.bf16 %v3578_v37, %v3578_v37 }
 0x3ed   : > { %v3193_v28 = vpop.f32.mrf.mxu1  ;;  %3495 = vmatprep.subr.bf16.mxu1 %v2451_v51  ;;  %3517 = vmatprep.mubr.bf16.mxu1 %v4267_v44  ;;  %v4177_v44 = vld [vmem:[%s5146_s29 + $0x78] sm:$0xff]  }
 0x3ee   : > { %v3194_v1 = vadd.f32 %v3193_v28, %v5770_v53  ;;  %v3575_v2 = vadd.f32 %v3561_v19, %v3549_v17  ;;  %v2442_v53 = vunpack.c.l.s8.bf16 %v1666_v58  ;;  %v4199_v28 = vld [vmem:[%s5146_s29 + $0xe0] sm:$0xff]  }
 0x3ef   : > { %v3195_v0 = vpop.f32.mrf.mxu1  ;;  %3471 = vmatpush2.bf16.msra.mxu0 %v2418_v32  ;;  %v4197_v32 = vld [vmem:[%s5146_s29 + $0xe8] sm:$0xff]  }
 0x3f0   : > { %3496 = vmatpush1.bf16.msra.mxu1 %v2450_v22  ;;  %3472 = vmatprep.subr.bf16.mxu0 %v2415_v56  ;;  %v3579_v16 = vmax.f32 %v3575_v2, 0.0  ;;  %v4198_v22 = vld [vmem:[%s5146_s29 + $0xa8] sm:$0xff]   ;;  %v4200_v56 = vld [vmem:[%s5146_s29 + $0xa0] sm:$0xff]  }
 0x3f1   : > { %v3196_v9 = vpop.f32.mrf.mxu1  ;;  %3497 = vmatprep.subr.bf16.mxu1 %v2447_v7  ;;  %v4201_v7 = vld [vmem:[%s5146_s29 + $0xd8] sm:$0xff]   ;;  %v4207_v2 = vld [vmem:[%s5146_s29 + $0xc0] sm:$0xff]  }
 0x3f2   : > { %v3584_v54 = vpack.c.bf16 %v3579_v16, %v3579_v16 }
 0x3f3   : > { %3473 = vmatpush2.bf16.msra.mxu0 %v2414_v3  ;;  %v4204_v3 = vld [vmem:[%s5146_s29 + $0x90] sm:$0xff]  }
 0x3f4   : > { %3498 = vmatpush1.bf16.msra.mxu1 %v2446_v6  ;;  %3474 = vmatprep.subr.bf16.mxu0 %v2411_v36  ;;  %v4205_v36 = vld [vmem:[%s5146_s29 + $0xc8] sm:$0xff]  }
 0x3f5   : > { %3499 = vmatprep.subr.bf16.mxu1 %v2443_v12  ;;  %v4206_v12 = vld [vmem:[%s5146_s29 + $0x88] sm:$0xff]  }
 0x3f7   : > { %3475 = vmatpush2.bf16.msra.mxu0 %v2410_v62  ;;  %v4208_v62 = vld [vmem:[%s5146_s29 + $0x80] sm:$0xff]  }
 0x3f8   : > { %3500 = vmatpush1.bf16.msra.mxu1 %v2442_v53  ;;  %4091 = vmatprep.subr.bf16.mxu0 %v4177_v44 }
 0x3f9   : > { %4113 = vmatprep.subr.bf16.mxu1 %v4193_v23 }
 0x3fa   : > { %v3232_v24 = vpop.f32.mrf.mxu0  ;;  %3477 = vmatmul.mubr.bf16.vlgmr.msra.gmra.mxu0 %v5533_v20 }
 0x3fb   : > { %4051 = vmatmul.mubr.msk.bf16.vlgmr.msra.gmra.mxu1 %vm2456_vm0, %v5556_v63  ;;  %v3233_v25 = vadd.f32 %v3232_v24, %v3192_v18  ;;  %4092 = vmatpush3.bf16.msra.mxu0 %v4178_v30  ;;  %v4184_v63 = vld [vmem:[%s5146_s29 + $0x20] sm:$0xff]  }
 0x3fc   : > { %3875 = vmatprep.mubr.bf16.mxu0 %v3584_v54  ;;  %v3234_v60 = vpop.f32.mrf.mxu0  ;;  %4093 = vmatprep.subr.bf16.mxu0 %v4179_v13 }
 0x3fd   : > { %v3235_v42 = vadd.f32 %v3234_v60, %v3194_v1  ;;  %4114 = vmatpush3.bf16.msra.mxu1 %v4194_v27  ;;  %v4203_v1 = vld [vmem:[%s5146_s29 + $0xd0] sm:$0xff]  }
 0x3fe   : > { %v3236_v15 = vpop.f32.mrf.mxu0  ;;  %4115 = vmatprep.subr.bf16.mxu1 %v4195_v52 }
 0x3ff   : > { %4094 = vmatpush3.bf16.msra.mxu0 %v4180_v26 }
 0x400   : > { %v3237_v20 = vpop.f32.mrf.mxu0  ;;  %4095 = vmatprep.subr.bf16.mxu0 %v4181_v4 }
 0x401   : > { %4116 = vmatpush3.bf16.msra.mxu1 %v4196_v45 }
 0x402   : > { %4117 = vmatprep.subr.bf16.mxu1 %v4197_v32 }
 0x403   : > { %4096 = vmatpush3.bf16.msra.mxu0 %v4182_v11 }
 0x404   : > { %4097 = vmatprep.subr.bf16.mxu0 %v4183_v33  ;;  %v3538_v33 = vsub.s32 2, %v5167_v47 }
 0x405   : > { %4118 = vmatpush3.bf16.msra.mxu1 %v4198_v22 }
 0x406   : > { %4119 = vmatprep.subr.bf16.mxu1 %v4199_v28  ;;  %v3539_v21 = vrot.slane %v5799_v48, %v3538_v33  ;;  %v3565_v10 = vrot.slane %v5811_v55, %v3538_v33 }
 0x407   : > { %4098 = vmatpush3.bf16.msra.mxu0 %v4184_v63 }
 0x408   : > { %4099 = vmatprep.subr.bf16.mxu0 %v4185_v61  ;;  %v3542_v61 = vsub.s32 3, %v5167_v47 }
 0x409   : > { %4120 = vmatpush3.bf16.msra.mxu1 %v4200_v56 }
 0x40a   : > { %4121 = vmatprep.subr.bf16.mxu1 %v4201_v7  ;;  %v3569_v47 = vrot.slane %v5811_v55, %v3542_v61  ;;  %v3582_v55 = vld [vmem:[#allocation2] sm:$0x3] }
 0x40b   : > { %4100 = vmatpush3.bf16.msra.mxu0 %v4186_v35 }
 0x40c   : > { %4101 = vmatprep.subr.bf16.mxu0 %v4187_v57 }
 0x40d   : > { %4122 = vmatpush3.bf16.msra.mxu1 %v4202_v5 }
 0x40e   : > { %4123 = vmatprep.subr.bf16.mxu1 %v4203_v1 }
 0x40f   : > { %4102 = vmatpush3.bf16.msra.mxu0 %v4188_v59 }
 0x410   : > { %4103 = vmatprep.subr.bf16.mxu0 %v4189_v40 }
 0x411   : > { %4124 = vmatpush3.bf16.msra.mxu1 %v4204_v3 }
 0x412   : > { %4125 = vmatprep.subr.bf16.mxu1 %v4205_v36 }
 0x413   : > { %4104 = vmatpush3.bf16.msra.mxu0 %v4190_v43 }
 0x414   : > { %4105 = vmatprep.subr.bf16.mxu0 %v4191_v41 }
 0x415   : > { %4126 = vmatpush3.bf16.msra.mxu1 %v4206_v12 }
 0x416   : > { %4127 = vmatprep.subr.bf16.mxu1 %v4207_v2 }
 0x417   : > { %4106 = vmatpush3.bf16.msra.mxu0 %v4192_v8  ;;  %v3543_v8 = vrot.slane %v5799_v48, %v3542_v61 }
 0x419   : > { %4128 = vmatpush3.bf16.msra.mxu1 %v4208_v62 }
 0x41a   : > { %3876 = vmatmul.mubr.bf16.vlgmr.msra.gmra.mxu0 %v3583_v14 }
 0x42b   : > { %v3273_v31 = vpop.f32.mrf.mxu1 }
 0x42c   : > { %v3274_v50 = vadd.f32 %v3273_v31, %v3233_v25 }
 0x42d   : > { %v3275_v51 = vpop.f32.mrf.mxu1 }
 0x42e   : > { %v3276_v46 = vadd.f32 %v3275_v51, %v3235_v42 }
 0x42f   : > { %v3277_v49 = vpop.f32.mrf.mxu1 }
 0x431   : > { %v3278_v18 = vpop.f32.mrf.mxu1 }
 0x43a   : > { %v3314_v58 = vpop.f32.mrf.mxu0 }
 0x43b   : > { %v3315_v17 = vadd.f32 %v3314_v58, %v3274_v50 }
 0x43c   : > { %v3316_v19 = vpop.f32.mrf.mxu0 }
 0x43d   : > { %v3317_v0 = vadd.f32 %v3316_v19, %v3276_v46 }
 0x43e   : > { %v3318_v6 = vpop.f32.mrf.mxu0 }
 0x440   : > { %v3319_v9 = vpop.f32.mrf.mxu0 }
 0x46b   : > { %v3355_v53 = vpop.f32.mrf.mxu1 }
 0x46c   : > { %v3356_v44 = vadd.f32 %v3355_v53, %v3315_v17 }
 0x46d   : > { %v3357_v16 = vpop.f32.mrf.mxu1 }
 0x46e   : > { %v3358_v30 = vadd.f32 %v3357_v16, %v3317_v0 }
 0x46f   : > { %v3359_v13 = vpop.f32.mrf.mxu1 }
 0x471   : > { %v3360_v54 = vpop.f32.mrf.mxu1 }
 0x47a   : > { %v3396_v24 = vpop.f32.mrf.mxu0 }
 0x47b   : > { %v3397_v20 = vadd.f32 %v3396_v24, %v3356_v44 }
 0x47c   : > { %v3398_v25 = vpop.f32.mrf.mxu0 }
 0x47d   : > { %v3399_v63 = vadd.f32 %v3398_v25, %v3358_v30 }
 0x47e   : > { %v3400_v26 = vpop.f32.mrf.mxu0 }
 0x480   : > { %v3401_v60 = vpop.f32.mrf.mxu0 }
 0x4ab   : > { %v3437_v4 = vpop.f32.mrf.mxu1 }
 0x4ac   : > { %v3438_v34 = vadd.f32 %v3437_v4, %v3397_v20 }
 0x4ad   : > { %v3439_v42 = vpop.f32.mrf.mxu1 }
 0x4ae   : > { %v3440_v57 = vadd.f32 %v3439_v42, %v3399_v63 }
 0x4af   : > { %v3441_v15 = vpop.f32.mrf.mxu1 }
 0x4b1   : > { %v3442_v11 = vpop.f32.mrf.mxu1 }
 0x4ba   : > { %v3478_v35 = vpop.f32.mrf.mxu0 }
 0x4bb   : > { %v3519_v29 = vpop.f32.mrf.mxu1  ;;  %v3479_v59 = vadd.f32 %v3478_v35, %v3438_v34 }
 0x4bc   : > { %v3480_v38 = vpop.f32.mrf.mxu0 }
 0x4bd   : > { %v3521_v40 = vpop.f32.mrf.mxu1  ;;  %v3520_v43 = vadd.f32 %v3519_v29, %v3479_v59  ;;  %v3481_v41 = vadd.f32 %v3480_v38, %v3440_v57 }
 0x4be   : > { %v3482_v37 = vpop.f32.mrf.mxu0 }
 0x4bf   : > { %v3523_v14 = vpop.f32.mrf.mxu1  ;;  %v3550_v23 = vmul.f32 %v3539_v21, %v3520_v43  ;;  %v3522_v27 = vadd.f32 %v3521_v40, %v3481_v41 }
 0x4c0   : > { %v3483_v31 = vpop.f32.mrf.mxu0 }
 0x4c1   : > { %v3524_v50 = vpop.f32.mrf.mxu1  ;;  %v3576_v51 = vadd.f32 %v3565_v10, %v3550_v23  ;;  %v3551_v52 = vmul.f32 %v3543_v8, %v3522_v27 }
 0x4c3   : > { %v3577_v46 = vadd.f32 %v3569_v47, %v3551_v52  ;;  %v3580_v45 = vmax.f32 %v3576_v51, 0.0 }
 0x4c5   : > { %v3581_v49 = vmax.f32 %v3577_v46, 0.0  ;;  %v3585_v32 = vpack.c.bf16 %v3580_v45, %v3580_v45 }
 0x4c7   : > { %v3586_v18 = vpack.c.bf16 %v3581_v49, %v3581_v49 }
 0x4c9   : > { %3915 = vmatprep.mubr.bf16.mxu1 %v3586_v18 }
 0x4ca   : > { %3916 = vmatmul.mubr.bf16.vlgmr.msra.gmra.mxu1 %v3585_v32 }
 0x4da   : > { %v4107_v22 = vpop.f32.mrf.mxu0 }
 0x4dc   : > { %v4108_v28 = vpop.f32.mrf.mxu0 }
 0x4dd   : > { %v4109_v48 = vadd.f32 %v4108_v28, %v4107_v22 }
 0x4de   : > { %v4110_v56 = vpop.f32.mrf.mxu0 }
 0x4e0   : > { %v4111_v7 = vpop.f32.mrf.mxu0 }
 0x58a   : > { %v4129_v5 = vpop.f32.mrf.mxu1 }
 0x58c   : > { %v4130_v58 = vpop.f32.mrf.mxu1 }
 0x58d   : > { %v4131_v17 = vadd.f32 %v4130_v58, %v4129_v5 }
 0x58e   : > { %v4132_v19 = vpop.f32.mrf.mxu1 }
 0x58f   : > { %v3918_v1 = vadd.f32 %v4131_v17, %v4109_v48  ;;  %3928 = sbr.rel (%p4084_p11) target bundleno = 1753 (0x6d9), region = 75 }
 0x590   : > { %v4133_v0 = vpop.f32.mrf.mxu1 }
 0x591   : > { %v3923_v3 = vadd.f32 %v3918_v1, %v3582_v55 }
 0x593   : > { %3924 = vst [vmem:[#allocation2] sm:$0x3] %v3923_v3 }
 0x594   : > { %v4085_v9 = vld [vmem:[%s5896_s5] ss:$0 sm:$0xff]  ;;  %v3939_v36 = vand.u32 127, %v1125_v39  ;;  %vm3942_vm1 = vcmask 1041408  }
 0x596   : > { %vm3940_vm2 = vcmp.lt.s32.totalorder %v3939_v36, 10 }
 0x59a   : > { %v3929_v6 = vld [vmem:[#allocation2] sm:$0x3] }
 0x59b   : > { %v3937_v12 = vadd.f32 %v4085_v9, %v3929_v6 }
 0x59d   : > { %v3941_v2 = vsel %vm3940_vm2, %v3937_v12, -1e+30 }
 0x59e   : > { %v3943_v62 = vsel %vm3942_vm1, %v3941_v2, -inf }
 0x59f   : > { %3944 = vmax.xlane.f32.xlu0 %v3943_v62 }
 0x628   : > { %v3945_v53 = vpop.xlane.xlu0 %3944 }
 0x629   : > { %v3946_v44 = vsub.f32 %v3941_v2, %v3945_v53 }
 0x62b   : > { %v3947_v16 = vmul.f32 1.442695, %v3946_v44 }
 0x62d   : > { %4209 = vpow2.f32 %v3947_v16 }
 0x63a   : > { %v4210_v30 = vpop.eup %4209 }
 0x63b   : > { %v3949_v13 = vsel %vm3942_vm1, %v4210_v30, 0.0 }
 0x63c   : > { %3950 = vadd.xlane.f32.xlu0 %v3949_v13 }
 0x6c5   : > { %v3951_v54 = vpop.xlane.xlu0 %3950 }
 0x6c6   : > { %4211 = vlog2.f32 %v3951_v54 }
 0x6d3   : > { %v4212_v24 = vpop.eup %4211 }
 0x6d4   : > { %v3953_v25 = vmul.f32 0.6931472, %v4212_v24 }
 0x6d6   : > { %v3954_v26 = vsub.f32 %v3946_v44, %v3953_v25 }
 0x6d8   : > { %3955 = vst [vmem:[#allocation4] sm:$0x3] %v3954_v26 }
 0x6d9 PF: > { %p4141_p12 = scmp.eq.s32.totalorder %s4320_s24, 1  ;;  %s4268_s29 = smov [#allocation4]  }
 0x6da   : > { %s3963_s30 = sshll.u32 %s4268_s29, 4  ;;  %s3964_s30 = int_to_ptr.vmem [resolvable:$true] %s3963_s30 }
 0x6db   : > { %s4213_s9 = scalar_lea.vmem %s3964_s30, 32  ;;  %p4220_p2 = scmp.lt.s32.totalorder %s3964_s30, %s3964_s30 }
 0x6dc   : > { %p4214_p13 = scmp.ne.s32.totalorder %s3964_s30, %s4213_s9  ;;  %p4221_p3 = scmp.lt.s32.totalorder %s4213_s9, %s4213_s9 }
 0x6de   : > { %p4215_p0 = pnand %p4214_p13, %p4141_p12  ;;  %p4222_p4 = por %p4221_p3, %p4220_p2 }
 0x6e0   : > { %p4216_p1 = pneg %p4215_p0 }
 0x6e2   : > { %p4223_p5 = pnand %p4222_p4, %p4216_p1 }
 0x6e4   : > { %4226 = shalt.err (!%p4223_p5)
}
 0x6e5   : > { %4138 = dma.vmem_to_hbm [thread:$0]  (%p4141_p12), %s3964_s30, 32, %s5897_s6, [#allocation5]  }
 0x6e6   : > { %4250 = dma.done.wait (%p4141_p12), [#allocation5], 32  }
 0x6e7   : > { %4252 = vsyncadd (%p4141_p12), [#allocation5], 4294967264 }
 0x6e8 PF: > { %p14_p6 = scmp.ge.s32.totalorder %s4323_s25, 4   ;;  %s5898_s21 = smov %s4259_s22 }
 0x6e9   : > { %s5899_s22 = smov %s4332_s28  ;;  %s5900_s23 = smov %s4323_s25 }
 0x6ea   :  { %16 = sbr.rel (!%p14_p6) target bundleno = 2 (0x2), region = 116 }
 0x6ef   :  { %3976 = vsyncpa [#allocation5], 1 }
 0x6f0   :  { %3978 = vsyncpa [#allocation5 + $0x1], 1 }

</bundles_post_ra>
